<compile_context>
chip_gen: v7x
topology: tpu7x:2x2x1
jax: 0.10.0
libtpu: 0.0.40
codegen_flags: <defaults>
</compile_context>

<pallas_src>
import jax
import jax.numpy as jnp
from jax.experimental import pallas as pl
from jax.experimental.pallas import tpu as pltpu


def _relu(x):
    return jnp.maximum(x, 0.0)


def _bf16(x):
    return x.astype(jnp.bfloat16)


def pcn_semseg_kernel(x_ref,                                   # (Bblk, N, Cpad) bf16
                      w1, b1, w2, b2,                          # PCNEncoder conv1/conv2
                      w3p, w3g, b3, w4, b4,                    # conv3 (split) / conv4
                      w5p, w5g, b5, w6, b6, w7, b7, w8, b8,    # seg head (BN folded)
                      o_ref):                                  # (Bblk, N, CLSpad)
    bblk, n, cin = x_ref.shape
    m = bblk * n

    def mm(a_bf16, w_ref):
        return jnp.dot(a_bf16, w_ref[...], preferred_element_type=jnp.float32)

    x = x_ref[...].reshape(m, cin)                               # bf16 (M, Cpad)

    # ---------------- PCNEncoder(global_feat=False), no BN ----------------
    h1 = _relu(mm(x, w1) + b1[...])                              # f32 (M, 128)
    pf_bf = _bf16(mm(_bf16(h1), w2) + b2[...])                   # bf16 (M, 256) pointfeat
    # per-cloud max over bf16 pointfeat (exact: bf16(max f32) == max(bf16 f32))
    g1 = jnp.max(pf_bf.reshape(bblk, n, -1), axis=1)             # bf16 (Bblk, 256)

    # concat([pf, bcast(g1)]) @ w3  ==  pf @ w3[:256] + bcast(g1 @ w3[256:])
    # conv bias b3 folded into the per-cloud row bias (one (Bblk,512) add
    # instead of a full (M,512) add).
    rb3 = mm(g1, w3g) + b3[...]                                  # f32 (Bblk, 512)
    h3 = mm(pf_bf, w3p)                                          # f32 (M, 512)
    h3 = _relu((h3.reshape(bblk, n, -1) + rb3[:, None, :]).reshape(m, -1))

    # h4 cast to bf16 right after the bias add -> halves the largest buffer;
    # g2 max over bf16 is exact (monotone rounding, only consumed as bf16).
    h4_bf = _bf16(mm(_bf16(h3), w4) + b4[...])                   # bf16 (M, 1024)
    g2 = jnp.max(h4_bf.reshape(bblk, n, -1), axis=1)             # bf16 (Bblk, 1024)

    # ---------------- segmentation head (conv + folded BN + relu) ----------------
    # concat([pf, bcast(g2)]) @ w5  ==  pf @ w5[:256] + bcast(g2 @ w5[256:])
    rb5 = mm(g2, w5g) + b5[...]                                  # f32 (Bblk, 512)
    y = mm(pf_bf, w5p)                                           # f32 (M, 512)
    y = _relu((y.reshape(bblk, n, -1) + rb5[:, None, :]).reshape(m, -1))

    y = _relu(mm(_bf16(y), w6) + b6[...])                        # (M, 256)
    y = _relu(mm(_bf16(y), w7) + b7[...])                        # (M, 128)
    logits = mm(_bf16(y), w8) + b8[...]                          # (M, CLSpad); pads = -1e30

    # log_softmax over classes (padded lanes contribute exp(-1e30) == 0)
    mx = jnp.max(logits, axis=-1, keepdims=True)
    z = logits - mx
    lse = jnp.log(jnp.sum(jnp.exp(z), axis=-1, keepdims=True))
    o_ref[...] = (z - lse).reshape(bblk, n, -1).astype(o_ref.dtype)


# ---------------- wrapper ----------------
def _chip_budget():
    """(max_rows_per_step, vmem_limit_bytes) chosen per TPU generation."""
    try:
        info = pltpu.get_tpu_info()
        vmem_phys = int(getattr(info, "vmem_capacity_bytes", 0) or 0)
    except Exception:
        vmem_phys = 0
    if vmem_phys >= 96 * 1024 * 1024:          # v5e / v6e: 128 MiB physical VMEM
        return 4096, 64 * 1024 * 1024
    # v7x (64 MiB physical VMEM) or unknown: stay conservative
    return 2048, 48 * 1024 * 1024


def _pick_block_b(batch, n, target_rows=512, max_rows=2048):
    # Cap at batch//2 so grid >= 2 steps -> both v7x TensorCores get work
    # (no cost on the single-TC v5e/v6e chips).
    cap = batch if batch < 2 else batch // 2
    best = 1
    for cand in range(1, cap + 1):
        if batch % cand != 0 or cand * n > max_rows:
            continue
        best = cand
        if cand * n >= target_rows:
            break
    return best


def _prepare_kernel_params(fused_params, c_in, c_pad, num_class, class_pad):
    (w1, b1), (w2, b2), (w3, b3), (w4, b4), \
        (w5, b5), (w6, b6), (w7, b7), (w8, b8) = fused_params

    # zero-pad input channels of conv1 (exact: padded input lanes are zero)
    w1p = jnp.zeros((c_pad, w1.shape[1]), jnp.float32).at[:c_in].set(w1)
    # split the two concat-matmuls (exact algebraic rewrite)
    w3p, w3g = w3[:256], w3[256:]
    w5p, w5g = w5[:256], w5[256:]
    # lane-dense classifier: zero weight columns, -1e30 bias on padded classes
    w8p = jnp.zeros((w8.shape[0], class_pad), jnp.float32).at[:, :num_class].set(w8)
    b8p = jnp.full((1, class_pad), -1e30, jnp.float32).at[:, :num_class].set(b8)

    return [_bf16(w1p), b1, _bf16(w2), b2,
            _bf16(w3p), _bf16(w3g), b3, _bf16(w4), b4,
            _bf16(w5p), _bf16(w5g), b5, _bf16(w6), b6,
            _bf16(w7), b7, _bf16(w8p), b8p]


def pcn_semseg_forward(x_bnc, fused_params, *, block_b=None, out_dtype=jnp.float32):
    """x_bnc: (B, N, C) float32.  fused_params: 8 x (W[Cin,Cout] f32, b[1,Cout] f32)."""
    B, N, C = x_bnc.shape
    num_class = fused_params[-1][0].shape[1]
    c_pad = max(16, ((C + 7) // 8) * 8)
    class_pad = max(128, ((num_class + 127) // 128) * 128)

    max_rows, vmem_limit = _chip_budget()
    assert N <= max_rows, (
        f"N={N} exceeds single-pass row budget {max_rows}; needs the N-tiled "
        "two-pass variant (see TODO).")

    if block_b is None:
        block_b = _pick_block_b(B, N, max_rows=max_rows)
    assert B % block_b == 0

    x_pad = jnp.zeros((B, N, c_pad), jnp.float32).at[:, :, :C].set(x_bnc)
    x_pad = _bf16(x_pad)

    flat = _prepare_kernel_params(fused_params, C, c_pad, num_class, class_pad)

    def _const_map(b):
        return (0, 0)

    in_specs = [pl.BlockSpec((block_b, N, c_pad), lambda b: (b, 0, 0))]
    # Weights/biases: constant block across the grid -> single-buffer them
    # (default double buffering would hold 2x ~3 MiB of bf16 weights in VMEM
    # for zero benefit).
    in_specs += [pl.BlockSpec(p.shape, _const_map, pipeline_mode=pl.Buffered(1))
                 for p in flat]

    per_point_macs = (c_pad * 128 + 128 * 256 + 256 * 512 + 512 * 1024
                      + 256 * 512 + 512 * 256 + 256 * 128 + 128 * class_pad)
    cost = pl.CostEstimate(
        flops=2 * B * N * per_point_macs,
        transcendentals=B * N * (class_pad + 1),
        bytes_accessed=int(sum(int(p.size) * p.dtype.itemsize for p in flat)
                           + int(x_pad.size) * 2
                           + B * N * class_pad * jnp.dtype(out_dtype).itemsize),
    )

    out = pl.pallas_call(
        pcn_semseg_kernel,
        out_shape=jax.ShapeDtypeStruct((B, N, class_pad), out_dtype),
        grid_spec=pltpu.PrefetchScalarGridSpec(
            num_scalar_prefetch=0,
            grid=(B // block_b,),
            in_specs=in_specs,
            out_specs=pl.BlockSpec((block_b, N, class_pad), lambda b: (b, 0, 0)),
        ),
        compiler_params=pltpu.CompilerParams(
            dimension_semantics=("parallel",),
            vmem_limit_bytes=vmem_limit,
        ),
        cost_estimate=cost,
    )(x_pad, *flat)

    return out[..., :num_class]


# ---------------- deterministic synthetic parameter init ----------------
def init_params(key, num_channel=9, num_class=13):
    dims = [
        (num_channel, 128), (128, 256), (512, 512), (512, 1024),   # PCNEncoder conv1..conv4
        (1280, 512), (512, 256), (256, 128), (128, num_class),     # head conv1..conv4
    ]
    keys = jax.random.split(key, 32)
    ki = 0
    raw = []
    for (cin, cout) in dims:
        k = 1.0 / jnp.sqrt(jnp.float32(cin))
        w = jax.random.uniform(keys[ki], (cin, cout), jnp.float32, -k, k); ki += 1
        b = jax.random.uniform(keys[ki], (1, cout), jnp.float32, -k, k); ki += 1
        raw.append((w, b))

    # BatchNorm1d(512/256/128) params + running stats; folded in eval mode.
    eps = 1e-5
    fused = list(raw[:4])
    for i, cout in enumerate((512, 256, 128)):
        gamma = 1.0 + 0.1 * jax.random.normal(keys[ki], (cout,), jnp.float32); ki += 1
        beta = 0.1 * jax.random.normal(keys[ki], (cout,), jnp.float32); ki += 1
        mean = 0.1 * jax.random.normal(keys[ki], (cout,), jnp.float32); ki += 1
        var = jnp.abs(1.0 + 0.1 * jax.random.normal(keys[ki], (cout,), jnp.float32)); ki += 1
        w, b = raw[4 + i]
        scale = gamma / jnp.sqrt(var + eps)
        w_f = w * scale[None, :]
        b_f = (b - mean[None, :]) * scale[None, :] + beta[None, :]
        fused.append((w_f, b_f))
    fused.append(raw[7])
    return fused


# ---------------- pure-JAX reference (matched bf16-input quantization) ----------------
def _quant(x):
    """bf16 quantization of matmul operands, matching the kernel's MXU path."""
    return x.astype(jnp.bfloat16).astype(jnp.float32)


def reference(x, params):
    def mm(h, wb):
        w, b = wb
        return jnp.einsum("bnc,cd->bnd", _quant(h), _quant(w),
                          precision=jax.lax.Precision.HIGHEST) + b

    h1 = jax.nn.relu(mm(x, params[0]))
    pf = mm(h1, params[1])
    g1 = jnp.max(pf, axis=1, keepdims=True)
    x2 = jnp.concatenate([pf, jnp.broadcast_to(g1, pf.shape)], axis=-1)
    h3 = jax.nn.relu(mm(x2, params[2]))
    h4 = mm(h3, params[3])
    g2 = jnp.max(h4, axis=1, keepdims=True)
    feat = jnp.concatenate([pf, jnp.broadcast_to(g2, h4.shape)], axis=-1)
    y = jax.nn.relu(mm(feat, params[4]))
    y = jax.nn.relu(mm(y, params[5]))
    y = jax.nn.relu(mm(y, params[6]))
    logits = mm(y, params[7])
    return jax.nn.log_softmax(logits, axis=-1)


if __name__ == "__main__":
    B, N, C, NUM_CLASS = 4, 64, 9, 13

    key = jax.random.PRNGKey(0)
    k_x, k_p = jax.random.split(key)

    # PyTorch input would be (B, C, N) = (4, 9, 64); our layout is (B, N, C).
    x_bcn = jax.random.normal(k_x, (B, C, N), jnp.float32)
    x_bnc = jnp.transpose(x_bcn, (0, 2, 1))

    params = init_params(k_p, num_channel=C, num_class=NUM_CLASS)

    out = jax.block_until_ready(pcn_semseg_forward(x_bnc, params))   # (B, N, 13) log-probs
    ref = jax.block_until_ready(reference(x_bnc, params))

    assert out.shape == (B, N, NUM_CLASS)
    # Tolerance derived for bf16 matmul operands + f32 accumulation compared
    # against a reference quantized the same way: residual error is only
    # summation order + occasional re-quantization rounding of intermediates.
    err = float(jnp.max(jnp.abs(out - ref)))
    assert err < 2e-2, err

    print("KERNEL_OK")
</pallas_src>

<mosaic_0001>
module attributes {stable_mosaic.version = 11 : i64} {
  func.func @pcn_semseg_kernel(%arg0: i32, %arg1: memref<2x64x16xbf16, #tpu.memory_space<vmem>>, %arg2: memref<16x128xbf16, #tpu.memory_space<vmem>>, %arg3: memref<1x128xf32, #tpu.memory_space<vmem>>, %arg4: memref<128x256xbf16, #tpu.memory_space<vmem>>, %arg5: memref<1x256xf32, #tpu.memory_space<vmem>>, %arg6: memref<256x512xbf16, #tpu.memory_space<vmem>>, %arg7: memref<256x512xbf16, #tpu.memory_space<vmem>>, %arg8: memref<1x512xf32, #tpu.memory_space<vmem>>, %arg9: memref<512x1024xbf16, #tpu.memory_space<vmem>>, %arg10: memref<1x1024xf32, #tpu.memory_space<vmem>>, %arg11: memref<256x512xbf16, #tpu.memory_space<vmem>>, %arg12: memref<1024x512xbf16, #tpu.memory_space<vmem>>, %arg13: memref<1x512xf32, #tpu.memory_space<vmem>>, %arg14: memref<512x256xbf16, #tpu.memory_space<vmem>>, %arg15: memref<1x256xf32, #tpu.memory_space<vmem>>, %arg16: memref<256x128xbf16, #tpu.memory_space<vmem>>, %arg17: memref<1x128xf32, #tpu.memory_space<vmem>>, %arg18: memref<128x128xbf16, #tpu.memory_space<vmem>>, %arg19: memref<1x128xf32, #tpu.memory_space<vmem>>, %arg20: memref<2x64x128xf32, #tpu.memory_space<vmem>>) attributes {dimension_semantics = [#tpu.dimension_semantics<parallel>], iteration_bounds = array<i64: 2>, scalar_prefetch = 0 : i64, scratch_operands = 0 : i64, tpu.core_type = #tpu.core_type<tc>, window_params = [{transform_indices = @transform_0, window_bounds = array<i64: 2, 64, 16>}, {pipeline_mode = #tpu.pipeline_mode<synchronous>, transform_indices = @transform_1, window_bounds = array<i64: 16, 128>}, {pipeline_mode = #tpu.pipeline_mode<synchronous>, transform_indices = @transform_2, window_bounds = array<i64: 1, 128>}, {pipeline_mode = #tpu.pipeline_mode<synchronous>, transform_indices = @transform_3, window_bounds = array<i64: 128, 256>}, {pipeline_mode = #tpu.pipeline_mode<synchronous>, transform_indices = @transform_4, window_bounds = array<i64: 1, 256>}, {pipeline_mode = #tpu.pipeline_mode<synchronous>, transform_indices = @transform_5, window_bounds = array<i64: 256, 512>}, {pipeline_mode = #tpu.pipeline_mode<synchronous>, transform_indices = @transform_6, window_bounds = array<i64: 256, 512>}, {pipeline_mode = #tpu.pipeline_mode<synchronous>, transform_indices = @transform_7, window_bounds = array<i64: 1, 512>}, {pipeline_mode = #tpu.pipeline_mode<synchronous>, transform_indices = @transform_8, window_bounds = array<i64: 512, 1024>}, {pipeline_mode = #tpu.pipeline_mode<synchronous>, transform_indices = @transform_9, window_bounds = array<i64: 1, 1024>}, {pipeline_mode = #tpu.pipeline_mode<synchronous>, transform_indices = @transform_10, window_bounds = array<i64: 256, 512>}, {pipeline_mode = #tpu.pipeline_mode<synchronous>, transform_indices = @transform_11, window_bounds = array<i64: 1024, 512>}, {pipeline_mode = #tpu.pipeline_mode<synchronous>, transform_indices = @transform_12, window_bounds = array<i64: 1, 512>}, {pipeline_mode = #tpu.pipeline_mode<synchronous>, transform_indices = @transform_13, window_bounds = array<i64: 512, 256>}, {pipeline_mode = #tpu.pipeline_mode<synchronous>, transform_indices = @transform_14, window_bounds = array<i64: 1, 256>}, {pipeline_mode = #tpu.pipeline_mode<synchronous>, transform_indices = @transform_15, window_bounds = array<i64: 256, 128>}, {pipeline_mode = #tpu.pipeline_mode<synchronous>, transform_indices = @transform_16, window_bounds = array<i64: 1, 128>}, {pipeline_mode = #tpu.pipeline_mode<synchronous>, transform_indices = @transform_17, window_bounds = array<i64: 128, 128>}, {pipeline_mode = #tpu.pipeline_mode<synchronous>, transform_indices = @transform_18, window_bounds = array<i64: 1, 128>}, {transform_indices = @transform_19, window_bounds = array<i64: 2, 64, 128>}]} {
    %c0 = arith.constant 0 : index
    %c0_0 = arith.constant 0 : index
    %c0_1 = arith.constant 0 : index
    %0 = vector.load %arg1[%c0, %c0_0, %c0_1] : memref<2x64x16xbf16, #tpu.memory_space<vmem>>, vector<2x64x16xbf16>
    %1 = vector.shape_cast %0 : vector<2x64x16xbf16> to vector<128x16xbf16>
    %c0_2 = arith.constant 0 : index
    %c0_3 = arith.constant 0 : index
    %2 = vector.load %arg2[%c0_2, %c0_3] : memref<16x128xbf16, #tpu.memory_space<vmem>>, vector<16x128xbf16>
    %cst = arith.constant dense<0.000000e+00> : vector<128x128xf32>
    %3 = tpu.matmul %1, %2, %cst {dimension_numbers = #tpu.dot_dimension_numbers<[1], [0], [0], [1], [0, 0, 1, 1], [], []>} : vector<128x16xbf16>, vector<16x128xbf16>, vector<128x128xf32> -> vector<128x128xf32>
    %c0_4 = arith.constant 0 : index
    %c0_5 = arith.constant 0 : index
    %4 = vector.load %arg3[%c0_4, %c0_5] : memref<1x128xf32, #tpu.memory_space<vmem>>, vector<1x128xf32>
    %5 = vector.broadcast %4 : vector<1x128xf32> to vector<128x128xf32>
    %6 = arith.addf %3, %5 : vector<128x128xf32>
    %cst_6 = arith.constant 0.000000e+00 : f32
    %7 = vector.broadcast %cst_6 : f32 to vector<128x128xf32>
    %8 = arith.maximumf %6, %7 : vector<128x128xf32>
    %9 = arith.truncf %8 : vector<128x128xf32> to vector<128x128xbf16>
    %c0_7 = arith.constant 0 : index
    %c0_8 = arith.constant 0 : index
    %10 = vector.load %arg4[%c0_7, %c0_8] : memref<128x256xbf16, #tpu.memory_space<vmem>>, vector<128x256xbf16>
    %cst_9 = arith.constant dense<0.000000e+00> : vector<128x256xf32>
    %11 = tpu.matmul %9, %10, %cst_9 {dimension_numbers = #tpu.dot_dimension_numbers<[1], [0], [0], [1], [0, 0, 1, 1], [], []>} : vector<128x128xbf16>, vector<128x256xbf16>, vector<128x256xf32> -> vector<128x256xf32>
    %c0_10 = arith.constant 0 : index
    %c0_11 = arith.constant 0 : index
    %12 = vector.load %arg5[%c0_10, %c0_11] : memref<1x256xf32, #tpu.memory_space<vmem>>, vector<1x256xf32>
    %13 = vector.broadcast %12 : vector<1x256xf32> to vector<128x256xf32>
    %14 = arith.addf %11, %13 : vector<128x256xf32>
    %15 = arith.truncf %14 : vector<128x256xf32> to vector<128x256xbf16>
    %16 = vector.shape_cast %15 : vector<128x256xbf16> to vector<2x64x256xbf16>
    %cst_12 = arith.constant dense<0xFF80> : vector<2x256xbf16>
    %17 = vector.multi_reduction <maximumf>, %16, %cst_12 [1] : vector<2x64x256xbf16> to vector<2x256xbf16>
    %c0_13 = arith.constant 0 : index
    %c0_14 = arith.constant 0 : index
    %18 = vector.load %arg7[%c0_13, %c0_14] : memref<256x512xbf16, #tpu.memory_space<vmem>>, vector<256x512xbf16>
    %cst_15 = arith.constant dense<0.000000e+00> : vector<2x512xf32>
    %19 = tpu.matmul %17, %18, %cst_15 {dimension_numbers = #tpu.dot_dimension_numbers<[1], [0], [0], [1], [0, 0, 1, 1], [], []>} : vector<2x256xbf16>, vector<256x512xbf16>, vector<2x512xf32> -> vector<2x512xf32>
    %c0_16 = arith.constant 0 : index
    %c0_17 = arith.constant 0 : index
    %20 = vector.load %arg8[%c0_16, %c0_17] : memref<1x512xf32, #tpu.memory_space<vmem>>, vector<1x512xf32>
    %21 = vector.broadcast %20 : vector<1x512xf32> to vector<2x512xf32>
    %22 = arith.addf %19, %21 : vector<2x512xf32>
    %c0_18 = arith.constant 0 : index
    %c0_19 = arith.constant 0 : index
    %23 = vector.load %arg6[%c0_18, %c0_19] : memref<256x512xbf16, #tpu.memory_space<vmem>>, vector<256x512xbf16>
    %cst_20 = arith.constant dense<0.000000e+00> : vector<128x512xf32>
    %24 = tpu.matmul %15, %23, %cst_20 {dimension_numbers = #tpu.dot_dimension_numbers<[1], [0], [0], [1], [0, 0, 1, 1], [], []>} : vector<128x256xbf16>, vector<256x512xbf16>, vector<128x512xf32> -> vector<128x512xf32>
    %25 = vector.shape_cast %24 : vector<128x512xf32> to vector<2x64x512xf32>
    %26 = vector.shape_cast %22 : vector<2x512xf32> to vector<2x1x512xf32>
    %27 = vector.broadcast %26 : vector<2x1x512xf32> to vector<2x64x512xf32>
    %28 = arith.addf %25, %27 : vector<2x64x512xf32>
    %29 = vector.shape_cast %28 : vector<2x64x512xf32> to vector<128x512xf32>
    %cst_21 = arith.constant 0.000000e+00 : f32
    %30 = vector.broadcast %cst_21 : f32 to vector<128x512xf32>
    %31 = arith.maximumf %29, %30 : vector<128x512xf32>
    %32 = arith.truncf %31 : vector<128x512xf32> to vector<128x512xbf16>
    %c0_22 = arith.constant 0 : index
    %c0_23 = arith.constant 0 : index
    %33 = vector.load %arg9[%c0_22, %c0_23] : memref<512x1024xbf16, #tpu.memory_space<vmem>>, vector<512x1024xbf16>
    %cst_24 = arith.constant dense<0.000000e+00> : vector<128x1024xf32>
    %34 = tpu.matmul %32, %33, %cst_24 {dimension_numbers = #tpu.dot_dimension_numbers<[1], [0], [0], [1], [0, 0, 1, 1], [], []>} : vector<128x512xbf16>, vector<512x1024xbf16>, vector<128x1024xf32> -> vector<128x1024xf32>
    %c0_25 = arith.constant 0 : index
    %c0_26 = arith.constant 0 : index
    %35 = vector.load %arg10[%c0_25, %c0_26] : memref<1x1024xf32, #tpu.memory_space<vmem>>, vector<1x1024xf32>
    %36 = vector.broadcast %35 : vector<1x1024xf32> to vector<128x1024xf32>
    %37 = arith.addf %34, %36 : vector<128x1024xf32>
    %38 = arith.truncf %37 : vector<128x1024xf32> to vector<128x1024xbf16>
    %39 = vector.shape_cast %38 : vector<128x1024xbf16> to vector<2x64x1024xbf16>
    %cst_27 = arith.constant dense<0xFF80> : vector<2x1024xbf16>
    %40 = vector.multi_reduction <maximumf>, %39, %cst_27 [1] : vector<2x64x1024xbf16> to vector<2x1024xbf16>
    %c0_28 = arith.constant 0 : index
    %c0_29 = arith.constant 0 : index
    %41 = vector.load %arg12[%c0_28, %c0_29] : memref<1024x512xbf16, #tpu.memory_space<vmem>>, vector<1024x512xbf16>
    %cst_30 = arith.constant dense<0.000000e+00> : vector<2x512xf32>
    %42 = tpu.matmul %40, %41, %cst_30 {dimension_numbers = #tpu.dot_dimension_numbers<[1], [0], [0], [1], [0, 0, 1, 1], [], []>} : vector<2x1024xbf16>, vector<1024x512xbf16>, vector<2x512xf32> -> vector<2x512xf32>
    %c0_31 = arith.constant 0 : index
    %c0_32 = arith.constant 0 : index
    %43 = vector.load %arg13[%c0_31, %c0_32] : memref<1x512xf32, #tpu.memory_space<vmem>>, vector<1x512xf32>
    %44 = vector.broadcast %43 : vector<1x512xf32> to vector<2x512xf32>
    %45 = arith.addf %42, %44 : vector<2x512xf32>
    %c0_33 = arith.constant 0 : index
    %c0_34 = arith.constant 0 : index
    %46 = vector.load %arg11[%c0_33, %c0_34] : memref<256x512xbf16, #tpu.memory_space<vmem>>, vector<256x512xbf16>
    %cst_35 = arith.constant dense<0.000000e+00> : vector<128x512xf32>
    %47 = tpu.matmul %15, %46, %cst_35 {dimension_numbers = #tpu.dot_dimension_numbers<[1], [0], [0], [1], [0, 0, 1, 1], [], []>} : vector<128x256xbf16>, vector<256x512xbf16>, vector<128x512xf32> -> vector<128x512xf32>
    %48 = vector.shape_cast %47 : vector<128x512xf32> to vector<2x64x512xf32>
    %49 = vector.shape_cast %45 : vector<2x512xf32> to vector<2x1x512xf32>
    %50 = vector.broadcast %49 : vector<2x1x512xf32> to vector<2x64x512xf32>
    %51 = arith.addf %48, %50 : vector<2x64x512xf32>
    %52 = vector.shape_cast %51 : vector<2x64x512xf32> to vector<128x512xf32>
    %cst_36 = arith.constant 0.000000e+00 : f32
    %53 = vector.broadcast %cst_36 : f32 to vector<128x512xf32>
    %54 = arith.maximumf %52, %53 : vector<128x512xf32>
    %55 = arith.truncf %54 : vector<128x512xf32> to vector<128x512xbf16>
    %c0_37 = arith.constant 0 : index
    %c0_38 = arith.constant 0 : index
    %56 = vector.load %arg14[%c0_37, %c0_38] : memref<512x256xbf16, #tpu.memory_space<vmem>>, vector<512x256xbf16>
    %cst_39 = arith.constant dense<0.000000e+00> : vector<128x256xf32>
    %57 = tpu.matmul %55, %56, %cst_39 {dimension_numbers = #tpu.dot_dimension_numbers<[1], [0], [0], [1], [0, 0, 1, 1], [], []>} : vector<128x512xbf16>, vector<512x256xbf16>, vector<128x256xf32> -> vector<128x256xf32>
    %c0_40 = arith.constant 0 : index
    %c0_41 = arith.constant 0 : index
    %58 = vector.load %arg15[%c0_40, %c0_41] : memref<1x256xf32, #tpu.memory_space<vmem>>, vector<1x256xf32>
    %59 = vector.broadcast %58 : vector<1x256xf32> to vector<128x256xf32>
    %60 = arith.addf %57, %59 : vector<128x256xf32>
    %cst_42 = arith.constant 0.000000e+00 : f32
    %61 = vector.broadcast %cst_42 : f32 to vector<128x256xf32>
    %62 = arith.maximumf %60, %61 : vector<128x256xf32>
    %63 = arith.truncf %62 : vector<128x256xf32> to vector<128x256xbf16>
    %c0_43 = arith.constant 0 : index
    %c0_44 = arith.constant 0 : index
    %64 = vector.load %arg16[%c0_43, %c0_44] : memref<256x128xbf16, #tpu.memory_space<vmem>>, vector<256x128xbf16>
    %cst_45 = arith.constant dense<0.000000e+00> : vector<128x128xf32>
    %65 = tpu.matmul %63, %64, %cst_45 {dimension_numbers = #tpu.dot_dimension_numbers<[1], [0], [0], [1], [0, 0, 1, 1], [], []>} : vector<128x256xbf16>, vector<256x128xbf16>, vector<128x128xf32> -> vector<128x128xf32>
    %c0_46 = arith.constant 0 : index
    %c0_47 = arith.constant 0 : index
    %66 = vector.load %arg17[%c0_46, %c0_47] : memref<1x128xf32, #tpu.memory_space<vmem>>, vector<1x128xf32>
    %67 = vector.broadcast %66 : vector<1x128xf32> to vector<128x128xf32>
    %68 = arith.addf %65, %67 : vector<128x128xf32>
    %cst_48 = arith.constant 0.000000e+00 : f32
    %69 = vector.broadcast %cst_48 : f32 to vector<128x128xf32>
    %70 = arith.maximumf %68, %69 : vector<128x128xf32>
    %71 = arith.truncf %70 : vector<128x128xf32> to vector<128x128xbf16>
    %c0_49 = arith.constant 0 : index
    %c0_50 = arith.constant 0 : index
    %72 = vector.load %arg18[%c0_49, %c0_50] : memref<128x128xbf16, #tpu.memory_space<vmem>>, vector<128x128xbf16>
    %cst_51 = arith.constant dense<0.000000e+00> : vector<128x128xf32>
    %73 = tpu.matmul %71, %72, %cst_51 {dimension_numbers = #tpu.dot_dimension_numbers<[1], [0], [0], [1], [0, 0, 1, 1], [], []>} : vector<128x128xbf16>, vector<128x128xbf16>, vector<128x128xf32> -> vector<128x128xf32>
    %c0_52 = arith.constant 0 : index
    %c0_53 = arith.constant 0 : index
    %74 = vector.load %arg19[%c0_52, %c0_53] : memref<1x128xf32, #tpu.memory_space<vmem>>, vector<1x128xf32>
    %75 = vector.broadcast %74 : vector<1x128xf32> to vector<128x128xf32>
    %76 = arith.addf %73, %75 : vector<128x128xf32>
    %cst_54 = arith.constant dense<0xFF800000> : vector<128xf32>
    %77 = vector.multi_reduction <maximumf>, %76, %cst_54 [1] : vector<128x128xf32> to vector<128xf32>
    %78 = vector.shape_cast %77 : vector<128xf32> to vector<128x1xf32>
    %79 = vector.broadcast %78 : vector<128x1xf32> to vector<128x128xf32>
    %80 = arith.subf %76, %79 : vector<128x128xf32>
    %81 = math.exp %80 : vector<128x128xf32>
    %cst_55 = arith.constant dense<0.000000e+00> : vector<128xf32>
    %82 = vector.multi_reduction <add>, %81, %cst_55 [1] : vector<128x128xf32> to vector<128xf32>
    %83 = vector.shape_cast %82 : vector<128xf32> to vector<128x1xf32>
    %84 = math.log %83 : vector<128x1xf32>
    %85 = vector.broadcast %84 : vector<128x1xf32> to vector<128x128xf32>
    %86 = arith.subf %80, %85 : vector<128x128xf32>
    %87 = vector.shape_cast %86 : vector<128x128xf32> to vector<2x64x128xf32>
    %c0_56 = arith.constant 0 : index
    %c0_57 = arith.constant 0 : index
    %c0_58 = arith.constant 0 : index
    %88 = vector.load %arg20[%c0_56, %c0_57, %c0_58] : memref<2x64x128xf32, #tpu.memory_space<vmem>>, vector<2x64x128xf32>
    tpu.vector_store %arg20[%c0_56, %c0_57, %c0_58], %87 {strides = array<i32>} : memref<2x64x128xf32, #tpu.memory_space<vmem>>, vector<2x64x128xf32>,
    return
  }
  func.func @transform_0(%arg0: i32) -> (i32, i32, i32) {
    %c0_i32 = arith.constant 0 : i32
    %c0_i32_0 = arith.constant 0 : i32
    %c0_i32_1 = arith.constant 0 : i32
    return %arg0, %c0_i32, %c0_i32_0 : i32, i32, i32
  }
  func.func @transform_1(%arg0: i32) -> (i32, i32) {
    %c0_i32 = arith.constant 0 : i32
    %c0_i32_0 = arith.constant 0 : i32
    %c0_i32_1 = arith.constant 0 : i32
    return %c0_i32, %c0_i32_0 : i32, i32
  }
  func.func @transform_2(%arg0: i32) -> (i32, i32) {
    %c0_i32 = arith.constant 0 : i32
    %c0_i32_0 = arith.constant 0 : i32
    %c0_i32_1 = arith.constant 0 : i32
    return %c0_i32, %c0_i32_0 : i32, i32
  }
  func.func @transform_3(%arg0: i32) -> (i32, i32) {
    %c0_i32 = arith.constant 0 : i32
    %c0_i32_0 = arith.constant 0 : i32
    %c0_i32_1 = arith.constant 0 : i32
    return %c0_i32, %c0_i32_0 : i32, i32
  }
  func.func @transform_4(%arg0: i32) -> (i32, i32) {
    %c0_i32 = arith.constant 0 : i32
    %c0_i32_0 = arith.constant 0 : i32
    %c0_i32_1 = arith.constant 0 : i32
    return %c0_i32, %c0_i32_0 : i32, i32
  }
  func.func @transform_5(%arg0: i32) -> (i32, i32) {
    %c0_i32 = arith.constant 0 : i32
    %c0_i32_0 = arith.constant 0 : i32
    %c0_i32_1 = arith.constant 0 : i32
    return %c0_i32, %c0_i32_0 : i32, i32
  }
  func.func @transform_6(%arg0: i32) -> (i32, i32) {
    %c0_i32 = arith.constant 0 : i32
    %c0_i32_0 = arith.constant 0 : i32
    %c0_i32_1 = arith.constant 0 : i32
    return %c0_i32, %c0_i32_0 : i32, i32
  }
  func.func @transform_7(%arg0: i32) -> (i32, i32) {
    %c0_i32 = arith.constant 0 : i32
    %c0_i32_0 = arith.constant 0 : i32
    %c0_i32_1 = arith.constant 0 : i32
    return %c0_i32, %c0_i32_0 : i32, i32
  }
  func.func @transform_8(%arg0: i32) -> (i32, i32) {
    %c0_i32 = arith.constant 0 : i32
    %c0_i32_0 = arith.constant 0 : i32
    %c0_i32_1 = arith.constant 0 : i32
    return %c0_i32, %c0_i32_0 : i32, i32
  }
  func.func @transform_9(%arg0: i32) -> (i32, i32) {
    %c0_i32 = arith.constant 0 : i32
    %c0_i32_0 = arith.constant 0 : i32
    %c0_i32_1 = arith.constant 0 : i32
    return %c0_i32, %c0_i32_0 : i32, i32
  }
  func.func @transform_10(%arg0: i32) -> (i32, i32) {
    %c0_i32 = arith.constant 0 : i32
    %c0_i32_0 = arith.constant 0 : i32
    %c0_i32_1 = arith.constant 0 : i32
    return %c0_i32, %c0_i32_0 : i32, i32
  }
  func.func @transform_11(%arg0: i32) -> (i32, i32) {
    %c0_i32 = arith.constant 0 : i32
    %c0_i32_0 = arith.constant 0 : i32
    %c0_i32_1 = arith.constant 0 : i32
    return %c0_i32, %c0_i32_0 : i32, i32
  }
  func.func @transform_12(%arg0: i32) -> (i32, i32) {
    %c0_i32 = arith.constant 0 : i32
    %c0_i32_0 = arith.constant 0 : i32
    %c0_i32_1 = arith.constant 0 : i32
    return %c0_i32, %c0_i32_0 : i32, i32
  }
  func.func @transform_13(%arg0: i32) -> (i32, i32) {
    %c0_i32 = arith.constant 0 : i32
    %c0_i32_0 = arith.constant 0 : i32
    %c0_i32_1 = arith.constant 0 : i32
    return %c0_i32, %c0_i32_0 : i32, i32
  }
  func.func @transform_14(%arg0: i32) -> (i32, i32) {
    %c0_i32 = arith.constant 0 : i32
    %c0_i32_0 = arith.constant 0 : i32
    %c0_i32_1 = arith.constant 0 : i32
    return %c0_i32, %c0_i32_0 : i32, i32
  }
  func.func @transform_15(%arg0: i32) -> (i32, i32) {
    %c0_i32 = arith.constant 0 : i32
    %c0_i32_0 = arith.constant 0 : i32
    %c0_i32_1 = arith.constant 0 : i32
    return %c0_i32, %c0_i32_0 : i32, i32
  }
  func.func @transform_16(%arg0: i32) -> (i32, i32) {
    %c0_i32 = arith.constant 0 : i32
    %c0_i32_0 = arith.constant 0 : i32
    %c0_i32_1 = arith.constant 0 : i32
    return %c0_i32, %c0_i32_0 : i32, i32
  }
  func.func @transform_17(%arg0: i32) -> (i32, i32) {
    %c0_i32 = arith.constant 0 : i32
    %c0_i32_0 = arith.constant 0 : i32
    %c0_i32_1 = arith.constant 0 : i32
    return %c0_i32, %c0_i32_0 : i32, i32
  }
  func.func @transform_18(%arg0: i32) -> (i32, i32) {
    %c0_i32 = arith.constant 0 : i32
    %c0_i32_0 = arith.constant 0 : i32
    %c0_i32_1 = arith.constant 0 : i32
    return %c0_i32, %c0_i32_0 : i32, i32
  }
  func.func @transform_19(%arg0: i32) -> (i32, i32, i32) {
    %c0_i32 = arith.constant 0 : i32
    %c0_i32_0 = arith.constant 0 : i32
    %c0_i32_1 = arith.constant 0 : i32
    return %arg0, %c0_i32, %c0_i32_0 : i32, i32, i32
  }
}

</mosaic_0001>

<bundles_post_ra>
// kernel: tpu_custom_call.1
= control target key start
LH: loop header
LB: loop body
LE: loop exit
PB: predicated region body
PF: predicated region fallthrough
CT: control target
= control target key end

     0   :  { %s14363_s0 = inlined_call_operand.vmem [shape: bf16[4,64,16], index: 0, kind: input, shape index: {}]   ;;  %s14364_s1 = inlined_call_operand.hbm [shape: bf16[16,128], index: 1, kind: input, shape index: {}]   ;;  %s14365_s2 = inlined_call_operand.vmem [shape: f32[1,128], index: 2, kind: input, shape index: {}]   ;;  %s14366_s3 = inlined_call_operand.vmem [shape: bf16[128,256], index: 3, kind: input, shape index: {}]   ;;  %s14367_s4 = inlined_call_operand.hbm [shape: f32[1,256], index: 4, kind: input, shape index: {}]   ;;  %s14368_s5 = inlined_call_operand.hbm [shape: bf16[256,512], index: 5, kind: input, shape index: {}]   ;;  %s14369_s6 = inlined_call_operand.hbm [shape: bf16[256,512], index: 6, kind: input, shape index: {}]   ;;  %s14370_s7 = inlined_call_operand.hbm [shape: f32[1,512], index: 7, kind: input, shape index: {}]   ;;  %s14371_s8 = inlined_call_operand.hbm [shape: bf16[512,1024], index: 8, kind: input, shape index: {}]   ;;  %s14372_s9 = inlined_call_operand.hbm [shape: f32[1,1024], index: 9, kind: input, shape index: {}]   ;;  %s14373_s10 = inlined_call_operand.hbm [shape: bf16[256,512], index: 10, kind: input, shape index: {}]   ;;  %s14374_s11 = inlined_call_operand.hbm [shape: bf16[1024,512], index: 11, kind: input, shape index: {}]   ;;  %s14375_s12 = inlined_call_operand.vmem [shape: f32[1,512], index: 12, kind: input, shape index: {}]   ;;  %s14376_s13 = inlined_call_operand.hbm [shape: bf16[512,256], index: 13, kind: input, shape index: {}]   ;;  %s14377_s14 = inlined_call_operand.vmem [shape: f32[1,256], index: 14, kind: input, shape index: {}]   ;;  %s14378_s15 = inlined_call_operand.hbm [shape: bf16[256,128], index: 15, kind: input, shape index: {}]   ;;  %s14379_s16 = inlined_call_operand.vmem [shape: f32[1,128], index: 16, kind: input, shape index: {}]   ;;  %s14380_s17 = inlined_call_operand.vmem [shape: bf16[128,128], index: 17, kind: input, shape index: {}]   ;;  %s14381_s18 = inlined_call_operand.vmem [shape: f32[1,128], index: 18, kind: input, shape index: {}]   ;;  %s14382_s19 = inlined_call_operand.hbm [shape: f32[4,64,128], index: 19, kind: output, shape index: {}]  }
   0x1   :  { %14445 = sst [smem:[#allocation57_spill]] %s14363_s0 }
   0x2   :  { %14446 = sst [smem:[#allocation58_spill]] %s14364_s1 }
   0x3   :  { %14447 = sst [smem:[#allocation59_spill]] %s14365_s2 }
   0x4   :  { %14448 = sst [smem:[#allocation60_spill]] %s14366_s3 }
   0x5   :  { %14449 = sst [smem:[#allocation61_spill]] %s14367_s4 }
   0x6   :  { %14450 = sst [smem:[#allocation62_spill]] %s14369_s6 }
   0x7   :  { %14451 = sst [smem:[#allocation63_spill]] %s14371_s8 }
   0x8   :  { %14452 = sst [smem:[#allocation64_spill]] %s14379_s16 }
   0x9   :  { %14453 = sst [smem:[#allocation65_spill]] %s14381_s18 }
   0xa   :  { %14454 = sst [smem:[#allocation66_spill]] %s14382_s19 }
   0xb   :  { %24 = vsyncpa [#allocation3], 0 }
   0xc   :  { %25 = vsyncpa [#allocation6], 0 }
   0xd   :  { %26 = vsyncpa [#allocation9], 0 }
   0xe   :  { %27 = vsyncpa [#allocation12], 0 }
   0xf   :  { %28 = vsyncpa [#allocation15], 0 }
  0x10   :  { %29 = vsyncpa [#allocation18], 0 }
  0x11   :  { %30 = vsyncpa [#allocation4], 0 }
  0x12   :  { %32 = vsyncpa [#allocation4 + $0x1], 0  ;;  %s12538_s0 = smov 0   ;;  %s12540_s30 = smov 0  }
  0x13   :  { %s12542_s20 = smov 0   ;;  %s12544_s21 = smov 0  }
  0x14 LB: > { %14455 = sst [smem:[#allocation28_spill]] %s12400_s0  ;;  %s12559_s1 = sadd.s32 4294967295, %s12412_s21   ;;  %s12412_s21 = sphi %s12544_s21, %s14578_s21   ;;  %s12408_s20 = sphi %s12542_s20, %s14581_s20   ;;  %s12404_s30 = sphi %s12540_s30, %s14580_s30   ;;  %s12400_s0 = sphi %s12538_s0, %s14579_s0  }
  0x15   : > { %14456 = sst [smem:[#allocation29_spill]] %s12404_s30  ;;  %s9613_s22 = sadd.s32 4294967294, %s12412_s21  }
  0x16   : > { %14457 = sst [smem:[#allocation30_spill]] %s12408_s20  ;;  %s12563_s2 = sadd.s32 1, %s12412_s21  }
  0x17   : > { %14458 = sst [smem:[#allocation31_spill]] %s12412_s21  ;;  %s449_s23 = sadd.s32 1, %s12408_s20 }
  0x18   : > { %14459 = sst [smem:[#allocation32_spill]] %s12563_s2  ;;  %s446_s24 = ssub.s32 %s12412_s21, %s12563_s2 }
  0x19   : > { %p459_p0 = scmp.ne.s32.totalorder %s12408_s20, %s12404_s30  ;;  %p447_p1 = scmp.eq.s32.totalorder %s446_s24, 0 }
  0x1a   : > { %p460_p2 = scmp.eq.s32.totalorder %s12559_s1, 1  ;;  %p465_p3 = scmp.ne.s32.totalorder %s12404_s30, %s12400_s0 }
  0x1b   : > { %p466_p4 = scmp.eq.s32.totalorder %s9613_s22, 1  ;;  %p9614_p7 = scmp.ge.s32.totalorder %s12412_s21, 1 }
  0x1c   : > { %s12574_s25 = scalar_select %p447_p1, %s12408_s20, %s449_s23  }
  0x1d   : > { %p12576_p5 = por %p460_p2, %p459_p0  ;;  %p12580_p6 = por %p466_p4, %p465_p3 }
  0x1e   : > { %14460 = sst [smem:[#allocation33_spill]] %s12574_s25  ;;  %p473_p8 = scmp.lt.s32.totalorder %s12412_s21, 3 }
  0x1f   : > { %s14461_s3 = scalar_select %p12576_p5, 1, 0 }
  0x20   : > { %s14463_s26 = scalar_select %p12580_p6, 1, 0 }
  0x21   : > { %14462 = sst [smem:[#allocation34_spill]] %s14461_s3  ;;  %p14392_p9 = scmp.eq.s32.totalorder %s12559_s1, 0 }
  0x22   : > { %14464 = sst [smem:[#allocation35_spill]] %s14463_s26  ;;  %p12587_p10 = pnand %p9614_p7, %p473_p8 }
  0x23   : > { %s12414_s28 = smov [#allocation5]   ;;  %s12415_s23 = smov [#allocation8]  }
  0x24   : > { %s14465_s27 = scalar_select %p12587_p10, 1, 0 }
  0x25   : > { %s505_s29 = sshll.u32 %s12414_s28, 4  ;;  %p11013_p11 = pneg %p12587_p10  ;;  %s506_s29 = int_to_ptr.vmem [resolvable:$true] %s505_s29 }
  0x26   : > { %s528_s24 = sshll.u32 %s12415_s23, 4  ;;  %s12416_s25 = smov [#allocation11]   ;;  %s12599_s24 = int_to_ptr.vmem [resolvable:$true] %s528_s24 }
  0x27   : > { %p12595_p12 = pnand %p14392_p9, %p11013_p11  ;;  %s12601_s20 = sshll.u32 %s12416_s25, 4  ;;  %s553_s20 = int_to_ptr.vmem [resolvable:$true] %s12601_s20 }
  0x28   : > { %s14467_s4 = sld [smem:[#allocation61_spill]] }
  0x29   : > { %p12611_p0 = pneg %p12595_p12 }
  0x2e   : > { %s12018_s28 = scalar_lea.hbm %s14467_s4, 32 }
  0x2f   : > { %p12019_p13 = scmp.ne.s32.totalorder %s14467_s4, %s12018_s28  ;;  %p12025_p3 = scmp.lt.u32.totalorder %s12018_s28, %s14467_s4 }
  0x31   : > { %p12021_p1 = pnand %p12611_p0, %p12019_p13 }
  0x33   : > { %p12022_p2 = pneg %p12021_p1 }
  0x35   : > { %p12027_p4 = pnand %p12025_p3, %p12022_p2 }
  0x37   : > { %12030 = shalt.err (!%p12027_p4)
}
  0x38   : > { %s12031_s2 = scalar_lea.vmem %s506_s29, 32  ;;  %p12039_p9 = scmp.lt.s32.totalorder %s506_s29, %s506_s29 }
  0x39   : > { %p12032_p7 = scmp.ne.s32.totalorder %s506_s29, %s12031_s2  ;;  %p12040_p6 = scmp.lt.s32.totalorder %s12031_s2, %s12031_s2 }
  0x3b   : > { %p12034_p8 = pnand %p12032_p7, %p12611_p0  ;;  %p12041_p5 = por %p12040_p6, %p12039_p9 }
  0x3d   : > { %p12035_p11 = pneg %p12034_p8 }
  0x3f   : > { %p12042_p10 = pnand %p12041_p5, %p12035_p11 }
  0x41   : > { %12045 = shalt.err (!%p12042_p10)
}
  0x42   : > { %11019 = dma.hbm_to_vmem [thread:$0]  (!%p12595_p12), %s14467_s4, 32, %s506_s29, [#allocation6]  }
  0x43   : > { %s14469_s6 = sld [smem:[#allocation62_spill]] }
  0x49   : > { %s12046_s23 = scalar_lea.hbm %s14469_s6, 8192 }
  0x4a   : > { %p12047_p13 = scmp.ne.s32.totalorder %s14469_s6, %s12046_s23  ;;  %p12053_p5 = scmp.lt.u32.totalorder %s12046_s23, %s14469_s6 }
  0x4c   : > { %p12049_p1 = pnand %p12047_p13, %p12611_p0 }
  0x4e   : > { %p12050_p6 = pneg %p12049_p1 }
  0x50   : > { %p12055_p9 = pnand %p12053_p5, %p12050_p6 }
  0x52   : > { %12058 = shalt.err (!%p12055_p9)
}
  0x53   : > { %s12059_s29 = scalar_lea.vmem %s12599_s24, 8192  ;;  %p12067_p4 = scmp.lt.s32.totalorder %s12599_s24, %s12599_s24 }
  0x54   : > { %p12060_p10 = scmp.ne.s32.totalorder %s12599_s24, %s12059_s29  ;;  %p12068_p7 = scmp.lt.s32.totalorder %s12059_s29, %s12059_s29 }
  0x56   : > { %p12062_p2 = pnand %p12060_p10, %p12611_p0  ;;  %p12069_p8 = por %p12068_p7, %p12067_p4 }
  0x58   : > { %p12063_p3 = pneg %p12062_p2 }
  0x5a   : > { %p12070_p11 = pnand %p12069_p8, %p12063_p3 }
  0x5c   : > { %12073 = shalt.err (!%p12070_p11)
}
  0x5d   : > { %s14399_s3 = smov 256   ;;  %s14401_s30 = smov 16  }
  0x5e   : > { %11025 = dma.hbm_to_vmem [thread:$0]  (!%p12595_p12), %s14469_s6, 8192, %s12599_s24, [#allocation9], %s14399_s3, %s14399_s3, %s14401_s30  }
  0x5f   : > { %s14470_s8 = sld [smem:[#allocation63_spill]] }
  0x65   : > { %s12074_s23 = scalar_lea.hbm %s14470_s8, 32768 }
  0x66   : > { %p12075_p13 = scmp.ne.s32.totalorder %s14470_s8, %s12074_s23  ;;  %p12081_p5 = scmp.lt.u32.totalorder %s12074_s23, %s14470_s8 }
  0x68   : > { %p12077_p1 = pnand %p12075_p13, %p12611_p0 }
  0x6a   : > { %p12078_p6 = pneg %p12077_p1 }
  0x6c   : > { %p12083_p9 = pnand %p12081_p5, %p12078_p6 }
  0x6e   : > { %12086 = shalt.err (!%p12083_p9)
}
  0x6f   : > { %s12087_s0 = scalar_lea.vmem %s553_s20, 32768  ;;  %p12095_p4 = scmp.lt.s32.totalorder %s553_s20, %s553_s20 }
  0x70   : > { %p12088_p10 = scmp.ne.s32.totalorder %s553_s20, %s12087_s0  ;;  %p12096_p7 = scmp.lt.s32.totalorder %s12087_s0, %s12087_s0 }
  0x72   : > { %p12090_p2 = pnand %p12088_p10, %p12611_p0  ;;  %p12097_p8 = por %p12096_p7, %p12095_p4 }
  0x74   : > { %p12091_p3 = pneg %p12090_p2 }
  0x76   : > { %p12098_p11 = pnand %p12097_p8, %p12091_p3 }
  0x78   : > { %12101 = shalt.err (!%p12098_p11)
}
  0x79   : > { %s12419_s24 = smov 512   ;;  %s12420_s21 = smov 32  }
  0x7a   : > { %11031 = dma.hbm_to_vmem [thread:$0]  (!%p12595_p12), %s14470_s8, 32768, %s553_s20, [#allocation12], %s12419_s24, %s12419_s24, %s12420_s21  }
  0x7b   : > { %s12421_s28 = smov [#allocation14]   ;;  %s12422_s25 = smov [#allocation17]  }
  0x7c   : > { %s576_s23 = sshll.u32 %s12421_s28, 4  ;;  %s605_s2 = sshll.u32 %s12422_s25, 4  ;;  %s577_s23 = int_to_ptr.vmem [resolvable:$true] %s576_s23  ;;  %s606_s2 = int_to_ptr.vmem [resolvable:$true] %s605_s2 }
  0x7d   : > { %s12102_s0 = scalar_lea.hbm %s14373_s10, 8192 }
  0x7e   : > { %p12103_p13 = scmp.ne.s32.totalorder %s14373_s10, %s12102_s0  ;;  %p12109_p5 = scmp.lt.u32.totalorder %s12102_s0, %s14373_s10 }
  0x80   : > { %p12105_p1 = pnand %p12103_p13, %p12611_p0 }
  0x82   : > { %p12106_p6 = pneg %p12105_p1 }
  0x84   : > { %p12111_p9 = pnand %p12109_p5, %p12106_p6 }
  0x86   : > { %12114 = shalt.err (!%p12111_p9)
}
  0x87   : > { %s12115_s20 = scalar_lea.vmem %s577_s23, 8192  ;;  %p12123_p4 = scmp.lt.s32.totalorder %s577_s23, %s577_s23 }
  0x88   : > { %p12116_p10 = scmp.ne.s32.totalorder %s577_s23, %s12115_s20  ;;  %p12124_p7 = scmp.lt.s32.totalorder %s12115_s20, %s12115_s20 }
  0x8a   : > { %p12118_p2 = pnand %p12116_p10, %p12611_p0  ;;  %p12125_p8 = por %p12124_p7, %p12123_p4 }
  0x8c   : > { %p12119_p3 = pneg %p12118_p2 }
  0x8e   : > { %p12126_p11 = pnand %p12125_p8, %p12119_p3 }
  0x90   : > { %12129 = shalt.err (!%p12126_p11)
}
  0x91   : > { %s14471_s6 = smov 16   ;;  %s14472_s3 = smov 256  }
  0x92   : > { %11037 = dma.hbm_to_vmem [thread:$0]  (!%p12595_p12), %s14373_s10, 8192, %s577_s23, [#allocation15], %s14472_s3, %s14472_s3, %s14471_s6  }
  0x93   : > { %s12130_s21 = scalar_lea.hbm %s14376_s13, 8192 }
  0x94   : > { %p12131_p13 = scmp.ne.s32.totalorder %s14376_s13, %s12130_s21  ;;  %p12137_p5 = scmp.lt.u32.totalorder %s12130_s21, %s14376_s13 }
  0x96   : > { %p12133_p1 = pnand %p12131_p13, %p12611_p0 }
  0x98   : > { %p12134_p6 = pneg %p12133_p1 }
  0x9a   : > { %p12139_p9 = pnand %p12137_p5, %p12134_p6 }
  0x9c   : > { %12142 = shalt.err (!%p12139_p9)
}
  0x9d   : > { %s12143_s29 = scalar_lea.vmem %s606_s2, 8192  ;;  %p12151_p4 = scmp.lt.s32.totalorder %s606_s2, %s606_s2 }
  0x9e   : > { %p12144_p10 = scmp.ne.s32.totalorder %s606_s2, %s12143_s29  ;;  %p12152_p7 = scmp.lt.s32.totalorder %s12143_s29, %s12143_s29 }
  0xa0   : > { %p12146_p2 = pnand %p12144_p10, %p12611_p0  ;;  %p12153_p8 = por %p12152_p7, %p12151_p4 }
  0xa2   : > { %p12147_p3 = pneg %p12146_p2 }
  0xa4   : > { %p12154_p11 = pnand %p12153_p8, %p12147_p3 }
  0xa6   : > { %12157 = shalt.err (!%p12154_p11)
}
  0xa7   : > { %s12423_s23 = smov 128   ;;  %s12424_s0 = smov 8  }
  0xa8   : > { %11043 = dma.hbm_to_vmem [thread:$0]  (!%p12595_p12), %s14376_s13, 8192, %s606_s2, [#allocation18], %s12423_s23, %s12423_s23, %s12424_s0  }
  0xa9   : > { %s12425_s18 = smov [#allocation2]   ;;  %s14473_s4 = sld [smem:[#allocation58_spill]] }
  0xaa   : > { %s485_s30 = sshll.u32 %s12425_s18, 4  ;;  %s486_s30 = int_to_ptr.vmem [resolvable:$true] %s485_s30 }
  0xaf   : > { %s12158_s26 = scalar_lea.hbm %s14473_s4, 128 }
  0xb0   : > { %p12159_p13 = scmp.ne.s32.totalorder %s14473_s4, %s12158_s26  ;;  %p12165_p5 = scmp.lt.u32.totalorder %s12158_s26, %s14473_s4 }
  0xb2   : > { %p12161_p1 = pnand %p12159_p13, %p12611_p0 }
  0xb4   : > { %p12162_p6 = pneg %p12161_p1 }
  0xb6   : > { %p12167_p9 = pnand %p12165_p5, %p12162_p6 }
  0xb8   : > { %12170 = shalt.err (!%p12167_p9)
}
  0xb9   : > { %s12171_s2 = scalar_lea.vmem %s486_s30, 128  ;;  %p12179_p4 = scmp.lt.s32.totalorder %s486_s30, %s486_s30 }
  0xba   : > { %p12172_p10 = scmp.ne.s32.totalorder %s486_s30, %s12171_s2  ;;  %p12180_p7 = scmp.lt.s32.totalorder %s12171_s2, %s12171_s2 }
  0xbc   : > { %p12174_p2 = pnand %p12172_p10, %p12611_p0  ;;  %p12181_p8 = por %p12180_p7, %p12179_p4 }
  0xbe   : > { %p12175_p3 = pneg %p12174_p2 }
  0xc0   : > { %p12182_p11 = pnand %p12181_p8, %p12175_p3 }
  0xc2   : > { %12185 = shalt.err (!%p12182_p11)
}
  0xc3   : > { %s12426_s23 = smov 64   ;;  %s12427_s0 = smov 4  }
  0xc4   : > { %11016 = dma.hbm_to_vmem [thread:$0]  (!%p12595_p12), %s14473_s4, 128, %s486_s30, [#allocation3], %s12426_s23, %s12426_s23, %s12427_s0  }
  0xc5   : > { %s12428_s16 = smov [#allocation7]   ;;  %s12429_s24 = smov [#allocation10]  }
  0xc6   : > { %s515_s18 = sshll.u32 %s12428_s16, 4  ;;  %s542_s21 = sshll.u32 %s12429_s24, 4  ;;  %s516_s18 = int_to_ptr.vmem [resolvable:$true] %s515_s18  ;;  %s12732_s21 = int_to_ptr.vmem [resolvable:$true] %s542_s21 }
  0xc7   : > { %s12186_s25 = scalar_lea.hbm %s14368_s5, 8192 }
  0xc8   : > { %p12187_p13 = scmp.ne.s32.totalorder %s14368_s5, %s12186_s25  ;;  %p12193_p5 = scmp.lt.u32.totalorder %s12186_s25, %s14368_s5 }
  0xca   : > { %p12189_p1 = pnand %p12187_p13, %p12611_p0 }
  0xcc   : > { %p12190_p6 = pneg %p12189_p1 }
  0xce   : > { %p12195_p9 = pnand %p12193_p5, %p12190_p6 }
  0xd0   : > { %12198 = shalt.err (!%p12195_p9)
}
  0xd1   : > { %s12199_s20 = scalar_lea.vmem %s516_s18, 8192  ;;  %p12207_p4 = scmp.lt.s32.totalorder %s516_s18, %s516_s18 }
  0xd2   : > { %p12200_p10 = scmp.ne.s32.totalorder %s516_s18, %s12199_s20  ;;  %p12208_p7 = scmp.lt.s32.totalorder %s12199_s20, %s12199_s20 }
  0xd4   : > { %p12202_p2 = pnand %p12200_p10, %p12611_p0  ;;  %p12209_p8 = por %p12208_p7, %p12207_p4 }
  0xd6   : > { %p12203_p3 = pneg %p12202_p2 }
  0xd8   : > { %p12210_p11 = pnand %p12209_p8, %p12203_p3 }
  0xda   : > { %12213 = shalt.err (!%p12210_p11)
}
  0xdb   : > { %11022 = dma.hbm_to_vmem [thread:$0]  (!%p12595_p12), %s14368_s5, 8192, %s516_s18, [#allocation6], %s14472_s3, %s14472_s3, %s14471_s6  }
  0xdc   : > { %s12214_s25 = scalar_lea.hbm %s14370_s7, 64 }
  0xdd   : > { %p12215_p13 = scmp.ne.s32.totalorder %s14370_s7, %s12214_s25  ;;  %p12221_p5 = scmp.lt.u32.totalorder %s12214_s25, %s14370_s7 }
  0xdf   : > { %p12217_p1 = pnand %p12215_p13, %p12611_p0 }
  0xe1   : > { %p12218_p6 = pneg %p12217_p1 }
  0xe3   : > { %p12223_p9 = pnand %p12221_p5, %p12218_p6 }
  0xe5   : > { %12226 = shalt.err (!%p12223_p9)
}
  0xe6   : > { %s12227_s18 = scalar_lea.vmem %s12732_s21, 64  ;;  %p12235_p4 = scmp.lt.s32.totalorder %s12732_s21, %s12732_s21 }
  0xe7   : > { %p12228_p10 = scmp.ne.s32.totalorder %s12732_s21, %s12227_s18  ;;  %p12236_p7 = scmp.lt.s32.totalorder %s12227_s18, %s12227_s18 }
  0xe9   : > { %p12230_p2 = pnand %p12228_p10, %p12611_p0  ;;  %p12237_p8 = por %p12236_p7, %p12235_p4 }
  0xeb   : > { %p12231_p3 = pneg %p12230_p2 }
  0xed   : > { %p12238_p11 = pnand %p12237_p8, %p12231_p3 }
  0xef   : > { %12241 = shalt.err (!%p12238_p11)
}
  0xf0   : > { %11028 = dma.hbm_to_vmem [thread:$0]  (!%p12595_p12), %s14370_s7, 64, %s12732_s21, [#allocation9]  }
  0xf1   : > { %s12430_s24 = smov [#allocation13]   ;;  %s12431_s28 = smov [#allocation16]  }
  0xf2   : > { %s566_s26 = sshll.u32 %s12430_s24, 4  ;;  %s589_s25 = sshll.u32 %s12431_s28, 4  ;;  %s567_s26 = int_to_ptr.vmem [resolvable:$true] %s566_s26  ;;  %s12778_s25 = int_to_ptr.vmem [resolvable:$true] %s589_s25 }
  0xf3   : > { %s12242_s8 = scalar_lea.hbm %s14372_s9, 128 }
  0xf4   : > { %p12243_p13 = scmp.ne.s32.totalorder %s14372_s9, %s12242_s8  ;;  %p12249_p5 = scmp.lt.u32.totalorder %s12242_s8, %s14372_s9 }
  0xf6   : > { %p12245_p1 = pnand %p12243_p13, %p12611_p0 }
  0xf8   : > { %p12246_p6 = pneg %p12245_p1 }
  0xfa   : > { %p12251_p9 = pnand %p12249_p5, %p12246_p6 }
  0xfc   : > { %12254 = shalt.err (!%p12251_p9)
}
  0xfd   : > { %s12255_s16 = scalar_lea.vmem %s567_s26, 128  ;;  %p12263_p4 = scmp.lt.s32.totalorder %s567_s26, %s567_s26 }
  0xfe   : > { %p12256_p10 = scmp.ne.s32.totalorder %s567_s26, %s12255_s16  ;;  %p12264_p7 = scmp.lt.s32.totalorder %s12255_s16, %s12255_s16 }
 0x100   : > { %p12258_p2 = pnand %p12256_p10, %p12611_p0  ;;  %p12265_p8 = por %p12264_p7, %p12263_p4 }
 0x102   : > { %p12259_p3 = pneg %p12258_p2 }
 0x104   : > { %p12266_p11 = pnand %p12265_p8, %p12259_p3 }
 0x106   : > { %12269 = shalt.err (!%p12266_p11)
}
 0x107   : > { %11034 = dma.hbm_to_vmem [thread:$0]  (!%p12595_p12), %s14372_s9, 128, %s567_s26, [#allocation12]  }
 0x108   : > { %s12270_s8 = scalar_lea.hbm %s14374_s11, 32768 }
 0x109   : > { %p12271_p13 = scmp.ne.s32.totalorder %s14374_s11, %s12270_s8  ;;  %p12277_p5 = scmp.lt.u32.totalorder %s12270_s8, %s14374_s11 }
 0x10b   : > { %p12273_p1 = pnand %p12271_p13, %p12611_p0 }
 0x10d   : > { %p12274_p6 = pneg %p12273_p1 }
 0x10f   : > { %p12279_p9 = pnand %p12277_p5, %p12274_p6 }
 0x111   : > { %12282 = shalt.err (!%p12279_p9)
}
 0x112   : > { %s12283_s26 = scalar_lea.vmem %s12778_s25, 32768  ;;  %p12291_p4 = scmp.lt.s32.totalorder %s12778_s25, %s12778_s25 }
 0x113   : > { %p12284_p10 = scmp.ne.s32.totalorder %s12778_s25, %s12283_s26  ;;  %p12292_p7 = scmp.lt.s32.totalorder %s12283_s26, %s12283_s26 }
 0x115   : > { %p12286_p2 = pnand %p12284_p10, %p12611_p0  ;;  %p12293_p8 = por %p12292_p7, %p12291_p4 }
 0x117   : > { %p12287_p3 = pneg %p12286_p2 }
 0x119   : > { %p12294_p11 = pnand %p12293_p8, %p12287_p3 }
 0x11b   : > { %12297 = shalt.err (!%p12294_p11)
}
 0x11c   : > { %11040 = dma.hbm_to_vmem [thread:$0]  (!%p12595_p12), %s14374_s11, 32768, %s12778_s25, [#allocation15], %s14472_s3, %s14472_s3, %s14471_s6  }
 0x11d   : > { %s12432_s28 = smov [#allocation19]   ;;  %s12298_s30 = scalar_lea.hbm %s14378_s15, 2048 }
 0x11e   : > { %s621_s29 = sshll.u32 %s12432_s28, 4  ;;  %p12299_p13 = scmp.ne.s32.totalorder %s14378_s15, %s12298_s30  ;;  %s622_s29 = int_to_ptr.vmem [resolvable:$true] %s621_s29 }
 0x11f   : > { %p12305_p5 = scmp.lt.u32.totalorder %s12298_s30, %s14378_s15 }
 0x120   : > { %p12301_p1 = pnand %p12299_p13, %p12611_p0 }
 0x122   : > { %p12302_p6 = pneg %p12301_p1 }
 0x124   : > { %p12307_p9 = pnand %p12305_p5, %p12302_p6 }
 0x126   : > { %12310 = shalt.err (!%p12307_p9)
}
 0x127   : > { %s12311_s6 = scalar_lea.vmem %s622_s29, 2048  ;;  %p12319_p4 = scmp.lt.s32.totalorder %s622_s29, %s622_s29 }
 0x128   : > { %p12312_p10 = scmp.ne.s32.totalorder %s622_s29, %s12311_s6  ;;  %p12320_p7 = scmp.lt.s32.totalorder %s12311_s6, %s12311_s6 }
 0x12a   : > { %p12314_p2 = pnand %p12312_p10, %p12611_p0  ;;  %p12321_p8 = por %p12320_p7, %p12319_p4 }
 0x12c   : > { %p12315_p3 = pneg %p12314_p2 }
 0x12e   : > { %p12322_p11 = pnand %p12321_p8, %p12315_p3 }
 0x130   : > { %12325 = shalt.err (!%p12322_p11)
}
 0x131   : > { %11046 = dma.hbm_to_vmem [thread:$0]  (!%p12595_p12), %s14378_s15, 2048, %s622_s29, [#allocation18], %s12426_s23, %s12426_s23, %s12427_s0  }
 0x132   : > { %p14474_p13 = scmp.ne.s32.totalorder %s14465_s27, 0 }
 0x134   : > { %656 = sbr.rel (%p14474_p13) target bundleno = 3111 (0xc27), region = 96 }
 0x13b   : > { %p14475_p0 = scmp.eq.s32.totalorder %s12559_s1, 0 }
 0x13d   : > { %12371 = dma.done.wait (%p14475_p0), [#allocation3], 128   ;;  %p14476_p1 = pmov %p14475_p0 }
 0x13e   : > { %p14477_p6 = pmov %p14475_p0 }
 0x13f   : > { %12373 = vsyncadd (%p14476_p1), [#allocation3], 4294967168 }
 0x140   : > { %12375 = dma.done.wait (%p14477_p6), [#allocation6], 8224   ;;  %p14478_p5 = pmov %p14475_p0 }
 0x141   : > { %p14479_p9 = pmov %p14475_p0 }
 0x142   : > { %12377 = vsyncadd (%p14478_p5), [#allocation6], 4294959072 }
 0x143   : > { %12379 = dma.done.wait (%p14479_p9), [#allocation9], 8256   ;;  %p14480_p12 = pmov %p14475_p0 }
 0x144   : > { %p14481_p10 = pmov %p14475_p0 }
 0x145   : > { %12381 = vsyncadd (%p14480_p12), [#allocation9], 4294959040 }
 0x146   : > { %12383 = dma.done.wait (%p14481_p10), [#allocation12], 32896   ;;  %p14482_p2 = pmov %p14475_p0 }
 0x147   : > { %p14483_p3 = pmov %p14475_p0 }
 0x148   : > { %12385 = vsyncadd (%p14482_p2), [#allocation12], 4294934400 }
 0x149   : > { %12387 = dma.done.wait (%p14483_p3), [#allocation15], 40960   ;;  %p14484_p4 = pmov %p14475_p0 }
 0x14a   : > { %p14485_p7 = pmov %p14475_p0 }
 0x14b   : > { %12389 = vsyncadd (%p14484_p4), [#allocation15], 4294926336 }
 0x14c   : > { %12391 = dma.done.wait (%p14485_p7), [#allocation18], 10240   ;;  %p14486_p8 = pmov %p14475_p0 }
 0x14d   : > { %s9640_s19 = sshll.u32 %s12559_s1, 1  ;;  %s14487_s0 = sld [smem:[#allocation57_spill]]  ;;  %v11129_v0 = vld [vmem:[#allocation2] sm:$0xff]   ;;  %vm833_vm0 = vcmask 130048   ;;  %v12433_v25 = vmov 0   ;;  %vm1362_vm1 = vcmask 1041409  }
 0x14e   : > { %12393 = vsyncadd (%p14486_p8), [#allocation18], 4294957056  ;;  %p754_p11 = scmp.lt.s32.totalorder %s9640_s19, 3  ;;  %10569 = vmatprep.subr.bf16.mxu0 %v11129_v0  ;;  %s14488_s29 = sld [smem:[#allocation60_spill]]  ;;  %1119 = vmatprep.mubr.bf16.mxu1 %v12433_v25 }
 0x14f   : > { %10570 = vmatpush3.bf16.msra.mxu0 %v11129_v0  ;;  %s14567_s30 = sld [smem:[#allocation64_spill]]  ;;  %s14568_s21 = sld [smem:[#allocation65_spill]] }
 0x150   : > { %s14583_s19 = smov (!%p754_p11, %s9640_s19), 3  ;;  %s14569_s26 = sld [smem:[#allocation29_spill]] }
 0x151   : > { %s10477_s27 = sshll.u32 %s14583_s19, 5  ;;  %s14570_s25 = sld [smem:[#allocation34_spill]] }
 0x152   : > { %s10479_s19 = sshll.u32 %s12559_s1, 11  ;;  %s12435_s8 = smov [#allocation20]  }
 0x153   : > { %s12875_s16 = scalar_lea.vmem %s14487_s0, %s10477_s27  ;;  %s14489_s0 = sld [smem:[#allocation59_spill]] }
 0x154   : > { %v11130_v1 = vld [vmem:[%s12875_s16] sm:$0xff]   ;;  %v11131_v2 = vld [vmem:[%s12875_s16 + $0x8] sm:$0xff]   ;;  %v11132_v3 = vld [vmem:[%s12875_s16 + $0x10] sm:$0xff]  }
 0x155   : > { %10571 = vmatprep.mubr.msk.bf16.mxu0 %vm833_vm0, %v11130_v1  ;;  %v11133_v4 = vld [vmem:[%s12875_s16 + $0x18] sm:$0xff]   ;;  %v11138_v5 = vld [vmem:[%s14488_s29 + $0x4] ss:$8 sps:$4 sm:$0xff]   ;;  %v11140_v6 = vld [vmem:[%s14488_s29] ss:$8 sps:$4 sm:$0xff]  }
 0x156   : > { %10572 = vmatmul.mubr.msk.bf16.vlgmr.msra.gmra.mrb[0].mxu0 %vm833_vm0, %v11131_v2  ;;  %v11134_v7 = vld [vmem:[%s12875_s16 + $0x20] sm:$0xff]   ;;  %1087 = vmatprep.subr.bf16.mxu1 %v11138_v5  ;;  %v11141_v8 = vld [vmem:[%s14488_s29 + $0x14] ss:$8 sps:$4 sm:$0xff]   ;;  %v11143_v9 = vld [vmem:[%s14488_s29 + $0x10] ss:$8 sps:$4 sm:$0xff]   ;;  %s750_s6 = sand.u32 1, %s14569_s26  }
 0x157   : > { %10575 = vmatprep.mubr.msk.bf16.mxu0 %vm833_vm0, %v11132_v3  ;;  %1088 = vmatpush1.bf16.msra.mxu1 %v11140_v6  ;;  %v11144_v10 = vld [vmem:[%s14488_s29 + $0x24] ss:$8 sps:$4 sm:$0xff]   ;;  %v11146_v12 = vld [vmem:[%s14488_s29 + $0x20] ss:$8 sps:$4 sm:$0xff]   ;;  %v11147_v13 = vld [vmem:[%s14488_s29 + $0x34] ss:$8 sps:$4 sm:$0xff]  }
 0x158   : > { %1089 = vmatprep.subr.bf16.mxu1 %v11141_v8  ;;  %v11135_v11 = vld [vmem:[%s12875_s16 + $0x28] sm:$0xff]   ;;  %v11136_v14 = vld [vmem:[%s12875_s16 + $0x30] sm:$0xff]   ;;  %v11137_v19 = vld [vmem:[%s12875_s16 + $0x38] sm:$0xff]   ;;  %s9639_s3 = sshll.u32 %s750_s6, 7  ;;  %s14322_s1 = scalar_lea.sflag [#allocation4], %s750_s6 }
 0x159   : > { %v11149_v15 = vld [vmem:[%s14488_s29 + $0x30] ss:$8 sps:$4 sm:$0xff]   ;;  %v11150_v16 = vld [vmem:[%s14488_s29 + $0x44] ss:$8 sps:$4 sm:$0xff]   ;;  %v11152_v17 = vld [vmem:[%s14488_s29 + $0x40] ss:$8 sps:$4 sm:$0xff]  }
 0x15a   : > { %v11153_v18 = vld [vmem:[%s14488_s29 + $0x54] ss:$8 sps:$4 sm:$0xff]   ;;  %v11155_v20 = vld [vmem:[%s14488_s29 + $0x50] ss:$8 sps:$4 sm:$0xff]   ;;  %v11156_v21 = vld [vmem:[%s14488_s29 + $0x64] ss:$8 sps:$4 sm:$0xff]  }
 0x15b   : > { %1090 = vmatpush1.bf16.msra.mxu1 %v11143_v9  ;;  %v11158_v22 = vld [vmem:[%s14488_s29 + $0x60] ss:$8 sps:$4 sm:$0xff]   ;;  %v11159_v23 = vld [vmem:[%s14488_s29 + $0x74] ss:$8 sps:$4 sm:$0xff]   ;;  %v11161_v24 = vld [vmem:[%s14488_s29 + $0x70] ss:$8 sps:$4 sm:$0xff]  }
 0x15c   : > { %1091 = vmatprep.subr.bf16.mxu1 %v11144_v10  ;;  %v9643_v26 = vld [vmem:[%s14489_s0] ss:$0 sm:$0xff]  ;;  %s14278_s16 = scalar_lea.vmem [#allocation20], %s9639_s3  ;;  %s14571_s0 = sld [smem:[#allocation66_spill]] }
 0x15d   : > { %s9444_s27 = sshll.u32 %s14278_s16, 4  ;;  %p14573_p0 = scmp.ne.s32.totalorder %s14570_s25, 0  ;;  %s14315_s27 = int_to_ptr.vmem [resolvable:$true] %s9444_s27 }
 0x15e   : > { %10576 = vmatmul.mubr.msk.bf16.gmra.mrb[4].mxu0 %vm833_vm0, %v11133_v4  ;;  %s12326_s2 = scalar_lea.vmem %s14315_s27, 2048 }
 0x15f   : > { %10579 = vmatprep.mubr.msk.bf16.mxu0 %vm833_vm0, %v11134_v7  ;;  %1092 = vmatpush1.bf16.msra.mxu1 %v11146_v12  ;;  %p12327_p13 = scmp.ne.s32.totalorder %s14315_s27, %s12326_s2 }
 0x160   : > { %1093 = vmatprep.subr.bf16.mxu1 %v11147_v13 }
 0x161   : > { %p12328_p1 = pnand %p12327_p13, %p14573_p0 }
 0x162   : > { %s14572_s24 = smov %s14571_s0  ;;  %s14313_s28 = scalar_lea.hbm %s14571_s0, %s10479_s19 }
 0x163   : > { %1094 = vmatpush1.bf16.msra.mxu1 %v11149_v15  ;;  %p12329_p6 = pneg %p12328_p1 }
 0x164   : > { %1095 = vmatprep.subr.bf16.mxu1 %v11150_v16 }
 0x166   : > { %10580 = vmatmul.mubr.msk.bf16.gmra.mrb[8].mxu0 %vm833_vm0, %v11135_v11 }
 0x167   : > { %10583 = vmatprep.mubr.msk.bf16.mxu0 %vm833_vm0, %v11136_v14  ;;  %1096 = vmatpush1.bf16.msra.mxu1 %v11152_v17 }
 0x168   : > { %1097 = vmatprep.subr.bf16.mxu1 %v11153_v18 }
 0x16b   : > { %1098 = vmatpush1.bf16.msra.mxu1 %v11155_v20  ;;  %v11167_v20 = vld [vmem:[#allocation8 + $0xc] ss:$16 sps:$4 sm:$0xff]  }
 0x16c   : > { %1099 = vmatprep.subr.bf16.mxu1 %v11156_v21  ;;  %v11162_v21 = vld [vmem:[#allocation8] ss:$16 sps:$4 sm:$0xff]  }
 0x16e   : > { %10584 = vmatmul.mubr.msk.bf16.gmra.mrb[12].mxu0 %vm833_vm0, %v11137_v19  ;;  %v11164_v19 = vld [vmem:[#allocation8 + $0x4] ss:$16 sps:$4 sm:$0xff]  }
 0x16f   : > { %1100 = vmatpush1.bf16.msra.mxu1 %v11158_v22  ;;  %v11165_v22 = vld [vmem:[#allocation8 + $0x8] ss:$16 sps:$4 sm:$0xff]   ;;  %1689 = vmatprep.subr.bf16.mxu0 %v11164_v19  ;;  %v11260_v19 = vld [vmem:[#allocation7 + $0x4] ss:$16 sps:$4 sm:$0xff]  }
 0x170   : > { %1101 = vmatprep.subr.bf16.mxu1 %v11159_v23  ;;  %1690 = vmatpush1.bf16.msra.mxu0 %v11162_v21  ;;  %v11170_v23 = vld [vmem:[#allocation8 + $0x24] ss:$16 sps:$4 sm:$0xff]   ;;  %v997_v21 = vlaneseq }
 0x171   : > { %1691 = vmatprep.subr.bf16.mxu0 %v11170_v23 }
 0x173   : > { %1102 = vmatpush1.bf16.msra.mxu1 %v11161_v24  ;;  %v11173_v24 = vld [vmem:[#allocation8 + $0x2c] ss:$16 sps:$4 sm:$0xff]  }
 0x174   : > { %1730 = vmatprep.subr.bf16.mxu1 %v11167_v20  ;;  %v11263_v20 = vld [vmem:[#allocation7 + $0xc] ss:$16 sps:$4 sm:$0xff]  }
 0x229   : > { %v10573_v27 = vpop.f32.mrb[0].mxu0 }
 0x22a   : > { %v901_v28 = vadd.f32 %v10573_v27, %v9643_v26  ;;  %v892_v29 = vpop.f32.mrb[1].mxu0  ;;  %v11171_v27 = vld [vmem:[#allocation8 + $0x28] ss:$16 sps:$4 sm:$0xff]  }
 0x22b   : > { %v893_v30 = vadd.f32 %v9643_v26, %v892_v29  ;;  %v10574_v31 = vpop.f32.mrb[2].mxu0  ;;  %v11179_v29 = vld [vmem:[#allocation8 + $0x4c] ss:$16 sps:$4 sm:$0xff]  }
 0x22c   : > { %v904_v32 = vadd.f32 %v10574_v31, %v9643_v26  ;;  %v895_v33 = vpop.f32.mrb[3].mxu0  ;;  %v957_v35 = vmax.f32 %v901_v28, 0.0  ;;  %v11176_v28 = vld [vmem:[#allocation8 + $0x44] ss:$16 sps:$4 sm:$0xff]  }
 0x22d   : > { %v896_v34 = vadd.f32 %v9643_v26, %v895_v33  ;;  %v955_v37 = vmax.f32 %v893_v30, 0.0  ;;  %v11177_v30 = vld [vmem:[#allocation8 + $0x48] ss:$16 sps:$4 sm:$0xff]   ;;  %v11182_v31 = vld [vmem:[#allocation8 + $0x64] ss:$16 sps:$4 sm:$0xff]  }
 0x22e   : > { %v958_v36 = vmax.f32 %v904_v32, 0.0  ;;  %v11185_v32 = vld [vmem:[#allocation8 + $0x6c] ss:$16 sps:$4 sm:$0xff]   ;;  %v11180_v33 = vld [vmem:[#allocation8 + $0x60] ss:$16 sps:$4 sm:$0xff]  }
 0x22f   : > { %v956_v38 = vmax.f32 %v896_v34, 0.0  ;;  %v11183_v34 = vld [vmem:[#allocation8 + $0x68] ss:$16 sps:$4 sm:$0xff]  }
 0x230   : > { %v972_v39 = vpack.c.bf16 %v958_v36, %v957_v35  ;;  %v11188_v35 = vld [vmem:[#allocation8 + $0x84] ss:$16 sps:$4 sm:$0xff]   ;;  %v11191_v36 = vld [vmem:[#allocation8 + $0x8c] ss:$16 sps:$4 sm:$0xff]  }
 0x231   : > { %v971_v40 = vpack.c.bf16 %v956_v38, %v955_v37  ;;  %v10577_v41 = vpop.f32.mrb[4].mxu0  ;;  %v11186_v37 = vld [vmem:[#allocation8 + $0x80] ss:$16 sps:$4 sm:$0xff]   ;;  %v11189_v38 = vld [vmem:[#allocation8 + $0x88] ss:$16 sps:$4 sm:$0xff]  }
 0x232   : > { %v917_v42 = vadd.f32 %v10577_v41, %v9643_v26  ;;  %v908_v43 = vpop.f32.mrb[5].mxu0  ;;  %v11192_v41 = vld [vmem:[#allocation8 + $0xa0] ss:$16 sps:$4 sm:$0xff]  }
 0x233   : > { %1120 = vmatmul.mubr.bf16.vlgmr.msra.gmra.mrb[0].mxu1 %v971_v40  ;;  %v909_v44 = vadd.f32 %v9643_v26, %v908_v43  ;;  %v10578_v45 = vpop.f32.mrb[6].mxu0  ;;  %v11197_v40 = vld [vmem:[#allocation8 + $0xac] ss:$16 sps:$4 sm:$0xff]   ;;  %v11200_v43 = vld [vmem:[#allocation8 + $0xc4] ss:$16 sps:$4 sm:$0xff]  }
 0x234   : > { %v961_v46 = vmax.f32 %v917_v42, 0.0  ;;  %v920_v47 = vadd.f32 %v10578_v45, %v9643_v26  ;;  %v911_v48 = vpop.f32.mrb[7].mxu0  ;;  %1129 = vmatprep.mubr.bf16.mxu1 %v12433_v25  ;;  %1731 = vmatpush1.bf16.msra.mxu1 %v11165_v22  ;;  %v11195_v42 = vld [vmem:[#allocation8 + $0xa8] ss:$16 sps:$4 sm:$0xff]   ;;  %v11198_v45 = vld [vmem:[#allocation8 + $0xc0] ss:$16 sps:$4 sm:$0xff]  }
 0x235   : > { %v959_v49 = vmax.f32 %v909_v44, 0.0  ;;  %v912_v50 = vadd.f32 %v9643_v26, %v911_v48  ;;  %1732 = vmatprep.subr.bf16.mxu1 %v11173_v24  ;;  %v11203_v44 = vld [vmem:[#allocation8 + $0xcc] ss:$16 sps:$4 sm:$0xff]   ;;  %v12952_v22 = vshrl.u32 %v997_v21, 7 }
 0x236   : > { %v962_v51 = vmax.f32 %v920_v47, 0.0  ;;  %v11206_v47 = vld [vmem:[#allocation8 + $0xe4] ss:$16 sps:$4 sm:$0xff]   ;;  %v11209_v48 = vld [vmem:[#allocation8 + $0xec] ss:$16 sps:$4 sm:$0xff]  }
 0x237   : > { %v960_v52 = vmax.f32 %v912_v50, 0.0  ;;  %v11207_v50 = vld [vmem:[#allocation8 + $0xe8] ss:$16 sps:$4 sm:$0xff]   ;;  %14490 = vst [vmem:[#allocation36_spill] sm:$0xff] %v12952_v22  ;;  %v12955_v23 = vsub.s32 0, %v12952_v22 }
 0x238   : > { %v974_v53 = vpack.c.bf16 %v962_v51, %v961_v46  ;;  %1733 = vmatpush1.bf16.msra.mxu1 %v11171_v27  ;;  %v11201_v46 = vld [vmem:[#allocation8 + $0xc8] ss:$16 sps:$4 sm:$0xff]   ;;  %v11212_v51 = vld [vmem:[#allocation8 + $0x104] ss:$16 sps:$4 sm:$0xff]   ;;  %v995_v24 = vld [vmem:[#allocation5] sm:$0x3] }
 0x239   : > { %v973_v54 = vpack.c.bf16 %v960_v52, %v959_v49  ;;  %v10581_v55 = vpop.f32.mrb[8].mxu0  ;;  %1734 = vmatprep.subr.bf16.mxu1 %v11179_v29  ;;  %v11204_v49 = vld [vmem:[#allocation8 + $0xe0] ss:$16 sps:$4 sm:$0xff]   ;;  %v11215_v52 = vld [vmem:[#allocation8 + $0x10c] ss:$16 sps:$4 sm:$0xff]   ;;  %v12961_v27 = vrot.slane %v995_v24, %v12955_v23 }
 0x23a   : > { %v933_v56 = vadd.f32 %v10581_v55, %v9643_v26  ;;  %v924_v57 = vpop.f32.mrb[9].mxu0  ;;  %v11218_v55 = vld [vmem:[#allocation8 + $0x124] ss:$16 sps:$4 sm:$0xff]  }
 0x23b   : > { %1130 = vmatmul.mubr.bf16.gmra.mrb[4].mxu1 %v972_v39  ;;  %v925_v58 = vadd.f32 %v9643_v26, %v924_v57  ;;  %v10582_v59 = vpop.f32.mrb[10].mxu0  ;;  %v11194_v39 = vld [vmem:[#allocation8 + $0xa4] ss:$16 sps:$4 sm:$0xff]   ;;  %v11216_v57 = vld [vmem:[#allocation8 + $0x120] ss:$16 sps:$4 sm:$0xff]  }
 0x23c   : > { %1139 = vmatprep.mubr.bf16.mxu1 %v12433_v25  ;;  %v965_v60 = vmax.f32 %v933_v56, 0.0  ;;  %v936_v61 = vadd.f32 %v10582_v59, %v9643_v26  ;;  %v927_v62 = vpop.f32.mrb[11].mxu0  ;;  %1735 = vmatpush1.bf16.msra.mxu1 %v11177_v30  ;;  %v11221_v56 = vld [vmem:[#allocation8 + $0x12c] ss:$16 sps:$4 sm:$0xff]   ;;  %v11224_v59 = vld [vmem:[#allocation8 + $0x144] ss:$16 sps:$4 sm:$0xff]  }
 0x23d   : > { %v963_v63 = vmax.f32 %v925_v58, 0.0  ;;  %v928_v0 = vadd.f32 %v9643_v26, %v927_v62  ;;  %1736 = vmatprep.subr.bf16.mxu1 %v11185_v32  ;;  %v11219_v58 = vld [vmem:[#allocation8 + $0x128] ss:$16 sps:$4 sm:$0xff]  }
 0x23e   : > { %v966_v1 = vmax.f32 %v936_v61, 0.0  ;;  %v11222_v61 = vld [vmem:[#allocation8 + $0x140] ss:$16 sps:$4 sm:$0xff]   ;;  %v11225_v62 = vld [vmem:[#allocation8 + $0x148] ss:$16 sps:$4 sm:$0xff]  }
 0x23f   : > { %v964_v2 = vmax.f32 %v928_v0, 0.0  ;;  %v11233_v0 = vld [vmem:[#allocation8 + $0x16c] ss:$16 sps:$4 sm:$0xff]  }
 0x240   : > { %v976_v3 = vpack.c.bf16 %v966_v1, %v965_v60  ;;  %1737 = vmatpush1.bf16.msra.mxu1 %v11183_v34  ;;  %v11227_v60 = vld [vmem:[#allocation8 + $0x14c] ss:$16 sps:$4 sm:$0xff]   ;;  %v11228_v1 = vld [vmem:[#allocation8 + $0x160] ss:$16 sps:$4 sm:$0xff]  }
 0x241   : > { %v975_v4 = vpack.c.bf16 %v964_v2, %v963_v63  ;;  %v10585_v5 = vpop.f32.mrb[12].mxu0  ;;  %1738 = vmatprep.subr.bf16.mxu1 %v11191_v36  ;;  %v11230_v63 = vld [vmem:[#allocation8 + $0x164] ss:$16 sps:$4 sm:$0xff]   ;;  %v11231_v2 = vld [vmem:[#allocation8 + $0x168] ss:$16 sps:$4 sm:$0xff]  }
 0x242   : > { %v949_v6 = vadd.f32 %v10585_v5, %v9643_v26  ;;  %v940_v7 = vpop.f32.mrb[13].mxu0  ;;  %v11237_v5 = vld [vmem:[#allocation8 + $0x188] ss:$16 sps:$4 sm:$0xff]  }
 0x243   : > { %1140 = vmatmul.mubr.bf16.gmra.mrb[8].mxu1 %v973_v54  ;;  %v941_v8 = vadd.f32 %v9643_v26, %v940_v7  ;;  %v10586_v9 = vpop.f32.mrb[14].mxu0  ;;  %v11213_v54 = vld [vmem:[#allocation8 + $0x108] ss:$16 sps:$4 sm:$0xff]   ;;  %v11242_v7 = vld [vmem:[#allocation8 + $0x1a4] ss:$16 sps:$4 sm:$0xff]  }
 0x244   : > { %1149 = vmatprep.mubr.bf16.mxu1 %v12433_v25  ;;  %v969_v10 = vmax.f32 %v949_v6, 0.0  ;;  %v952_v11 = vadd.f32 %v10586_v9, %v9643_v26  ;;  %v943_v12 = vpop.f32.mrb[15].mxu0  ;;  %1739 = vmatpush1.bf16.msra.mxu1 %v11189_v38  ;;  %v11239_v6 = vld [vmem:[#allocation8 + $0x18c] ss:$16 sps:$4 sm:$0xff]   ;;  %v11240_v9 = vld [vmem:[#allocation8 + $0x1a0] ss:$16 sps:$4 sm:$0xff]  }
 0x245   : > { %v967_v13 = vmax.f32 %v941_v8, 0.0  ;;  %v944_v14 = vadd.f32 %v9643_v26, %v943_v12  ;;  %v11168_v26 = vld [vmem:[#allocation8 + $0x20] ss:$16 sps:$4 sm:$0xff]   ;;  %1740 = vmatprep.subr.bf16.mxu1 %v11197_v40  ;;  %v11245_v8 = vld [vmem:[#allocation8 + $0x1ac] ss:$16 sps:$4 sm:$0xff]  }
 0x246   : > { %v970_v15 = vmax.f32 %v952_v11, 0.0  ;;  %1692 = vmatpush1.bf16.msra.mxu0 %v11168_v26  ;;  %v11248_v11 = vld [vmem:[#allocation8 + $0x1c4] ss:$16 sps:$4 sm:$0xff]   ;;  %v11251_v12 = vld [vmem:[#allocation8 + $0x1cc] ss:$16 sps:$4 sm:$0xff]   ;;  %v12958_v26 = vsub.s32 1, %v12952_v22 }
 0x247   : > { %v968_v16 = vmax.f32 %v944_v14, 0.0  ;;  %1693 = vmatprep.subr.bf16.mxu0 %v11176_v28  ;;  %v11249_v14 = vld [vmem:[#allocation8 + $0x1c8] ss:$16 sps:$4 sm:$0xff]  }
 0x248   : > { %v978_v17 = vpack.c.bf16 %v970_v15, %v969_v10  ;;  %1741 = vmatpush1.bf16.msra.mxu1 %v11195_v42  ;;  %v11243_v10 = vld [vmem:[#allocation8 + $0x1a8] ss:$16 sps:$4 sm:$0xff]   ;;  %v11254_v15 = vld [vmem:[#allocation8 + $0x1e4] ss:$16 sps:$4 sm:$0xff]   ;;  %14491 = vst [vmem:[#allocation37_spill] sm:$0xff] %v12958_v26  ;;  %v12964_v29 = vrot.slane %v995_v24, %v12958_v26 }
 0x249   : > { %v977_v18 = vpack.c.bf16 %v968_v16, %v967_v13  ;;  %1742 = vmatprep.subr.bf16.mxu1 %v11203_v44  ;;  %v11246_v13 = vld [vmem:[#allocation8 + $0x1c0] ss:$16 sps:$4 sm:$0xff]   ;;  %v11257_v16 = vld [vmem:[#allocation8 + $0x1ec] ss:$16 sps:$4 sm:$0xff]  }
 0x24b   : > { %1150 = vmatmul.mubr.bf16.gmra.mrb[12].mxu1 %v974_v53  ;;  %v11210_v53 = vld [vmem:[#allocation8 + $0x100] ss:$16 sps:$4 sm:$0xff]  }
 0x24c   : > { %1159 = vmatprep.mubr.bf16.mxu1 %v12433_v25  ;;  %1743 = vmatpush1.bf16.msra.mxu1 %v11201_v46 }
 0x24d   : > { %1744 = vmatprep.subr.bf16.mxu1 %v11209_v48 }
 0x250   : > { %1745 = vmatpush1.bf16.msra.mxu1 %v11207_v50 }
 0x251   : > { %1746 = vmatprep.subr.bf16.mxu1 %v11215_v52 }
 0x253   : > { %1160 = vmatmul.mubr.bf16.gmra.mrb[16].mxu1 %v975_v4  ;;  %v11236_v4 = vld [vmem:[#allocation8 + $0x184] ss:$16 sps:$4 sm:$0xff]  }
 0x254   : > { %1169 = vmatprep.mubr.bf16.mxu1 %v12433_v25  ;;  %1747 = vmatpush1.bf16.msra.mxu1 %v11213_v54 }
 0x255   : > { %1748 = vmatprep.subr.bf16.mxu1 %v11221_v56 }
 0x258   : > { %1749 = vmatpush1.bf16.msra.mxu1 %v11219_v58 }
 0x259   : > { %1750 = vmatprep.subr.bf16.mxu1 %v11227_v60 }
 0x25b   : > { %1170 = vmatmul.mubr.bf16.gmra.mrb[20].mxu1 %v976_v3  ;;  %v11234_v3 = vld [vmem:[#allocation8 + $0x180] ss:$16 sps:$4 sm:$0xff]  }
 0x25c   : > { %1179 = vmatprep.mubr.bf16.mxu1 %v12433_v25  ;;  %1751 = vmatpush1.bf16.msra.mxu1 %v11225_v62 }
 0x25d   : > { %1752 = vmatprep.subr.bf16.mxu1 %v11233_v0 }
 0x260   : > { %1753 = vmatpush1.bf16.msra.mxu1 %v11231_v2 }
 0x261   : > { %1754 = vmatprep.subr.bf16.mxu1 %v11239_v6 }
 0x263   : > { %1180 = vmatmul.mubr.bf16.gmra.mrb[24].mxu1 %v977_v18  ;;  %v11255_v18 = vld [vmem:[#allocation8 + $0x1e8] ss:$16 sps:$4 sm:$0xff]  }
 0x264   : > { %1189 = vmatprep.mubr.bf16.mxu1 %v12433_v25  ;;  %v11174_v25 = vld [vmem:[#allocation8 + $0x40] ss:$16 sps:$4 sm:$0xff]   ;;  %1755 = vmatpush1.bf16.msra.mxu1 %v11237_v5 }
 0x265   : > { %1694 = vmatpush1.bf16.msra.mxu0 %v11174_v25  ;;  %1756 = vmatprep.subr.bf16.mxu1 %v11245_v8 }
 0x266   : > { %1695 = vmatprep.subr.bf16.mxu0 %v11182_v31 }
 0x268   : > { %1757 = vmatpush1.bf16.msra.mxu1 %v11243_v10 }
 0x269   : > { %1696 = vmatpush1.bf16.msra.mxu0 %v11180_v33  ;;  %1758 = vmatprep.subr.bf16.mxu1 %v11251_v12 }
 0x26a   : > { %1697 = vmatprep.subr.bf16.mxu0 %v11188_v35 }
 0x26b   : > { %1190 = vmatmul.mubr.bf16.gmra.mrb[28].mxu1 %v978_v17  ;;  %v11252_v17 = vld [vmem:[#allocation8 + $0x1e0] ss:$16 sps:$4 sm:$0xff]  }
 0x26c   : > { %1759 = vmatpush1.bf16.msra.mxu1 %v11249_v14 }
 0x26d   : > { %1698 = vmatpush1.bf16.msra.mxu0 %v11186_v37  ;;  %1760 = vmatprep.subr.bf16.mxu1 %v11257_v16 }
 0x26e   : > { %1699 = vmatprep.subr.bf16.mxu0 %v11194_v39 }
 0x270   : > { %1761 = vmatpush1.bf16.msra.mxu1 %v11255_v18 }
 0x271   : > { %1700 = vmatpush1.bf16.msra.mxu0 %v11192_v41  ;;  %2268 = vmatprep.subr.bf16.mxu1 %v11263_v20 }
 0x272   : > { %1701 = vmatprep.subr.bf16.mxu0 %v11200_v43 }
 0x275   : > { %1702 = vmatpush1.bf16.msra.mxu0 %v11198_v45 }
 0x276   : > { %1703 = vmatprep.subr.bf16.mxu0 %v11206_v47 }
 0x279   : > { %1704 = vmatpush1.bf16.msra.mxu0 %v11204_v49 }
 0x27a   : > { %1705 = vmatprep.subr.bf16.mxu0 %v11212_v51 }
 0x27d   : > { %1706 = vmatpush1.bf16.msra.mxu0 %v11210_v53 }
 0x27e   : > { %1707 = vmatprep.subr.bf16.mxu0 %v11218_v55 }
 0x281   : > { %1708 = vmatpush1.bf16.msra.mxu0 %v11216_v57 }
 0x282   : > { %1709 = vmatprep.subr.bf16.mxu0 %v11224_v59 }
 0x285   : > { %1710 = vmatpush1.bf16.msra.mxu0 %v11222_v61 }
 0x286   : > { %1711 = vmatprep.subr.bf16.mxu0 %v11230_v63 }
 0x289   : > { %1712 = vmatpush1.bf16.msra.mxu0 %v11228_v1 }
 0x28a   : > { %1713 = vmatprep.subr.bf16.mxu0 %v11236_v4 }
 0x28d   : > { %1714 = vmatpush1.bf16.msra.mxu0 %v11234_v3 }
 0x28e   : > { %1715 = vmatprep.subr.bf16.mxu0 %v11242_v7 }
 0x291   : > { %1716 = vmatpush1.bf16.msra.mxu0 %v11240_v9 }
 0x292   : > { %1717 = vmatprep.subr.bf16.mxu0 %v11248_v11 }
 0x295   : > { %1718 = vmatpush1.bf16.msra.mxu0 %v11246_v13 }
 0x296   : > { %1719 = vmatprep.subr.bf16.mxu0 %v11254_v15 }
 0x299   : > { %1720 = vmatpush1.bf16.msra.mxu0 %v11252_v17 }
 0x29a   : > { %2155 = vmatprep.subr.bf16.mxu0 %v11260_v19 }
 0x306   : > { %v1121_v28 = vpop.f32.mrb[0].mxu1 }
 0x307   : > { %v1123_v25 = vpop.f32.mrb[1].mxu1  ;;  %v1122_v31 = vadd.f32 %v1121_v28, %v12961_v27 }
 0x308   : > { %v1125_v30 = vpop.f32.mrb[2].mxu1  ;;  %v1124_v34 = vadd.f32 %v1123_v25, %v12964_v29 }
 0x309   : > { %v1126_v32 = vadd.f32 %v1125_v30, %v12961_v27  ;;  %v1127_v33 = vpop.f32.mrb[3].mxu1 }
 0x30a   : > { %v1128_v35 = vadd.f32 %v1127_v33, %v12964_v29 }
 0x30b   : > { %v12970_v36 = vpack.c.bf16 %v1126_v32, %v1122_v31 }
 0x30c   : > { %v12972_v37 = vpack.c.bf16 %v1128_v35, %v1124_v34 }
 0x30d   : > { %14492 = vst [vmem:[#allocation38_spill] sm:$0xff] %v12970_v36 }
 0x30e   : > { %14493 = vst [vmem:[#allocation39_spill] sm:$0xff] %v12972_v37  ;;  %v1131_v38 = vpop.f32.mrb[4].mxu1 }
 0x30f   : > { %v1133_v39 = vpop.f32.mrb[5].mxu1  ;;  %v1132_v41 = vadd.f32 %v1131_v38, %v12961_v27 }
 0x310   : > { %v1135_v40 = vpop.f32.mrb[6].mxu1  ;;  %v1134_v44 = vadd.f32 %v1133_v39, %v12964_v29 }
 0x311   : > { %v1136_v42 = vadd.f32 %v1135_v40, %v12961_v27  ;;  %v1137_v43 = vpop.f32.mrb[7].mxu1 }
 0x312   : > { %v1138_v45 = vadd.f32 %v1137_v43, %v12964_v29 }
 0x313   : > { %v12978_v46 = vpack.c.bf16 %v1136_v42, %v1132_v41 }
 0x314   : > { %v12980_v47 = vpack.c.bf16 %v1138_v45, %v1134_v44 }
 0x315   : > { %14494 = vst [vmem:[#allocation40_spill] sm:$0xff] %v12978_v46  ;;  %v1216_v14 = vmax.bf16 %v12978_v46, %v12970_v36 }
 0x316   : > { %14495 = vst [vmem:[#allocation41_spill] sm:$0xff] %v12980_v47  ;;  %v1141_v48 = vpop.f32.mrb[8].mxu1  ;;  %v1229_v15 = vmax.bf16 %v12980_v47, %v12972_v37 }
 0x317   : > { %v1143_v49 = vpop.f32.mrb[9].mxu1  ;;  %v1142_v51 = vadd.f32 %v1141_v48, %v12961_v27 }
 0x318   : > { %v1145_v50 = vpop.f32.mrb[10].mxu1  ;;  %v1144_v54 = vadd.f32 %v1143_v49, %v12964_v29 }
 0x319   : > { %v1146_v52 = vadd.f32 %v1145_v50, %v12961_v27  ;;  %v1147_v53 = vpop.f32.mrb[11].mxu1 }
 0x31a   : > { %v1148_v55 = vadd.f32 %v1147_v53, %v12964_v29 }
 0x31b   : > { %v12986_v56 = vpack.c.bf16 %v1146_v52, %v1142_v51 }
 0x31c   : > { %v12988_v57 = vpack.c.bf16 %v1148_v55, %v1144_v54 }
 0x31d   : > { %14496 = vst [vmem:[#allocation42_spill] sm:$0xff] %v12986_v56  ;;  %v1217_v17 = vmax.bf16 %v1216_v14, %v12986_v56 }
 0x31e   : > { %14497 = vst [vmem:[#allocation43_spill] sm:$0xff] %v12988_v57  ;;  %v1151_v58 = vpop.f32.mrb[12].mxu1  ;;  %v1230_v19 = vmax.bf16 %v1229_v15, %v12988_v57 }
 0x31f   : > { %v1153_v59 = vpop.f32.mrb[13].mxu1  ;;  %v1152_v61 = vadd.f32 %v1151_v58, %v12961_v27 }
 0x320   : > { %v1155_v60 = vpop.f32.mrb[14].mxu1  ;;  %v1154_v0 = vadd.f32 %v1153_v59, %v12964_v29 }
 0x321   : > { %v1156_v62 = vadd.f32 %v1155_v60, %v12961_v27  ;;  %v1157_v63 = vpop.f32.mrb[15].mxu1 }
 0x322   : > { %v1158_v1 = vadd.f32 %v1157_v63, %v12964_v29 }
 0x323   : > { %v12994_v2 = vpack.c.bf16 %v1156_v62, %v1152_v61 }
 0x324   : > { %v12996_v3 = vpack.c.bf16 %v1158_v1, %v1154_v0 }
 0x325   : > { %14498 = vst [vmem:[#allocation44_spill] sm:$0xff] %v12994_v2  ;;  %v1218_v21 = vmax.bf16 %v1217_v17, %v12994_v2 }
 0x326   : > { %14499 = vst [vmem:[#allocation45_spill] sm:$0xff] %v12996_v3  ;;  %v1161_v4 = vpop.f32.mrb[16].mxu1  ;;  %v1231_v30 = vmax.bf16 %v1230_v19, %v12996_v3 }
 0x327   : > { %v1163_v5 = vpop.f32.mrb[17].mxu1  ;;  %v1162_v7 = vadd.f32 %v1161_v4, %v12961_v27  ;;  %v1219_v35 = vunpack.i.l.bf16 %v1218_v21  ;;  %v1220_v38 = vunpack.i.h.bf16 %v1218_v21 }
 0x328   : > { %v1165_v6 = vpop.f32.mrb[18].mxu1  ;;  %v1164_v10 = vadd.f32 %v1163_v5, %v12964_v29  ;;  %v1232_v39 = vunpack.i.l.bf16 %v1231_v30  ;;  %v1233_v40 = vunpack.i.h.bf16 %v1231_v30 }
 0x329   : > { %v1166_v8 = vadd.f32 %v1165_v6, %v12961_v27  ;;  %v1167_v9 = vpop.f32.mrb[19].mxu1  ;;  %v1221_v44 = vmax.f32 %v1219_v35, %v1220_v38 }
 0x32a   : > { %v1168_v11 = vadd.f32 %v1167_v9, %v12964_v29  ;;  %v1234_v52 = vmax.f32 %v1232_v39, %v1233_v40 }
 0x32b   : > { %v13002_v12 = vpack.c.bf16 %v1166_v8, %v1162_v7  ;;  %v1222_v55 = vrot.slane %v1221_v44, 4 }
 0x32c   : > { %v13004_v13 = vpack.c.bf16 %v1168_v11, %v1164_v10  ;;  %v1235_v59 = vrot.slane %v1234_v52, 4 }
 0x32d   : > { %14500 = vst [vmem:[#allocation46_spill] sm:$0xff] %v13002_v12  ;;  %v1223_v62 = vmax.f32 %v1221_v44, %v1222_v55 }
 0x32e   : > { %14501 = vst [vmem:[#allocation47_spill] sm:$0xff] %v13004_v13  ;;  %v1171_v16 = vpop.f32.mrb[20].mxu1  ;;  %v1236_v8 = vmax.f32 %v1234_v52, %v1235_v59 }
 0x32f   : > { %v1173_v18 = vpop.f32.mrb[21].mxu1  ;;  %v1172_v24 = vadd.f32 %v1171_v16, %v12961_v27 }
 0x330   : > { %v1175_v20 = vpop.f32.mrb[22].mxu1  ;;  %v1174_v31 = vadd.f32 %v1173_v18, %v12964_v29  ;;  %v1237_v17 = vrot.slane %v1236_v8, 2 }
 0x331   : > { %v1176_v28 = vadd.f32 %v1175_v20, %v12961_v27  ;;  %v1177_v25 = vpop.f32.mrb[23].mxu1 }
 0x332   : > { %v1178_v32 = vadd.f32 %v1177_v25, %v12964_v29 }
 0x333   : > { %v13018_v33 = vpack.c.bf16 %v1176_v28, %v1172_v24  ;;  %v1238_v28 = vmax.f32 %v1236_v8, %v1237_v17  ;;  %v11266_v8 = vld [vmem:[#allocation7 + $0x24] ss:$16 sps:$4 sm:$0xff]   ;;  %v11270_v17 = vld [vmem:[#allocation7 + $0x40] ss:$16 sps:$4 sm:$0xff]  }
 0x334   : > { %v13020_v34 = vpack.c.bf16 %v1178_v32, %v1174_v31 }
 0x335   : > { %14502 = vst [vmem:[#allocation48_spill] sm:$0xff] %v13018_v33  ;;  %v1242_v63 = vmax.bf16 %v13018_v33, %v13002_v12  ;;  %v1239_v38 = vrot.slane %v1238_v28, 1 }
 0x336   : > { %14503 = vst [vmem:[#allocation49_spill] sm:$0xff] %v13020_v34  ;;  %v1181_v41 = vpop.f32.mrb[24].mxu1  ;;  %v1255_v5 = vmax.bf16 %v13020_v34, %v13004_v13 }
 0x337   : > { %v1183_v42 = vpop.f32.mrb[25].mxu1  ;;  %v1182_v45 = vadd.f32 %v1181_v41, %v12961_v27  ;;  %v1240_v44 = vmax.f32 %v1238_v28, %v1239_v38  ;;  %v11287_v28 = vld [vmem:[#allocation7 + $0x8c] ss:$16 sps:$4 sm:$0xff]   ;;  %v11291_v38 = vld [vmem:[#allocation7 + $0xa8] ss:$16 sps:$4 sm:$0xff]  }
 0x338   : > { %v1185_v43 = vpop.f32.mrb[26].mxu1  ;;  %v1184_v50 = vadd.f32 %v1183_v42, %v12964_v29 }
 0x339   : > { %v1186_v48 = vadd.f32 %v1185_v43, %v12961_v27  ;;  %v1187_v49 = vpop.f32.mrb[27].mxu1  ;;  %v1241_v52 = vpack.i.bf16 %v1240_v44, %v1240_v44  ;;  %v11305_v44 = vld [vmem:[#allocation7 + $0xec] ss:$16 sps:$4 sm:$0xff]  }
 0x33a   : > { %v1188_v51 = vadd.f32 %v1187_v49, %v12964_v29 }
 0x33b   : > { %v13026_v53 = vpack.c.bf16 %v1186_v48, %v1182_v45 }
 0x33c   : > { %v13028_v54 = vpack.c.bf16 %v1188_v51, %v1184_v50 }
 0x33d   : > { %14504 = vst [vmem:[#allocation50_spill] sm:$0xff] %v13026_v53  ;;  %v1243_v9 = vmax.bf16 %v1242_v63, %v13026_v53 }
 0x33e   : > { %14505 = vst [vmem:[#allocation51_spill] sm:$0xff] %v13028_v54  ;;  %v1191_v58 = vpop.f32.mrb[28].mxu1  ;;  %v1256_v11 = vmax.bf16 %v1255_v5, %v13028_v54  ;;  %v11258_v5 = vld [vmem:[#allocation7] ss:$16 sps:$4 sm:$0xff]  }
 0x33f   : > { %v1193_v60 = vpop.f32.mrb[29].mxu1  ;;  %v1192_v0 = vadd.f32 %v1191_v58, %v12961_v27 }
 0x340   : > { %v1195_v61 = vpop.f32.mrb[30].mxu1  ;;  %v1194_v6 = vadd.f32 %v1193_v60, %v12964_v29 }
 0x341   : > { %v1196_v1 = vadd.f32 %v1195_v61, %v12961_v27  ;;  %v1197_v4 = vpop.f32.mrb[31].mxu1  ;;  %v1224_v27 = vrot.slane %v1223_v62, 2 }
 0x342   : > { %v1198_v7 = vadd.f32 %v1197_v4, %v12964_v29 }
 0x343   : > { %v13039_v10 = vpack.c.bf16 %v1196_v1, %v1192_v0  ;;  %v1225_v24 = vmax.f32 %v1223_v62, %v1224_v27  ;;  %v1359_v62 = vunpack.c.l.b16 %v1241_v52  ;;  %v11272_v27 = vld [vmem:[#allocation7 + $0x44] ss:$16 sps:$4 sm:$0xff]   ;;  %v11309_v52 = vld [vmem:[#allocation7 + $0x108] ss:$16 sps:$4 sm:$0xff]  }
 0x344   : > { %v13042_v14 = vpack.c.bf16 %v1198_v7, %v1194_v6  ;;  %v11261_v6 = vld [vmem:[#allocation7 + $0x8] ss:$16 sps:$4 sm:$0xff]  }
 0x345   : > { %14506 = vst [vmem:[#allocation52_spill] sm:$0xff] %v13039_v10  ;;  %v1244_v15 = vmax.bf16 %v1243_v9, %v13039_v10  ;;  %v1226_v35 = vrot.slane %v1225_v24, 1  ;;  %v11269_v9 = vld [vmem:[#allocation7 + $0x2c] ss:$16 sps:$4 sm:$0xff]  }
 0x346   : > { %14507 = vst [vmem:[#allocation53_spill] sm:$0xff] %v13042_v14  ;;  %v1257_v16 = vmax.bf16 %v1256_v11, %v13042_v14  ;;  %v11264_v11 = vld [vmem:[#allocation7 + $0x20] ss:$16 sps:$4 sm:$0xff]  }
 0x347   : > { %v1245_v18 = vunpack.i.l.bf16 %v1244_v15  ;;  %v1246_v19 = vunpack.i.h.bf16 %v1244_v15  ;;  %v1227_v42 = vmax.f32 %v1225_v24, %v1226_v35  ;;  %v11267_v15 = vld [vmem:[#allocation7 + $0x28] ss:$16 sps:$4 sm:$0xff]   ;;  %v11284_v24 = vld [vmem:[#allocation7 + $0x84] ss:$16 sps:$4 sm:$0xff]   ;;  %v11288_v35 = vld [vmem:[#allocation7 + $0xa0] ss:$16 sps:$4 sm:$0xff]  }
 0x348   : > { %v1258_v20 = vunpack.i.l.bf16 %v1257_v16  ;;  %v1259_v21 = vunpack.i.h.bf16 %v1257_v16  ;;  %v11275_v16 = vld [vmem:[#allocation7 + $0x4c] ss:$16 sps:$4 sm:$0xff]  }
 0x349   : > { %v1247_v29 = vmax.f32 %v1245_v18, %v1246_v19  ;;  %v1228_v50 = vpack.i.bf16 %v1227_v42, %v1227_v42  ;;  %v11273_v18 = vld [vmem:[#allocation7 + $0x48] ss:$16 sps:$4 sm:$0xff]   ;;  %v11278_v19 = vld [vmem:[#allocation7 + $0x64] ss:$16 sps:$4 sm:$0xff]  }
 0x34a   : > { %v1260_v25 = vmax.f32 %v1258_v20, %v1259_v21  ;;  %v11281_v20 = vld [vmem:[#allocation7 + $0x6c] ss:$16 sps:$4 sm:$0xff]   ;;  %v11276_v21 = vld [vmem:[#allocation7 + $0x60] ss:$16 sps:$4 sm:$0xff]   ;;  %v11297_v42 = vld [vmem:[#allocation7 + $0xc8] ss:$16 sps:$4 sm:$0xff]  }
 0x34b   : > { %v1248_v30 = vrot.slane %v1247_v29, 4  ;;  %v1358_v60 = vunpack.c.l.b16 %v1228_v50  ;;  %v11311_v50 = vld [vmem:[#allocation7 + $0x10c] ss:$16 sps:$4 sm:$0xff]  }
 0x34c   : > { %v1261_v31 = vrot.slane %v1260_v25, 4 }
 0x34d   : > { %v1249_v32 = vmax.f32 %v1247_v29, %v1248_v30  ;;  %v11279_v29 = vld [vmem:[#allocation7 + $0x68] ss:$16 sps:$4 sm:$0xff]  }
 0x34e   : > { %v1262_v39 = vmax.f32 %v1260_v25, %v1261_v31  ;;  %v11282_v25 = vld [vmem:[#allocation7 + $0x80] ss:$16 sps:$4 sm:$0xff]   ;;  %v11285_v30 = vld [vmem:[#allocation7 + $0x88] ss:$16 sps:$4 sm:$0xff]   ;;  %v11290_v31 = vld [vmem:[#allocation7 + $0xa4] ss:$16 sps:$4 sm:$0xff]  }
 0x34f   : > { %v1250_v40 = vrot.slane %v1249_v32, 2 }
 0x350   : > { %v1263_v41 = vrot.slane %v1262_v39, 2 }
 0x351   : > { %v1251_v43 = vmax.f32 %v1249_v32, %v1250_v40  ;;  %v11293_v32 = vld [vmem:[#allocation7 + $0xac] ss:$16 sps:$4 sm:$0xff]  }
 0x352   : > { %v1264_v45 = vmax.f32 %v1262_v39, %v1263_v41  ;;  %v11296_v39 = vld [vmem:[#allocation7 + $0xc4] ss:$16 sps:$4 sm:$0xff]   ;;  %v11299_v40 = vld [vmem:[#allocation7 + $0xcc] ss:$16 sps:$4 sm:$0xff]   ;;  %v11294_v41 = vld [vmem:[#allocation7 + $0xc0] ss:$16 sps:$4 sm:$0xff]  }
 0x353   : > { %v1252_v48 = vrot.slane %v1251_v43, 1 }
 0x354   : > { %v1265_v49 = vrot.slane %v1264_v45, 1 }
 0x355   : > { %v1253_v51 = vmax.f32 %v1251_v43, %v1252_v48  ;;  %v11302_v43 = vld [vmem:[#allocation7 + $0xe4] ss:$16 sps:$4 sm:$0xff]   ;;  %v11303_v48 = vld [vmem:[#allocation7 + $0xe8] ss:$16 sps:$4 sm:$0xff]  }
 0x356   : > { %v1266_v55 = vmax.f32 %v1264_v45, %v1265_v49  ;;  %v11300_v45 = vld [vmem:[#allocation7 + $0xe0] ss:$16 sps:$4 sm:$0xff]   ;;  %v11308_v49 = vld [vmem:[#allocation7 + $0x104] ss:$16 sps:$4 sm:$0xff]  }
 0x357   : > { %v1254_v58 = vpack.i.bf16 %v1253_v51, %v1253_v51  ;;  %v11306_v51 = vld [vmem:[#allocation7 + $0x100] ss:$16 sps:$4 sm:$0xff]  }
 0x358   : > { %v1267_v59 = vpack.i.bf16 %v1266_v55, %v1266_v55  ;;  %v11314_v55 = vld [vmem:[#allocation7 + $0x124] ss:$16 sps:$4 sm:$0xff]  }
 0x359   : > { %v1360_v61 = vunpack.c.l.b16 %v1254_v58  ;;  %v11317_v58 = vld [vmem:[#allocation7 + $0x12c] ss:$16 sps:$4 sm:$0xff]  }
 0x35a   : > { %v1361_v63 = vunpack.c.l.b16 %v1267_v59  ;;  %v11312_v59 = vld [vmem:[#allocation7 + $0x120] ss:$16 sps:$4 sm:$0xff]  }
 0x35b   : > { %v1363_v0 = vsel %vm1362_vm1, %v1360_v61, %v1358_v60  ;;  %v11315_v60 = vld [vmem:[#allocation7 + $0x128] ss:$16 sps:$4 sm:$0xff]   ;;  %v11320_v61 = vld [vmem:[#allocation7 + $0x144] ss:$16 sps:$4 sm:$0xff]  }
 0x35c   : > { %v1364_v1 = vsel %vm1362_vm1, %v1361_v63, %v1359_v62  ;;  %v1365_v7 = vpack.c.b16 %v1363_v0, %v1363_v0  ;;  %v11323_v62 = vld [vmem:[#allocation7 + $0x14c] ss:$16 sps:$4 sm:$0xff]   ;;  %v11318_v63 = vld [vmem:[#allocation7 + $0x140] ss:$16 sps:$4 sm:$0xff]   ;;  %v11321_v0 = vld [vmem:[#allocation7 + $0x148] ss:$16 sps:$4 sm:$0xff]  }
 0x35d   : > { %v1366_v4 = vpack.c.b16 %v1364_v1, %v1364_v1  ;;  %v11326_v1 = vld [vmem:[#allocation7 + $0x164] ss:$16 sps:$4 sm:$0xff]  }
 0x35f   : > { %1721 = vmatprep.mubr.bf16.mxu0 %v1366_v4  ;;  %1762 = vmatprep.mubr.bf16.mxu1 %v1366_v4  ;;  %v11329_v4 = vld [vmem:[#allocation7 + $0x16c] ss:$16 sps:$4 sm:$0xff]  }
 0x360   : > { %1722 = vmatmul.mubr.bf16.vlgmr.msra.gmra.mrb[16].mxu0 %v1365_v7  ;;  %1763 = vmatmul.mubr.bf16.vlgmr.msra.gmra.mrb[32].mxu1 %v1365_v7  ;;  %v11332_v7 = vld [vmem:[#allocation7 + $0x184] ss:$16 sps:$4 sm:$0xff]  }
 0x361   : > { %2156 = vmatpush1.bf16.msra.mxu0 %v11258_v5  ;;  %2269 = vmatpush1.bf16.msra.mxu1 %v11261_v6  ;;  %v11324_v5 = vld [vmem:[#allocation7 + $0x160] ss:$16 sps:$4 sm:$0xff]   ;;  %v11327_v6 = vld [vmem:[#allocation7 + $0x168] ss:$16 sps:$4 sm:$0xff]  }
 0x362   : > { %2187 = vmatprep.mubr.bf16.mxu0 %v12972_v37  ;;  %2300 = vmatprep.mubr.bf16.mxu1 %v12972_v37 }
 0x363   : > { %2157 = vmatprep.subr.bf16.mxu0 %v11266_v8  ;;  %2270 = vmatprep.subr.bf16.mxu1 %v11269_v9  ;;  %v11335_v8 = vld [vmem:[#allocation7 + $0x18c] ss:$16 sps:$4 sm:$0xff]   ;;  %v11330_v9 = vld [vmem:[#allocation7 + $0x180] ss:$16 sps:$4 sm:$0xff]  }
 0x365   : > { %2158 = vmatpush1.bf16.msra.mxu0 %v11264_v11  ;;  %2271 = vmatpush1.bf16.msra.mxu1 %v11267_v15  ;;  %v11333_v11 = vld [vmem:[#allocation7 + $0x188] ss:$16 sps:$4 sm:$0xff]   ;;  %v11338_v15 = vld [vmem:[#allocation7 + $0x1a4] ss:$16 sps:$4 sm:$0xff]  }
 0x366   : > { %2159 = vmatprep.subr.bf16.mxu0 %v11272_v27  ;;  %2272 = vmatprep.subr.bf16.mxu1 %v11275_v16  ;;  %v11341_v27 = vld [vmem:[#allocation7 + $0x1ac] ss:$16 sps:$4 sm:$0xff]   ;;  %v11336_v16 = vld [vmem:[#allocation7 + $0x1a0] ss:$16 sps:$4 sm:$0xff]  }
 0x369   : > { %2160 = vmatpush1.bf16.msra.mxu0 %v11270_v17  ;;  %2273 = vmatpush1.bf16.msra.mxu1 %v11273_v18  ;;  %v11339_v17 = vld [vmem:[#allocation7 + $0x1a8] ss:$16 sps:$4 sm:$0xff]   ;;  %v11344_v18 = vld [vmem:[#allocation7 + $0x1c4] ss:$16 sps:$4 sm:$0xff]  }
 0x36a   : > { %2161 = vmatprep.subr.bf16.mxu0 %v11278_v19  ;;  %2274 = vmatprep.subr.bf16.mxu1 %v11281_v20  ;;  %v11347_v19 = vld [vmem:[#allocation7 + $0x1cc] ss:$16 sps:$4 sm:$0xff]   ;;  %v11342_v20 = vld [vmem:[#allocation7 + $0x1c0] ss:$16 sps:$4 sm:$0xff]  }
 0x36d   : > { %2162 = vmatpush1.bf16.msra.mxu0 %v11276_v21  ;;  %2275 = vmatpush1.bf16.msra.mxu1 %v11279_v29  ;;  %v11345_v21 = vld [vmem:[#allocation7 + $0x1c8] ss:$16 sps:$4 sm:$0xff]   ;;  %v11350_v29 = vld [vmem:[#allocation7 + $0x1e4] ss:$16 sps:$4 sm:$0xff]  }
 0x36e   : > { %2163 = vmatprep.subr.bf16.mxu0 %v11284_v24  ;;  %2276 = vmatprep.subr.bf16.mxu1 %v11287_v28  ;;  %v11353_v24 = vld [vmem:[#allocation7 + $0x1ec] ss:$16 sps:$4 sm:$0xff]   ;;  %v11348_v28 = vld [vmem:[#allocation7 + $0x1e0] ss:$16 sps:$4 sm:$0xff]  }
 0x371   : > { %2164 = vmatpush1.bf16.msra.mxu0 %v11282_v25  ;;  %2277 = vmatpush1.bf16.msra.mxu1 %v11285_v30  ;;  %v11351_v25 = vld [vmem:[#allocation7 + $0x1e8] ss:$16 sps:$4 sm:$0xff]  }
 0x372   : > { %2165 = vmatprep.subr.bf16.mxu0 %v11290_v31  ;;  %2278 = vmatprep.subr.bf16.mxu1 %v11293_v32  ;;  %v2617_v30 = vld [vmem:[#allocation11] sm:$0xff]  ;;  %v2618_v32 = vld [vmem:[#allocation11 + $0x8] sm:$0xff] }
 0x373   : > { %v2621_v31 = vld [vmem:[#allocation11 + $0x20] sm:$0xff] }
 0x375   : > { %2166 = vmatpush1.bf16.msra.mxu0 %v11288_v35  ;;  %2279 = vmatpush1.bf16.msra.mxu1 %v11291_v38  ;;  %v9806_v35 = vcombine.high %v2617_v30, %v2621_v31  ;;  %v2622_v38 = vld [vmem:[#allocation11 + $0x28] sm:$0xff] }
 0x376   : > { %2167 = vmatprep.subr.bf16.mxu0 %v11296_v39  ;;  %2280 = vmatprep.subr.bf16.mxu1 %v11299_v40  ;;  %v9805_v39 = vcombine.low %v2617_v30, %v2621_v31  ;;  %v9808_v40 = vcombine.high %v2618_v32, %v2622_v38 }
 0x379   : > { %2168 = vmatpush1.bf16.msra.mxu0 %v11294_v41  ;;  %2281 = vmatpush1.bf16.msra.mxu1 %v11297_v42  ;;  %v9807_v41 = vcombine.low %v2618_v32, %v2622_v38  ;;  %v2625_v42 = vld [vmem:[#allocation11 + $0x40] sm:$0xff] }
 0x37a   : > { %2169 = vmatprep.subr.bf16.mxu0 %v11302_v43  ;;  %2282 = vmatprep.subr.bf16.mxu1 %v11305_v44  ;;  %v2629_v43 = vld [vmem:[#allocation11 + $0x60] sm:$0xff]  ;;  %v2626_v44 = vld [vmem:[#allocation11 + $0x48] sm:$0xff] }
 0x37d   : > { %2170 = vmatpush1.bf16.msra.mxu0 %v11300_v45  ;;  %2283 = vmatpush1.bf16.msra.mxu1 %v11303_v48  ;;  %v9813_v45 = vcombine.low %v2625_v42, %v2629_v43  ;;  %v9814_v48 = vcombine.high %v2625_v42, %v2629_v43  ;;  %v2673_v42 = vld [vmem:[#allocation11 + $0x1c0] sm:$0xff] }
 0x37e   : > { %2171 = vmatprep.subr.bf16.mxu0 %v11308_v49  ;;  %2284 = vmatprep.subr.bf16.mxu1 %v11311_v50  ;;  %v2630_v49 = vld [vmem:[#allocation11 + $0x68] sm:$0xff]  ;;  %v2633_v50 = vld [vmem:[#allocation11 + $0x80] sm:$0xff] }
 0x37f   : > { %v2677_v43 = vld [vmem:[#allocation11 + $0x1e0] sm:$0xff] }
 0x381   : > { %2172 = vmatpush1.bf16.msra.mxu0 %v11306_v51  ;;  %2285 = vmatpush1.bf16.msra.mxu1 %v11309_v52  ;;  %v2637_v51 = vld [vmem:[#allocation11 + $0xa0] sm:$0xff]  ;;  %v9816_v52 = vcombine.high %v2626_v44, %v2630_v49 }
 0x382   : > { %2173 = vmatprep.subr.bf16.mxu0 %v11314_v55  ;;  %2286 = vmatprep.subr.bf16.mxu1 %v11317_v58  ;;  %v2634_v55 = vld [vmem:[#allocation11 + $0x88] sm:$0xff] }
 0x383   : > { %v2638_v58 = vld [vmem:[#allocation11 + $0xa8] sm:$0xff] }
 0x385   : > { %2174 = vmatpush1.bf16.msra.mxu0 %v11312_v59  ;;  %2287 = vmatpush1.bf16.msra.mxu1 %v11315_v60  ;;  %v9815_v59 = vcombine.low %v2626_v44, %v2630_v49  ;;  %v9822_v60 = vcombine.high %v2633_v50, %v2637_v51  ;;  %v2678_v49 = vld [vmem:[#allocation11 + $0x1e8] sm:$0xff] }
 0x386   : > { %2175 = vmatprep.subr.bf16.mxu0 %v11320_v61  ;;  %2288 = vmatprep.subr.bf16.mxu1 %v11323_v62  ;;  %v9821_v61 = vcombine.low %v2633_v50, %v2637_v51  ;;  %v9824_v62 = vcombine.high %v2634_v55, %v2638_v58  ;;  %v9862_v50 = vcombine.high %v2673_v42, %v2677_v43  ;;  %v2681_v51 = vld [vmem:[#allocation11 + $0x200] sm:$0xff] }
 0x389   : > { %2176 = vmatpush1.bf16.msra.mxu0 %v11318_v63  ;;  %2289 = vmatpush1.bf16.msra.mxu1 %v11321_v0  ;;  %v2641_v63 = vld [vmem:[#allocation11 + $0xc0] sm:$0xff] }
 0x38a   : > { %2177 = vmatprep.subr.bf16.mxu0 %v11326_v1  ;;  %2290 = vmatprep.subr.bf16.mxu1 %v11329_v4  ;;  %v2645_v0 = vld [vmem:[#allocation11 + $0xe0] sm:$0xff]  ;;  %v2642_v1 = vld [vmem:[#allocation11 + $0xc8] sm:$0xff] }
 0x38b   : > { %v2646_v4 = vld [vmem:[#allocation11 + $0xe8] sm:$0xff] }
 0x38d   : > { %2178 = vmatpush1.bf16.msra.mxu0 %v11324_v5  ;;  %2291 = vmatpush1.bf16.msra.mxu1 %v11327_v6  ;;  %v2649_v5 = vld [vmem:[#allocation11 + $0x100] sm:$0xff] }
 0x38e   : > { %2179 = vmatprep.subr.bf16.mxu0 %v11332_v7  ;;  %2292 = vmatprep.subr.bf16.mxu1 %v11335_v8  ;;  %v2653_v6 = vld [vmem:[#allocation11 + $0x120] sm:$0xff]  ;;  %v9823_v7 = vcombine.low %v2634_v55, %v2638_v58  ;;  %v9830_v8 = vcombine.high %v2641_v63, %v2645_v0  ;;  %v9861_v58 = vcombine.low %v2673_v42, %v2677_v43  ;;  %v2714_v42 = vld [vmem:[#allocation11 + $0x308] sm:$0xff] }
 0x38f   : > { %v2718_v43 = vld [vmem:[#allocation11 + $0x328] sm:$0xff] }
 0x391   : > { %2180 = vmatpush1.bf16.msra.mxu0 %v11330_v9  ;;  %2293 = vmatpush1.bf16.msra.mxu1 %v11333_v11  ;;  %v9829_v9 = vcombine.low %v2641_v63, %v2645_v0  ;;  %v9832_v11 = vcombine.high %v2642_v1, %v2646_v4  ;;  %v2689_v63 = vld [vmem:[#allocation11 + $0x240] sm:$0xff] }
 0x392   : > { %2181 = vmatprep.subr.bf16.mxu0 %v11338_v15  ;;  %2294 = vmatprep.subr.bf16.mxu1 %v11341_v27  ;;  %v9838_v15 = vcombine.high %v2649_v5, %v2653_v6  ;;  %v2650_v27 = vld [vmem:[#allocation11 + $0x108] sm:$0xff]  ;;  %v2693_v0 = vld [vmem:[#allocation11 + $0x260] sm:$0xff] }
 0x395   : > { %2182 = vmatpush1.bf16.msra.mxu0 %v11336_v16  ;;  %2295 = vmatpush1.bf16.msra.mxu1 %v11339_v17  ;;  %v2654_v16 = vld [vmem:[#allocation11 + $0x128] sm:$0xff]  ;;  %v9831_v17 = vcombine.low %v2642_v1, %v2646_v4 }
 0x396   : > { %2183 = vmatprep.subr.bf16.mxu0 %v11344_v18  ;;  %2296 = vmatprep.subr.bf16.mxu1 %v11347_v19  ;;  %v9837_v18 = vcombine.low %v2649_v5, %v2653_v6  ;;  %v9840_v19 = vcombine.high %v2650_v27, %v2654_v16  ;;  %v9839_v30 = vcombine.low %v2650_v27, %v2654_v16 }
 0x397   : > { %v9878_v6 = vcombine.high %v2689_v63, %v2693_v0  ;;  %v9877_v27 = vcombine.low %v2689_v63, %v2693_v0  ;;  %v2733_v63 = vld [vmem:[#allocation11 + $0x3a0] sm:$0xff]  ;;  %v2730_v0 = vld [vmem:[#allocation11 + $0x388] sm:$0xff] }
 0x399   : > { %2184 = vmatpush1.bf16.msra.mxu0 %v11342_v20  ;;  %2297 = vmatpush1.bf16.msra.mxu1 %v11345_v21  ;;  %v2657_v20 = vld [vmem:[#allocation11 + $0x140] sm:$0xff] }
 0x39a   : > { %2185 = vmatprep.subr.bf16.mxu0 %v11350_v29  ;;  %2298 = vmatprep.subr.bf16.mxu1 %v11353_v24  ;;  %v2661_v21 = vld [vmem:[#allocation11 + $0x160] sm:$0xff]  ;;  %v2658_v29 = vld [vmem:[#allocation11 + $0x148] sm:$0xff] }
 0x39b   : > { %v2662_v24 = vld [vmem:[#allocation11 + $0x168] sm:$0xff]  ;;  %v9846_v31 = vcombine.high %v2657_v20, %v2661_v21  ;;  %v9845_v32 = vcombine.low %v2657_v20, %v2661_v21  ;;  %v2705_v20 = vld [vmem:[#allocation11 + $0x2c0] sm:$0xff] }
 0x39c   : > { %v2709_v21 = vld [vmem:[#allocation11 + $0x2e0] sm:$0xff] }
 0x39d   : > { %2186 = vmatpush1.bf16.msra.mxu0 %v11348_v28  ;;  %2299 = vmatpush1.bf16.msra.mxu1 %v11351_v25  ;;  %v2665_v28 = vld [vmem:[#allocation11 + $0x180] sm:$0xff] }
 0x39e   : > { %4195 = vmatprep.subr.bf16.mxu0 %v9806_v35  ;;  %4421 = vmatprep.subr.bf16.mxu1 %v9808_v40  ;;  %v2669_v25 = vld [vmem:[#allocation11 + $0x1a0] sm:$0xff]  ;;  %v9848_v35 = vcombine.high %v2658_v29, %v2662_v24  ;;  %v2670_v40 = vld [vmem:[#allocation11 + $0x1a8] sm:$0xff] }
 0x39f   : > { %v9854_v38 = vcombine.high %v2665_v28, %v2669_v25  ;;  %v9853_v44 = vcombine.low %v2665_v28, %v2669_v25  ;;  %v9894_v25 = vcombine.high %v2705_v20, %v2709_v21 }
 0x3a0   : > { %2188 = vmatmul.mubr.bf16.vlgmr.msra.gmra.mrb[20].mxu0 %v12970_v36  ;;  %2301 = vmatmul.mubr.bf16.vlgmr.msra.gmra.mrb[36].mxu1 %v12970_v36 }
 0x3a1   : > { %2197 = vmatprep.mubr.bf16.mxu0 %v12980_v47  ;;  %2310 = vmatprep.mubr.bf16.mxu1 %v12980_v47 }
 0x3a2   : > { %4196 = vmatpush1.bf16.msra.mxu0 %v9805_v39  ;;  %4422 = vmatpush1.bf16.msra.mxu1 %v9807_v41  ;;  %v2666_v39 = vld [vmem:[#allocation11 + $0x188] sm:$0xff]  ;;  %v9847_v41 = vcombine.low %v2658_v29, %v2662_v24 }
 0x3a3   : > { %4197 = vmatprep.subr.bf16.mxu0 %v9814_v48  ;;  %4423 = vmatprep.subr.bf16.mxu1 %v9816_v52  ;;  %v2674_v48 = vld [vmem:[#allocation11 + $0x1c8] sm:$0xff]  ;;  %v2685_v52 = vld [vmem:[#allocation11 + $0x220] sm:$0xff]  ;;  %v9855_v55 = vcombine.low %v2666_v39, %v2670_v40 }
 0x3a4   : > { %v9863_v1 = vcombine.low %v2674_v48, %v2678_v49  ;;  %v9869_v4 = vcombine.low %v2681_v51, %v2685_v52 }
 0x3a6   : > { %4198 = vmatpush1.bf16.msra.mxu0 %v9813_v45  ;;  %4424 = vmatpush1.bf16.msra.mxu1 %v9815_v59  ;;  %v9856_v45 = vcombine.high %v2666_v39, %v2670_v40  ;;  %v9864_v59 = vcombine.high %v2674_v48, %v2678_v49  ;;  %v9893_v39 = vcombine.low %v2705_v20, %v2709_v21  ;;  %v13082_v20 = vld [vmem:[#allocation11 + $0x420] sm:$0xff]  ;;  %v13084_v21 = vld [vmem:[#allocation11 + $0x408] sm:$0xff] }
 0x3a7   : > { %4199 = vmatprep.subr.bf16.mxu0 %v9822_v60  ;;  %4425 = vmatprep.subr.bf16.mxu1 %v9824_v62  ;;  %v9870_v60 = vcombine.high %v2681_v51, %v2685_v52  ;;  %v2686_v62 = vld [vmem:[#allocation11 + $0x228] sm:$0xff] }
 0x3a8   : > { %2198 = vmatmul.mubr.bf16.gmra.mrb[24].mxu0 %v12978_v46  ;;  %2311 = vmatmul.mubr.bf16.gmra.mrb[40].mxu1 %v12978_v46  ;;  %v2722_v52 = vld [vmem:[#allocation11 + $0x348] sm:$0xff] }
 0x3a9   : > { %2207 = vmatprep.mubr.bf16.mxu0 %v12988_v57  ;;  %2320 = vmatprep.mubr.bf16.mxu1 %v12988_v57 }
 0x3aa   : > { %4200 = vmatpush1.bf16.msra.mxu0 %v9821_v61  ;;  %4426 = vmatpush1.bf16.msra.mxu1 %v9823_v7  ;;  %v2682_v61 = vld [vmem:[#allocation11 + $0x208] sm:$0xff] }
 0x3ab   : > { %4201 = vmatprep.subr.bf16.mxu0 %v9830_v8  ;;  %4427 = vmatprep.subr.bf16.mxu1 %v9832_v11  ;;  %v9872_v5 = vcombine.high %v2682_v61, %v2686_v62  ;;  %v2690_v7 = vld [vmem:[#allocation11 + $0x248] sm:$0xff]  ;;  %v2701_v11 = vld [vmem:[#allocation11 + $0x2a0] sm:$0xff] }
 0x3ac   : > { %v2694_v8 = vld [vmem:[#allocation11 + $0x268] sm:$0xff] }
 0x3ad   : > { %v9880_v16 = vcombine.high %v2690_v7, %v2694_v8  ;;  %v9879_v29 = vcombine.low %v2690_v7, %v2694_v8  ;;  %v2737_v8 = vld [vmem:[#allocation11 + $0x3c0] sm:$0xff] }
 0x3ae   : > { %4202 = vmatpush1.bf16.msra.mxu0 %v9829_v9  ;;  %4428 = vmatpush1.bf16.msra.mxu1 %v9831_v17  ;;  %v2697_v9 = vld [vmem:[#allocation11 + $0x280] sm:$0xff] }
 0x3af   : > { %4203 = vmatprep.subr.bf16.mxu0 %v9838_v15  ;;  %4429 = vmatprep.subr.bf16.mxu1 %v9840_v19  ;;  %v9871_v15 = vcombine.low %v2682_v61, %v2686_v62  ;;  %v9886_v17 = vcombine.high %v2697_v9, %v2701_v11  ;;  %v2702_v19 = vld [vmem:[#allocation11 + $0x2a8] sm:$0xff]  ;;  %v9885_v24 = vcombine.low %v2697_v9, %v2701_v11  ;;  %v2729_v62 = vld [vmem:[#allocation11 + $0x380] sm:$0xff] }
 0x3b0   : > { %2208 = vmatmul.mubr.bf16.gmra.mrb[28].mxu0 %v12986_v56  ;;  %2321 = vmatmul.mubr.bf16.gmra.mrb[44].mxu1 %v12986_v56  ;;  %v2741_v9 = vld [vmem:[#allocation11 + $0x3e0] sm:$0xff]  ;;  %v2738_v11 = vld [vmem:[#allocation11 + $0x3c8] sm:$0xff] }
 0x3b1   : > { %2217 = vmatprep.mubr.bf16.mxu0 %v12996_v3  ;;  %2330 = vmatprep.mubr.bf16.mxu1 %v12996_v3  ;;  %v13460_v56 = vld [vmem:[#allocation11 + $0x6a0] sm:$0xff] }
 0x3b2   : > { %4204 = vmatpush1.bf16.msra.mxu0 %v9837_v18  ;;  %4430 = vmatpush1.bf16.msra.mxu1 %v9839_v30  ;;  %v2698_v18 = vld [vmem:[#allocation11 + $0x288] sm:$0xff] }
 0x3b3   : > { %4205 = vmatprep.subr.bf16.mxu0 %v9846_v31  ;;  %4431 = vmatprep.subr.bf16.mxu1 %v9848_v35  ;;  %v9888_v28 = vcombine.high %v2698_v18, %v2702_v19  ;;  %v2706_v30 = vld [vmem:[#allocation11 + $0x2c8] sm:$0xff]  ;;  %v2717_v35 = vld [vmem:[#allocation11 + $0x320] sm:$0xff] }
 0x3b4   : > { %v2710_v31 = vld [vmem:[#allocation11 + $0x2e8] sm:$0xff] }
 0x3b5   : > { %v9896_v40 = vcombine.high %v2706_v30, %v2710_v31  ;;  %v9895_v48 = vcombine.low %v2706_v30, %v2710_v31  ;;  %v13097_v31 = vsub.s32 2, %v12952_v22 }
 0x3b6   : > { %4206 = vmatpush1.bf16.msra.mxu0 %v9845_v32  ;;  %4432 = vmatpush1.bf16.msra.mxu1 %v9847_v41  ;;  %v2713_v32 = vld [vmem:[#allocation11 + $0x300] sm:$0xff] }
 0x3b7   : > { %4207 = vmatprep.subr.bf16.mxu0 %v9854_v38  ;;  %4433 = vmatprep.subr.bf16.mxu1 %v9856_v45  ;;  %v9887_v38 = vcombine.low %v2698_v18, %v2702_v19  ;;  %v9902_v41 = vcombine.high %v2713_v32, %v2717_v35  ;;  %v2725_v45 = vld [vmem:[#allocation11 + $0x360] sm:$0xff]  ;;  %v9901_v49 = vcombine.low %v2713_v32, %v2717_v35  ;;  %v1332_v32 = vld [vmem:[#allocation10] sm:$0xf]  ;;  %v12434_v35 = vmov 1966171168  }
 0x3b8   : > { %2218 = vmatmul.mubr.bf16.gmra.mrb[32].mxu0 %v12994_v2  ;;  %2331 = vmatmul.mubr.bf16.gmra.mrb[48].mxu1 %v12994_v2  ;;  %v13080_v19 = vld [vmem:[#allocation11 + $0x400] sm:$0xff]  ;;  %14508 = vst [vmem:[#allocation54_spill] sm:$0xff] %v13097_v31 }
 0x3b9   : > { %2227 = vmatprep.mubr.bf16.mxu0 %v13004_v13  ;;  %2340 = vmatprep.mubr.bf16.mxu1 %v13004_v13 }
 0x3ba   : > { %4208 = vmatpush1.bf16.msra.mxu0 %v9853_v44  ;;  %4434 = vmatpush1.bf16.msra.mxu1 %v9855_v55  ;;  %v2721_v44 = vld [vmem:[#allocation11 + $0x340] sm:$0xff]  ;;  %v2726_v55 = vld [vmem:[#allocation11 + $0x368] sm:$0xff] }
 0x3bb   : > { %4209 = vmatprep.subr.bf16.mxu0 %v9862_v50  ;;  %4435 = vmatprep.subr.bf16.mxu1 %v9864_v59  ;;  %v9904_v50 = vcombine.high %v2714_v42, %v2718_v43  ;;  %v9910_v51 = vcombine.high %v2721_v44, %v2725_v45  ;;  %v9909_v59 = vcombine.low %v2721_v44, %v2725_v45 }
 0x3bc   : > { %v9911_v61 = vcombine.low %v2722_v52, %v2726_v55 }
 0x3be   : > { %4210 = vmatpush1.bf16.msra.mxu0 %v9861_v58  ;;  %4436 = vmatpush1.bf16.msra.mxu1 %v9863_v1  ;;  %v9903_v58 = vcombine.low %v2714_v42, %v2718_v43  ;;  %v9918_v1 = vcombine.high %v2729_v62, %v2733_v63  ;;  %v1341_v42 = vrot.slane %v1332_v32, %v12958_v26 }
 0x3bf   : > { %4211 = vmatprep.subr.bf16.mxu0 %v9870_v60  ;;  %4437 = vmatprep.subr.bf16.mxu1 %v9872_v5  ;;  %v9912_v60 = vcombine.high %v2722_v52, %v2726_v55  ;;  %v9917_v5 = vcombine.low %v2729_v62, %v2733_v63 }
 0x3c0   : > { %2228 = vmatmul.mubr.bf16.gmra.mrb[36].mxu0 %v13002_v12  ;;  %2341 = vmatmul.mubr.bf16.gmra.mrb[52].mxu1 %v13002_v12 }
 0x3c1   : > { %2237 = vmatprep.mubr.bf16.mxu0 %v13020_v34  ;;  %2350 = vmatprep.mubr.bf16.mxu1 %v13020_v34  ;;  %v13238_v34 = vld [vmem:[#allocation11 + $0x568] sm:$0xff] }
 0x3c2   : > { %4212 = vmatpush1.bf16.msra.mxu0 %v9869_v4  ;;  %4438 = vmatpush1.bf16.msra.mxu1 %v9871_v15  ;;  %v2734_v4 = vld [vmem:[#allocation11 + $0x3a8] sm:$0xff]  ;;  %v9926_v15 = vcombine.high %v2737_v8, %v2741_v9 }
 0x3c3   : > { %4213 = vmatprep.subr.bf16.mxu0 %v9878_v6  ;;  %4439 = vmatprep.subr.bf16.mxu1 %v9880_v16  ;;  %v9920_v6 = vcombine.high %v2730_v0, %v2734_v4  ;;  %v9919_v7 = vcombine.low %v2730_v0, %v2734_v4  ;;  %v9925_v16 = vcombine.low %v2737_v8, %v2741_v9  ;;  %v13120_v9 = vld [vmem:[#allocation11 + $0x440] sm:$0xff] }
 0x3c6   : > { %4214 = vmatpush1.bf16.msra.mxu0 %v9877_v27  ;;  %4440 = vmatpush1.bf16.msra.mxu1 %v9879_v29  ;;  %v2742_v27 = vld [vmem:[#allocation11 + $0x3e8] sm:$0xff]  ;;  %v9934_v29 = vcombine.high %v13080_v19, %v13082_v20 }
 0x3c7   : > { %4215 = vmatprep.subr.bf16.mxu0 %v9886_v17  ;;  %4441 = vmatprep.subr.bf16.mxu1 %v9888_v28  ;;  %v9928_v17 = vcombine.high %v2738_v11, %v2742_v27  ;;  %v9927_v18 = vcombine.low %v2738_v11, %v2742_v27  ;;  %v13122_v11 = vld [vmem:[#allocation11 + $0x460] sm:$0xff] }
 0x3c8   : > { %2238 = vmatmul.mubr.bf16.gmra.mrb[40].mxu0 %v13018_v33  ;;  %2351 = vmatmul.mubr.bf16.gmra.mrb[56].mxu1 %v13018_v33  ;;  %v13236_v33 = vld [vmem:[#allocation11 + $0x548] sm:$0xff] }
 0x3c9   : > { %2247 = vmatprep.mubr.bf16.mxu0 %v13028_v54  ;;  %2360 = vmatprep.mubr.bf16.mxu1 %v13028_v54 }
 0x3ca   : > { %4216 = vmatpush1.bf16.msra.mxu0 %v9885_v24  ;;  %4442 = vmatpush1.bf16.msra.mxu1 %v9887_v38  ;;  %v13088_v24 = vld [vmem:[#allocation11 + $0x428] sm:$0xff]  ;;  %v2388_v38 = vunpack.c.l.s4 %v12434_v35  ;;  %v13140_v35 = vld [vmem:[#allocation11 + $0x480] sm:$0xff] }
 0x3cb   : > { %4217 = vmatprep.subr.bf16.mxu0 %v9894_v25  ;;  %4443 = vmatprep.subr.bf16.mxu1 %v9896_v40  ;;  %v9936_v30 = vcombine.high %v13084_v21, %v13088_v24  ;;  %v1337_v40 = vrot.slane %v1332_v32, %v12955_v23  ;;  %v13182_v25 = vld [vmem:[#allocation11 + $0x520] sm:$0xff] }
 0x3cc   : > { %v2389_v43 = vunpack.c.0.s8 %v2388_v38  ;;  %v13142_v38 = vld [vmem:[#allocation11 + $0x4a0] sm:$0xff] }
 0x3ce   : > { %4218 = vmatpush1.bf16.msra.mxu0 %v9893_v39  ;;  %4444 = vmatpush1.bf16.msra.mxu1 %v9895_v48  ;;  %v13100_v39 = vsub.s32 3, %v12952_v22 }
 0x3cf   : > { %4219 = vmatprep.subr.bf16.mxu0 %v9902_v41  ;;  %4445 = vmatprep.subr.bf16.mxu1 %v9904_v50  ;;  %v1345_v41 = vrot.slane %v1332_v32, %v13097_v31 }
 0x3d0   : > { %2248 = vmatmul.mubr.bf16.gmra.mrb[44].mxu0 %v13026_v53  ;;  %2361 = vmatmul.mubr.bf16.gmra.mrb[60].mxu1 %v13026_v53  ;;  %14509 = vst [vmem:[#allocation55_spill] sm:$0xff] %v13100_v39  ;;  %v1349_v44 = vrot.slane %v1332_v32, %v13100_v39 }
 0x3d1   : > { %2257 = vmatprep.mubr.bf16.mxu0 %v13042_v14  ;;  %2370 = vmatprep.mubr.bf16.mxu1 %v13042_v14 }
 0x3d2   : > { %4220 = vmatpush1.bf16.msra.mxu0 %v9901_v49  ;;  %4446 = vmatpush1.bf16.msra.mxu1 %v9903_v58  ;;  %v13107_v58 = vsub.s32 %v2389_v43, %v12952_v22 }
 0x3d3   : > { %4221 = vmatprep.subr.bf16.mxu0 %v9910_v51  ;;  %4447 = vmatprep.subr.bf16.mxu1 %v9912_v60 }
 0x3d4   : > { %14510 = vst [vmem:[#allocation56_spill] sm:$0xff] %v13107_v58 }
 0x3d6   : > { %4222 = vmatpush1.bf16.msra.mxu0 %v9909_v59  ;;  %4448 = vmatpush1.bf16.msra.mxu1 %v9911_v61 }
 0x3d7   : > { %4223 = vmatprep.subr.bf16.mxu0 %v9918_v1  ;;  %4449 = vmatprep.subr.bf16.mxu1 %v9920_v6 }
 0x3d8   : > { %2258 = vmatmul.mubr.bf16.gmra.mrb[48].mxu0 %v13039_v10  ;;  %2371 = vmatmul.mubr.bf16.gmra.mrb[64].mxu1 %v13039_v10 }
 0x3da   : > { %4224 = vmatpush1.bf16.msra.mxu0 %v9917_v5  ;;  %4450 = vmatpush1.bf16.msra.mxu1 %v9919_v7 }
 0x3db   : > { %4225 = vmatprep.subr.bf16.mxu0 %v9926_v15  ;;  %4451 = vmatprep.subr.bf16.mxu1 %v9928_v17  ;;  %v13132_v17 = vld [vmem:[#allocation11 + $0x468] sm:$0xff] }
 0x3de   : > { %4226 = vmatpush1.bf16.msra.mxu0 %v9925_v16  ;;  %4452 = vmatpush1.bf16.msra.mxu1 %v9927_v18  ;;  %v13130_v16 = vld [vmem:[#allocation11 + $0x448] sm:$0xff] }
 0x3df   : > { %4308 = vmatprep.subr.bf16.mxu0 %v9934_v29  ;;  %4534 = vmatprep.subr.bf16.mxu1 %v9936_v30 }
 0x433   : > { %v1723_v45 = vpop.f32.mrb[16].mxu0  ;;  %v1764_v48 = vpop.f32.mrb[32].mxu1 }
 0x434   : > { %v1724_v49 = vadd.f32 %v1723_v45, %v1337_v40  ;;  %v1765_v50 = vadd.f32 %v1764_v48, %v1345_v41  ;;  %v1725_v51 = vpop.f32.mrb[17].mxu0  ;;  %v1766_v52 = vpop.f32.mrb[33].mxu1  ;;  %v13150_v48 = vld [vmem:[#allocation11 + $0x488] sm:$0xff] }
 0x435   : > { %v1726_v55 = vadd.f32 %v1725_v51, %v1341_v42  ;;  %v1767_v59 = vadd.f32 %v1766_v52, %v1349_v44  ;;  %v1727_v60 = vpop.f32.mrb[18].mxu0  ;;  %v1768_v61 = vpop.f32.mrb[34].mxu1  ;;  %v13176_v44 = vld [vmem:[#allocation11 + $0x4c8] sm:$0xff] }
 0x436   : > { %v1728_v62 = vpop.f32.mrb[19].mxu0  ;;  %v1769_v63 = vpop.f32.mrb[35].mxu1 }
 0x437   : > { %v2385_v0 = vcombine.low %v1724_v49, %v1726_v55  ;;  %v2386_v1 = vcombine.low %v1765_v50, %v1767_v59  ;;  %v13152_v49 = vld [vmem:[#allocation11 + $0x4a8] sm:$0xff] }
 0x439   : > { %v13110_v4 = vrot.slane %v2385_v0, %v13107_v58  ;;  %v13113_v5 = vrot.slane %v2386_v1, %v13107_v58 }
 0x43b   : > { %v2401_v6 = vcombine.low %v13110_v4, %v13113_v5 }
 0x43d   : > { %v2409_v8 = vrot.slane %v2401_v6, %v13107_v58  ;;  %v13178_v6 = vld [vmem:[#allocation11 + $0x4e8] sm:$0xff] }
 0x43f   : > { %v13125_v15 = vrot.slane %v2409_v8, %v12955_v23  ;;  %v13128_v27 = vrot.slane %v2409_v8, %v13097_v31  ;;  %v13135_v18 = vrot.slane %v2409_v8, %v12958_v26  ;;  %v13138_v29 = vrot.slane %v2409_v8, %v13100_v39 }
 0x473   : > { %v2189_v30 = vpop.f32.mrb[20].mxu0  ;;  %v2302_v32 = vpop.f32.mrb[36].mxu1 }
 0x474   : > { %v2457_v40 = vadd.f32 %v13125_v15, %v2189_v30  ;;  %v2459_v41 = vadd.f32 %v13128_v27, %v2302_v32  ;;  %v2191_v42 = vpop.f32.mrb[21].mxu0  ;;  %v2304_v43 = vpop.f32.mrb[37].mxu1  ;;  %v13180_v32 = vld [vmem:[#allocation11 + $0x500] sm:$0xff] }
 0x475   : > { %v2458_v50 = vadd.f32 %v13135_v18, %v2191_v42  ;;  %v2460_v51 = vadd.f32 %v13138_v29, %v2304_v43  ;;  %v2193_v52 = vpop.f32.mrb[22].mxu0  ;;  %v2306_v55 = vpop.f32.mrb[38].mxu1  ;;  %v13172_v43 = vld [vmem:[#allocation11 + $0x4c0] sm:$0xff] }
 0x476   : > { %v2461_v61 = vadd.f32 %v13125_v15, %v2193_v52  ;;  %v2463_v62 = vadd.f32 %v13128_v27, %v2306_v55  ;;  %v2195_v63 = vpop.f32.mrb[23].mxu0  ;;  %v2308_v0 = vpop.f32.mrb[39].mxu1  ;;  %v13174_v52 = vld [vmem:[#allocation11 + $0x4e0] sm:$0xff]  ;;  %v2521_v55 = vmax.f32 %v2457_v40, 0.0  ;;  %v2523_v7 = vmax.f32 %v2459_v41, 0.0 }
 0x477   : > { %v2462_v8 = vadd.f32 %v13135_v18, %v2195_v63  ;;  %v2464_v30 = vadd.f32 %v13138_v29, %v2308_v0  ;;  %v2522_v63 = vmax.f32 %v2458_v50, 0.0  ;;  %v2524_v0 = vmax.f32 %v2460_v51, 0.0  ;;  %v13194_v50 = vld [vmem:[#allocation11 + $0x528] sm:$0xff] }
 0x478   : > { %v2525_v1 = vmax.f32 %v2461_v61, 0.0  ;;  %v2527_v59 = vmax.f32 %v2463_v62, 0.0  ;;  %v13192_v61 = vld [vmem:[#allocation11 + $0x508] sm:$0xff] }
 0x479   : > { %v2526_v60 = vmax.f32 %v2462_v8, 0.0  ;;  %v2528_v45 = vmax.f32 %v2464_v30, 0.0 }
 0x47a   : > { %v13184_v42 = vpack.c.bf16 %v2525_v1, %v2521_v55  ;;  %v13186_v28 = vpack.c.bf16 %v2527_v59, %v2523_v7 }
 0x47b   : > { %v13196_v51 = vpack.c.bf16 %v2526_v60, %v2522_v63  ;;  %v13198_v62 = vpack.c.bf16 %v2528_v45, %v2524_v0  ;;  %v2199_v8 = vpop.f32.mrb[24].mxu0  ;;  %v2312_v30 = vpop.f32.mrb[40].mxu1  ;;  %v13210_v63 = vld [vmem:[#allocation11 + $0x540] sm:$0xff] }
 0x47c   : > { %v2465_v1 = vadd.f32 %v13125_v15, %v2199_v8  ;;  %v2467_v55 = vadd.f32 %v13128_v27, %v2312_v30  ;;  %v2201_v40 = vpop.f32.mrb[25].mxu0  ;;  %v2314_v41 = vpop.f32.mrb[41].mxu1  ;;  %v13212_v0 = vld [vmem:[#allocation11 + $0x560] sm:$0xff]  ;;  %v14511_v30 = vcombine.low %v13080_v19, %v13082_v20  ;;  %v14514_v19 = vcombine.high %v13130_v16, %v13132_v17 }
 0x47d   : > { %v2466_v7 = vadd.f32 %v13135_v18, %v2201_v40  ;;  %v2468_v59 = vadd.f32 %v13138_v29, %v2314_v41  ;;  %v2203_v10 = vpop.f32.mrb[26].mxu0  ;;  %v2316_v8 = vpop.f32.mrb[42].mxu1  ;;  %4227 = vmatprep.mubr.bf16.mxu0 %v13196_v51  ;;  %4453 = vmatprep.mubr.bf16.mxu1 %v13196_v51 }
 0x47e   : > { %v2469_v60 = vadd.f32 %v13125_v15, %v2203_v10  ;;  %v2471_v45 = vadd.f32 %v13128_v27, %v2316_v8  ;;  %v2205_v14 = vpop.f32.mrb[27].mxu0  ;;  %v2318_v53 = vpop.f32.mrb[43].mxu1  ;;  %4228 = vmatmul.mubr.bf16.vlgmr.msra.gmra.mrb[52].mxu0 %v13184_v42  ;;  %4454 = vmatmul.mubr.bf16.vlgmr.msra.gmra.mrb[68].mxu1 %v13184_v42  ;;  %v14512_v10 = vcombine.low %v13084_v21, %v13088_v24  ;;  %v2529_v40 = vmax.f32 %v2465_v1, 0.0  ;;  %v13248_v8 = vld [vmem:[#allocation11 + $0x5a0] sm:$0xff] }
 0x47f   : > { %v2470_v41 = vadd.f32 %v13135_v18, %v2205_v14  ;;  %v2472_v54 = vadd.f32 %v13138_v29, %v2318_v53  ;;  %4309 = vmatpush1.bf16.msra.mxu0 %v14511_v30  ;;  %v2531_v12 = vmax.f32 %v2467_v55, 0.0  ;;  %v14513_v53 = vcombine.high %v13120_v9, %v13122_v11 }
 0x480   : > { %4535 = vmatpush1.bf16.msra.mxu1 %v14512_v10  ;;  %v2533_v14 = vmax.f32 %v2469_v60, 0.0  ;;  %v2535_v13 = vmax.f32 %v2471_v45, 0.0  ;;  %v2530_v20 = vmax.f32 %v2466_v7, 0.0  ;;  %v2532_v21 = vmax.f32 %v2468_v59, 0.0  ;;  %v13246_v10 = vld [vmem:[#allocation11 + $0x580] sm:$0xff] }
 0x481   : > { %4310 = vmatprep.subr.bf16.mxu0 %v14513_v53  ;;  %4536 = vmatprep.subr.bf16.mxu1 %v14514_v19  ;;  %v2534_v24 = vmax.f32 %v2470_v41, 0.0  ;;  %v2536_v30 = vmax.f32 %v2472_v54, 0.0  ;;  %v14515_v54 = vcombine.low %v13120_v9, %v13122_v11  ;;  %v14517_v11 = vcombine.high %v13140_v35, %v13142_v38  ;;  %v13306_v60 = vld [vmem:[#allocation11 + $0x5c0] sm:$0xff] }
 0x482   : > { %v13250_v1 = vpack.c.bf16 %v2533_v14, %v2529_v40  ;;  %v13252_v55 = vpack.c.bf16 %v2535_v13, %v2531_v12  ;;  %v14516_v12 = vcombine.low %v13130_v16, %v13132_v17  ;;  %v13270_v40 = vld [vmem:[#allocation11 + $0x588] sm:$0xff]  ;;  %v14518_v16 = vcombine.high %v13150_v48, %v13152_v49  ;;  %v13308_v13 = vld [vmem:[#allocation11 + $0x5e0] sm:$0xff] }
 0x483   : > { %v13258_v53 = vpack.c.bf16 %v2534_v24, %v2530_v20  ;;  %v13260_v7 = vpack.c.bf16 %v2536_v30, %v2532_v21  ;;  %4311 = vmatpush1.bf16.msra.mxu0 %v14515_v54  ;;  %v2209_v59 = vpop.f32.mrb[28].mxu0  ;;  %v2322_v41 = vpop.f32.mrb[44].mxu1  ;;  %v13272_v14 = vld [vmem:[#allocation11 + $0x5a8] sm:$0xff] }
 0x484   : > { %4537 = vmatpush1.bf16.msra.mxu1 %v14516_v12  ;;  %v2473_v19 = vadd.f32 %v13125_v15, %v2209_v59  ;;  %v2475_v20 = vadd.f32 %v13128_v27, %v2322_v41  ;;  %v2211_v21 = vpop.f32.mrb[29].mxu0  ;;  %v2324_v9 = vpop.f32.mrb[45].mxu1  ;;  %4312 = vmatprep.subr.bf16.mxu0 %v14517_v11  ;;  %v14519_v41 = vcombine.low %v13140_v35, %v13142_v38 }
 0x485   : > { %4538 = vmatprep.subr.bf16.mxu1 %v14518_v16  ;;  %v2474_v24 = vadd.f32 %v13135_v18, %v2211_v21  ;;  %v2476_v30 = vadd.f32 %v13138_v29, %v2324_v9  ;;  %v2213_v54 = vpop.f32.mrb[30].mxu0  ;;  %v2326_v59 = vpop.f32.mrb[46].mxu1  ;;  %4237 = vmatprep.mubr.bf16.mxu0 %v13258_v53  ;;  %v14522_v35 = vcombine.high %v13176_v44, %v13178_v6 }
 0x486   : > { %4463 = vmatprep.mubr.bf16.mxu1 %v13258_v53  ;;  %v2477_v12 = vadd.f32 %v13125_v15, %v2213_v54  ;;  %v2479_v11 = vadd.f32 %v13128_v27, %v2326_v59  ;;  %v2215_v16 = vpop.f32.mrb[31].mxu0  ;;  %v2328_v45 = vpop.f32.mrb[47].mxu1  ;;  %4238 = vmatmul.mubr.bf16.gmra.mrb[56].mxu0 %v13250_v1  ;;  %v14520_v54 = vcombine.low %v13150_v48, %v13152_v49  ;;  %v2537_v21 = vmax.f32 %v2473_v19, 0.0  ;;  %v13318_v59 = vld [vmem:[#allocation11 + $0x5e8] sm:$0xff] }
 0x487   : > { %4464 = vmatmul.mubr.bf16.gmra.mrb[72].mxu1 %v13250_v1  ;;  %v2478_v9 = vadd.f32 %v13135_v18, %v2215_v16  ;;  %v2480_v17 = vadd.f32 %v13138_v29, %v2328_v45  ;;  %4313 = vmatpush1.bf16.msra.mxu0 %v14519_v41  ;;  %v2539_v2 = vmax.f32 %v2475_v20, 0.0  ;;  %v14521_v45 = vcombine.high %v13172_v43, %v13174_v52 }
 0x488   : > { %4539 = vmatpush1.bf16.msra.mxu1 %v14520_v54  ;;  %v2541_v16 = vmax.f32 %v2477_v12, 0.0  ;;  %v2543_v3 = vmax.f32 %v2479_v11, 0.0  ;;  %v2538_v38 = vmax.f32 %v2474_v24, 0.0  ;;  %v2540_v48 = vmax.f32 %v2476_v30, 0.0  ;;  %v13316_v54 = vld [vmem:[#allocation11 + $0x5c8] sm:$0xff] }
 0x489   : > { %4314 = vmatprep.subr.bf16.mxu0 %v14521_v45  ;;  %4540 = vmatprep.subr.bf16.mxu1 %v14522_v35  ;;  %v2542_v49 = vmax.f32 %v2478_v9, 0.0  ;;  %v2544_v41 = vmax.f32 %v2480_v17, 0.0  ;;  %v14523_v24 = vcombine.high %v13110_v4, %v13113_v5  ;;  %v13342_v45 = vld [vmem:[#allocation11 + $0x600] sm:$0xff] }
 0x48a   : > { %v13320_v19 = vpack.c.bf16 %v2541_v16, %v2537_v21  ;;  %v13322_v20 = vpack.c.bf16 %v2543_v3, %v2539_v2  ;;  %v14524_v21 = vcombine.low %v13172_v43, %v13174_v52  ;;  %v14525_v16 = vcombine.low %v13176_v44, %v13178_v6  ;;  %v13344_v35 = vld [vmem:[#allocation11 + $0x620] sm:$0xff] }
 0x48b   : > { %v2416_v30 = vrot.slane %v14523_v24, %v13107_v58  ;;  %v13332_v17 = vpack.c.bf16 %v2542_v49, %v2538_v38  ;;  %v13334_v9 = vpack.c.bf16 %v2544_v41, %v2540_v48  ;;  %v2219_v2 = vpop.f32.mrb[32].mxu0  ;;  %v2332_v3 = vpop.f32.mrb[48].mxu1  ;;  %v14526_v43 = vcombine.high %v13180_v32, %v13182_v25 }
 0x48c   : > { %4315 = vmatpush1.bf16.msra.mxu0 %v14524_v21  ;;  %4541 = vmatpush1.bf16.msra.mxu1 %v14525_v16  ;;  %v2481_v4 = vadd.f32 %v13125_v15, %v2219_v2  ;;  %v2483_v5 = vadd.f32 %v13128_v27, %v2332_v3  ;;  %v2221_v38 = vpop.f32.mrb[33].mxu0  ;;  %v2334_v48 = vpop.f32.mrb[49].mxu1  ;;  %v14527_v52 = vcombine.high %v13192_v61, %v13194_v50 }
 0x48d   : > { %4316 = vmatprep.subr.bf16.mxu0 %v14526_v43  ;;  %v2482_v6 = vadd.f32 %v13135_v18, %v2221_v38  ;;  %v2484_v49 = vadd.f32 %v13138_v29, %v2334_v48  ;;  %v2223_v41 = vpop.f32.mrb[34].mxu0  ;;  %v2336_v24 = vpop.f32.mrb[50].mxu1  ;;  %4247 = vmatprep.mubr.bf16.mxu0 %v13332_v17  ;;  %v13369_v48 = vrot.slane %v2416_v30, %v12955_v23 }
 0x48e   : > { %4542 = vmatprep.subr.bf16.mxu1 %v14527_v52  ;;  %4473 = vmatprep.mubr.bf16.mxu1 %v13332_v17  ;;  %v2485_v2 = vadd.f32 %v13125_v15, %v2223_v41  ;;  %v2487_v3 = vadd.f32 %v13128_v27, %v2336_v24  ;;  %v2225_v16 = vpop.f32.mrb[35].mxu0  ;;  %v2338_v43 = vpop.f32.mrb[51].mxu1  ;;  %v14528_v15 = vcombine.low %v13180_v32, %v13182_v25  ;;  %v2545_v41 = vmax.f32 %v2481_v4, 0.0 }
 0x48f   : > { %4248 = vmatmul.mubr.bf16.gmra.mrb[60].mxu0 %v13320_v19  ;;  %4474 = vmatmul.mubr.bf16.gmra.mrb[76].mxu1 %v13320_v19  ;;  %v2486_v52 = vadd.f32 %v13135_v18, %v2225_v16  ;;  %v2488_v44 = vadd.f32 %v13138_v29, %v2338_v43  ;;  %v14529_v27 = vcombine.low %v13192_v61, %v13194_v50  ;;  %v2547_v24 = vmax.f32 %v2483_v5, 0.0  ;;  %v13395_v5 = vld [vmem:[#allocation11 + $0x608] sm:$0xff] }
 0x490   : > { %4317 = vmatpush1.bf16.msra.mxu0 %v14528_v15  ;;  %v2549_v12 = vmax.f32 %v2485_v2, 0.0  ;;  %v2551_v21 = vmax.f32 %v2487_v3, 0.0  ;;  %v14530_v38 = vcombine.high %v13210_v63, %v13212_v0  ;;  %v14531_v18 = vcombine.high %v13236_v33, %v13238_v34  ;;  %v13397_v2 = vld [vmem:[#allocation11 + $0x628] sm:$0xff] }
 0x491   : > { %4543 = vmatpush1.bf16.msra.mxu1 %v14529_v27  ;;  %v2546_v29 = vmax.f32 %v2482_v6, 0.0  ;;  %v2548_v16 = vmax.f32 %v2484_v49, 0.0  ;;  %v2550_v25 = vmax.f32 %v2486_v52, 0.0  ;;  %v2552_v32 = vmax.f32 %v2488_v44, 0.0 }
 0x492   : > { %4318 = vmatprep.subr.bf16.mxu0 %v14530_v38  ;;  %4544 = vmatprep.subr.bf16.mxu1 %v14531_v18  ;;  %v13386_v43 = vrot.slane %v2416_v30, %v12958_v26  ;;  %v13389_v61 = vrot.slane %v2416_v30, %v13097_v31  ;;  %v13391_v50 = vpack.c.bf16 %v2549_v12, %v2545_v41 }
 0x493   : > { %v13393_v4 = vpack.c.bf16 %v2551_v21, %v2547_v24  ;;  %v13400_v3 = vrot.slane %v2416_v30, %v13100_v39  ;;  %v13402_v6 = vpack.c.bf16 %v2550_v25, %v2546_v29  ;;  %v13404_v44 = vpack.c.bf16 %v2552_v32, %v2548_v16  ;;  %v2229_v38 = vpop.f32.mrb[36].mxu0  ;;  %v2342_v12 = vpop.f32.mrb[52].mxu1  ;;  %v13422_v24 = vld [vmem:[#allocation11 + $0x640] sm:$0xff]  ;;  %v13450_v25 = vld [vmem:[#allocation11 + $0x668] sm:$0xff] }
 0x494   : > { %v14532_v49 = vcombine.low %v13210_v63, %v13212_v0  ;;  %v14533_v21 = vcombine.low %v13236_v33, %v13238_v34  ;;  %v2489_v52 = vadd.f32 %v13369_v48, %v2229_v38  ;;  %v2491_v15 = vadd.f32 %v13389_v61, %v2342_v12  ;;  %v2231_v30 = vpop.f32.mrb[37].mxu0  ;;  %v2344_v27 = vpop.f32.mrb[53].mxu1  ;;  %v13424_v33 = vld [vmem:[#allocation11 + $0x660] sm:$0xff] }
 0x495   : > { %v14534_v41 = vcombine.high %v13246_v10, %v13248_v8  ;;  %v14535_v63 = vcombine.high %v13270_v40, %v13272_v14  ;;  %v2490_v34 = vadd.f32 %v13386_v43, %v2231_v30  ;;  %v2492_v18 = vadd.f32 %v13400_v3, %v2344_v27  ;;  %v2233_v29 = vpop.f32.mrb[38].mxu0  ;;  %v2346_v16 = vpop.f32.mrb[54].mxu1  ;;  %4257 = vmatprep.mubr.bf16.mxu0 %v13402_v6  ;;  %v2865_v39 = vld [vmem:[#allocation11 + $0x7c0] sm:$0xff] }
 0x496   : > { %4319 = vmatpush1.bf16.msra.mxu0 %v14532_v49  ;;  %4545 = vmatpush1.bf16.msra.mxu1 %v14533_v21  ;;  %v2493_v32 = vadd.f32 %v13369_v48, %v2233_v29  ;;  %v2495_v49 = vadd.f32 %v13389_v61, %v2346_v16  ;;  %v2235_v38 = vpop.f32.mrb[39].mxu0  ;;  %v2348_v12 = vpop.f32.mrb[55].mxu1  ;;  %v10000_v21 = vcombine.high %v13395_v5, %v13397_v2  ;;  %v13448_v16 = vld [vmem:[#allocation11 + $0x648] sm:$0xff]  ;;  %v2553_v0 = vmax.f32 %v2489_v52, 0.0 }
 0x497   : > { %4320 = vmatprep.subr.bf16.mxu0 %v14534_v41  ;;  %4546 = vmatprep.subr.bf16.mxu1 %v14535_v63  ;;  %v2494_v30 = vadd.f32 %v13386_v43, %v2235_v38  ;;  %v2496_v27 = vadd.f32 %v13400_v3, %v2348_v12  ;;  %v14536_v41 = vcombine.low %v13246_v10, %v13248_v8  ;;  %v2555_v11 = vmax.f32 %v2491_v15, 0.0 }
 0x498   : > { %4483 = vmatprep.mubr.bf16.mxu1 %v13402_v6  ;;  %4258 = vmatmul.mubr.bf16.gmra.mrb[64].mxu0 %v13391_v50  ;;  %v14537_v63 = vcombine.low %v13270_v40, %v13272_v14  ;;  %v10006_v29 = vcombine.high %v13422_v24, %v13424_v33  ;;  %v2557_v38 = vmax.f32 %v2493_v32, 0.0  ;;  %v2559_v58 = vmax.f32 %v2495_v49, 0.0 }
 0x499   : > { %4484 = vmatmul.mubr.bf16.gmra.mrb[80].mxu1 %v13391_v50  ;;  %v14538_v12 = vcombine.high %v13306_v60, %v13308_v13  ;;  %v14539_v8 = vcombine.high %v13316_v54, %v13318_v59  ;;  %v2554_v10 = vmax.f32 %v2490_v34, 0.0  ;;  %v2556_v40 = vmax.f32 %v2492_v18, 0.0 }
 0x49a   : > { %4321 = vmatpush1.bf16.msra.mxu0 %v14536_v41  ;;  %4547 = vmatpush1.bf16.msra.mxu1 %v14537_v63  ;;  %v2558_v14 = vmax.f32 %v2494_v30, 0.0  ;;  %v2560_v41 = vmax.f32 %v2496_v27, 0.0  ;;  %v13458_v63 = vld [vmem:[#allocation11 + $0x680] sm:$0xff]  ;;  %v13462_v52 = vpack.c.bf16 %v2557_v38, %v2553_v0  ;;  %v13464_v15 = vpack.c.bf16 %v2559_v58, %v2555_v11  ;;  %v13482_v0 = vld [vmem:[#allocation11 + $0x688] sm:$0xff] }
 0x49b   : > { %4322 = vmatprep.subr.bf16.mxu0 %v14538_v12  ;;  %4548 = vmatprep.subr.bf16.mxu1 %v14539_v8  ;;  %v10005_v32 = vcombine.low %v13422_v24, %v13424_v33  ;;  %v10007_v49 = vcombine.low %v13448_v16, %v13450_v25  ;;  %v14540_v18 = vcombine.low %v13306_v60, %v13308_v13  ;;  %v2239_v30 = vpop.f32.mrb[40].mxu0  ;;  %v2352_v27 = vpop.f32.mrb[56].mxu1  ;;  %v13484_v24 = vld [vmem:[#allocation11 + $0x6a8] sm:$0xff] }
 0x49c   : > { %v13470_v12 = vpack.c.bf16 %v2558_v14, %v2554_v10  ;;  %v13472_v34 = vpack.c.bf16 %v2560_v41, %v2556_v40  ;;  %v14541_v58 = vcombine.low %v13316_v54, %v13318_v59  ;;  %v10008_v11 = vcombine.high %v13448_v16, %v13450_v25  ;;  %v2241_v8 = vpop.f32.mrb[41].mxu0  ;;  %v2354_v60 = vpop.f32.mrb[57].mxu1 }
 0x49d   : > { %v2497_v33 = vadd.f32 %v13369_v48, %v2239_v30  ;;  %v2499_v38 = vadd.f32 %v13389_v61, %v2352_v27  ;;  %v14542_v13 = vcombine.high %v13342_v45, %v13344_v35  ;;  %v10014_v59 = vcombine.high %v13458_v63, %v13460_v56  ;;  %v2243_v16 = vpop.f32.mrb[42].mxu0  ;;  %v2356_v10 = vpop.f32.mrb[58].mxu1 }
 0x49e   : > { %4323 = vmatpush1.bf16.msra.mxu0 %v14540_v18  ;;  %4549 = vmatpush1.bf16.msra.mxu1 %v14541_v58  ;;  %v2498_v54 = vadd.f32 %v13386_v43, %v2241_v8  ;;  %v2500_v25 = vadd.f32 %v13400_v3, %v2354_v60  ;;  %v2501_v14 = vadd.f32 %v13369_v48, %v2243_v16  ;;  %v2245_v41 = vpop.f32.mrb[43].mxu0  ;;  %v2358_v18 = vpop.f32.mrb[59].mxu1  ;;  %v13515_v16 = vld [vmem:[#allocation11 + $0x6c0] sm:$0xff] }
 0x49f   : > { %4324 = vmatprep.subr.bf16.mxu0 %v14542_v13  ;;  %4550 = vmatprep.subr.bf16.mxu1 %v10000_v21  ;;  %v2503_v21 = vadd.f32 %v13389_v61, %v2356_v10  ;;  %v10015_v30 = vcombine.low %v13482_v0, %v13484_v24  ;;  %v2502_v27 = vadd.f32 %v13386_v43, %v2245_v41  ;;  %v13517_v10 = vld [vmem:[#allocation11 + $0x6e0] sm:$0xff]  ;;  %v2561_v40 = vmax.f32 %v2497_v33, 0.0 }
 0x4a0   : > { %4267 = vmatprep.mubr.bf16.mxu0 %v13470_v12  ;;  %4493 = vmatprep.mubr.bf16.mxu1 %v13470_v12  ;;  %v2504_v58 = vadd.f32 %v13400_v3, %v2358_v18  ;;  %v14543_v8 = vcombine.low %v13342_v45, %v13344_v35  ;;  %v14544_v60 = vcombine.low %v13395_v5, %v13397_v2  ;;  %v2563_v57 = vmax.f32 %v2499_v38, 0.0  ;;  %v13519_v18 = vld [vmem:[#allocation11 + $0x6c8] sm:$0xff] }
 0x4a1   : > { %4268 = vmatmul.mubr.bf16.gmra.mrb[68].mxu0 %v13462_v52  ;;  %4494 = vmatmul.mubr.bf16.gmra.mrb[84].mxu1 %v13462_v52  ;;  %v10016_v13 = vcombine.high %v13482_v0, %v13484_v24  ;;  %v2565_v41 = vmax.f32 %v2501_v14, 0.0  ;;  %v2567_v46 = vmax.f32 %v2503_v21, 0.0  ;;  %v13521_v45 = vld [vmem:[#allocation11 + $0x6e8] sm:$0xff]  ;;  %v2562_v35 = vmax.f32 %v2498_v54, 0.0 }
 0x4a2   : > { %4325 = vmatpush1.bf16.msra.mxu0 %v14543_v8  ;;  %4551 = vmatpush1.bf16.msra.mxu1 %v14544_v60  ;;  %v2564_v5 = vmax.f32 %v2500_v25, 0.0  ;;  %v2566_v2 = vmax.f32 %v2502_v27, 0.0  ;;  %v2568_v8 = vmax.f32 %v2504_v58, 0.0  ;;  %v10021_v24 = vcombine.low %v13515_v16, %v13517_v10 }
 0x4a3   : > { %4326 = vmatprep.subr.bf16.mxu0 %v10006_v29  ;;  %4552 = vmatprep.subr.bf16.mxu1 %v10008_v11  ;;  %v13523_v60 = vpack.c.bf16 %v2565_v41, %v2561_v40  ;;  %v13525_v0 = vpack.c.bf16 %v2567_v46, %v2563_v57  ;;  %v10022_v33 = vcombine.high %v13515_v16, %v13517_v10  ;;  %v13531_v29 = vld [vmem:[#allocation11 + $0x700] sm:$0xff]  ;;  %v2249_v25 = vpop.f32.mrb[44].mxu0  ;;  %v2362_v40 = vpop.f32.mrb[60].mxu1  ;;  %v13545_v16 = vld [vmem:[#allocation11 + $0x708] sm:$0xff] }
 0x4a4   : > { %v13533_v11 = vld [vmem:[#allocation11 + $0x720] sm:$0xff]  ;;  %v13535_v38 = vpack.c.bf16 %v2566_v2, %v2562_v35  ;;  %v13537_v54 = vpack.c.bf16 %v2568_v8, %v2564_v5  ;;  %v10023_v46 = vcombine.low %v13519_v18, %v13521_v45  ;;  %v2505_v57 = vadd.f32 %v13369_v48, %v2249_v25  ;;  %v2251_v21 = vpop.f32.mrb[45].mxu0  ;;  %v2364_v27 = vpop.f32.mrb[61].mxu1 }
 0x4a5   : > { %v2507_v14 = vadd.f32 %v13389_v61, %v2362_v40  ;;  %v10024_v58 = vcombine.high %v13519_v18, %v13521_v45  ;;  %v2508_v10 = vadd.f32 %v13400_v3, %v2364_v27  ;;  %v2253_v41 = vpop.f32.mrb[46].mxu0  ;;  %v2366_v35 = vpop.f32.mrb[62].mxu1  ;;  %v10029_v2 = vcombine.low %v13531_v29, %v13533_v11  ;;  %v13568_v27 = vld [vmem:[#allocation11 + $0x740] sm:$0xff] }
 0x4a6   : > { %4327 = vmatpush1.bf16.msra.mxu0 %v10005_v32  ;;  %4553 = vmatpush1.bf16.msra.mxu1 %v10007_v49  ;;  %v13547_v32 = vld [vmem:[#allocation11 + $0x728] sm:$0xff]  ;;  %v2506_v49 = vadd.f32 %v13386_v43, %v2251_v21  ;;  %v2511_v18 = vadd.f32 %v13389_v61, %v2366_v35  ;;  %v2255_v45 = vpop.f32.mrb[47].mxu0  ;;  %v2368_v5 = vpop.f32.mrb[63].mxu1  ;;  %v14545_v40 = vcombine.low %v13458_v63, %v13460_v56  ;;  %v2569_v35 = vmax.f32 %v2505_v57, 0.0 }
 0x4a7   : > { %4328 = vmatprep.subr.bf16.mxu0 %v10014_v59  ;;  %4554 = vmatprep.subr.bf16.mxu1 %v10016_v13  ;;  %v10030_v59 = vcombine.high %v13531_v29, %v13533_v11  ;;  %v2509_v13 = vadd.f32 %v13369_v48, %v2253_v41  ;;  %v2510_v8 = vadd.f32 %v13386_v43, %v2255_v45  ;;  %v13570_v41 = vld [vmem:[#allocation11 + $0x760] sm:$0xff]  ;;  %v2571_v47 = vmax.f32 %v2507_v14, 0.0  ;;  %v2850_v56 = vld [vmem:[#allocation11 + $0x748] sm:$0xff] }
 0x4a8   : > { %4277 = vmatprep.mubr.bf16.mxu0 %v13535_v38  ;;  %4503 = vmatprep.mubr.bf16.mxu1 %v13535_v38  ;;  %v2512_v25 = vadd.f32 %v13400_v3, %v2368_v5  ;;  %v10032_v21 = vcombine.high %v13545_v16, %v13547_v32  ;;  %v2575_v29 = vmax.f32 %v2511_v18, 0.0  ;;  %v2570_v11 = vmax.f32 %v2506_v49, 0.0  ;;  %v2854_v63 = vld [vmem:[#allocation11 + $0x768] sm:$0xff] }
 0x4a9   : > { %4278 = vmatmul.mubr.bf16.gmra.mrb[72].mxu0 %v13523_v60  ;;  %4504 = vmatmul.mubr.bf16.gmra.mrb[88].mxu1 %v13523_v60  ;;  %v2573_v36 = vmax.f32 %v2509_v13, 0.0  ;;  %v2572_v45 = vmax.f32 %v2508_v10, 0.0  ;;  %v2574_v5 = vmax.f32 %v2510_v8, 0.0  ;;  %v10031_v22 = vcombine.low %v13545_v16, %v13547_v32  ;;  %v13586_v10 = vld [vmem:[#allocation11 + $0x780] sm:$0xff]  ;;  %v2862_v8 = vld [vmem:[#allocation11 + $0x7a8] sm:$0xff] }
 0x4aa   : > { %4329 = vmatpush1.bf16.msra.mxu0 %v14545_v40  ;;  %4555 = vmatpush1.bf16.msra.mxu1 %v10015_v30  ;;  %v2576_v37 = vmax.f32 %v2512_v25, 0.0  ;;  %v13574_v40 = vpack.c.bf16 %v2575_v29, %v2571_v47  ;;  %v10038_v57 = vcombine.high %v13568_v27, %v13570_v41  ;;  %v13588_v47 = vld [vmem:[#allocation11 + $0x7a0] sm:$0xff] }
 0x4ab   : > { %4330 = vmatprep.subr.bf16.mxu0 %v10022_v33  ;;  %4556 = vmatprep.subr.bf16.mxu1 %v10024_v58  ;;  %v13572_v30 = vpack.c.bf16 %v2573_v36, %v2569_v35  ;;  %v13580_v14 = vpack.c.bf16 %v2574_v5, %v2570_v11  ;;  %v2259_v58 = vpop.f32.mrb[48].mxu0  ;;  %v2372_v49 = vpop.f32.mrb[64].mxu1  ;;  %v10037_v36 = vcombine.low %v13568_v27, %v13570_v41 }
 0x4ac   : > { %v13582_v33 = vpack.c.bf16 %v2576_v37, %v2572_v45  ;;  %v2513_v16 = vadd.f32 %v13369_v48, %v2259_v58  ;;  %v2515_v32 = vadd.f32 %v13389_v61, %v2372_v49  ;;  %v2261_v13 = vpop.f32.mrb[49].mxu0  ;;  %v2374_v18 = vpop.f32.mrb[65].mxu1  ;;  %v10040_v37 = vcombine.high %v2850_v56, %v2854_v63 }
 0x4ad   : > { %v2516_v25 = vadd.f32 %v13400_v3, %v2374_v18  ;;  %v2263_v27 = vpop.f32.mrb[50].mxu0  ;;  %v2376_v41 = vpop.f32.mrb[66].mxu1  ;;  %4287 = vmatprep.mubr.bf16.mxu0 %v13580_v14  ;;  %4513 = vmatprep.mubr.bf16.mxu1 %v13580_v14  ;;  %v10039_v35 = vcombine.low %v2850_v56, %v2854_v63  ;;  %v10046_v45 = vcombine.high %v13586_v10, %v13588_v47 }
 0x4ae   : > { %4331 = vmatpush1.bf16.msra.mxu0 %v10021_v24  ;;  %4557 = vmatpush1.bf16.msra.mxu1 %v10023_v46  ;;  %v2858_v24 = vld [vmem:[#allocation11 + $0x788] sm:$0xff]  ;;  %v2514_v46 = vadd.f32 %v13386_v43, %v2261_v13  ;;  %v2517_v29 = vadd.f32 %v13369_v48, %v2263_v27  ;;  %v2519_v11 = vadd.f32 %v13389_v61, %v2376_v41  ;;  %v2577_v63 = vmax.f32 %v2513_v16, 0.0 }
 0x4af   : > { %4332 = vmatprep.subr.bf16.mxu0 %v10030_v59  ;;  %4558 = vmatprep.subr.bf16.mxu1 %v10032_v21  ;;  %v2265_v59 = vpop.f32.mrb[51].mxu0  ;;  %v2378_v21 = vpop.f32.mrb[67].mxu1  ;;  %v10048_v56 = vcombine.high %v2858_v24, %v2862_v8  ;;  %v2579_v48 = vmax.f32 %v2515_v32, 0.0  ;;  %v2580_v18 = vmax.f32 %v2516_v25, 0.0  ;;  %v10047_v32 = vcombine.low %v2858_v24, %v2862_v8  ;;  %v2619_v25 = vld [vmem:[#allocation11 + $0x10] sm:$0xff] }
 0x4b0   : > { %v2518_v5 = vadd.f32 %v13386_v43, %v2265_v59  ;;  %v2520_v58 = vadd.f32 %v13400_v3, %v2378_v21  ;;  %v2581_v49 = vmax.f32 %v2517_v29, 0.0  ;;  %v2583_v61 = vmax.f32 %v2519_v11, 0.0  ;;  %v2869_v43 = vld [vmem:[#allocation11 + $0x7e0] sm:$0xff]  ;;  %v2866_v3 = vld [vmem:[#allocation11 + $0x7c8] sm:$0xff]  ;;  %v2623_v29 = vld [vmem:[#allocation11 + $0x30] sm:$0xff] }
 0x4b1   : > { %4288 = vmatmul.mubr.bf16.gmra.mrb[76].mxu0 %v13572_v30  ;;  %4514 = vmatmul.mubr.bf16.gmra.mrb[92].mxu1 %v13572_v30  ;;  %v2578_v13 = vmax.f32 %v2514_v46, 0.0  ;;  %v9810_v24 = vcombine.high %v2619_v25, %v2623_v29  ;;  %v2627_v11 = vld [vmem:[#allocation11 + $0x50] sm:$0xff]  ;;  %v9809_v21 = vcombine.low %v2619_v25, %v2623_v29 }
 0x4b2   : > { %4333 = vmatpush1.bf16.msra.mxu0 %v10029_v2  ;;  %4559 = vmatpush1.bf16.msra.mxu1 %v10031_v22  ;;  %v2582_v27 = vmax.f32 %v2518_v5, 0.0  ;;  %v2584_v41 = vmax.f32 %v2520_v58, 0.0  ;;  %v13604_v26 = vpack.c.bf16 %v2581_v49, %v2577_v63  ;;  %v13606_v31 = vpack.c.bf16 %v2583_v61, %v2579_v48  ;;  %v2870_v2 = vld [vmem:[#allocation11 + $0x7e8] sm:$0xff]  ;;  %v2631_v59 = vld [vmem:[#allocation11 + $0x70] sm:$0xff]  ;;  %v2632_v5 = vld [vmem:[#allocation11 + $0x78] sm:$0xff] }
 0x4b3   : > { %4334 = vmatprep.subr.bf16.mxu0 %v10038_v57  ;;  %4560 = vmatprep.subr.bf16.mxu1 %v10040_v37  ;;  %v10045_v57 = vcombine.low %v13586_v10, %v13588_v47  ;;  %v10054_v37 = vcombine.high %v2865_v39, %v2869_v43  ;;  %v10056_v46 = vcombine.high %v2866_v3, %v2870_v2  ;;  %v2639_v63 = vld [vmem:[#allocation11 + $0xb0] sm:$0xff]  ;;  %v2636_v61 = vld [vmem:[#allocation11 + $0x98] sm:$0xff] }
 0x4b4   : > { %v13608_v22 = vpack.c.bf16 %v2582_v27, %v2578_v13  ;;  %v13610_v16 = vpack.c.bf16 %v2584_v41, %v2580_v18  ;;  %v10053_v10 = vcombine.low %v2865_v39, %v2869_v43  ;;  %v10055_v47 = vcombine.low %v2866_v3, %v2870_v2  ;;  %v2635_v39 = vld [vmem:[#allocation11 + $0x90] sm:$0xff]  ;;  %v2640_v13 = vld [vmem:[#allocation11 + $0xb8] sm:$0xff] }
 0x4b5   : > { %v9817_v49 = vcombine.low %v2627_v11, %v2631_v59  ;;  %v9826_v18 = vcombine.high %v2635_v39, %v2639_v63  ;;  %v9828_v41 = vcombine.high %v2636_v61, %v2640_v13  ;;  %v2643_v43 = vld [vmem:[#allocation11 + $0xd0] sm:$0xff]  ;;  %v9825_v2 = vcombine.low %v2635_v39, %v2639_v63 }
 0x4b6   : > { %4335 = vmatpush1.bf16.msra.mxu0 %v10037_v36  ;;  %4561 = vmatpush1.bf16.msra.mxu1 %v10039_v35  ;;  %v2620_v36 = vld [vmem:[#allocation11 + $0x18] sm:$0xff]  ;;  %v2647_v3 = vld [vmem:[#allocation11 + $0xf0] sm:$0xff] }
 0x4b7   : > { %4336 = vmatprep.subr.bf16.mxu0 %v10046_v45  ;;  %4562 = vmatprep.subr.bf16.mxu1 %v10048_v56  ;;  %v2624_v35 = vld [vmem:[#allocation11 + $0x38] sm:$0xff]  ;;  %v9818_v56 = vcombine.high %v2627_v11, %v2631_v59  ;;  %v2651_v25 = vld [vmem:[#allocation11 + $0x110] sm:$0xff] }
 0x4b8   : > { %4297 = vmatprep.mubr.bf16.mxu0 %v13608_v22  ;;  %4523 = vmatprep.mubr.bf16.mxu1 %v13608_v22  ;;  %v9812_v8 = vcombine.high %v2620_v36, %v2624_v35  ;;  %v2628_v45 = vld [vmem:[#allocation11 + $0x58] sm:$0xff]  ;;  %v9811_v58 = vcombine.low %v2620_v36, %v2624_v35  ;;  %v2655_v29 = vld [vmem:[#allocation11 + $0x130] sm:$0xff]  ;;  %v9833_v35 = vcombine.low %v2643_v43, %v2647_v3 }
 0x4b9   : > { %4298 = vmatmul.mubr.bf16.gmra.mrb[80].mxu0 %v13604_v26  ;;  %4524 = vmatmul.mubr.bf16.gmra.mrb[96].mxu1 %v13604_v26  ;;  %v9820_v48 = vcombine.high %v2628_v45, %v2632_v5  ;;  %v9819_v27 = vcombine.low %v2628_v45, %v2632_v5  ;;  %v2659_v59 = vld [vmem:[#allocation11 + $0x150] sm:$0xff]  ;;  %v9841_v45 = vcombine.low %v2651_v25, %v2655_v29  ;;  %v2660_v5 = vld [vmem:[#allocation11 + $0x158] sm:$0xff] }
 0x4ba   : > { %4337 = vmatpush1.bf16.msra.mxu0 %v10045_v57  ;;  %4340 = vmatprep.mubr.bf16.mxu0 %v13198_v62  ;;  %v2644_v57 = vld [vmem:[#allocation11 + $0xd8] sm:$0xff]  ;;  %v2667_v63 = vld [vmem:[#allocation11 + $0x190] sm:$0xff] }
 0x4bb   : > { %4563 = vmatpush1.bf16.msra.mxu1 %v10047_v32  ;;  %4566 = vmatprep.mubr.bf16.mxu1 %v13198_v62  ;;  %v2648_v32 = vld [vmem:[#allocation11 + $0xf8] sm:$0xff] }
 0x4bc   : > { %4338 = vmatprep.subr.bf16.mxu0 %v10054_v37  ;;  %4564 = vmatprep.subr.bf16.mxu1 %v10056_v46  ;;  %v9827_v37 = vcombine.low %v2636_v61, %v2640_v13  ;;  %v9834_v46 = vcombine.high %v2643_v43, %v2647_v3  ;;  %v9836_v36 = vcombine.high %v2644_v57, %v2648_v32  ;;  %v2668_v13 = vld [vmem:[#allocation11 + $0x198] sm:$0xff]  ;;  %v2675_v3 = vld [vmem:[#allocation11 + $0x1d0] sm:$0xff] }
 0x4be   : > { %4339 = vmatpush1.bf16.msra.mxu0 %v10053_v10  ;;  %v2652_v10 = vld [vmem:[#allocation11 + $0x118] sm:$0xff] }
 0x4bf   : > { %4565 = vmatpush1.bf16.msra.mxu1 %v10055_v47  ;;  %4647 = vmatprep.subr.bf16.mxu0 %v9810_v24  ;;  %v2656_v47 = vld [vmem:[#allocation11 + $0x138] sm:$0xff]  ;;  %v9842_v24 = vcombine.high %v2651_v25, %v2655_v29  ;;  %v2683_v29 = vld [vmem:[#allocation11 + $0x210] sm:$0xff] }
 0x4c0   : > { %4873 = vmatprep.subr.bf16.mxu1 %v9812_v8  ;;  %v9835_v8 = vcombine.low %v2644_v57, %v2648_v32  ;;  %v9844_v11 = vcombine.high %v2652_v10, %v2656_v47  ;;  %v2676_v32 = vld [vmem:[#allocation11 + $0x1d8] sm:$0xff] }
 0x4c1   : > { %4341 = vmatmul.mubr.bf16.vlgmr.msra.gmra.mrb[52].mxu0 %v13186_v28 }
 0x4c2   : > { %4567 = vmatmul.mubr.bf16.vlgmr.msra.gmra.mrb[68].mxu1 %v13186_v28  ;;  %4648 = vmatpush1.bf16.msra.mxu0 %v9809_v21  ;;  %v2663_v21 = vld [vmem:[#allocation11 + $0x170] sm:$0xff] }
 0x4c3   : > { %4350 = vmatprep.mubr.bf16.mxu0 %v13260_v7  ;;  %4576 = vmatprep.mubr.bf16.mxu1 %v13260_v7  ;;  %v9850_v39 = vcombine.high %v2659_v59, %v2663_v21  ;;  %v9849_v61 = vcombine.low %v2659_v59, %v2663_v21  ;;  %v2691_v21 = vld [vmem:[#allocation11 + $0x250] sm:$0xff] }
 0x4c4   : > { %4874 = vmatpush1.bf16.msra.mxu1 %v9811_v58  ;;  %4649 = vmatprep.subr.bf16.mxu0 %v9818_v56  ;;  %v2664_v58 = vld [vmem:[#allocation11 + $0x178] sm:$0xff]  ;;  %v9843_v56 = vcombine.low %v2652_v10, %v2656_v47 }
 0x4c5   : > { %4875 = vmatprep.subr.bf16.mxu1 %v9820_v48  ;;  %v2671_v48 = vld [vmem:[#allocation11 + $0x1b0] sm:$0xff]  ;;  %v2684_v47 = vld [vmem:[#allocation11 + $0x218] sm:$0xff] }
 0x4c6   : > { %4650 = vmatpush1.bf16.msra.mxu0 %v9817_v49  ;;  %v9852_v49 = vcombine.high %v2660_v5, %v2664_v58  ;;  %v9857_v57 = vcombine.low %v2667_v63, %v2671_v48 }
 0x4c7   : > { %4651 = vmatprep.subr.bf16.mxu0 %v9826_v18  ;;  %v2672_v18 = vld [vmem:[#allocation11 + $0x1b8] sm:$0xff] }
 0x4c8   : > { %4876 = vmatpush1.bf16.msra.mxu1 %v9819_v27  ;;  %v9858_v27 = vcombine.high %v2667_v63, %v2671_v48  ;;  %v9860_v43 = vcombine.high %v2668_v13, %v2672_v18  ;;  %v2699_v48 = vld [vmem:[#allocation11 + $0x290] sm:$0xff] }
 0x4c9   : > { %4351 = vmatmul.mubr.bf16.gmra.mrb[56].mxu0 %v13252_v55  ;;  %4877 = vmatprep.subr.bf16.mxu1 %v9828_v41  ;;  %v9851_v41 = vcombine.low %v2660_v5, %v2664_v58  ;;  %v2692_v58 = vld [vmem:[#allocation11 + $0x258] sm:$0xff] }
 0x4ca   : > { %4577 = vmatmul.mubr.bf16.gmra.mrb[72].mxu1 %v13252_v55  ;;  %4652 = vmatpush1.bf16.msra.mxu0 %v9825_v2  ;;  %v2679_v2 = vld [vmem:[#allocation11 + $0x1f0] sm:$0xff] }
 0x4cb   : > { %4360 = vmatprep.mubr.bf16.mxu0 %v13334_v9  ;;  %4586 = vmatprep.mubr.bf16.mxu1 %v13334_v9  ;;  %v9866_v25 = vcombine.high %v2675_v3, %v2679_v2  ;;  %v9865_v10 = vcombine.low %v2675_v3, %v2679_v2  ;;  %v2707_v2 = vld [vmem:[#allocation11 + $0x2d0] sm:$0xff] }
 0x4cc   : > { %4878 = vmatpush1.bf16.msra.mxu1 %v9827_v37  ;;  %4653 = vmatprep.subr.bf16.mxu0 %v9834_v46  ;;  %v2680_v37 = vld [vmem:[#allocation11 + $0x1f8] sm:$0xff]  ;;  %v9859_v46 = vcombine.low %v2668_v13, %v2672_v18 }
 0x4cd   : > { %4879 = vmatprep.subr.bf16.mxu1 %v9836_v36  ;;  %v2687_v36 = vld [vmem:[#allocation11 + $0x230] sm:$0xff]  ;;  %v2700_v18 = vld [vmem:[#allocation11 + $0x298] sm:$0xff] }
 0x4ce   : > { %4654 = vmatpush1.bf16.msra.mxu0 %v9833_v35  ;;  %v9868_v35 = vcombine.high %v2676_v32, %v2680_v37  ;;  %v9873_v5 = vcombine.low %v2683_v29, %v2687_v36 }
 0x4cf   : > { %4655 = vmatprep.subr.bf16.mxu0 %v9842_v24  ;;  %v2688_v24 = vld [vmem:[#allocation11 + $0x238] sm:$0xff] }
 0x4d0   : > { %4880 = vmatpush1.bf16.msra.mxu1 %v9835_v8  ;;  %v9874_v8 = vcombine.high %v2683_v29, %v2687_v36  ;;  %v9876_v59 = vcombine.high %v2684_v47, %v2688_v24  ;;  %v2715_v36 = vld [vmem:[#allocation11 + $0x310] sm:$0xff] }
 0x4d1   : > { %4361 = vmatmul.mubr.bf16.gmra.mrb[60].mxu0 %v13322_v20  ;;  %4881 = vmatprep.subr.bf16.mxu1 %v9844_v11  ;;  %v9867_v11 = vcombine.low %v2676_v32, %v2680_v37  ;;  %v2708_v37 = vld [vmem:[#allocation11 + $0x2d8] sm:$0xff] }
 0x4d2   : > { %4587 = vmatmul.mubr.bf16.gmra.mrb[76].mxu1 %v13322_v20  ;;  %4656 = vmatpush1.bf16.msra.mxu0 %v9841_v45  ;;  %v2695_v45 = vld [vmem:[#allocation11 + $0x270] sm:$0xff] }
 0x4d3   : > { %4370 = vmatprep.mubr.bf16.mxu0 %v13404_v44  ;;  %4596 = vmatprep.mubr.bf16.mxu1 %v13404_v44  ;;  %v9882_v63 = vcombine.high %v2691_v21, %v2695_v45  ;;  %v9881_v13 = vcombine.low %v2691_v21, %v2695_v45  ;;  %v2723_v45 = vld [vmem:[#allocation11 + $0x350] sm:$0xff] }
 0x4d4   : > { %4882 = vmatpush1.bf16.msra.mxu1 %v9843_v56  ;;  %4657 = vmatprep.subr.bf16.mxu0 %v9850_v39  ;;  %v2696_v56 = vld [vmem:[#allocation11 + $0x278] sm:$0xff]  ;;  %v9875_v39 = vcombine.low %v2684_v47, %v2688_v24 }
 0x4d5   : > { %4883 = vmatprep.subr.bf16.mxu1 %v9852_v49  ;;  %v2703_v49 = vld [vmem:[#allocation11 + $0x2b0] sm:$0xff]  ;;  %v2716_v24 = vld [vmem:[#allocation11 + $0x318] sm:$0xff] }
 0x4d6   : > { %4658 = vmatpush1.bf16.msra.mxu0 %v9849_v61  ;;  %v9884_v61 = vcombine.high %v2692_v58, %v2696_v56  ;;  %v9889_v32 = vcombine.low %v2699_v48, %v2703_v49 }
 0x4d7   : > { %4659 = vmatprep.subr.bf16.mxu0 %v9858_v27  ;;  %v2704_v27 = vld [vmem:[#allocation11 + $0x2b8] sm:$0xff] }
 0x4d8   : > { %4884 = vmatpush1.bf16.msra.mxu1 %v9851_v41  ;;  %v9890_v41 = vcombine.high %v2699_v48, %v2703_v49  ;;  %v9892_v3 = vcombine.high %v2700_v18, %v2704_v27  ;;  %v2731_v49 = vld [vmem:[#allocation11 + $0x390] sm:$0xff] }
 0x4d9   : > { %4371 = vmatmul.mubr.bf16.gmra.mrb[64].mxu0 %v13393_v4  ;;  %4885 = vmatprep.subr.bf16.mxu1 %v9860_v43  ;;  %v9883_v43 = vcombine.low %v2692_v58, %v2696_v56  ;;  %v2724_v56 = vld [vmem:[#allocation11 + $0x358] sm:$0xff] }
 0x4da   : > { %4597 = vmatmul.mubr.bf16.gmra.mrb[80].mxu1 %v13393_v4  ;;  %4660 = vmatpush1.bf16.msra.mxu0 %v9857_v57  ;;  %v2711_v57 = vld [vmem:[#allocation11 + $0x2f0] sm:$0xff] }
 0x4db   : > { %4380 = vmatprep.mubr.bf16.mxu0 %v13472_v34  ;;  %4606 = vmatprep.mubr.bf16.mxu1 %v13472_v34  ;;  %v9898_v29 = vcombine.high %v2707_v2, %v2711_v57  ;;  %v9897_v47 = vcombine.low %v2707_v2, %v2711_v57  ;;  %v2739_v57 = vld [vmem:[#allocation11 + $0x3d0] sm:$0xff] }
 0x4dc   : > { %4886 = vmatpush1.bf16.msra.mxu1 %v9859_v46  ;;  %4661 = vmatprep.subr.bf16.mxu0 %v9866_v25  ;;  %v2712_v46 = vld [vmem:[#allocation11 + $0x2f8] sm:$0xff]  ;;  %v9891_v25 = vcombine.low %v2700_v18, %v2704_v27 }
 0x4dd   : > { %4887 = vmatprep.subr.bf16.mxu1 %v9868_v35  ;;  %v2719_v35 = vld [vmem:[#allocation11 + $0x330] sm:$0xff]  ;;  %v2732_v27 = vld [vmem:[#allocation11 + $0x398] sm:$0xff] }
 0x4de   : > { %4662 = vmatpush1.bf16.msra.mxu0 %v9865_v10  ;;  %v9900_v10 = vcombine.high %v2708_v37, %v2712_v46  ;;  %v9905_v58 = vcombine.low %v2715_v36, %v2719_v35 }
 0x4df   : > { %4663 = vmatprep.subr.bf16.mxu0 %v9874_v8  ;;  %v2720_v8 = vld [vmem:[#allocation11 + $0x338] sm:$0xff] }
 0x4e0   : > { %4888 = vmatpush1.bf16.msra.mxu1 %v9867_v11  ;;  %v9906_v11 = vcombine.high %v2715_v36, %v2719_v35  ;;  %v9908_v21 = vcombine.high %v2716_v24, %v2720_v8  ;;  %v2747_v35 = vld [vmem:[#allocation11 + $0x410] sm:$0xff] }
 0x4e1   : > { %4381 = vmatmul.mubr.bf16.gmra.mrb[68].mxu0 %v13464_v15  ;;  %4889 = vmatprep.subr.bf16.mxu1 %v9876_v59  ;;  %v9899_v59 = vcombine.low %v2708_v37, %v2712_v46  ;;  %v2740_v46 = vld [vmem:[#allocation11 + $0x3d8] sm:$0xff] }
 0x4e2   : > { %4607 = vmatmul.mubr.bf16.gmra.mrb[84].mxu1 %v13464_v15  ;;  %4664 = vmatpush1.bf16.msra.mxu0 %v9873_v5  ;;  %v2727_v5 = vld [vmem:[#allocation11 + $0x370] sm:$0xff] }
 0x4e3   : > { %4390 = vmatprep.mubr.bf16.mxu0 %v13537_v54  ;;  %4616 = vmatprep.mubr.bf16.mxu1 %v13537_v54  ;;  %v9914_v48 = vcombine.high %v2723_v45, %v2727_v5  ;;  %v9913_v18 = vcombine.low %v2723_v45, %v2727_v5  ;;  %v2755_v45 = vld [vmem:[#allocation11 + $0x450] sm:$0xff] }
 0x4e4   : > { %4890 = vmatpush1.bf16.msra.mxu1 %v9875_v39  ;;  %4665 = vmatprep.subr.bf16.mxu0 %v9882_v63  ;;  %v2728_v39 = vld [vmem:[#allocation11 + $0x378] sm:$0xff]  ;;  %v9907_v63 = vcombine.low %v2716_v24, %v2720_v8  ;;  %v2759_v5 = vld [vmem:[#allocation11 + $0x470] sm:$0xff] }
 0x4e5   : > { %4891 = vmatprep.subr.bf16.mxu1 %v9884_v61  ;;  %v2735_v61 = vld [vmem:[#allocation11 + $0x3b0] sm:$0xff]  ;;  %v2748_v8 = vld [vmem:[#allocation11 + $0x418] sm:$0xff] }
 0x4e6   : > { %4666 = vmatpush1.bf16.msra.mxu0 %v9881_v13  ;;  %v9916_v13 = vcombine.high %v2724_v56, %v2728_v39  ;;  %v9921_v37 = vcombine.low %v2731_v49, %v2735_v61 }
 0x4e7   : > { %4667 = vmatprep.subr.bf16.mxu0 %v9890_v41  ;;  %v2736_v41 = vld [vmem:[#allocation11 + $0x3b8] sm:$0xff] }
 0x4e8   : > { %4892 = vmatpush1.bf16.msra.mxu1 %v9883_v43  ;;  %v9922_v43 = vcombine.high %v2731_v49, %v2735_v61  ;;  %v9924_v2 = vcombine.high %v2732_v27, %v2736_v41  ;;  %v2763_v61 = vld [vmem:[#allocation11 + $0x490] sm:$0xff] }
 0x4e9   : > { %4391 = vmatmul.mubr.bf16.gmra.mrb[72].mxu0 %v13525_v0  ;;  %4893 = vmatprep.subr.bf16.mxu1 %v9892_v3  ;;  %v9915_v3 = vcombine.low %v2724_v56, %v2728_v39  ;;  %v2756_v39 = vld [vmem:[#allocation11 + $0x458] sm:$0xff] }
 0x4ea   : > { %4617 = vmatmul.mubr.bf16.gmra.mrb[88].mxu1 %v13525_v0  ;;  %4668 = vmatpush1.bf16.msra.mxu0 %v9889_v32  ;;  %v2743_v32 = vld [vmem:[#allocation11 + $0x3f0] sm:$0xff] }
 0x4eb   : > { %4400 = vmatprep.mubr.bf16.mxu0 %v13582_v33  ;;  %4626 = vmatprep.mubr.bf16.mxu1 %v13582_v33  ;;  %v9930_v36 = vcombine.high %v2739_v57, %v2743_v32  ;;  %v9929_v24 = vcombine.low %v2739_v57, %v2743_v32  ;;  %v2775_v57 = vld [vmem:[#allocation11 + $0x4f0] sm:$0xff] }
 0x4ec   : > { %4894 = vmatpush1.bf16.msra.mxu1 %v9891_v25  ;;  %4669 = vmatprep.subr.bf16.mxu0 %v9898_v29  ;;  %v2744_v25 = vld [vmem:[#allocation11 + $0x3f8] sm:$0xff]  ;;  %v9923_v29 = vcombine.low %v2732_v27, %v2736_v41 }
 0x4ed   : > { %4895 = vmatprep.subr.bf16.mxu1 %v9900_v10  ;;  %v2751_v10 = vld [vmem:[#allocation11 + $0x430] sm:$0xff]  ;;  %v2764_v27 = vld [vmem:[#allocation11 + $0x498] sm:$0xff] }
 0x4ee   : > { %4670 = vmatpush1.bf16.msra.mxu0 %v9897_v47  ;;  %v9932_v47 = vcombine.high %v2740_v46, %v2744_v25  ;;  %v9937_v56 = vcombine.low %v2747_v35, %v2751_v10  ;;  %v2768_v41 = vld [vmem:[#allocation11 + $0x4b8] sm:$0xff] }
 0x4ef   : > { %4671 = vmatprep.subr.bf16.mxu0 %v9906_v11  ;;  %v2752_v11 = vld [vmem:[#allocation11 + $0x438] sm:$0xff]  ;;  %v9956_v32 = vcombine.high %v2764_v27, %v2768_v41 }
 0x4f0   : > { %4896 = vmatpush1.bf16.msra.mxu1 %v9899_v59  ;;  %v9938_v59 = vcombine.high %v2747_v35, %v2751_v10  ;;  %v9939_v49 = vcombine.low %v2748_v8, %v2752_v11  ;;  %v2779_v35 = vld [vmem:[#allocation11 + $0x510] sm:$0xff] }
 0x4f1   : > { %4401 = vmatmul.mubr.bf16.gmra.mrb[76].mxu0 %v13574_v40  ;;  %4897 = vmatprep.subr.bf16.mxu1 %v9908_v21  ;;  %v9931_v21 = vcombine.low %v2740_v46, %v2744_v25  ;;  %v2772_v46 = vld [vmem:[#allocation11 + $0x4d8] sm:$0xff] }
 0x4f2   : > { %4627 = vmatmul.mubr.bf16.gmra.mrb[92].mxu1 %v13574_v40  ;;  %4672 = vmatpush1.bf16.msra.mxu0 %v9905_v58  ;;  %v9940_v58 = vcombine.high %v2748_v8, %v2752_v11  ;;  %v2776_v25 = vld [vmem:[#allocation11 + $0x4f8] sm:$0xff] }
 0x4f3   : > { %4410 = vmatprep.mubr.bf16.mxu0 %v13610_v16  ;;  %4636 = vmatprep.mubr.bf16.mxu1 %v13610_v16  ;;  %v9963_v11 = vcombine.low %v2772_v46, %v2776_v25 }
 0x4f4   : > { %4898 = vmatpush1.bf16.msra.mxu1 %v9907_v63  ;;  %4673 = vmatprep.subr.bf16.mxu0 %v9914_v48  ;;  %v2760_v63 = vld [vmem:[#allocation11 + $0x478] sm:$0xff]  ;;  %v9946_v48 = vcombine.high %v2755_v45, %v2759_v5 }
 0x4f5   : > { %4899 = vmatprep.subr.bf16.mxu1 %v9916_v13  ;;  %v2767_v13 = vld [vmem:[#allocation11 + $0x4b0] sm:$0xff] }
 0x4f6   : > { %4674 = vmatpush1.bf16.msra.mxu0 %v9913_v18  ;;  %v9945_v18 = vcombine.low %v2755_v45, %v2759_v5 }
 0x4f7   : > { %4675 = vmatprep.subr.bf16.mxu0 %v9922_v43  ;;  %v9954_v43 = vcombine.high %v2763_v61, %v2767_v13 }
 0x4f8   : > { %4900 = vmatpush1.bf16.msra.mxu1 %v9915_v3  ;;  %v9947_v3 = vcombine.low %v2756_v39, %v2760_v63 }
 0x4f9   : > { %4411 = vmatmul.mubr.bf16.gmra.mrb[80].mxu0 %v13606_v31  ;;  %4901 = vmatprep.subr.bf16.mxu1 %v9924_v2  ;;  %v2771_v2 = vld [vmem:[#allocation11 + $0x4d0] sm:$0xff] }
 0x4fa   : > { %4637 = vmatmul.mubr.bf16.gmra.mrb[96].mxu1 %v13606_v31  ;;  %4676 = vmatpush1.bf16.msra.mxu0 %v9921_v37  ;;  %v9953_v37 = vcombine.low %v2763_v61, %v2767_v13  ;;  %v9961_v10 = vcombine.low %v2771_v2, %v2775_v57  ;;  %v2796_v61 = vld [vmem:[#allocation11 + $0x598] sm:$0xff] }
 0x4fb   : > { %4679 = vmatprep.mubr.bf16.mxu0 %v13196_v51  ;;  %4905 = vmatprep.mubr.bf16.mxu1 %v13196_v51  ;;  %v9948_v51 = vcombine.high %v2756_v39, %v2760_v63  ;;  %v2800_v13 = vld [vmem:[#allocation11 + $0x5b8] sm:$0xff] }
 0x4fc   : > { %4902 = vmatpush1.bf16.msra.mxu1 %v9923_v29  ;;  %4677 = vmatprep.subr.bf16.mxu0 %v9930_v36  ;;  %v9962_v29 = vcombine.high %v2771_v2, %v2775_v57  ;;  %v9955_v36 = vcombine.low %v2764_v27, %v2768_v41  ;;  %v2803_v27 = vld [vmem:[#allocation11 + $0x5d0] sm:$0xff]  ;;  %v2804_v2 = vld [vmem:[#allocation11 + $0x5d8] sm:$0xff] }
 0x4fd   : > { %4903 = vmatprep.subr.bf16.mxu1 %v9932_v47  ;;  %v2780_v47 = vld [vmem:[#allocation11 + $0x518] sm:$0xff]  ;;  %v2807_v41 = vld [vmem:[#allocation11 + $0x5f0] sm:$0xff] }
 0x4fe   : > { %4678 = vmatpush1.bf16.msra.mxu0 %v9929_v24  ;;  %v2784_v24 = vld [vmem:[#allocation11 + $0x538] sm:$0xff] }
 0x4ff   : > { %4760 = vmatprep.subr.bf16.mxu0 %v9938_v59  ;;  %v2787_v59 = vld [vmem:[#allocation11 + $0x550] sm:$0xff]  ;;  %v9972_v45 = vcombine.high %v2780_v47, %v2784_v24  ;;  %v9971_v63 = vcombine.low %v2780_v47, %v2784_v24  ;;  %v2808_v57 = vld [vmem:[#allocation11 + $0x5f8] sm:$0xff] }
 0x500   : > { %4904 = vmatpush1.bf16.msra.mxu1 %v9931_v21  ;;  %v2791_v21 = vld [vmem:[#allocation11 + $0x570] sm:$0xff] }
 0x501   : > { %4680 = vmatmul.mubr.bf16.vlgmr.msra.gmra.mrb[84].mxu0 %v13184_v42  ;;  %4986 = vmatprep.subr.bf16.mxu1 %v9940_v58  ;;  %v2788_v58 = vld [vmem:[#allocation11 + $0x558] sm:$0xff]  ;;  %v9978_v39 = vcombine.high %v2787_v59, %v2791_v21 }
 0x502   : > { %4761 = vmatpush1.bf16.msra.mxu0 %v9937_v56  ;;  %4689 = vmatprep.mubr.bf16.mxu0 %v13258_v53  ;;  %v2792_v56 = vld [vmem:[#allocation11 + $0x578] sm:$0xff] }
 0x503   : > { %4906 = vmatmul.mubr.bf16.vlgmr.msra.gmra.mrb[100].mxu1 %v13184_v42  ;;  %4762 = vmatprep.subr.bf16.mxu0 %v9946_v48  ;;  %v2783_v42 = vld [vmem:[#allocation11 + $0x530] sm:$0xff] }
 0x504   : > { %4915 = vmatprep.mubr.bf16.mxu1 %v13258_v53  ;;  %4987 = vmatpush1.bf16.msra.mxu1 %v9939_v49  ;;  %v9964_v53 = vcombine.high %v2772_v46, %v2776_v25  ;;  %v9970_v8 = vcombine.high %v2779_v35, %v2783_v42  ;;  %v9969_v5 = vcombine.low %v2779_v35, %v2783_v42  ;;  %v2795_v48 = vld [vmem:[#allocation11 + $0x590] sm:$0xff] }
 0x505   : > { %4988 = vmatprep.subr.bf16.mxu1 %v9948_v51  ;;  %v9977_v49 = vcombine.low %v2787_v59, %v2791_v21  ;;  %v2811_v46 = vld [vmem:[#allocation11 + $0x610] sm:$0xff]  ;;  %v9993_v25 = vcombine.low %v2803_v27, %v2807_v41  ;;  %v9995_v42 = vcombine.low %v2804_v2, %v2808_v57 }
 0x506   : > { %4763 = vmatpush1.bf16.msra.mxu0 %v9945_v18  ;;  %v9979_v18 = vcombine.low %v2788_v58, %v2792_v56 }
 0x507   : > { %4764 = vmatprep.subr.bf16.mxu0 %v9954_v43  ;;  %v9988_v43 = vcombine.high %v2796_v61, %v2800_v13 }
 0x508   : > { %4989 = vmatpush1.bf16.msra.mxu1 %v9947_v3 }
 0x509   : > { %4690 = vmatmul.mubr.bf16.gmra.mrb[88].mxu0 %v13250_v1  ;;  %4990 = vmatprep.subr.bf16.mxu1 %v9956_v32  ;;  %v9994_v32 = vcombine.high %v2803_v27, %v2807_v41  ;;  %v2843_v27 = vld [vmem:[#allocation11 + $0x710] sm:$0xff] }
 0x50a   : > { %4765 = vmatpush1.bf16.msra.mxu0 %v9953_v37  ;;  %4699 = vmatprep.mubr.bf16.mxu0 %v13332_v17  ;;  %v9987_v37 = vcombine.low %v2796_v61, %v2800_v13  ;;  %v2836_v61 = vld [vmem:[#allocation11 + $0x6d8] sm:$0xff] }
 0x50b   : > { %4916 = vmatmul.mubr.bf16.gmra.mrb[104].mxu1 %v13250_v1  ;;  %4766 = vmatprep.subr.bf16.mxu0 %v9962_v29  ;;  %v2799_v1 = vld [vmem:[#allocation11 + $0x5b0] sm:$0xff]  ;;  %v2812_v29 = vld [vmem:[#allocation11 + $0x618] sm:$0xff] }
 0x50c   : > { %4925 = vmatprep.mubr.bf16.mxu1 %v13332_v17  ;;  %4991 = vmatpush1.bf16.msra.mxu1 %v9955_v36  ;;  %v9980_v17 = vcombine.high %v2788_v58, %v2792_v56  ;;  %v9986_v51 = vcombine.high %v2795_v48, %v2799_v1  ;;  %v9985_v3 = vcombine.low %v2795_v48, %v2799_v1  ;;  %v2816_v36 = vld [vmem:[#allocation11 + $0x638] sm:$0xff]  ;;  %v2835_v48 = vld [vmem:[#allocation11 + $0x6d0] sm:$0xff] }
 0x50d   : > { %4992 = vmatprep.subr.bf16.mxu1 %v9964_v53  ;;  %v2819_v53 = vld [vmem:[#allocation11 + $0x650] sm:$0xff]  ;;  %v10004_v47 = vcombine.high %v2812_v29, %v2816_v36  ;;  %v10003_v21 = vcombine.low %v2812_v29, %v2816_v36  ;;  %v2828_v58 = vld [vmem:[#allocation11 + $0x698] sm:$0xff] }
 0x50e   : > { %4767 = vmatpush1.bf16.msra.mxu0 %v9961_v10  ;;  %v2823_v10 = vld [vmem:[#allocation11 + $0x670] sm:$0xff]  ;;  %v2832_v56 = vld [vmem:[#allocation11 + $0x6b8] sm:$0xff] }
 0x50f   : > { %4768 = vmatprep.subr.bf16.mxu0 %v9970_v8  ;;  %v2820_v8 = vld [vmem:[#allocation11 + $0x658] sm:$0xff]  ;;  %v10010_v59 = vcombine.high %v2819_v53, %v2823_v10  ;;  %v2839_v1 = vld [vmem:[#allocation11 + $0x6f0] sm:$0xff] }
 0x510   : > { %4993 = vmatpush1.bf16.msra.mxu1 %v9963_v11  ;;  %v2824_v11 = vld [vmem:[#allocation11 + $0x678] sm:$0xff]  ;;  %v10025_v41 = vcombine.low %v2835_v48, %v2839_v1 }
 0x511   : > { %4700 = vmatmul.mubr.bf16.gmra.mrb[92].mxu0 %v13320_v19  ;;  %4994 = vmatprep.subr.bf16.mxu1 %v9972_v45  ;;  %v2827_v45 = vld [vmem:[#allocation11 + $0x690] sm:$0xff]  ;;  %v2840_v13 = vld [vmem:[#allocation11 + $0x6f8] sm:$0xff] }
 0x512   : > { %4769 = vmatpush1.bf16.msra.mxu0 %v9969_v5  ;;  %4709 = vmatprep.mubr.bf16.mxu0 %v13402_v6  ;;  %v10009_v5 = vcombine.low %v2819_v53, %v2823_v10  ;;  %v2860_v53 = vld [vmem:[#allocation11 + $0x798] sm:$0xff] }
 0x513   : > { %4926 = vmatmul.mubr.bf16.gmra.mrb[108].mxu1 %v13320_v19  ;;  %4770 = vmatprep.subr.bf16.mxu0 %v9978_v39  ;;  %v2815_v19 = vld [vmem:[#allocation11 + $0x630] sm:$0xff]  ;;  %v2864_v10 = vld [vmem:[#allocation11 + $0x7b8] sm:$0xff] }
 0x514   : > { %4935 = vmatprep.mubr.bf16.mxu1 %v13402_v6  ;;  %4995 = vmatpush1.bf16.msra.mxu1 %v9971_v63  ;;  %v9996_v6 = vcombine.high %v2804_v2, %v2808_v57  ;;  %v10002_v35 = vcombine.high %v2811_v46, %v2815_v19  ;;  %v10001_v24 = vcombine.low %v2811_v46, %v2815_v19 }
 0x515   : > { %4996 = vmatprep.subr.bf16.mxu1 %v9980_v17  ;;  %v10011_v63 = vcombine.low %v2820_v8, %v2824_v11  ;;  %v10020_v17 = vcombine.high %v2828_v58, %v2832_v56  ;;  %v10027_v57 = vcombine.low %v2836_v61, %v2840_v13 }
 0x516   : > { %4771 = vmatpush1.bf16.msra.mxu0 %v9977_v49 }
 0x517   : > { %4772 = vmatprep.subr.bf16.mxu0 %v9986_v51  ;;  %v10026_v51 = vcombine.high %v2835_v48, %v2839_v1  ;;  %v11362_v48 = vld [vmem:[#allocation16 + $0x24] ss:$16 sps:$4 sm:$0xff]   ;;  %v11357_v1 = vld [vmem:[#allocation16 + $0x8] ss:$16 sps:$4 sm:$0xff]  }
 0x518   : > { %4997 = vmatpush1.bf16.msra.mxu1 %v9979_v18  ;;  %v10019_v18 = vcombine.low %v2828_v58, %v2832_v56  ;;  %v11356_v58 = vld [vmem:[#allocation16 + $0x4] ss:$16 sps:$4 sm:$0xff]  }
 0x519   : > { %4710 = vmatmul.mubr.bf16.gmra.mrb[96].mxu0 %v13391_v50  ;;  %4998 = vmatprep.subr.bf16.mxu1 %v9988_v43  ;;  %v2844_v43 = vld [vmem:[#allocation11 + $0x718] sm:$0xff] }
 0x51a   : > { %4773 = vmatpush1.bf16.msra.mxu0 %v9985_v3  ;;  %4719 = vmatprep.mubr.bf16.mxu0 %v13470_v12  ;;  %v2848_v3 = vld [vmem:[#allocation11 + $0x738] sm:$0xff] }
 0x51b   : > { %4936 = vmatmul.mubr.bf16.gmra.mrb[112].mxu1 %v13391_v50  ;;  %4774 = vmatprep.subr.bf16.mxu0 %v9994_v32  ;;  %v2831_v50 = vld [vmem:[#allocation11 + $0x6b0] sm:$0xff]  ;;  %v10036_v46 = vcombine.high %v2844_v43, %v2848_v3  ;;  %v10035_v36 = vcombine.low %v2844_v43, %v2848_v3  ;;  %v11386_v43 = vld [vmem:[#allocation16 + $0xa4] ss:$16 sps:$4 sm:$0xff]  }
 0x51c   : > { %4945 = vmatprep.mubr.bf16.mxu1 %v13470_v12  ;;  %4999 = vmatpush1.bf16.msra.mxu1 %v9987_v37  ;;  %v10012_v12 = vcombine.high %v2820_v8, %v2824_v11  ;;  %v10018_v39 = vcombine.high %v2827_v45, %v2831_v50  ;;  %v10017_v49 = vcombine.low %v2827_v45, %v2831_v50  ;;  %v2851_v32 = vld [vmem:[#allocation11 + $0x750] sm:$0xff]  ;;  %v2868_v45 = vld [vmem:[#allocation11 + $0x7d8] sm:$0xff] }
 0x51d   : > { %5000 = vmatprep.subr.bf16.mxu1 %v9996_v6  ;;  %v2855_v37 = vld [vmem:[#allocation11 + $0x770] sm:$0xff]  ;;  %v2852_v6 = vld [vmem:[#allocation11 + $0x758] sm:$0xff] }
 0x51e   : > { %4775 = vmatpush1.bf16.msra.mxu0 %v9993_v25  ;;  %v2856_v25 = vld [vmem:[#allocation11 + $0x778] sm:$0xff]  ;;  %v10042_v29 = vcombine.high %v2851_v32, %v2855_v37  ;;  %v2867_v8 = vld [vmem:[#allocation11 + $0x7d0] sm:$0xff] }
 0x51f   : > { %4776 = vmatprep.subr.bf16.mxu0 %v10002_v35  ;;  %v2859_v35 = vld [vmem:[#allocation11 + $0x790] sm:$0xff]  ;;  %v2872_v50 = vld [vmem:[#allocation11 + $0x7f8] sm:$0xff] }
 0x520   : > { %5001 = vmatpush1.bf16.msra.mxu1 %v9995_v42  ;;  %v10041_v42 = vcombine.low %v2851_v32, %v2855_v37  ;;  %v2871_v11 = vld [vmem:[#allocation11 + $0x7f0] sm:$0xff]  ;;  %v10059_v56 = vcombine.low %v2868_v45, %v2872_v50  ;;  %v11390_v37 = vld [vmem:[#allocation16 + $0xc0] ss:$16 sps:$4 sm:$0xff]  }
 0x521   : > { %4720 = vmatmul.mubr.bf16.gmra.mrb[100].mxu0 %v13462_v52  ;;  %5002 = vmatprep.subr.bf16.mxu1 %v10004_v47  ;;  %v11381_v3 = vld [vmem:[#allocation16 + $0x88] ss:$16 sps:$4 sm:$0xff]   ;;  %v11395_v32 = vld [vmem:[#allocation16 + $0xcc] ss:$16 sps:$4 sm:$0xff]  }
 0x522   : > { %4777 = vmatpush1.bf16.msra.mxu0 %v10001_v24  ;;  %4729 = vmatprep.mubr.bf16.mxu0 %v13535_v38  ;;  %v10043_v24 = vcombine.low %v2852_v6, %v2856_v25 }
 0x523   : > { %4946 = vmatmul.mubr.bf16.gmra.mrb[116].mxu1 %v13462_v52  ;;  %4778 = vmatprep.subr.bf16.mxu0 %v10010_v59  ;;  %v2847_v52 = vld [vmem:[#allocation11 + $0x730] sm:$0xff]  ;;  %v10052_v59 = vcombine.high %v2860_v53, %v2864_v10 }
 0x524   : > { %4955 = vmatprep.mubr.bf16.mxu1 %v13535_v38  ;;  %5003 = vmatpush1.bf16.msra.mxu1 %v10003_v21  ;;  %v10028_v38 = vcombine.high %v2836_v61, %v2840_v13  ;;  %v10034_v2 = vcombine.high %v2843_v27, %v2847_v52  ;;  %v10033_v19 = vcombine.low %v2843_v27, %v2847_v52  ;;  %v11371_v61 = vld [vmem:[#allocation16 + $0x4c] ss:$16 sps:$4 sm:$0xff]   ;;  %v11366_v13 = vld [vmem:[#allocation16 + $0x40] ss:$16 sps:$4 sm:$0xff]   ;;  %v11375_v52 = vld [vmem:[#allocation16 + $0x68] ss:$16 sps:$4 sm:$0xff]  }
 0x525   : > { %5004 = vmatprep.subr.bf16.mxu1 %v10012_v12  ;;  %v10058_v12 = vcombine.high %v2867_v8, %v2871_v11  ;;  %v11377_v27 = vld [vmem:[#allocation16 + $0x6c] ss:$16 sps:$4 sm:$0xff]  }
 0x526   : > { %4779 = vmatpush1.bf16.msra.mxu0 %v10009_v5  ;;  %v10051_v5 = vcombine.low %v2860_v53, %v2864_v10  ;;  %v11419_v53 = vld [vmem:[#allocation16 + $0x14c] ss:$16 sps:$4 sm:$0xff]   ;;  %v11414_v10 = vld [vmem:[#allocation16 + $0x140] ss:$16 sps:$4 sm:$0xff]  }
 0x527   : > { %4780 = vmatprep.subr.bf16.mxu0 %v10018_v39  ;;  %v11359_v39 = vld [vmem:[#allocation16 + $0xc] ss:$16 sps:$4 sm:$0xff]  }
 0x528   : > { %5005 = vmatpush1.bf16.msra.mxu1 %v10011_v63  ;;  %v11354_v63 = vld [vmem:[#allocation16] ss:$16 sps:$4 sm:$0xff]  }
 0x529   : > { %4730 = vmatmul.mubr.bf16.gmra.mrb[104].mxu0 %v13523_v60  ;;  %5006 = vmatprep.subr.bf16.mxu1 %v10020_v17  ;;  %v11365_v17 = vld [vmem:[#allocation16 + $0x2c] ss:$16 sps:$4 sm:$0xff]  }
 0x52a   : > { %4781 = vmatpush1.bf16.msra.mxu0 %v10017_v49  ;;  %4739 = vmatprep.mubr.bf16.mxu0 %v13580_v14  ;;  %v11363_v49 = vld [vmem:[#allocation16 + $0x28] ss:$16 sps:$4 sm:$0xff]  }
 0x52b   : > { %4956 = vmatmul.mubr.bf16.gmra.mrb[120].mxu1 %v13523_v60  ;;  %4782 = vmatprep.subr.bf16.mxu0 %v10026_v51  ;;  %v2863_v60 = vld [vmem:[#allocation11 + $0x7b0] sm:$0xff]  ;;  %v11374_v51 = vld [vmem:[#allocation16 + $0x64] ss:$16 sps:$4 sm:$0xff]  }
 0x52c   : > { %4965 = vmatprep.mubr.bf16.mxu1 %v13580_v14  ;;  %5007 = vmatpush1.bf16.msra.mxu1 %v10019_v18  ;;  %v10044_v14 = vcombine.high %v2852_v6, %v2856_v25  ;;  %v10050_v47 = vcombine.high %v2859_v35, %v2863_v60  ;;  %v10049_v21 = vcombine.low %v2859_v35, %v2863_v60  ;;  %v11369_v18 = vld [vmem:[#allocation16 + $0x48] ss:$16 sps:$4 sm:$0xff]   ;;  %v11401_v6 = vld [vmem:[#allocation16 + $0xec] ss:$16 sps:$4 sm:$0xff]   ;;  %v11410_v35 = vld [vmem:[#allocation16 + $0x124] ss:$16 sps:$4 sm:$0xff]  }
 0x52d   : > { %5008 = vmatprep.subr.bf16.mxu1 %v10028_v38  ;;  %v11383_v38 = vld [vmem:[#allocation16 + $0x8c] ss:$16 sps:$4 sm:$0xff]   ;;  %v11399_v25 = vld [vmem:[#allocation16 + $0xe8] ss:$16 sps:$4 sm:$0xff]  }
 0x52e   : > { %4783 = vmatpush1.bf16.msra.mxu0 %v10025_v41  ;;  %v11378_v41 = vld [vmem:[#allocation16 + $0x80] ss:$16 sps:$4 sm:$0xff]   ;;  %v11405_v60 = vld [vmem:[#allocation16 + $0x108] ss:$16 sps:$4 sm:$0xff]  }
 0x52f   : > { %4784 = vmatprep.subr.bf16.mxu0 %v10034_v2  ;;  %v11389_v2 = vld [vmem:[#allocation16 + $0xac] ss:$16 sps:$4 sm:$0xff]  }
 0x530   : > { %5009 = vmatpush1.bf16.msra.mxu1 %v10027_v57  ;;  %v11387_v57 = vld [vmem:[#allocation16 + $0xa8] ss:$16 sps:$4 sm:$0xff]  }
 0x531   : > { %4740 = vmatmul.mubr.bf16.gmra.mrb[108].mxu0 %v13572_v30  ;;  %5010 = vmatprep.subr.bf16.mxu1 %v10036_v46  ;;  %v11398_v46 = vld [vmem:[#allocation16 + $0xe4] ss:$16 sps:$4 sm:$0xff]  }
 0x532   : > { %4785 = vmatpush1.bf16.msra.mxu0 %v10033_v19  ;;  %4749 = vmatprep.mubr.bf16.mxu0 %v13608_v22  ;;  %v11393_v19 = vld [vmem:[#allocation16 + $0xc8] ss:$16 sps:$4 sm:$0xff]  }
 0x533   : > { %4966 = vmatmul.mubr.bf16.gmra.mrb[124].mxu1 %v13572_v30  ;;  %4786 = vmatprep.subr.bf16.mxu0 %v10042_v29  ;;  %v10060_v30 = vcombine.high %v2868_v45, %v2872_v50  ;;  %v11407_v29 = vld [vmem:[#allocation16 + $0x10c] ss:$16 sps:$4 sm:$0xff]   ;;  %v11434_v45 = vld [vmem:[#allocation16 + $0x1a4] ss:$16 sps:$4 sm:$0xff]   ;;  %v11429_v50 = vld [vmem:[#allocation16 + $0x188] ss:$16 sps:$4 sm:$0xff]  }
 0x534   : > { %4975 = vmatprep.mubr.bf16.mxu1 %v13608_v22  ;;  %5011 = vmatpush1.bf16.msra.mxu1 %v10035_v36  ;;  %v10057_v22 = vcombine.low %v2867_v8, %v2871_v11  ;;  %v11402_v36 = vld [vmem:[#allocation16 + $0x100] ss:$16 sps:$4 sm:$0xff]   ;;  %v11425_v8 = vld [vmem:[#allocation16 + $0x16c] ss:$16 sps:$4 sm:$0xff]   ;;  %v11423_v11 = vld [vmem:[#allocation16 + $0x168] ss:$16 sps:$4 sm:$0xff]  }
 0x535   : > { %5012 = vmatprep.subr.bf16.mxu1 %v10044_v14  ;;  %v11413_v14 = vld [vmem:[#allocation16 + $0x12c] ss:$16 sps:$4 sm:$0xff]  }
 0x536   : > { %4787 = vmatpush1.bf16.msra.mxu0 %v10041_v42  ;;  %v11411_v42 = vld [vmem:[#allocation16 + $0x128] ss:$16 sps:$4 sm:$0xff]  }
 0x537   : > { %4788 = vmatprep.subr.bf16.mxu0 %v10050_v47  ;;  %v11422_v47 = vld [vmem:[#allocation16 + $0x164] ss:$16 sps:$4 sm:$0xff]  }
 0x538   : > { %5013 = vmatpush1.bf16.msra.mxu1 %v10043_v24  ;;  %v11417_v24 = vld [vmem:[#allocation16 + $0x148] ss:$16 sps:$4 sm:$0xff]  }
 0x539   : > { %4750 = vmatmul.mubr.bf16.gmra.mrb[112].mxu0 %v13604_v26  ;;  %5014 = vmatprep.subr.bf16.mxu1 %v10052_v59  ;;  %v11431_v59 = vld [vmem:[#allocation16 + $0x18c] ss:$16 sps:$4 sm:$0xff]  }
 0x53a   : > { %4789 = vmatpush1.bf16.msra.mxu0 %v10049_v21  ;;  %4792 = vmatprep.mubr.bf16.mxu0 %v13198_v62  ;;  %v11426_v21 = vld [vmem:[#allocation16 + $0x180] ss:$16 sps:$4 sm:$0xff]  }
 0x53b   : > { %4976 = vmatmul.mubr.bf16.gmra.mrb[128].mxu1 %v13604_v26  ;;  %4790 = vmatprep.subr.bf16.mxu0 %v10058_v12  ;;  %v11360_v26 = vld [vmem:[#allocation16 + $0x20] ss:$16 sps:$4 sm:$0xff]   ;;  %v11437_v12 = vld [vmem:[#allocation16 + $0x1ac] ss:$16 sps:$4 sm:$0xff]  }
 0x53c   : > { %5015 = vmatpush1.bf16.msra.mxu1 %v10051_v5  ;;  %5018 = vmatprep.mubr.bf16.mxu1 %v13198_v62  ;;  %v11368_v62 = vld [vmem:[#allocation16 + $0x44] ss:$16 sps:$4 sm:$0xff]   ;;  %v11435_v5 = vld [vmem:[#allocation16 + $0x1a8] ss:$16 sps:$4 sm:$0xff]  }
 0x53d   : > { %5016 = vmatprep.subr.bf16.mxu1 %v10060_v30  ;;  %v11443_v30 = vld [vmem:[#allocation16 + $0x1cc] ss:$16 sps:$4 sm:$0xff]  }
 0x53e   : > { %4791 = vmatpush1.bf16.msra.mxu0 %v10057_v22  ;;  %v11438_v22 = vld [vmem:[#allocation16 + $0x1c0] ss:$16 sps:$4 sm:$0xff]  }
 0x53f   : > { %6985 = vmatprep.subr.bf16.mxu0 %v11356_v58  ;;  %v11446_v58 = vld [vmem:[#allocation16 + $0x1e4] ss:$16 sps:$4 sm:$0xff]  }
 0x540   : > { %5017 = vmatpush1.bf16.msra.mxu1 %v10059_v56  ;;  %v11441_v56 = vld [vmem:[#allocation16 + $0x1c8] ss:$16 sps:$4 sm:$0xff]  }
 0x541   : > { %4793 = vmatmul.mubr.bf16.vlgmr.msra.gmra.mrb[84].mxu0 %v13186_v28  ;;  %7149 = vmatprep.subr.bf16.mxu1 %v11359_v39  ;;  %v11449_v39 = vld [vmem:[#allocation16 + $0x1ec] ss:$16 sps:$4 sm:$0xff]  }
 0x542   : > { %4802 = vmatprep.mubr.bf16.mxu0 %v13260_v7  ;;  %6986 = vmatpush1.bf16.msra.mxu0 %v11354_v63  ;;  %v11447_v63 = vld [vmem:[#allocation16 + $0x1e8] ss:$16 sps:$4 sm:$0xff]  }
 0x543   : > { %5019 = vmatmul.mubr.bf16.vlgmr.msra.gmra.mrb[100].mxu1 %v13186_v28  ;;  %6987 = vmatprep.subr.bf16.mxu0 %v11362_v48  ;;  %v11372_v28 = vld [vmem:[#allocation16 + $0x60] ss:$16 sps:$4 sm:$0xff]   ;;  %v11455_v48 = vld [vmem:[#allocation16 + $0x20c] ss:$16 sps:$4 sm:$0xff]  }
 0x544   : > { %5028 = vmatprep.mubr.bf16.mxu1 %v13260_v7  ;;  %7150 = vmatpush1.bf16.msra.mxu1 %v11357_v1  ;;  %v11380_v7 = vld [vmem:[#allocation16 + $0x84] ss:$16 sps:$4 sm:$0xff]   ;;  %v13714_v1 = vld [vmem:[#allocation13] sm:$0xff] }
 0x545   : > { %7151 = vmatprep.subr.bf16.mxu1 %v11365_v17  ;;  %v13718_v17 = vrot.slane %v13714_v1, %v12955_v23 }
 0x546   : > { %6988 = vmatpush1.bf16.msra.mxu0 %v11360_v26 }
 0x547   : > { %6989 = vmatprep.subr.bf16.mxu0 %v11368_v62  ;;  %v14546_v62 = vld [vmem:[#allocation54_spill] sm:$0xff] }
 0x548   : > { %7152 = vmatpush1.bf16.msra.mxu1 %v11363_v49  ;;  %v14547_v49 = vld [vmem:[#allocation37_spill] sm:$0xff] }
 0x549   : > { %4803 = vmatmul.mubr.bf16.gmra.mrb[88].mxu0 %v13252_v55  ;;  %7153 = vmatprep.subr.bf16.mxu1 %v11371_v61  ;;  %v13726_v61 = vrot.slane %v13714_v1, %v14547_v49 }
 0x54a   : > { %4812 = vmatprep.mubr.bf16.mxu0 %v13334_v9  ;;  %6990 = vmatpush1.bf16.msra.mxu0 %v11366_v13 }
 0x54b   : > { %5029 = vmatmul.mubr.bf16.gmra.mrb[104].mxu1 %v13252_v55  ;;  %6991 = vmatprep.subr.bf16.mxu0 %v11374_v51  ;;  %v11384_v55 = vld [vmem:[#allocation16 + $0xa0] ss:$16 sps:$4 sm:$0xff]  }
 0x54c   : > { %5038 = vmatprep.mubr.bf16.mxu1 %v13334_v9  ;;  %7154 = vmatpush1.bf16.msra.mxu1 %v11369_v18  ;;  %v11392_v9 = vld [vmem:[#allocation16 + $0xc4] ss:$16 sps:$4 sm:$0xff]   ;;  %v14548_v18 = vld [vmem:[#allocation55_spill] sm:$0xff] }
 0x54d   : > { %7155 = vmatprep.subr.bf16.mxu1 %v11377_v27  ;;  %v13730_v27 = vrot.slane %v13714_v1, %v14548_v18 }
 0x54e   : > { %6992 = vmatpush1.bf16.msra.mxu0 %v11372_v28 }
 0x54f   : > { %6993 = vmatprep.subr.bf16.mxu0 %v11380_v7 }
 0x550   : > { %7156 = vmatpush1.bf16.msra.mxu1 %v11375_v52 }
 0x551   : > { %4813 = vmatmul.mubr.bf16.gmra.mrb[92].mxu0 %v13322_v20  ;;  %7157 = vmatprep.subr.bf16.mxu1 %v11383_v38 }
 0x552   : > { %4822 = vmatprep.mubr.bf16.mxu0 %v13404_v44  ;;  %6994 = vmatpush1.bf16.msra.mxu0 %v11378_v41 }
 0x553   : > { %5039 = vmatmul.mubr.bf16.gmra.mrb[108].mxu1 %v13322_v20  ;;  %6995 = vmatprep.subr.bf16.mxu0 %v11386_v43  ;;  %v11396_v20 = vld [vmem:[#allocation16 + $0xe0] ss:$16 sps:$4 sm:$0xff]  }
 0x554   : > { %5048 = vmatprep.mubr.bf16.mxu1 %v13404_v44  ;;  %7158 = vmatpush1.bf16.msra.mxu1 %v11381_v3  ;;  %v11404_v44 = vld [vmem:[#allocation16 + $0x104] ss:$16 sps:$4 sm:$0xff]  }
 0x555   : > { %7159 = vmatprep.subr.bf16.mxu1 %v11389_v2 }
 0x556   : > { %6996 = vmatpush1.bf16.msra.mxu0 %v11384_v55 }
 0x557   : > { %6997 = vmatprep.subr.bf16.mxu0 %v11392_v9 }
 0x558   : > { %7160 = vmatpush1.bf16.msra.mxu1 %v11387_v57 }
 0x559   : > { %4823 = vmatmul.mubr.bf16.gmra.mrb[96].mxu0 %v13393_v4  ;;  %7161 = vmatprep.subr.bf16.mxu1 %v11395_v32 }
 0x55a   : > { %4832 = vmatprep.mubr.bf16.mxu0 %v13472_v34  ;;  %6998 = vmatpush1.bf16.msra.mxu0 %v11390_v37 }
 0x55b   : > { %5049 = vmatmul.mubr.bf16.gmra.mrb[112].mxu1 %v13393_v4  ;;  %6999 = vmatprep.subr.bf16.mxu0 %v11398_v46  ;;  %v11408_v4 = vld [vmem:[#allocation16 + $0x120] ss:$16 sps:$4 sm:$0xff]  }
 0x55c   : > { %5058 = vmatprep.mubr.bf16.mxu1 %v13472_v34  ;;  %7162 = vmatpush1.bf16.msra.mxu1 %v11393_v19  ;;  %v11416_v34 = vld [vmem:[#allocation16 + $0x144] ss:$16 sps:$4 sm:$0xff]  }
 0x55d   : > { %7163 = vmatprep.subr.bf16.mxu1 %v11401_v6 }
 0x55e   : > { %7000 = vmatpush1.bf16.msra.mxu0 %v11396_v20 }
 0x55f   : > { %7001 = vmatprep.subr.bf16.mxu0 %v11404_v44 }
 0x560   : > { %7164 = vmatpush1.bf16.msra.mxu1 %v11399_v25 }
 0x561   : > { %4833 = vmatmul.mubr.bf16.gmra.mrb[100].mxu0 %v13464_v15  ;;  %7165 = vmatprep.subr.bf16.mxu1 %v11407_v29 }
 0x562   : > { %4842 = vmatprep.mubr.bf16.mxu0 %v13537_v54  ;;  %7002 = vmatpush1.bf16.msra.mxu0 %v11402_v36 }
 0x563   : > { %5059 = vmatmul.mubr.bf16.gmra.mrb[116].mxu1 %v13464_v15  ;;  %7003 = vmatprep.subr.bf16.mxu0 %v11410_v35  ;;  %v11420_v15 = vld [vmem:[#allocation16 + $0x160] ss:$16 sps:$4 sm:$0xff]  }
 0x564   : > { %5068 = vmatprep.mubr.bf16.mxu1 %v13537_v54  ;;  %7166 = vmatpush1.bf16.msra.mxu1 %v11405_v60  ;;  %v11428_v54 = vld [vmem:[#allocation16 + $0x184] ss:$16 sps:$4 sm:$0xff]  }
 0x565   : > { %7167 = vmatprep.subr.bf16.mxu1 %v11413_v14 }
 0x566   : > { %7004 = vmatpush1.bf16.msra.mxu0 %v11408_v4 }
 0x567   : > { %7005 = vmatprep.subr.bf16.mxu0 %v11416_v34 }
 0x568   : > { %7168 = vmatpush1.bf16.msra.mxu1 %v11411_v42 }
 0x569   : > { %4843 = vmatmul.mubr.bf16.gmra.mrb[104].mxu0 %v13525_v0  ;;  %7169 = vmatprep.subr.bf16.mxu1 %v11419_v53 }
 0x56a   : > { %4852 = vmatprep.mubr.bf16.mxu0 %v13582_v33  ;;  %7006 = vmatpush1.bf16.msra.mxu0 %v11414_v10 }
 0x56b   : > { %5069 = vmatmul.mubr.bf16.gmra.mrb[120].mxu1 %v13525_v0  ;;  %7007 = vmatprep.subr.bf16.mxu0 %v11422_v47  ;;  %v11432_v0 = vld [vmem:[#allocation16 + $0x1a0] ss:$16 sps:$4 sm:$0xff]  }
 0x56c   : > { %5078 = vmatprep.mubr.bf16.mxu1 %v13582_v33  ;;  %7170 = vmatpush1.bf16.msra.mxu1 %v11417_v24  ;;  %v11440_v33 = vld [vmem:[#allocation16 + $0x1c4] ss:$16 sps:$4 sm:$0xff]  }
 0x56d   : > { %7171 = vmatprep.subr.bf16.mxu1 %v11425_v8 }
 0x56e   : > { %7008 = vmatpush1.bf16.msra.mxu0 %v11420_v15 }
 0x56f   : > { %7009 = vmatprep.subr.bf16.mxu0 %v11428_v54 }
 0x570   : > { %7172 = vmatpush1.bf16.msra.mxu1 %v11423_v11 }
 0x571   : > { %4853 = vmatmul.mubr.bf16.gmra.mrb[108].mxu0 %v13574_v40  ;;  %7173 = vmatprep.subr.bf16.mxu1 %v11431_v59 }
 0x572   : > { %4862 = vmatprep.mubr.bf16.mxu0 %v13610_v16  ;;  %7010 = vmatpush1.bf16.msra.mxu0 %v11426_v21 }
 0x573   : > { %5079 = vmatmul.mubr.bf16.gmra.mrb[124].mxu1 %v13574_v40  ;;  %7011 = vmatprep.subr.bf16.mxu0 %v11434_v45  ;;  %v11444_v40 = vld [vmem:[#allocation16 + $0x1e0] ss:$16 sps:$4 sm:$0xff]  }
 0x574   : > { %5088 = vmatprep.mubr.bf16.mxu1 %v13610_v16  ;;  %7174 = vmatpush1.bf16.msra.mxu1 %v11429_v50  ;;  %v11452_v16 = vld [vmem:[#allocation16 + $0x204] ss:$16 sps:$4 sm:$0xff]  }
 0x575   : > { %7175 = vmatprep.subr.bf16.mxu1 %v11437_v12 }
 0x576   : > { %7012 = vmatpush1.bf16.msra.mxu0 %v11432_v0 }
 0x577   : > { %7013 = vmatprep.subr.bf16.mxu0 %v11440_v33 }
 0x578   : > { %7176 = vmatpush1.bf16.msra.mxu1 %v11435_v5 }
 0x579   : > { %4863 = vmatmul.mubr.bf16.gmra.mrb[112].mxu0 %v13606_v31  ;;  %7177 = vmatprep.subr.bf16.mxu1 %v11443_v30 }
 0x57a   : > { %7014 = vmatpush1.bf16.msra.mxu0 %v11438_v22 }
 0x57b   : > { %5089 = vmatmul.mubr.bf16.gmra.mrb[128].mxu1 %v13606_v31  ;;  %7015 = vmatprep.subr.bf16.mxu0 %v11446_v58  ;;  %v13722_v31 = vrot.slane %v13714_v1, %v14546_v62 }
 0x57c   : > { %7178 = vmatpush1.bf16.msra.mxu1 %v11441_v56 }
 0x57d   : > { %7179 = vmatprep.subr.bf16.mxu1 %v11449_v39 }
 0x57e   : > { %7016 = vmatpush1.bf16.msra.mxu0 %v11444_v40 }
 0x57f   : > { %7026 = vmatprep.subr.bf16.mxu0 %v11452_v16 }
 0x580   : > { %7180 = vmatpush1.bf16.msra.mxu1 %v11447_v63 }
 0x581   : > { %7190 = vmatprep.subr.bf16.mxu1 %v11455_v48 }
 0x594   : > { %v4342_v26 = vpop.f32.mrb[52].mxu0 }
 0x595   : > { %v4568_v13 = vpop.f32.mrb[68].mxu1  ;;  %v4344_v51 = vpop.f32.mrb[53].mxu0  ;;  %v10619_v52 = vadd.f32 %v4342_v26, %v13718_v17 }
 0x596   : > { %v4570_v28 = vpop.f32.mrb[69].mxu1  ;;  %v4346_v7 = vpop.f32.mrb[54].mxu0  ;;  %v10651_v3 = vadd.f32 %v4568_v13, %v13722_v31  ;;  %v10620_v2 = vadd.f32 %v4344_v51, %v13726_v61 }
 0x597   : > { %v10621_v38 = vadd.f32 %v4346_v7, %v13718_v17  ;;  %v4572_v41 = vpop.f32.mrb[70].mxu1  ;;  %v4348_v43 = vpop.f32.mrb[55].mxu0  ;;  %v10652_v32 = vadd.f32 %v4570_v28, %v13730_v27 }
 0x598   : > { %v10653_v55 = vadd.f32 %v4572_v41, %v13722_v31  ;;  %v10622_v9 = vadd.f32 %v4348_v43, %v13726_v61  ;;  %v4574_v57 = vpop.f32.mrb[71].mxu1 }
 0x599   : > { %v5099_v37 = vpack.c.bf16 %v10621_v38, %v10619_v52  ;;  %v10654_v46 = vadd.f32 %v4574_v57, %v13730_v27 }
 0x59a   : > { %v5101_v19 = vpack.c.bf16 %v10653_v55, %v10651_v3  ;;  %v5100_v6 = vpack.c.bf16 %v10622_v9, %v10620_v2 }
 0x59b   : > { %v5102_v20 = vpack.c.bf16 %v10654_v46, %v10652_v32 }
 0x59c   : > { %v4352_v44 = vpop.f32.mrb[56].mxu0 }
 0x59d   : > { %v4578_v25 = vpop.f32.mrb[72].mxu1  ;;  %v4354_v29 = vpop.f32.mrb[57].mxu0  ;;  %v10623_v60 = vadd.f32 %v4352_v44, %v13718_v17 }
 0x59e   : > { %v4580_v36 = vpop.f32.mrb[73].mxu1  ;;  %v4356_v35 = vpop.f32.mrb[58].mxu0  ;;  %v10655_v42 = vadd.f32 %v4578_v25, %v13722_v31  ;;  %v10624_v53 = vadd.f32 %v4354_v29, %v13726_v61 }
 0x59f   : > { %v10625_v14 = vadd.f32 %v4356_v35, %v13718_v17  ;;  %v4582_v4 = vpop.f32.mrb[74].mxu1  ;;  %v4358_v34 = vpop.f32.mrb[59].mxu0  ;;  %v10656_v8 = vadd.f32 %v4580_v36, %v13730_v27 }
 0x5a0   : > { %v10657_v10 = vadd.f32 %v4582_v4, %v13722_v31  ;;  %v10626_v47 = vadd.f32 %v4358_v34, %v13726_v61  ;;  %v4584_v24 = vpop.f32.mrb[75].mxu1 }
 0x5a1   : > { %v5107_v15 = vpack.c.bf16 %v10625_v14, %v10623_v60  ;;  %v10658_v54 = vadd.f32 %v4584_v24, %v13730_v27 }
 0x5a2   : > { %v5109_v11 = vpack.c.bf16 %v10657_v10, %v10655_v42  ;;  %v5108_v59 = vpack.c.bf16 %v10626_v47, %v10624_v53 }
 0x5a3   : > { %v5163_v21 = vmax.bf16 %v5107_v15, %v5099_v37  ;;  %v5110_v45 = vpack.c.bf16 %v10658_v54, %v10656_v8 }
 0x5a4   : > { %v5189_v50 = vmax.bf16 %v5109_v11, %v5101_v19  ;;  %v5176_v12 = vmax.bf16 %v5108_v59, %v5100_v6  ;;  %v4362_v0 = vpop.f32.mrb[60].mxu0 }
 0x5a5   : > { %v5202_v33 = vmax.bf16 %v5110_v45, %v5102_v20  ;;  %v4588_v5 = vpop.f32.mrb[76].mxu1  ;;  %v4364_v30 = vpop.f32.mrb[61].mxu0  ;;  %v10627_v56 = vadd.f32 %v4362_v0, %v13718_v17 }
 0x5a6   : > { %v4590_v22 = vpop.f32.mrb[77].mxu1  ;;  %v4366_v58 = vpop.f32.mrb[62].mxu0  ;;  %v10659_v63 = vadd.f32 %v4588_v5, %v13722_v31  ;;  %v10628_v48 = vadd.f32 %v4364_v30, %v13726_v61 }
 0x5a7   : > { %v10629_v39 = vadd.f32 %v4366_v58, %v13718_v17  ;;  %v4592_v40 = vpop.f32.mrb[78].mxu1  ;;  %v4368_v16 = vpop.f32.mrb[63].mxu0  ;;  %v10660_v28 = vadd.f32 %v4590_v22, %v13730_v27 }
 0x5a8   : > { %v10661_v26 = vadd.f32 %v4592_v40, %v13722_v31  ;;  %v10630_v13 = vadd.f32 %v4368_v16, %v13726_v61  ;;  %v4594_v51 = vpop.f32.mrb[79].mxu1 }
 0x5a9   : > { %v5115_v7 = vpack.c.bf16 %v10629_v39, %v10627_v56  ;;  %v10662_v52 = vadd.f32 %v4594_v51, %v13730_v27 }
 0x5aa   : > { %v5117_v38 = vpack.c.bf16 %v10661_v26, %v10659_v63  ;;  %v5116_v41 = vpack.c.bf16 %v10630_v13, %v10628_v48 }
 0x5ab   : > { %v5164_v43 = vmax.bf16 %v5163_v21, %v5115_v7  ;;  %v5118_v3 = vpack.c.bf16 %v10662_v52, %v10660_v28 }
 0x5ac   : > { %v5190_v2 = vmax.bf16 %v5189_v50, %v5117_v38  ;;  %v5177_v55 = vmax.bf16 %v5176_v12, %v5116_v41  ;;  %v4372_v9 = vpop.f32.mrb[64].mxu0 }
 0x5ad   : > { %v5203_v57 = vmax.bf16 %v5202_v33, %v5118_v3  ;;  %v4598_v32 = vpop.f32.mrb[80].mxu1  ;;  %v4374_v37 = vpop.f32.mrb[65].mxu0  ;;  %v10631_v6 = vadd.f32 %v4372_v9, %v13718_v17 }
 0x5ae   : > { %v4600_v46 = vpop.f32.mrb[81].mxu1  ;;  %v4376_v19 = vpop.f32.mrb[66].mxu0  ;;  %v10663_v29 = vadd.f32 %v4598_v32, %v13722_v31  ;;  %v10632_v36 = vadd.f32 %v4374_v37, %v13726_v61 }
 0x5af   : > { %v10633_v20 = vadd.f32 %v4376_v19, %v13718_v17  ;;  %v4602_v44 = vpop.f32.mrb[82].mxu1  ;;  %v4378_v25 = vpop.f32.mrb[67].mxu0  ;;  %v10664_v4 = vadd.f32 %v4600_v46, %v13730_v27 }
 0x5b0   : > { %v10665_v35 = vadd.f32 %v4602_v44, %v13722_v31  ;;  %v10634_v60 = vadd.f32 %v4378_v25, %v13726_v61  ;;  %v4604_v14 = vpop.f32.mrb[83].mxu1 }
 0x5b1   : > { %v5123_v34 = vpack.c.bf16 %v10633_v20, %v10631_v6  ;;  %v10666_v42 = vadd.f32 %v4604_v14, %v13730_v27 }
 0x5b2   : > { %v5125_v53 = vpack.c.bf16 %v10665_v35, %v10663_v29  ;;  %v5124_v10 = vpack.c.bf16 %v10634_v60, %v10632_v36 }
 0x5b3   : > { %v5165_v47 = vmax.bf16 %v5164_v43, %v5123_v34  ;;  %v5126_v24 = vpack.c.bf16 %v10666_v42, %v10664_v4 }
 0x5b4   : > { %v5191_v8 = vmax.bf16 %v5190_v2, %v5125_v53  ;;  %v5178_v15 = vmax.bf16 %v5177_v55, %v5124_v10  ;;  %v4382_v54 = vpop.f32.mrb[68].mxu0 }
 0x5b5   : > { %v13764_v11 = vmax.bf16 %v5203_v57, %v5126_v24  ;;  %v4608_v59 = vpop.f32.mrb[84].mxu1  ;;  %v4384_v21 = vpop.f32.mrb[69].mxu0  ;;  %v10635_v5 = vadd.f32 %v4382_v54, %v13718_v17  ;;  %v5166_v41 = vunpack.i.l.bf16 %v5165_v47  ;;  %v5167_v19 = vunpack.i.h.bf16 %v5165_v47 }
 0x5b6   : > { %v4610_v45 = vpop.f32.mrb[85].mxu1  ;;  %v4386_v50 = vpop.f32.mrb[70].mxu0  ;;  %v10667_v30 = vadd.f32 %v4608_v59, %v13722_v31  ;;  %v10636_v56 = vadd.f32 %v4384_v21, %v13726_v61  ;;  %v5192_v25 = vunpack.i.l.bf16 %v5191_v8  ;;  %v5193_v29 = vunpack.i.h.bf16 %v5191_v8 }
 0x5b7   : > { %v4612_v12 = vpop.f32.mrb[86].mxu1  ;;  %v4388_v0 = vpop.f32.mrb[71].mxu0  ;;  %v10637_v22 = vadd.f32 %v4386_v50, %v13718_v17  ;;  %v10668_v39 = vadd.f32 %v4610_v45, %v13730_v27  ;;  %v5179_v60 = vunpack.i.l.bf16 %v5178_v15  ;;  %v5180_v14 = vunpack.i.h.bf16 %v5178_v15 }
 0x5b8   : > { %v4614_v33 = vpop.f32.mrb[87].mxu1  ;;  %v10669_v58 = vadd.f32 %v4612_v12, %v13722_v31  ;;  %v10638_v40 = vadd.f32 %v4388_v0, %v13726_v61  ;;  %v5205_v24 = vunpack.i.l.bf16 %v13764_v11  ;;  %v5206_v47 = vunpack.i.h.bf16 %v13764_v11 }
 0x5b9   : > { %v10670_v16 = vadd.f32 %v4614_v33, %v13730_v27  ;;  %v5131_v63 = vpack.c.bf16 %v10637_v22, %v10635_v5  ;;  %v5168_v45 = vmax.f32 %v5166_v41, %v5167_v19  ;;  %v5194_v8 = vmax.f32 %v5192_v25, %v5193_v29 }
 0x5ba   : > { %v5133_v48 = vpack.c.bf16 %v10669_v58, %v10667_v30  ;;  %v5132_v26 = vpack.c.bf16 %v10638_v40, %v10636_v56  ;;  %v5181_v0 = vmax.f32 %v5179_v60, %v5180_v14  ;;  %v5207_v40 = vmax.f32 %v5205_v24, %v5206_v47 }
 0x5bb   : > { %v5134_v13 = vpack.c.bf16 %v10670_v16, %v10668_v39 }
 0x5bc   : > { %v4392_v51 = vpop.f32.mrb[72].mxu0 }
 0x5bd   : > { %v4618_v28 = vpop.f32.mrb[88].mxu1  ;;  %v4394_v7 = vpop.f32.mrb[73].mxu0  ;;  %v10639_v43 = vadd.f32 %v4392_v51, %v13718_v17 }
 0x5be   : > { %v4620_v52 = vpop.f32.mrb[89].mxu1  ;;  %v4396_v38 = vpop.f32.mrb[74].mxu0  ;;  %v10671_v9 = vadd.f32 %v4618_v28, %v13722_v31  ;;  %v10640_v57 = vadd.f32 %v4394_v7, %v13726_v61  ;;  %v5195_v28 = vrot.slane %v5194_v8, 4  ;;  %v5182_v7 = vrot.slane %v5181_v0, 4 }
 0x5bf   : > { %v10641_v3 = vadd.f32 %v4396_v38, %v13718_v17  ;;  %v4622_v2 = vpop.f32.mrb[90].mxu1  ;;  %v4398_v55 = vpop.f32.mrb[75].mxu0  ;;  %v10672_v6 = vadd.f32 %v4620_v52, %v13730_v27 }
 0x5c0   : > { %v10673_v32 = vadd.f32 %v4622_v2, %v13722_v31  ;;  %v10642_v37 = vadd.f32 %v4398_v55, %v13726_v61  ;;  %v4624_v46 = vpop.f32.mrb[91].mxu1  ;;  %v5208_v2 = vrot.slane %v5207_v40, 4  ;;  %v5196_v19 = vmax.f32 %v5194_v8, %v5195_v28 }
 0x5c1   : > { %v5139_v20 = vpack.c.bf16 %v10641_v3, %v10639_v43  ;;  %v10674_v44 = vadd.f32 %v4624_v46, %v13730_v27 }
 0x5c2   : > { %v5141_v36 = vpack.c.bf16 %v10673_v32, %v10671_v9  ;;  %v5140_v35 = vpack.c.bf16 %v10642_v37, %v10640_v57 }
 0x5c3   : > { %v5267_v4 = vmax.bf16 %v5139_v20, %v5131_v63  ;;  %v5142_v34 = vpack.c.bf16 %v10674_v44, %v10672_v6  ;;  %v5183_v6 = vmax.f32 %v5181_v0, %v5182_v7 }
 0x5c4   : > { %v5293_v42 = vmax.bf16 %v5141_v36, %v5133_v48  ;;  %v5280_v53 = vmax.bf16 %v5140_v35, %v5132_v26  ;;  %v4402_v10 = vpop.f32.mrb[76].mxu0  ;;  %v5169_v26 = vrot.slane %v5168_v45, 4 }
 0x5c5   : > { %v5306_v54 = vmax.bf16 %v5142_v34, %v5134_v13  ;;  %v4628_v59 = vpop.f32.mrb[92].mxu1  ;;  %v4404_v21 = vpop.f32.mrb[77].mxu0  ;;  %v10643_v33 = vadd.f32 %v4402_v10, %v13718_v17  ;;  %v5209_v34 = vmax.f32 %v5207_v40, %v5208_v2 }
 0x5c6   : > { %v4630_v50 = vpop.f32.mrb[93].mxu1  ;;  %v4406_v12 = vpop.f32.mrb[78].mxu0  ;;  %v10675_v22 = vadd.f32 %v4628_v59, %v13722_v31  ;;  %v10644_v58 = vadd.f32 %v4404_v21, %v13726_v61  ;;  %v5170_v32 = vmax.f32 %v5168_v45, %v5169_v26  ;;  %v5197_v21 = vrot.slane %v5196_v19, 2 }
 0x5c7   : > { %v10645_v15 = vadd.f32 %v4406_v12, %v13718_v17  ;;  %v4632_v5 = vpop.f32.mrb[94].mxu1  ;;  %v4408_v30 = vpop.f32.mrb[79].mxu0  ;;  %v10676_v16 = vadd.f32 %v4630_v50, %v13730_v27  ;;  %v5184_v45 = vrot.slane %v5183_v6, 2  ;;  %v5210_v8 = vrot.slane %v5209_v34, 2 }
 0x5c8   : > { %v10677_v11 = vadd.f32 %v4632_v5, %v13722_v31  ;;  %v10646_v56 = vadd.f32 %v4408_v30, %v13726_v61  ;;  %v4634_v39 = vpop.f32.mrb[95].mxu1 }
 0x5c9   : > { %v5147_v63 = vpack.c.bf16 %v10645_v15, %v10643_v33  ;;  %v10678_v48 = vadd.f32 %v4634_v39, %v13730_v27  ;;  %v5211_v26 = vmax.f32 %v5209_v34, %v5210_v8 }
 0x5ca   : > { %v5149_v13 = vpack.c.bf16 %v10677_v11, %v10675_v22  ;;  %v5148_v51 = vpack.c.bf16 %v10646_v56, %v10644_v58  ;;  %v5198_v56 = vmax.f32 %v5196_v19, %v5197_v21 }
 0x5cb   : > { %v5268_v52 = vmax.bf16 %v5267_v4, %v5147_v63  ;;  %v5150_v38 = vpack.c.bf16 %v10678_v48, %v10676_v16  ;;  %v5185_v16 = vmax.f32 %v5183_v6, %v5184_v45 }
 0x5cc   : > { %v5294_v41 = vmax.bf16 %v5293_v42, %v5149_v13  ;;  %v5281_v43 = vmax.bf16 %v5280_v53, %v5148_v51  ;;  %v4412_v3 = vpop.f32.mrb[80].mxu0 }
 0x5cd   : > { %v5307_v55 = vmax.bf16 %v5306_v54, %v5150_v38  ;;  %v4638_v9 = vpop.f32.mrb[96].mxu1  ;;  %v4414_v57 = vpop.f32.mrb[81].mxu0  ;;  %v10647_v20 = vadd.f32 %v4412_v3, %v13718_v17  ;;  %v5199_v38 = vrot.slane %v5198_v56, 1  ;;  %v5186_v3 = vrot.slane %v5185_v16, 1 }
 0x5ce   : > { %v4640_v37 = vpop.f32.mrb[97].mxu1  ;;  %v4416_v46 = vpop.f32.mrb[82].mxu0  ;;  %v10679_v36 = vadd.f32 %v4638_v9, %v13722_v31  ;;  %v10648_v35 = vadd.f32 %v4414_v57, %v13726_v61  ;;  %v5212_v9 = vrot.slane %v5211_v26, 1 }
 0x5cf   : > { %v10649_v44 = vadd.f32 %v4416_v46, %v13718_v17  ;;  %v4642_v25 = vpop.f32.mrb[98].mxu1  ;;  %v4418_v29 = vpop.f32.mrb[83].mxu0  ;;  %v10680_v42 = vadd.f32 %v4640_v37, %v13730_v27  ;;  %v5171_v17 = vrot.slane %v5170_v32, 2 }
 0x5d0   : > { %v10681_v60 = vadd.f32 %v4642_v25, %v13722_v31  ;;  %v10650_v14 = vadd.f32 %v4418_v29, %v13726_v61  ;;  %v4644_v4 = vpop.f32.mrb[99].mxu1  ;;  %v5200_v25 = vmax.f32 %v5198_v56, %v5199_v38  ;;  %v11453_v56 = vld [vmem:[#allocation16 + $0x208] ss:$16 sps:$4 sm:$0xff]   ;;  %v11470_v38 = vld [vmem:[#allocation16 + $0x264] ss:$16 sps:$4 sm:$0xff]  }
 0x5d1   : > { %v5155_v53 = vpack.c.bf16 %v10649_v44, %v10647_v20  ;;  %v10682_v10 = vadd.f32 %v4644_v4, %v13730_v27  ;;  %v5172_v22 = vmax.f32 %v5170_v32, %v5171_v17  ;;  %v5187_v20 = vmax.f32 %v5185_v16, %v5186_v3  ;;  %v11458_v16 = vld [vmem:[#allocation16 + $0x224] ss:$16 sps:$4 sm:$0xff]   ;;  %v11471_v3 = vld [vmem:[#allocation16 + $0x268] ss:$16 sps:$4 sm:$0xff]  }
 0x5d2   : > { %v5157_v24 = vpack.c.bf16 %v10681_v60, %v10679_v36  ;;  %v5156_v47 = vpack.c.bf16 %v10650_v14, %v10648_v35  ;;  %v5213_v36 = vmax.f32 %v5211_v26, %v5212_v9  ;;  %v11456_v26 = vld [vmem:[#allocation16 + $0x220] ss:$16 sps:$4 sm:$0xff]  }
 0x5d3   : > { %v5269_v54 = vmax.bf16 %v5268_v52, %v5155_v53  ;;  %v5158_v59 = vpack.c.bf16 %v10682_v10, %v10680_v42  ;;  %v5173_v28 = vrot.slane %v5172_v22, 1  ;;  %v5188_v53 = vpack.i.bf16 %v5187_v20, %v5187_v20  ;;  %v11474_v9 = vld [vmem:[#allocation16 + $0x280] ss:$16 sps:$4 sm:$0xff]   ;;  %v11491_v20 = vld [vmem:[#allocation16 + $0x2cc] ss:$16 sps:$4 sm:$0xff]  }
 0x5d4   : > { %v5295_v50 = vmax.bf16 %v5294_v41, %v5157_v24  ;;  %v5282_v12 = vmax.bf16 %v5281_v43, %v5156_v47  ;;  %v5201_v24 = vpack.i.bf16 %v5200_v25, %v5200_v25  ;;  %v11489_v25 = vld [vmem:[#allocation16 + $0x2c8] ss:$16 sps:$4 sm:$0xff]  }
 0x5d5   : > { %v5270_v31 = vunpack.i.l.bf16 %v5269_v54  ;;  %v5271_v0 = vunpack.i.h.bf16 %v5269_v54  ;;  %v5308_v61 = vmax.bf16 %v5307_v55, %v5158_v59  ;;  %v5174_v37 = vmax.f32 %v5172_v22, %v5173_v28  ;;  %v11467_v28 = vld [vmem:[#allocation16 + $0x24c] ss:$16 sps:$4 sm:$0xff]  }
 0x5d6   : > { %v5296_v33 = vunpack.i.l.bf16 %v5295_v50  ;;  %v5297_v15 = vunpack.i.h.bf16 %v5295_v50  ;;  %v5283_v5 = vunpack.i.l.bf16 %v5282_v12  ;;  %v5284_v30 = vunpack.i.h.bf16 %v5282_v12 }
 0x5d7   : > { %v5272_v58 = vmax.f32 %v5270_v31, %v5271_v0  ;;  %v5309_v27 = vunpack.i.l.bf16 %v5308_v61  ;;  %v5310_v11 = vunpack.i.h.bf16 %v5308_v61  ;;  %v5175_v4 = vpack.i.bf16 %v5174_v37, %v5174_v37  ;;  %v11485_v37 = vld [vmem:[#allocation16 + $0x2ac] ss:$16 sps:$4 sm:$0xff]  }
 0x5d8   : > { %v5298_v39 = vmax.f32 %v5296_v33, %v5297_v15  ;;  %v5285_v40 = vmax.f32 %v5283_v5, %v5284_v30  ;;  %v5214_v54 = vpack.i.bf16 %v5213_v36, %v5213_v36  ;;  %v5666_v31 = vunpack.c.l.b16 %v5188_v53  ;;  %v11497_v36 = vld [vmem:[#allocation16 + $0x2ec] ss:$16 sps:$4 sm:$0xff]   ;;  %v11506_v53 = vld [vmem:[#allocation16 + $0x324] ss:$16 sps:$4 sm:$0xff]  }
 0x5d9   : > { %v5273_v63 = vrot.slane %v5272_v58, 4  ;;  %v5311_v48 = vmax.f32 %v5309_v27, %v5310_v11  ;;  %v5665_v50 = vunpack.c.l.b16 %v5175_v4  ;;  %v5667_v61 = vunpack.c.l.b16 %v5201_v24  ;;  %v11450_v11 = vld [vmem:[#allocation16 + $0x200] ss:$16 sps:$4 sm:$0xff]   ;;  %v11503_v4 = vld [vmem:[#allocation16 + $0x30c] ss:$16 sps:$4 sm:$0xff]  }
 0x5da   : > { %v5299_v13 = vrot.slane %v5298_v39, 4  ;;  %v5286_v51 = vrot.slane %v5285_v40, 4  ;;  %v5668_v5 = vunpack.c.l.b16 %v5214_v54  ;;  %v11504_v24 = vld [vmem:[#allocation16 + $0x320] ss:$16 sps:$4 sm:$0xff]  }
 0x5db   : > { %v5274_v7 = vmax.f32 %v5272_v58, %v5273_v63  ;;  %v5312_v52 = vrot.slane %v5311_v48, 4  ;;  %v11461_v63 = vld [vmem:[#allocation16 + $0x22c] ss:$16 sps:$4 sm:$0xff]  }
 0x5dc   : > { %v5300_v41 = vmax.f32 %v5298_v39, %v5299_v13  ;;  %v5287_v43 = vmax.f32 %v5285_v40, %v5286_v51  ;;  %v11459_v13 = vld [vmem:[#allocation16 + $0x228] ss:$16 sps:$4 sm:$0xff]   ;;  %v11464_v51 = vld [vmem:[#allocation16 + $0x244] ss:$16 sps:$4 sm:$0xff]  }
 0x5dd   : > { %v5275_v2 = vrot.slane %v5274_v7, 2  ;;  %v5313_v55 = vmax.f32 %v5311_v48, %v5312_v52  ;;  %v11465_v52 = vld [vmem:[#allocation16 + $0x248] ss:$16 sps:$4 sm:$0xff]  }
 0x5de   : > { %v5301_v57 = vrot.slane %v5300_v41, 2  ;;  %v5288_v32 = vrot.slane %v5287_v43, 2 }
 0x5df   : > { %v5276_v46 = vmax.f32 %v5274_v7, %v5275_v2  ;;  %v5314_v19 = vrot.slane %v5313_v55, 2  ;;  %v11462_v7 = vld [vmem:[#allocation16 + $0x240] ss:$16 sps:$4 sm:$0xff]   ;;  %v11476_v2 = vld [vmem:[#allocation16 + $0x284] ss:$16 sps:$4 sm:$0xff]  }
 0x5e0   : > { %v5302_v6 = vmax.f32 %v5300_v41, %v5301_v57  ;;  %v5289_v44 = vmax.f32 %v5287_v43, %v5288_v32  ;;  %v11473_v41 = vld [vmem:[#allocation16 + $0x26c] ss:$16 sps:$4 sm:$0xff]   ;;  %v11468_v43 = vld [vmem:[#allocation16 + $0x260] ss:$16 sps:$4 sm:$0xff]   ;;  %v11477_v57 = vld [vmem:[#allocation16 + $0x288] ss:$16 sps:$4 sm:$0xff]  }
 0x5e1   : > { %v5277_v29 = vrot.slane %v5276_v46, 1  ;;  %v5315_v35 = vmax.f32 %v5313_v55, %v5314_v19  ;;  %v11479_v55 = vld [vmem:[#allocation16 + $0x28c] ss:$16 sps:$4 sm:$0xff]   ;;  %v11482_v32 = vld [vmem:[#allocation16 + $0x2a4] ss:$16 sps:$4 sm:$0xff]  }
 0x5e2   : > { %v5303_v60 = vrot.slane %v5302_v6, 1  ;;  %v5290_v14 = vrot.slane %v5289_v44, 1  ;;  %v11483_v19 = vld [vmem:[#allocation16 + $0x2a8] ss:$16 sps:$4 sm:$0xff]  }
 0x5e3   : > { %v5278_v34 = vmax.f32 %v5276_v46, %v5277_v29  ;;  %v5316_v42 = vrot.slane %v5315_v35, 1  ;;  %v11480_v46 = vld [vmem:[#allocation16 + $0x2a0] ss:$16 sps:$4 sm:$0xff]   ;;  %v11494_v29 = vld [vmem:[#allocation16 + $0x2e4] ss:$16 sps:$4 sm:$0xff]  }
 0x5e4   : > { %v5291_v10 = vmax.f32 %v5289_v44, %v5290_v14  ;;  %v5304_v47 = vmax.f32 %v5302_v6, %v5303_v60  ;;  %v11488_v6 = vld [vmem:[#allocation16 + $0x2c4] ss:$16 sps:$4 sm:$0xff]   ;;  %v11486_v44 = vld [vmem:[#allocation16 + $0x2c0] ss:$16 sps:$4 sm:$0xff]   ;;  %v11495_v60 = vld [vmem:[#allocation16 + $0x2e8] ss:$16 sps:$4 sm:$0xff]  }
 0x5e5   : > { %v5279_v17 = vpack.i.bf16 %v5278_v34, %v5278_v34  ;;  %v5317_v59 = vmax.f32 %v5315_v35, %v5316_v42  ;;  %v11492_v35 = vld [vmem:[#allocation16 + $0x2e0] ss:$16 sps:$4 sm:$0xff]   ;;  %v11500_v14 = vld [vmem:[#allocation16 + $0x304] ss:$16 sps:$4 sm:$0xff]   ;;  %v11501_v42 = vld [vmem:[#allocation16 + $0x308] ss:$16 sps:$4 sm:$0xff]  }
 0x5e6   : > { %v5292_v21 = vpack.i.bf16 %v5291_v10, %v5291_v10  ;;  %v5305_v45 = vpack.i.bf16 %v5304_v47, %v5304_v47  ;;  %v11498_v34 = vld [vmem:[#allocation16 + $0x300] ss:$16 sps:$4 sm:$0xff]   ;;  %v11509_v10 = vld [vmem:[#allocation16 + $0x32c] ss:$16 sps:$4 sm:$0xff]   ;;  %v11507_v47 = vld [vmem:[#allocation16 + $0x328] ss:$16 sps:$4 sm:$0xff]  }
 0x5e7   : > { %v5673_v12 = vunpack.c.l.b16 %v5279_v17  ;;  %v5318_v8 = vpack.i.bf16 %v5317_v59, %v5317_v59  ;;  %v14549_v17 = vld [vmem:[#allocation36_spill] sm:$0xff] }
 0x5e8   : > { %v5674_v0 = vunpack.c.l.b16 %v5292_v21  ;;  %v5675_v33 = vunpack.c.l.b16 %v5305_v45  ;;  %v2893_v54 = vsub.s32 4, %v14549_v17  ;;  %v2897_v59 = vsub.s32 5, %v14549_v17  ;;  %v11512_v21 = vld [vmem:[#allocation16 + $0x344] ss:$16 sps:$4 sm:$0xff]   ;;  %v11515_v45 = vld [vmem:[#allocation16 + $0x34c] ss:$16 sps:$4 sm:$0xff]  }
 0x5e9   : > { %v5681_v15 = vsel %vm1362_vm1, %v5673_v12, %v5665_v50  ;;  %v5676_v30 = vunpack.c.l.b16 %v5318_v8  ;;  %v2901_v50 = vsub.s32 6, %v14549_v17  ;;  %v2905_v12 = vsub.s32 7, %v14549_v17 }
 0x5ea   : > { %v5682_v22 = vsel %vm1362_vm1, %v5674_v0, %v5666_v31  ;;  %v13803_v58 = vsel %vm1362_vm1, %v5675_v33, %v5667_v61  ;;  %v5689_v40 = vpack.c.b16 %v5681_v15, %v5681_v15  ;;  %v13811_v8 = vrot.slane %v13714_v1, %v2893_v54  ;;  %v11510_v31 = vld [vmem:[#allocation16 + $0x340] ss:$16 sps:$4 sm:$0xff]   ;;  %v11513_v0 = vld [vmem:[#allocation16 + $0x348] ss:$16 sps:$4 sm:$0xff]   ;;  %v11518_v15 = vld [vmem:[#allocation16 + $0x364] ss:$16 sps:$4 sm:$0xff]  }
 0x5eb   : > { %v5690_v27 = vpack.c.b16 %v5682_v22, %v5682_v22  ;;  %v5684_v39 = vsel %vm1362_vm1, %v5676_v30, %v5668_v5  ;;  %v13814_v33 = vrot.slane %v13714_v1, %v2897_v59  ;;  %v11521_v5 = vld [vmem:[#allocation16 + $0x36c] ss:$16 sps:$4 sm:$0xff]   ;;  %v13817_v30 = vrot.slane %v13714_v1, %v2901_v50 }
 0x5ec   : > { %v5692_v48 = vpack.c.b16 %v5684_v39, %v5684_v39 }
 0x5ed   : > { %7017 = vmatprep.mubr.bf16.mxu0 %v5690_v27  ;;  %7181 = vmatprep.mubr.bf16.mxu1 %v5690_v27 }
 0x5ee   : > { %7018 = vmatmul.mubr.bf16.vlgmr.msra.gmra.mrb[116].mxu0 %v5689_v40  ;;  %7182 = vmatmul.mubr.bf16.vlgmr.msra.gmra.mrb[132].mxu1 %v5689_v40 }
 0x5ef   : > { %7027 = vmatpush1.bf16.msra.mxu0 %v11450_v11  ;;  %7191 = vmatpush1.bf16.msra.mxu1 %v11453_v56  ;;  %v13820_v11 = vrot.slane %v13714_v1, %v2905_v12  ;;  %v11524_v1 = vld [vmem:[#allocation16 + $0x384] ss:$16 sps:$4 sm:$0xff]  }
 0x5f0   : > { %7058 = vmatprep.mubr.bf16.mxu0 %v5692_v48  ;;  %7222 = vmatprep.mubr.bf16.mxu1 %v5692_v48  ;;  %v11516_v48 = vld [vmem:[#allocation16 + $0x360] ss:$16 sps:$4 sm:$0xff]  }
 0x5f1   : > { %7028 = vmatprep.subr.bf16.mxu0 %v11458_v16  ;;  %7192 = vmatprep.subr.bf16.mxu1 %v11461_v63 }
 0x5f3   : > { %7029 = vmatpush1.bf16.msra.mxu0 %v11456_v26  ;;  %7193 = vmatpush1.bf16.msra.mxu1 %v11459_v13  ;;  %v11519_v26 = vld [vmem:[#allocation16 + $0x368] ss:$16 sps:$4 sm:$0xff]  }
 0x5f4   : > { %7030 = vmatprep.subr.bf16.mxu0 %v11464_v51  ;;  %7194 = vmatprep.subr.bf16.mxu1 %v11467_v28 }
 0x5f7   : > { %7031 = vmatpush1.bf16.msra.mxu0 %v11462_v7  ;;  %7195 = vmatpush1.bf16.msra.mxu1 %v11465_v52  ;;  %v11527_v7 = vld [vmem:[#allocation16 + $0x38c] ss:$16 sps:$4 sm:$0xff]  }
 0x5f8   : > { %7032 = vmatprep.subr.bf16.mxu0 %v11470_v38  ;;  %7196 = vmatprep.subr.bf16.mxu1 %v11473_v41 }
 0x5fb   : > { %7033 = vmatpush1.bf16.msra.mxu0 %v11468_v43  ;;  %7197 = vmatpush1.bf16.msra.mxu1 %v11471_v3 }
 0x5fc   : > { %7034 = vmatprep.subr.bf16.mxu0 %v11476_v2  ;;  %7198 = vmatprep.subr.bf16.mxu1 %v11479_v55 }
 0x5ff   : > { %7035 = vmatpush1.bf16.msra.mxu0 %v11474_v9  ;;  %7199 = vmatpush1.bf16.msra.mxu1 %v11477_v57  ;;  %v11522_v57 = vld [vmem:[#allocation16 + $0x380] ss:$16 sps:$4 sm:$0xff]  }
 0x600   : > { %7036 = vmatprep.subr.bf16.mxu0 %v11482_v32  ;;  %7200 = vmatprep.subr.bf16.mxu1 %v11485_v37  ;;  %v11525_v32 = vld [vmem:[#allocation16 + $0x388] ss:$16 sps:$4 sm:$0xff]  }
 0x603   : > { %7037 = vmatpush1.bf16.msra.mxu0 %v11480_v46  ;;  %7201 = vmatpush1.bf16.msra.mxu1 %v11483_v19  ;;  %v11530_v19 = vld [vmem:[#allocation16 + $0x3a4] ss:$16 sps:$4 sm:$0xff]  }
 0x604   : > { %7038 = vmatprep.subr.bf16.mxu0 %v11488_v6  ;;  %7202 = vmatprep.subr.bf16.mxu1 %v11491_v20  ;;  %v11533_v6 = vld [vmem:[#allocation16 + $0x3ac] ss:$16 sps:$4 sm:$0xff]  }
 0x607   : > { %7039 = vmatpush1.bf16.msra.mxu0 %v11486_v44  ;;  %7203 = vmatpush1.bf16.msra.mxu1 %v11489_v25 }
 0x608   : > { %7040 = vmatprep.subr.bf16.mxu0 %v11494_v29  ;;  %7204 = vmatprep.subr.bf16.mxu1 %v11497_v36 }
 0x60b   : > { %7041 = vmatpush1.bf16.msra.mxu0 %v11492_v35  ;;  %7205 = vmatpush1.bf16.msra.mxu1 %v11495_v60 }
 0x60c   : > { %7042 = vmatprep.subr.bf16.mxu0 %v11500_v14  ;;  %7206 = vmatprep.subr.bf16.mxu1 %v11503_v4  ;;  %v11528_v14 = vld [vmem:[#allocation16 + $0x3a0] ss:$16 sps:$4 sm:$0xff]   ;;  %v11531_v4 = vld [vmem:[#allocation16 + $0x3a8] ss:$16 sps:$4 sm:$0xff]  }
 0x60f   : > { %7043 = vmatpush1.bf16.msra.mxu0 %v11498_v34  ;;  %7207 = vmatpush1.bf16.msra.mxu1 %v11501_v42 }
 0x610   : > { %7044 = vmatprep.subr.bf16.mxu0 %v11506_v53  ;;  %7208 = vmatprep.subr.bf16.mxu1 %v11509_v10  ;;  %v11536_v10 = vld [vmem:[#allocation16 + $0x3c4] ss:$16 sps:$4 sm:$0xff]  }
 0x613   : > { %7045 = vmatpush1.bf16.msra.mxu0 %v11504_v24  ;;  %7209 = vmatpush1.bf16.msra.mxu1 %v11507_v47  ;;  %v11539_v24 = vld [vmem:[#allocation16 + $0x3cc] ss:$16 sps:$4 sm:$0xff]  }
 0x614   : > { %v4794_v61 = vpop.f32.mrb[84].mxu0  ;;  %7046 = vmatprep.subr.bf16.mxu0 %v11512_v21  ;;  %7210 = vmatprep.subr.bf16.mxu1 %v11515_v45 }
 0x615   : > { %v4796_v22 = vpop.f32.mrb[85].mxu0  ;;  %v10683_v39 = vadd.f32 %v4794_v61, %v13811_v8  ;;  %v11537_v61 = vld [vmem:[#allocation16 + $0x3c8] ss:$16 sps:$4 sm:$0xff]  }
 0x616   : > { %v5020_v27 = vpop.f32.mrb[100].mxu1  ;;  %v4798_v56 = vpop.f32.mrb[86].mxu0  ;;  %v10684_v13 = vadd.f32 %v4796_v22, %v13814_v33 }
 0x617   : > { %v5022_v40 = vpop.f32.mrb[101].mxu1  ;;  %v10685_v16 = vadd.f32 %v4798_v56, %v13811_v8  ;;  %7047 = vmatpush1.bf16.msra.mxu0 %v11510_v31  ;;  %7211 = vmatpush1.bf16.msra.mxu1 %v11513_v0  ;;  %v4800_v63 = vpop.f32.mrb[87].mxu0  ;;  %v10715_v52 = vadd.f32 %v5020_v27, %v13817_v30  ;;  %v11534_v0 = vld [vmem:[#allocation16 + $0x3c0] ss:$16 sps:$4 sm:$0xff]   ;;  %v11542_v27 = vld [vmem:[#allocation16 + $0x3e4] ss:$16 sps:$4 sm:$0xff]  }
 0x618   : > { %v5024_v51 = vpop.f32.mrb[102].mxu1  ;;  %v10686_v28 = vadd.f32 %v4800_v63, %v13814_v33  ;;  %7048 = vmatprep.subr.bf16.mxu0 %v11518_v15  ;;  %7212 = vmatprep.subr.bf16.mxu1 %v11521_v5  ;;  %v10716_v3 = vadd.f32 %v5022_v40, %v13820_v11  ;;  %v11545_v56 = vld [vmem:[#allocation16 + $0x3ec] ss:$16 sps:$4 sm:$0xff]  }
 0x619   : > { %v5103_v38 = vpack.c.bf16 %v10685_v16, %v10683_v39  ;;  %v10717_v41 = vadd.f32 %v5024_v51, %v13817_v30  ;;  %v5026_v43 = vpop.f32.mrb[103].mxu1 }
 0x61a   : > { %v5104_v2 = vpack.c.bf16 %v10686_v28, %v10684_v13  ;;  %v10718_v55 = vadd.f32 %v5026_v43, %v13820_v11  ;;  %v11548_v43 = vld [vmem:[#allocation16 + $0x404] ss:$16 sps:$4 sm:$0xff]  }
 0x61b   : > { %v5105_v9 = vpack.c.bf16 %v10717_v41, %v10715_v52  ;;  %7049 = vmatpush1.bf16.msra.mxu0 %v11516_v48  ;;  %7213 = vmatpush1.bf16.msra.mxu1 %v11519_v26 }
 0x61c   : > { %v5106_v37 = vpack.c.bf16 %v10718_v55, %v10716_v3  ;;  %v4804_v46 = vpop.f32.mrb[88].mxu0  ;;  %7050 = vmatprep.subr.bf16.mxu0 %v11524_v1  ;;  %7214 = vmatprep.subr.bf16.mxu1 %v11527_v7  ;;  %v11540_v1 = vld [vmem:[#allocation16 + $0x3e0] ss:$16 sps:$4 sm:$0xff]   ;;  %v11543_v7 = vld [vmem:[#allocation16 + $0x3e8] ss:$16 sps:$4 sm:$0xff]  }
 0x61d   : > { %v4806_v20 = vpop.f32.mrb[89].mxu0  ;;  %v10687_v29 = vadd.f32 %v4804_v46, %v13811_v8  ;;  %v11551_v3 = vld [vmem:[#allocation16 + $0x40c] ss:$16 sps:$4 sm:$0xff]  }
 0x61e   : > { %v5030_v44 = vpop.f32.mrb[104].mxu1  ;;  %v4808_v25 = vpop.f32.mrb[90].mxu0  ;;  %v10688_v34 = vadd.f32 %v4806_v20, %v13814_v33  ;;  %v11546_v20 = vld [vmem:[#allocation16 + $0x400] ss:$16 sps:$4 sm:$0xff]  }
 0x61f   : > { %v5032_v36 = vpop.f32.mrb[105].mxu1  ;;  %v10689_v35 = vadd.f32 %v4808_v25, %v13811_v8  ;;  %7051 = vmatpush1.bf16.msra.mxu0 %v11522_v57  ;;  %7215 = vmatpush1.bf16.msra.mxu1 %v11525_v32  ;;  %v4810_v60 = vpop.f32.mrb[91].mxu0  ;;  %v10719_v47 = vadd.f32 %v5030_v44, %v13817_v30  ;;  %v11549_v44 = vld [vmem:[#allocation16 + $0x408] ss:$16 sps:$4 sm:$0xff]  }
 0x620   : > { %v5034_v42 = vpop.f32.mrb[106].mxu1  ;;  %v10690_v53 = vadd.f32 %v4810_v60, %v13814_v33  ;;  %7052 = vmatprep.subr.bf16.mxu0 %v11530_v19  ;;  %7216 = vmatprep.subr.bf16.mxu1 %v11533_v6  ;;  %v10720_v21 = vadd.f32 %v5032_v36, %v13820_v11  ;;  %v11554_v60 = vld [vmem:[#allocation16 + $0x424] ss:$16 sps:$4 sm:$0xff]  }
 0x621   : > { %v5111_v17 = vpack.c.bf16 %v10689_v35, %v10687_v29  ;;  %v10721_v54 = vadd.f32 %v5034_v42, %v13817_v30  ;;  %v5036_v59 = vpop.f32.mrb[107].mxu1  ;;  %v5691_v35 = vpack.c.b16 %v13803_v58, %v13803_v58  ;;  %v11552_v58 = vld [vmem:[#allocation16 + $0x420] ss:$16 sps:$4 sm:$0xff]  }
 0x622   : > { %v5112_v45 = vpack.c.bf16 %v10690_v53, %v10688_v34  ;;  %v10722_v50 = vadd.f32 %v5036_v59, %v13820_v11  ;;  %v11555_v59 = vld [vmem:[#allocation16 + $0x428] ss:$16 sps:$4 sm:$0xff]  }
 0x623   : > { %v5215_v12 = vmax.bf16 %v5111_v17, %v5103_v38  ;;  %v5113_v31 = vpack.c.bf16 %v10721_v54, %v10719_v47  ;;  %7053 = vmatpush1.bf16.msra.mxu0 %v11528_v14  ;;  %7217 = vmatpush1.bf16.msra.mxu1 %v11531_v4  ;;  %v11557_v14 = vld [vmem:[#allocation16 + $0x42c] ss:$16 sps:$4 sm:$0xff]  }
 0x624   : > { %v5228_v15 = vmax.bf16 %v5112_v45, %v5104_v2  ;;  %v5114_v5 = vpack.c.bf16 %v10722_v50, %v10720_v21  ;;  %v4814_v22 = vpop.f32.mrb[92].mxu0  ;;  %7054 = vmatprep.subr.bf16.mxu0 %v11536_v10  ;;  %7218 = vmatprep.subr.bf16.mxu1 %v11539_v24 }
 0x625   : > { %v5241_v39 = vmax.bf16 %v5113_v31, %v5105_v9  ;;  %v4816_v40 = vpop.f32.mrb[93].mxu0  ;;  %v10691_v26 = vadd.f32 %v4814_v22, %v13811_v8  ;;  %v11563_v31 = vld [vmem:[#allocation16 + $0x44c] ss:$16 sps:$4 sm:$0xff]  }
 0x626   : > { %v5254_v16 = vmax.bf16 %v5114_v5, %v5106_v37  ;;  %v5040_v63 = vpop.f32.mrb[108].mxu1  ;;  %v4818_v48 = vpop.f32.mrb[94].mxu0  ;;  %v10692_v52 = vadd.f32 %v4816_v40, %v13814_v33 }
 0x627   : > { %v5042_v13 = vpop.f32.mrb[109].mxu1  ;;  %v10693_v51 = vadd.f32 %v4818_v48, %v13811_v8  ;;  %7055 = vmatpush1.bf16.msra.mxu0 %v11534_v0  ;;  %7219 = vmatpush1.bf16.msra.mxu1 %v11537_v61  ;;  %v4820_v28 = vpop.f32.mrb[95].mxu0  ;;  %v10723_v2 = vadd.f32 %v5040_v63, %v13817_v30  ;;  %v11561_v63 = vld [vmem:[#allocation16 + $0x448] ss:$16 sps:$4 sm:$0xff]  }
 0x628   : > { %v5044_v38 = vpop.f32.mrb[110].mxu1  ;;  %v10694_v41 = vadd.f32 %v4820_v28, %v13814_v33  ;;  %7056 = vmatprep.subr.bf16.mxu0 %v11542_v27  ;;  %7220 = vmatprep.subr.bf16.mxu1 %v11545_v56  ;;  %v10724_v32 = vadd.f32 %v5042_v13, %v13820_v11  ;;  %v11569_v28 = vld [vmem:[#allocation16 + $0x46c] ss:$16 sps:$4 sm:$0xff]  }
 0x629   : > { %v5119_v55 = vpack.c.bf16 %v10693_v51, %v10691_v26  ;;  %v10725_v9 = vadd.f32 %v5044_v38, %v13817_v30  ;;  %v5046_v57 = vpop.f32.mrb[111].mxu1  ;;  %v11566_v51 = vld [vmem:[#allocation16 + $0x464] ss:$16 sps:$4 sm:$0xff]  }
 0x62a   : > { %v5120_v37 = vpack.c.bf16 %v10694_v41, %v10692_v52  ;;  %v10726_v46 = vadd.f32 %v5046_v57, %v13820_v11  ;;  %v11572_v57 = vld [vmem:[#allocation16 + $0x484] ss:$16 sps:$4 sm:$0xff]  }
 0x62b   : > { %v5216_v19 = vmax.bf16 %v5215_v12, %v5119_v55  ;;  %v5121_v6 = vpack.c.bf16 %v10725_v9, %v10723_v2  ;;  %7057 = vmatpush1.bf16.msra.mxu0 %v11540_v1  ;;  %7221 = vmatpush1.bf16.msra.mxu1 %v11543_v7  ;;  %v11560_v12 = vld [vmem:[#allocation16 + $0x444] ss:$16 sps:$4 sm:$0xff]   ;;  %v11564_v2 = vld [vmem:[#allocation16 + $0x460] ss:$16 sps:$4 sm:$0xff]   ;;  %v11567_v55 = vld [vmem:[#allocation16 + $0x468] ss:$16 sps:$4 sm:$0xff]  }
 0x62c   : > { %v5229_v25 = vmax.bf16 %v5228_v15, %v5120_v37  ;;  %v5122_v29 = vpack.c.bf16 %v10726_v46, %v10724_v32  ;;  %v4824_v36 = vpop.f32.mrb[96].mxu0  ;;  %7067 = vmatprep.subr.bf16.mxu0 %v11548_v43  ;;  %7231 = vmatprep.subr.bf16.mxu1 %v11551_v3  ;;  %v11575_v32 = vld [vmem:[#allocation16 + $0x48c] ss:$16 sps:$4 sm:$0xff]  }
 0x62d   : > { %v5242_v4 = vmax.bf16 %v5241_v39, %v5121_v6  ;;  %v4826_v34 = vpop.f32.mrb[97].mxu0  ;;  %v10695_v24 = vadd.f32 %v4824_v36, %v13811_v8 }
 0x62e   : > { %v5255_v42 = vmax.bf16 %v5254_v16, %v5122_v29  ;;  %v5050_v53 = vpop.f32.mrb[112].mxu1  ;;  %7059 = vmatmul.mubr.bf16.vlgmr.msra.gmra.mrb[116].mxu0 %v5691_v35  ;;  %7223 = vmatmul.mubr.bf16.vlgmr.msra.gmra.mrb[132].mxu1 %v5691_v35  ;;  %v4828_v10 = vpop.f32.mrb[98].mxu0  ;;  %v10696_v21 = vadd.f32 %v4826_v34, %v13814_v33  ;;  %v11558_v16 = vld [vmem:[#allocation16 + $0x440] ss:$16 sps:$4 sm:$0xff]  }
 0x62f   : > { %v5052_v47 = vpop.f32.mrb[113].mxu1  ;;  %v10697_v17 = vadd.f32 %v4828_v10, %v13811_v8  ;;  %7068 = vmatpush1.bf16.msra.mxu0 %v11546_v20  ;;  %7232 = vmatpush1.bf16.msra.mxu1 %v11549_v44  ;;  %v4830_v54 = vpop.f32.mrb[99].mxu0  ;;  %v10727_v0 = vadd.f32 %v5050_v53, %v13817_v30  ;;  %v11578_v10 = vld [vmem:[#allocation16 + $0x4a4] ss:$16 sps:$4 sm:$0xff]  }
 0x630   : > { %v5054_v45 = vpop.f32.mrb[114].mxu1  ;;  %v10698_v50 = vadd.f32 %v4830_v54, %v13814_v33  ;;  %7069 = vmatprep.subr.bf16.mxu0 %v11554_v60  ;;  %7233 = vmatprep.subr.bf16.mxu1 %v11557_v14  ;;  %v10728_v22 = vadd.f32 %v5052_v47, %v13820_v11  ;;  %v11570_v14 = vld [vmem:[#allocation16 + $0x480] ss:$16 sps:$4 sm:$0xff]  }
 0x631   : > { %v5127_v61 = vpack.c.bf16 %v10697_v17, %v10695_v24  ;;  %v10729_v15 = vadd.f32 %v5054_v45, %v13817_v30  ;;  %v5056_v5 = vpop.f32.mrb[115].mxu1  ;;  %v11581_v24 = vld [vmem:[#allocation16 + $0x4ac] ss:$16 sps:$4 sm:$0xff]  }
 0x632   : > { %v5128_v27 = vpack.c.bf16 %v10698_v50, %v10696_v21  ;;  %v10730_v56 = vadd.f32 %v5056_v5, %v13820_v11  ;;  %v11576_v50 = vld [vmem:[#allocation16 + $0x4a0] ss:$16 sps:$4 sm:$0xff]   ;;  %v11587_v5 = vld [vmem:[#allocation16 + $0x4cc] ss:$16 sps:$4 sm:$0xff]  }
 0x633   : > { %v13856_v39 = vmax.bf16 %v5216_v19, %v5127_v61  ;;  %v5129_v40 = vpack.c.bf16 %v10729_v15, %v10727_v0  ;;  %7070 = vmatpush1.bf16.msra.mxu0 %v11552_v58  ;;  %7234 = vmatpush1.bf16.msra.mxu1 %v11555_v59  ;;  %v11584_v15 = vld [vmem:[#allocation16 + $0x4c4] ss:$16 sps:$4 sm:$0xff]  }
 0x634   : > { %v13858_v48 = vmax.bf16 %v5229_v25, %v5128_v27  ;;  %v5130_v26 = vpack.c.bf16 %v10730_v56, %v10728_v22  ;;  %v4834_v13 = vpop.f32.mrb[100].mxu0  ;;  %7071 = vmatprep.subr.bf16.mxu0 %v11560_v12  ;;  %7235 = vmatprep.subr.bf16.mxu1 %v11563_v31  ;;  %v11579_v12 = vld [vmem:[#allocation16 + $0x4a8] ss:$16 sps:$4 sm:$0xff]  }
 0x635   : > { %v13860_v1 = vmax.bf16 %v5242_v4, %v5129_v40  ;;  %v4836_v7 = vpop.f32.mrb[101].mxu0  ;;  %v10699_v37 = vadd.f32 %v4834_v13, %v13811_v8  ;;  %v11573_v4 = vld [vmem:[#allocation16 + $0x488] ss:$16 sps:$4 sm:$0xff]   ;;  %v5218_v13 = vunpack.i.l.bf16 %v13856_v39 }
 0x636   : > { %v13862_v52 = vmax.bf16 %v5255_v42, %v5130_v26  ;;  %v5060_v38 = vpop.f32.mrb[116].mxu1  ;;  %v4838_v41 = vpop.f32.mrb[102].mxu0  ;;  %v10700_v44 = vadd.f32 %v4836_v7, %v13814_v33 }
 0x637   : > { %v5062_v43 = vpop.f32.mrb[117].mxu1  ;;  %7072 = vmatpush1.bf16.msra.mxu0 %v11558_v16  ;;  %7236 = vmatpush1.bf16.msra.mxu1 %v11561_v63  ;;  %v4840_v3 = vpop.f32.mrb[103].mxu0  ;;  %v13866_v46 = vadd.f32 %v5060_v38, %v13817_v30  ;;  %v10701_v19 = vadd.f32 %v4838_v41, %v13811_v8  ;;  %v11582_v38 = vld [vmem:[#allocation16 + $0x4c0] ss:$16 sps:$4 sm:$0xff]   ;;  %v11585_v41 = vld [vmem:[#allocation16 + $0x4c8] ss:$16 sps:$4 sm:$0xff]  }
 0x638   : > { %v5064_v9 = vpop.f32.mrb[118].mxu1  ;;  %7073 = vmatprep.subr.bf16.mxu0 %v11566_v51  ;;  %7237 = vmatprep.subr.bf16.mxu1 %v11569_v28  ;;  %v13874_v25 = vadd.f32 %v5062_v43, %v13820_v11  ;;  %v10702_v29 = vadd.f32 %v4840_v3, %v13814_v33  ;;  %v5219_v51 = vunpack.i.h.bf16 %v13856_v39  ;;  %v5231_v43 = vunpack.i.l.bf16 %v13858_v48 }
 0x639   : > { %v13870_v6 = vadd.f32 %v5064_v9, %v13817_v30  ;;  %v5066_v20 = vpop.f32.mrb[119].mxu1  ;;  %v5135_v35 = vpack.c.bf16 %v10701_v19, %v10699_v37  ;;  %v5232_v3 = vunpack.i.h.bf16 %v13858_v48  ;;  %v5244_v37 = vunpack.i.l.bf16 %v13860_v1 }
 0x63a   : > { %v13878_v36 = vadd.f32 %v5066_v20, %v13820_v11  ;;  %v5136_v34 = vpack.c.bf16 %v10702_v29, %v10700_v44  ;;  %v5245_v39 = vunpack.i.h.bf16 %v13860_v1  ;;  %v5258_v20 = vunpack.i.h.bf16 %v13862_v52  ;;  %v11591_v1 = vld [vmem:[#allocation16 + $0x4e8] ss:$16 sps:$4 sm:$0xff]  }
 0x63b   : > { %v5137_v60 = vpack.c.bf16 %v13870_v6, %v13866_v46  ;;  %7074 = vmatpush1.bf16.msra.mxu0 %v11564_v2  ;;  %7238 = vmatpush1.bf16.msra.mxu1 %v11567_v55  ;;  %v5257_v6 = vunpack.i.l.bf16 %v13862_v52  ;;  %v5220_v29 = vmax.f32 %v5218_v13, %v5219_v51 }
 0x63c   : > { %v5138_v42 = vpack.c.bf16 %v13878_v36, %v13874_v25  ;;  %v4844_v53 = vpop.f32.mrb[104].mxu0  ;;  %7075 = vmatprep.subr.bf16.mxu0 %v11572_v57  ;;  %7239 = vmatprep.subr.bf16.mxu1 %v11575_v32  ;;  %v11590_v57 = vld [vmem:[#allocation16 + $0x4e4] ss:$16 sps:$4 sm:$0xff]   ;;  %v11593_v32 = vld [vmem:[#allocation16 + $0x4ec] ss:$16 sps:$4 sm:$0xff]  }
 0x63d   : > { %v4846_v47 = vpop.f32.mrb[105].mxu0  ;;  %v10703_v58 = vadd.f32 %v4844_v53, %v13811_v8 }
 0x63e   : > { %v5070_v17 = vpop.f32.mrb[120].mxu1  ;;  %v4848_v54 = vpop.f32.mrb[106].mxu0  ;;  %v10704_v31 = vadd.f32 %v4846_v47, %v13814_v33  ;;  %v5246_v47 = vmax.f32 %v5244_v37, %v5245_v39 }
 0x63f   : > { %v5072_v59 = vpop.f32.mrb[121].mxu1  ;;  %v10705_v21 = vadd.f32 %v4848_v54, %v13811_v8  ;;  %7076 = vmatpush1.bf16.msra.mxu0 %v11570_v14  ;;  %7240 = vmatpush1.bf16.msra.mxu1 %v11573_v4  ;;  %v4850_v45 = vpop.f32.mrb[107].mxu0  ;;  %v10735_v22 = vadd.f32 %v5070_v17, %v13817_v30 }
 0x640   : > { %v5074_v0 = vpop.f32.mrb[122].mxu1  ;;  %v10706_v61 = vadd.f32 %v4850_v45, %v13814_v33  ;;  %7077 = vmatprep.subr.bf16.mxu0 %v11578_v10  ;;  %7241 = vmatprep.subr.bf16.mxu1 %v11581_v24  ;;  %v10736_v16 = vadd.f32 %v5072_v59, %v13820_v11  ;;  %v11599_v24 = vld [vmem:[#allocation16 + $0x50c] ss:$16 sps:$4 sm:$0xff]  }
 0x641   : > { %v5143_v27 = vpack.c.bf16 %v10705_v21, %v10703_v58  ;;  %v10737_v56 = vadd.f32 %v5074_v0, %v13817_v30  ;;  %v5076_v40 = vpop.f32.mrb[123].mxu1  ;;  %v5259_v21 = vmax.f32 %v5257_v6, %v5258_v20  ;;  %v11608_v6 = vld [vmem:[#allocation16 + $0x544] ss:$16 sps:$4 sm:$0xff]   ;;  %v11611_v20 = vld [vmem:[#allocation16 + $0x54c] ss:$16 sps:$4 sm:$0xff]  }
 0x642   : > { %v5144_v63 = vpack.c.bf16 %v10706_v61, %v10704_v31  ;;  %v10738_v26 = vadd.f32 %v5076_v40, %v13820_v11  ;;  %v5221_v31 = vrot.slane %v5220_v29, 4 }
 0x643   : > { %v5319_v28 = vmax.bf16 %v5143_v27, %v5135_v35  ;;  %v5145_v7 = vpack.c.bf16 %v10737_v56, %v10735_v22  ;;  %7078 = vmatpush1.bf16.msra.mxu0 %v11576_v50  ;;  %7242 = vmatpush1.bf16.msra.mxu1 %v11579_v12 }
 0x644   : > { %v5332_v2 = vmax.bf16 %v5144_v63, %v5136_v34  ;;  %v5146_v55 = vpack.c.bf16 %v10738_v26, %v10736_v16  ;;  %v4854_v9 = vpop.f32.mrb[108].mxu0  ;;  %7079 = vmatprep.subr.bf16.mxu0 %v11584_v15  ;;  %7243 = vmatprep.subr.bf16.mxu1 %v11587_v5  ;;  %v11588_v34 = vld [vmem:[#allocation16 + $0x4e0] ss:$16 sps:$4 sm:$0xff]   ;;  %v11597_v5 = vld [vmem:[#allocation16 + $0x508] ss:$16 sps:$4 sm:$0xff]   ;;  %v5247_v26 = vrot.slane %v5246_v47, 4 }
 0x645   : > { %v5345_v46 = vmax.bf16 %v5145_v7, %v5137_v60  ;;  %v4856_v19 = vpop.f32.mrb[109].mxu0  ;;  %v10707_v36 = vadd.f32 %v4854_v9, %v13811_v8  ;;  %v5233_v60 = vmax.f32 %v5231_v43, %v5232_v3  ;;  %v11594_v15 = vld [vmem:[#allocation16 + $0x500] ss:$16 sps:$4 sm:$0xff]   ;;  %v11602_v16 = vld [vmem:[#allocation16 + $0x524] ss:$16 sps:$4 sm:$0xff]   ;;  %v5260_v7 = vrot.slane %v5259_v21, 4 }
 0x646   : > { %v5358_v44 = vmax.bf16 %v5146_v55, %v5138_v42  ;;  %v5080_v25 = vpop.f32.mrb[124].mxu1  ;;  %v4858_v48 = vpop.f32.mrb[110].mxu0  ;;  %v10708_v53 = vadd.f32 %v4856_v19, %v13814_v33  ;;  %v11596_v42 = vld [vmem:[#allocation16 + $0x504] ss:$16 sps:$4 sm:$0xff]   ;;  %v11605_v63 = vld [vmem:[#allocation16 + $0x52c] ss:$16 sps:$4 sm:$0xff]   ;;  %v5222_v43 = vmax.f32 %v5220_v29, %v5221_v31 }
 0x647   : > { %v5082_v35 = vpop.f32.mrb[125].mxu1  ;;  %v10709_v14 = vadd.f32 %v4858_v48, %v13811_v8  ;;  %7080 = vmatpush1.bf16.msra.mxu0 %v11582_v38  ;;  %7244 = vmatpush1.bf16.msra.mxu1 %v11585_v41  ;;  %v4860_v4 = vpop.f32.mrb[111].mxu0  ;;  %v10739_v17 = vadd.f32 %v5080_v25, %v13817_v30  ;;  %v5234_v22 = vrot.slane %v5233_v60, 4 }
 0x648   : > { %v5084_v10 = vpop.f32.mrb[126].mxu1  ;;  %v10710_v52 = vadd.f32 %v4860_v4, %v13814_v33  ;;  %7081 = vmatprep.subr.bf16.mxu0 %v11590_v57  ;;  %7245 = vmatprep.subr.bf16.mxu1 %v11593_v32  ;;  %v10740_v45 = vadd.f32 %v5082_v35, %v13820_v11  ;;  %v11600_v57 = vld [vmem:[#allocation16 + $0x520] ss:$16 sps:$4 sm:$0xff]   ;;  %v11603_v32 = vld [vmem:[#allocation16 + $0x528] ss:$16 sps:$4 sm:$0xff]  }
 0x649   : > { %v5151_v54 = vpack.c.bf16 %v10709_v14, %v10707_v36  ;;  %v10741_v58 = vadd.f32 %v5084_v10, %v13817_v30  ;;  %v5086_v59 = vpop.f32.mrb[127].mxu1  ;;  %v5235_v37 = vmax.f32 %v5233_v60, %v5234_v22  ;;  %v5261_v36 = vmax.f32 %v5259_v21, %v5260_v7  ;;  %v11606_v60 = vld [vmem:[#allocation16 + $0x540] ss:$16 sps:$4 sm:$0xff]  }
 0x64a   : > { %v5152_v50 = vpack.c.bf16 %v10710_v52, %v10708_v53  ;;  %v10742_v12 = vadd.f32 %v5086_v59, %v13820_v11  ;;  %v11609_v53 = vld [vmem:[#allocation16 + $0x548] ss:$16 sps:$4 sm:$0xff]  }
 0x64b   : > { %v5320_v0 = vmax.bf16 %v5319_v28, %v5151_v54  ;;  %v5153_v61 = vpack.c.bf16 %v10741_v58, %v10739_v17  ;;  %7082 = vmatpush1.bf16.msra.mxu0 %v11588_v34  ;;  %7246 = vmatpush1.bf16.msra.mxu1 %v11591_v1  ;;  %v5223_v34 = vrot.slane %v5222_v43, 2  ;;  %v5236_v10 = vrot.slane %v5235_v37, 2 }
 0x64c   : > { %v5333_v27 = vmax.bf16 %v5332_v2, %v5152_v50  ;;  %v5154_v56 = vpack.c.bf16 %v10742_v12, %v10740_v45  ;;  %v4864_v40 = vpop.f32.mrb[112].mxu0  ;;  %7083 = vmatprep.subr.bf16.mxu0 %v11596_v42  ;;  %7247 = vmatprep.subr.bf16.mxu1 %v11599_v24  ;;  %v11617_v24 = vld [vmem:[#allocation16 + $0x56c] ss:$16 sps:$4 sm:$0xff]   ;;  %v5262_v59 = vrot.slane %v5261_v36, 2 }
 0x64d   : > { %v5346_v13 = vmax.bf16 %v5345_v46, %v5153_v61  ;;  %v4866_v51 = vpop.f32.mrb[113].mxu0  ;;  %v10711_v3 = vadd.f32 %v4864_v40, %v13811_v8  ;;  %v5224_v50 = vmax.f32 %v5222_v43, %v5223_v34  ;;  %v11612_v61 = vld [vmem:[#allocation16 + $0x560] ss:$16 sps:$4 sm:$0xff]   ;;  %v11623_v40 = vld [vmem:[#allocation16 + $0x58c] ss:$16 sps:$4 sm:$0xff]  }
 0x64e   : > { %v5359_v38 = vmax.bf16 %v5358_v44, %v5154_v56  ;;  %v5090_v41 = vpop.f32.mrb[128].mxu1  ;;  %v4868_v28 = vpop.f32.mrb[114].mxu0  ;;  %v10712_v39 = vadd.f32 %v4866_v51, %v13814_v33  ;;  %v5248_v44 = vmax.f32 %v5246_v47, %v5247_v26  ;;  %v11620_v56 = vld [vmem:[#allocation16 + $0x584] ss:$16 sps:$4 sm:$0xff]  }
 0x64f   : > { %v5092_v55 = vpop.f32.mrb[129].mxu1  ;;  %v10713_v9 = vadd.f32 %v4868_v28, %v13811_v8  ;;  %7084 = vmatpush1.bf16.msra.mxu0 %v11594_v15  ;;  %7248 = vmatpush1.bf16.msra.mxu1 %v11597_v5  ;;  %v4870_v2 = vpop.f32.mrb[115].mxu0  ;;  %v10743_v25 = vadd.f32 %v5090_v41, %v13817_v30  ;;  %v11615_v15 = vld [vmem:[#allocation16 + $0x568] ss:$16 sps:$4 sm:$0xff]   ;;  %v5225_v41 = vrot.slane %v5224_v50, 1 }
 0x650   : > { %v5094_v46 = vpop.f32.mrb[130].mxu1  ;;  %v10714_v19 = vadd.f32 %v4870_v2, %v13814_v33  ;;  %7085 = vmatprep.subr.bf16.mxu0 %v11602_v16  ;;  %7249 = vmatprep.subr.bf16.mxu1 %v11605_v63  ;;  %v10744_v35 = vadd.f32 %v5092_v55, %v13820_v11  ;;  %v5249_v47 = vrot.slane %v5248_v44, 2  ;;  %v5237_v16 = vmax.f32 %v5235_v37, %v5236_v10  ;;  %v11621_v55 = vld [vmem:[#allocation16 + $0x588] ss:$16 sps:$4 sm:$0xff]  }
 0x651   : > { %v5159_v48 = vpack.c.bf16 %v10713_v9, %v10711_v3  ;;  %v10745_v8 = vadd.f32 %v5094_v46, %v13817_v30  ;;  %v5096_v29 = vpop.f32.mrb[131].mxu1  ;;  %v11614_v30 = vld [vmem:[#allocation16 + $0x564] ss:$16 sps:$4 sm:$0xff]   ;;  %v11618_v3 = vld [vmem:[#allocation16 + $0x580] ss:$16 sps:$4 sm:$0xff]  }
 0x652   : > { %v5160_v14 = vpack.c.bf16 %v10714_v19, %v10712_v39  ;;  %v10746_v4 = vadd.f32 %v5096_v29, %v13820_v11  ;;  %v5250_v63 = vmax.f32 %v5248_v44, %v5249_v47  ;;  %v5238_v37 = vrot.slane %v5237_v16, 1  ;;  %v11627_v29 = vld [vmem:[#allocation16 + $0x5a8] ss:$16 sps:$4 sm:$0xff]  }
 0x653   : > { %v5321_v1 = vmax.bf16 %v5320_v0, %v5159_v48  ;;  %v5161_v33 = vpack.c.bf16 %v10745_v8, %v10743_v25  ;;  %7086 = vmatpush1.bf16.msra.mxu0 %v11600_v57  ;;  %7250 = vmatpush1.bf16.msra.mxu1 %v11603_v32  ;;  %v11626_v57 = vld [vmem:[#allocation16 + $0x5a4] ss:$16 sps:$4 sm:$0xff]   ;;  %v11629_v32 = vld [vmem:[#allocation16 + $0x5ac] ss:$16 sps:$4 sm:$0xff]   ;;  %v11624_v8 = vld [vmem:[#allocation16 + $0x5a0] ss:$16 sps:$4 sm:$0xff]  }
 0x654   : > { %v5334_v52 = vmax.bf16 %v5333_v27, %v5160_v14  ;;  %v5162_v42 = vpack.c.bf16 %v10746_v4, %v10744_v35  ;;  %7087 = vmatprep.subr.bf16.mxu0 %v11608_v6  ;;  %7251 = vmatprep.subr.bf16.mxu1 %v11611_v20  ;;  %v5251_v39 = vrot.slane %v5250_v63, 1  ;;  %v11632_v14 = vld [vmem:[#allocation16 + $0x5c4] ss:$16 sps:$4 sm:$0xff]   ;;  %v11635_v4 = vld [vmem:[#allocation16 + $0x5cc] ss:$16 sps:$4 sm:$0xff]   ;;  %v5239_v34 = vmax.f32 %v5237_v16, %v5238_v37 }
 0x655   : > { %v5322_v17 = vunpack.i.l.bf16 %v5321_v1  ;;  %v5323_v54 = vunpack.i.h.bf16 %v5321_v1  ;;  %v5347_v58 = vmax.bf16 %v5346_v13, %v5161_v33  ;;  %v11633_v47 = vld [vmem:[#allocation16 + $0x5c8] ss:$16 sps:$4 sm:$0xff]  }
 0x656   : > { %v5335_v11 = vunpack.i.l.bf16 %v5334_v52  ;;  %v5336_v21 = vunpack.i.h.bf16 %v5334_v52  ;;  %v5360_v45 = vmax.bf16 %v5359_v38, %v5162_v42  ;;  %v5263_v38 = vmax.f32 %v5261_v36, %v5262_v59  ;;  %v11641_v59 = vld [vmem:[#allocation16 + $0x5ec] ss:$16 sps:$4 sm:$0xff]  }
 0x657   : > { %v5324_v12 = vmax.f32 %v5322_v17, %v5323_v54  ;;  %v5348_v31 = vunpack.i.l.bf16 %v5347_v58  ;;  %v5349_v0 = vunpack.i.h.bf16 %v5347_v58  ;;  %7088 = vmatpush1.bf16.msra.mxu0 %v11606_v60  ;;  %7252 = vmatpush1.bf16.msra.mxu1 %v11609_v53  ;;  %v5226_v36 = vmax.f32 %v5224_v50, %v5225_v41  ;;  %v11638_v58 = vld [vmem:[#allocation16 + $0x5e4] ss:$16 sps:$4 sm:$0xff]  }
 0x658   : > { %v5337_v5 = vmax.f32 %v5335_v11, %v5336_v21  ;;  %v5361_v22 = vunpack.i.l.bf16 %v5360_v45  ;;  %v5362_v27 = vunpack.i.h.bf16 %v5360_v45  ;;  %7089 = vmatprep.subr.bf16.mxu0 %v11614_v30  ;;  %7253 = vmatprep.subr.bf16.mxu1 %v11617_v24  ;;  %v5264_v44 = vrot.slane %v5263_v38, 1  ;;  %v11630_v24 = vld [vmem:[#allocation16 + $0x5c0] ss:$16 sps:$4 sm:$0xff]  }
 0x659   : > { %v5325_v26 = vrot.slane %v5324_v12, 4  ;;  %v5350_v13 = vmax.f32 %v5348_v31, %v5349_v0  ;;  %v5252_v53 = vmax.f32 %v5250_v63, %v5251_v39  ;;  %v5227_v17 = vpack.i.bf16 %v5226_v36, %v5226_v36  ;;  %v11650_v39 = vld [vmem:[#allocation16 + $0x624] ss:$16 sps:$4 sm:$0xff]   ;;  %v11665_v36 = vld [vmem:[#allocation16 + $0x66c] ss:$16 sps:$4 sm:$0xff]  }
 0x65a   : > { %v5338_v51 = vrot.slane %v5337_v5, 4  ;;  %v5363_v7 = vmax.f32 %v5361_v22, %v5362_v27  ;;  %v5265_v52 = vmax.f32 %v5263_v38, %v5264_v44  ;;  %v5240_v11 = vpack.i.bf16 %v5239_v34, %v5239_v34  ;;  %v11639_v22 = vld [vmem:[#allocation16 + $0x5e8] ss:$16 sps:$4 sm:$0xff]   ;;  %v11656_v44 = vld [vmem:[#allocation16 + $0x644] ss:$16 sps:$4 sm:$0xff]  }
 0x65b   : > { %v5326_v28 = vmax.f32 %v5324_v12, %v5325_v26  ;;  %v5351_v43 = vrot.slane %v5350_v13, 4  ;;  %7090 = vmatpush1.bf16.msra.mxu0 %v11612_v61  ;;  %7254 = vmatpush1.bf16.msra.mxu1 %v11615_v15  ;;  %v5253_v12 = vpack.i.bf16 %v5252_v53, %v5252_v53  ;;  %v5669_v27 = vunpack.c.l.b16 %v5227_v17  ;;  %v11644_v26 = vld [vmem:[#allocation16 + $0x604] ss:$16 sps:$4 sm:$0xff]   ;;  %v11671_v34 = vld [vmem:[#allocation16 + $0x68c] ss:$16 sps:$4 sm:$0xff]  }
 0x65c   : > { %v5339_v9 = vmax.f32 %v5337_v5, %v5338_v51  ;;  %v5364_v2 = vrot.slane %v5363_v7, 4  ;;  %7091 = vmatprep.subr.bf16.mxu0 %v11620_v56  ;;  %7255 = vmatprep.subr.bf16.mxu1 %v11623_v40  ;;  %v5266_v61 = vpack.i.bf16 %v5265_v52, %v5265_v52  ;;  %v11636_v5 = vld [vmem:[#allocation16 + $0x5e0] ss:$16 sps:$4 sm:$0xff]   ;;  %v5670_v16 = vunpack.c.l.b16 %v5240_v11  ;;  %v11677_v53 = vld [vmem:[#allocation16 + $0x6ac] ss:$16 sps:$4 sm:$0xff]  }
 0x65d   : > { %v5327_v46 = vrot.slane %v5326_v28, 2  ;;  %v5352_v19 = vmax.f32 %v5350_v13, %v5351_v43  ;;  %v11647_v13 = vld [vmem:[#allocation16 + $0x60c] ss:$16 sps:$4 sm:$0xff]   ;;  %v5671_v38 = vunpack.c.l.b16 %v5253_v12  ;;  %v11675_v52 = vld [vmem:[#allocation16 + $0x6a8] ss:$16 sps:$4 sm:$0xff]  }
 0x65e   : > { %v5340_v6 = vrot.slane %v5339_v9, 2  ;;  %v5365_v20 = vmax.f32 %v5363_v7, %v5364_v2  ;;  %v5672_v43 = vunpack.c.l.b16 %v5266_v61  ;;  %v11645_v2 = vld [vmem:[#allocation16 + $0x608] ss:$16 sps:$4 sm:$0xff]   ;;  %v11686_v17 = vld [vmem:[#allocation16 + $0x6e4] ss:$16 sps:$4 sm:$0xff]  }
 0x65f   : > { %v5328_v25 = vmax.f32 %v5326_v28, %v5327_v46  ;;  %v5353_v48 = vrot.slane %v5352_v19, 2  ;;  %7092 = vmatpush1.bf16.msra.mxu0 %v11618_v3  ;;  %7256 = vmatpush1.bf16.msra.mxu1 %v11621_v55  ;;  %v11653_v46 = vld [vmem:[#allocation16 + $0x62c] ss:$16 sps:$4 sm:$0xff]   ;;  %v11692_v11 = vld [vmem:[#allocation16 + $0x704] ss:$16 sps:$4 sm:$0xff]  }
 0x660   : > { %v5366_v35 = vrot.slane %v5365_v20, 2  ;;  %7093 = vmatprep.subr.bf16.mxu0 %v11626_v57  ;;  %7257 = vmatprep.subr.bf16.mxu1 %v11629_v32  ;;  %v5341_v1 = vmax.f32 %v5339_v9, %v5340_v6  ;;  %v11642_v9 = vld [vmem:[#allocation16 + $0x600] ss:$16 sps:$4 sm:$0xff]   ;;  %v11698_v12 = vld [vmem:[#allocation16 + $0x724] ss:$16 sps:$4 sm:$0xff]  }
 0x661   : > { %v5329_v33 = vrot.slane %v5328_v25, 1  ;;  %v5354_v60 = vmax.f32 %v5352_v19, %v5353_v48  ;;  %v11648_v6 = vld [vmem:[#allocation16 + $0x620] ss:$16 sps:$4 sm:$0xff]   ;;  %v11699_v61 = vld [vmem:[#allocation16 + $0x728] ss:$16 sps:$4 sm:$0xff]  }
 0x662   : > { %v5342_v10 = vrot.slane %v5341_v1, 1  ;;  %v5367_v42 = vmax.f32 %v5365_v20, %v5366_v35  ;;  %v11651_v20 = vld [vmem:[#allocation16 + $0x628] ss:$16 sps:$4 sm:$0xff]   ;;  %v11654_v48 = vld [vmem:[#allocation16 + $0x640] ss:$16 sps:$4 sm:$0xff]  }
 0x663   : > { %v5355_v30 = vrot.slane %v5354_v60, 1  ;;  %7094 = vmatpush1.bf16.msra.mxu0 %v11624_v8  ;;  %7258 = vmatpush1.bf16.msra.mxu1 %v11627_v29  ;;  %v5330_v54 = vmax.f32 %v5328_v25, %v5329_v33  ;;  %v11659_v25 = vld [vmem:[#allocation16 + $0x64c] ss:$16 sps:$4 sm:$0xff]   ;;  %v11657_v8 = vld [vmem:[#allocation16 + $0x648] ss:$16 sps:$4 sm:$0xff]  }
 0x664   : > { %7095 = vmatprep.subr.bf16.mxu0 %v11632_v14  ;;  %7259 = vmatprep.subr.bf16.mxu1 %v11635_v4  ;;  %v5343_v21 = vmax.f32 %v5341_v1, %v5342_v10  ;;  %v5368_v45 = vrot.slane %v5367_v42, 1  ;;  %v11662_v29 = vld [vmem:[#allocation16 + $0x664] ss:$16 sps:$4 sm:$0xff]   ;;  %v11660_v35 = vld [vmem:[#allocation16 + $0x660] ss:$16 sps:$4 sm:$0xff]  }
 0x665   : > { %v5331_v50 = vpack.i.bf16 %v5330_v54, %v5330_v54  ;;  %v5356_v31 = vmax.f32 %v5354_v60, %v5355_v30  ;;  %v11663_v14 = vld [vmem:[#allocation16 + $0x668] ss:$16 sps:$4 sm:$0xff]   ;;  %v11668_v4 = vld [vmem:[#allocation16 + $0x684] ss:$16 sps:$4 sm:$0xff]   ;;  %v11666_v1 = vld [vmem:[#allocation16 + $0x680] ss:$16 sps:$4 sm:$0xff]  }
 0x666   : > { %v5344_v0 = vpack.i.bf16 %v5343_v21, %v5343_v21  ;;  %v5369_v15 = vmax.f32 %v5367_v42, %v5368_v45  ;;  %v11669_v33 = vld [vmem:[#allocation16 + $0x688] ss:$16 sps:$4 sm:$0xff]   ;;  %v11674_v60 = vld [vmem:[#allocation16 + $0x6a4] ss:$16 sps:$4 sm:$0xff]   ;;  %v11672_v10 = vld [vmem:[#allocation16 + $0x6a0] ss:$16 sps:$4 sm:$0xff]  }
 0x667   : > { %7096 = vmatpush1.bf16.msra.mxu0 %v11630_v24  ;;  %7260 = vmatpush1.bf16.msra.mxu1 %v11633_v47  ;;  %v5677_v56 = vunpack.c.l.b16 %v5331_v50  ;;  %v5357_v40 = vpack.i.bf16 %v5356_v31, %v5356_v31  ;;  %v11680_v42 = vld [vmem:[#allocation16 + $0x6c4] ss:$16 sps:$4 sm:$0xff]   ;;  %v11683_v30 = vld [vmem:[#allocation16 + $0x6cc] ss:$16 sps:$4 sm:$0xff]   ;;  %v11678_v24 = vld [vmem:[#allocation16 + $0x6c0] ss:$16 sps:$4 sm:$0xff]  }
 0x668   : > { %7097 = vmatprep.subr.bf16.mxu0 %v11638_v58  ;;  %7261 = vmatprep.subr.bf16.mxu1 %v11641_v59  ;;  %v5678_v63 = vunpack.c.l.b16 %v5344_v0  ;;  %v5370_v51 = vpack.i.bf16 %v5369_v15, %v5369_v15  ;;  %v11681_v47 = vld [vmem:[#allocation16 + $0x6c8] ss:$16 sps:$4 sm:$0xff]   ;;  %v11689_v54 = vld [vmem:[#allocation16 + $0x6ec] ss:$16 sps:$4 sm:$0xff]   ;;  %v11684_v58 = vld [vmem:[#allocation16 + $0x6e0] ss:$16 sps:$4 sm:$0xff]  }
 0x669   : > { %v5685_v7 = vsel %vm1362_vm1, %v5677_v56, %v5669_v27  ;;  %v5679_v41 = vunpack.c.l.b16 %v5357_v40  ;;  %v11687_v59 = vld [vmem:[#allocation16 + $0x6e8] ss:$16 sps:$4 sm:$0xff]   ;;  %v11695_v21 = vld [vmem:[#allocation16 + $0x70c] ss:$16 sps:$4 sm:$0xff]   ;;  %v11690_v45 = vld [vmem:[#allocation16 + $0x700] ss:$16 sps:$4 sm:$0xff]  }
 0x66a   : > { %v5686_v28 = vsel %vm1362_vm1, %v5678_v63, %v5670_v16  ;;  %v5680_v3 = vunpack.c.l.b16 %v5370_v51  ;;  %v5693_v32 = vpack.c.b16 %v5685_v7, %v5685_v7  ;;  %v11693_v50 = vld [vmem:[#allocation16 + $0x708] ss:$16 sps:$4 sm:$0xff]   ;;  %v11701_v31 = vld [vmem:[#allocation16 + $0x72c] ss:$16 sps:$4 sm:$0xff]   ;;  %v11696_v0 = vld [vmem:[#allocation16 + $0x720] ss:$16 sps:$4 sm:$0xff]  }
 0x66b   : > { %7098 = vmatpush1.bf16.msra.mxu0 %v11636_v5  ;;  %7262 = vmatpush1.bf16.msra.mxu1 %v11639_v22  ;;  %v5694_v55 = vpack.c.b16 %v5686_v28, %v5686_v28  ;;  %v13919_v57 = vsel %vm1362_vm1, %v5679_v41, %v5671_v38  ;;  %v11704_v15 = vld [vmem:[#allocation16 + $0x744] ss:$16 sps:$4 sm:$0xff]   ;;  %v11707_v5 = vld [vmem:[#allocation16 + $0x74c] ss:$16 sps:$4 sm:$0xff]   ;;  %v11702_v22 = vld [vmem:[#allocation16 + $0x740] ss:$16 sps:$4 sm:$0xff]  }
 0x66c   : > { %7108 = vmatprep.subr.bf16.mxu0 %v11644_v26  ;;  %7272 = vmatprep.subr.bf16.mxu1 %v11647_v13  ;;  %v5688_v37 = vsel %vm1362_vm1, %v5680_v3, %v5672_v43  ;;  %v11705_v27 = vld [vmem:[#allocation16 + $0x748] ss:$16 sps:$4 sm:$0xff]   ;;  %v11710_v56 = vld [vmem:[#allocation16 + $0x764] ss:$16 sps:$4 sm:$0xff]   ;;  %v11713_v40 = vld [vmem:[#allocation16 + $0x76c] ss:$16 sps:$4 sm:$0xff]  }
 0x66d   : > { %7099 = vmatprep.mubr.bf16.mxu0 %v5694_v55  ;;  %7263 = vmatprep.mubr.bf16.mxu1 %v5694_v55  ;;  %v5696_v19 = vpack.c.b16 %v5688_v37, %v5688_v37  ;;  %v11708_v16 = vld [vmem:[#allocation16 + $0x760] ss:$16 sps:$4 sm:$0xff]   ;;  %v11711_v63 = vld [vmem:[#allocation16 + $0x768] ss:$16 sps:$4 sm:$0xff]   ;;  %v11716_v26 = vld [vmem:[#allocation16 + $0x784] ss:$16 sps:$4 sm:$0xff]  }
 0x66e   : > { %7100 = vmatmul.mubr.bf16.vlgmr.msra.gmra.mrb[116].mxu0 %v5693_v32  ;;  %7264 = vmatmul.mubr.bf16.vlgmr.msra.gmra.mrb[132].mxu1 %v5693_v32  ;;  %v11719_v13 = vld [vmem:[#allocation16 + $0x78c] ss:$16 sps:$4 sm:$0xff]   ;;  %v11714_v51 = vld [vmem:[#allocation16 + $0x780] ss:$16 sps:$4 sm:$0xff]   ;;  %v11717_v7 = vld [vmem:[#allocation16 + $0x788] ss:$16 sps:$4 sm:$0xff]  }
 0x66f   : > { %7109 = vmatpush1.bf16.msra.mxu0 %v11642_v9  ;;  %7273 = vmatpush1.bf16.msra.mxu1 %v11645_v2  ;;  %v11722_v38 = vld [vmem:[#allocation16 + $0x7a4] ss:$16 sps:$4 sm:$0xff]   ;;  %v11725_v41 = vld [vmem:[#allocation16 + $0x7ac] ss:$16 sps:$4 sm:$0xff]   ;;  %v11720_v28 = vld [vmem:[#allocation16 + $0x7a0] ss:$16 sps:$4 sm:$0xff]  }
 0x670   : > { %7140 = vmatprep.mubr.bf16.mxu0 %v5696_v19  ;;  %7304 = vmatprep.mubr.bf16.mxu1 %v5696_v19  ;;  %v11723_v43 = vld [vmem:[#allocation16 + $0x7a8] ss:$16 sps:$4 sm:$0xff]   ;;  %v11728_v3 = vld [vmem:[#allocation16 + $0x7c4] ss:$16 sps:$4 sm:$0xff]   ;;  %v11731_v55 = vld [vmem:[#allocation16 + $0x7cc] ss:$16 sps:$4 sm:$0xff]  }
 0x671   : > { %7110 = vmatprep.subr.bf16.mxu0 %v11650_v39  ;;  %7274 = vmatprep.subr.bf16.mxu1 %v11653_v46  ;;  %v11726_v9 = vld [vmem:[#allocation16 + $0x7c0] ss:$16 sps:$4 sm:$0xff]   ;;  %v11729_v2 = vld [vmem:[#allocation16 + $0x7c8] ss:$16 sps:$4 sm:$0xff]   ;;  %v11734_v32 = vld [vmem:[#allocation16 + $0x7e4] ss:$16 sps:$4 sm:$0xff]  }
 0x672   : > { %v11737_v37 = vld [vmem:[#allocation16 + $0x7ec] ss:$16 sps:$4 sm:$0xff]   ;;  %v11732_v39 = vld [vmem:[#allocation16 + $0x7e0] ss:$16 sps:$4 sm:$0xff]   ;;  %v11735_v46 = vld [vmem:[#allocation16 + $0x7e8] ss:$16 sps:$4 sm:$0xff]  }
 0x673   : > { %7111 = vmatpush1.bf16.msra.mxu0 %v11648_v6  ;;  %7275 = vmatpush1.bf16.msra.mxu1 %v11651_v20  ;;  %v11740_v19 = vld [vmem:[#allocation14 + $0x4] ss:$16 sps:$4 sm:$0xff]   ;;  %v11743_v6 = vld [vmem:[#allocation14 + $0xc] ss:$16 sps:$4 sm:$0xff]   ;;  %v11738_v20 = vld [vmem:[#allocation14] ss:$16 sps:$4 sm:$0xff]  }
 0x674   : > { %7112 = vmatprep.subr.bf16.mxu0 %v11656_v44  ;;  %7276 = vmatprep.subr.bf16.mxu1 %v11659_v25  ;;  %v5695_v44 = vpack.c.b16 %v13919_v57, %v13919_v57  ;;  %v11741_v25 = vld [vmem:[#allocation14 + $0x8] ss:$16 sps:$4 sm:$0xff]   ;;  %v11750_v57 = vld [vmem:[#allocation14 + $0x40] ss:$16 sps:$4 sm:$0xff]  }
 0x677   : > { %7113 = vmatpush1.bf16.msra.mxu0 %v11654_v48  ;;  %7277 = vmatpush1.bf16.msra.mxu1 %v11657_v8  ;;  %v11746_v48 = vld [vmem:[#allocation14 + $0x24] ss:$16 sps:$4 sm:$0xff]   ;;  %v11749_v8 = vld [vmem:[#allocation14 + $0x2c] ss:$16 sps:$4 sm:$0xff]  }
 0x678   : > { %7114 = vmatprep.subr.bf16.mxu0 %v11662_v29  ;;  %7278 = vmatprep.subr.bf16.mxu1 %v11665_v36  ;;  %v14550_v29 = vld [vmem:[#allocation39_spill] sm:$0xff]  ;;  %v11744_v36 = vld [vmem:[#allocation14 + $0x20] ss:$16 sps:$4 sm:$0xff]  }
 0x67b   : > { %7115 = vmatpush1.bf16.msra.mxu0 %v11660_v35  ;;  %7279 = vmatpush1.bf16.msra.mxu1 %v11663_v14  ;;  %v11747_v35 = vld [vmem:[#allocation14 + $0x28] ss:$16 sps:$4 sm:$0xff]   ;;  %v11752_v14 = vld [vmem:[#allocation14 + $0x44] ss:$16 sps:$4 sm:$0xff]  }
 0x67c   : > { %7116 = vmatprep.subr.bf16.mxu0 %v11668_v4  ;;  %7280 = vmatprep.subr.bf16.mxu1 %v11671_v34  ;;  %v11755_v4 = vld [vmem:[#allocation14 + $0x4c] ss:$16 sps:$4 sm:$0xff]   ;;  %v11753_v34 = vld [vmem:[#allocation14 + $0x48] ss:$16 sps:$4 sm:$0xff]  }
 0x67f   : > { %7117 = vmatpush1.bf16.msra.mxu0 %v11666_v1  ;;  %7281 = vmatpush1.bf16.msra.mxu1 %v11669_v33  ;;  %v11758_v1 = vld [vmem:[#allocation14 + $0x64] ss:$16 sps:$4 sm:$0xff]   ;;  %v11761_v33 = vld [vmem:[#allocation14 + $0x6c] ss:$16 sps:$4 sm:$0xff]  }
 0x680   : > { %7118 = vmatprep.subr.bf16.mxu0 %v11674_v60  ;;  %7282 = vmatprep.subr.bf16.mxu1 %v11677_v53  ;;  %v11756_v60 = vld [vmem:[#allocation14 + $0x60] ss:$16 sps:$4 sm:$0xff]   ;;  %v11759_v53 = vld [vmem:[#allocation14 + $0x68] ss:$16 sps:$4 sm:$0xff]  }
 0x683   : > { %7119 = vmatpush1.bf16.msra.mxu0 %v11672_v10  ;;  %7283 = vmatpush1.bf16.msra.mxu1 %v11675_v52  ;;  %v11764_v10 = vld [vmem:[#allocation14 + $0x84] ss:$16 sps:$4 sm:$0xff]   ;;  %v11767_v52 = vld [vmem:[#allocation14 + $0x8c] ss:$16 sps:$4 sm:$0xff]  }
 0x684   : > { %7120 = vmatprep.subr.bf16.mxu0 %v11680_v42  ;;  %7284 = vmatprep.subr.bf16.mxu1 %v11683_v30  ;;  %v11762_v42 = vld [vmem:[#allocation14 + $0x80] ss:$16 sps:$4 sm:$0xff]   ;;  %v11765_v30 = vld [vmem:[#allocation14 + $0x88] ss:$16 sps:$4 sm:$0xff]  }
 0x687   : > { %7121 = vmatpush1.bf16.msra.mxu0 %v11678_v24  ;;  %7285 = vmatpush1.bf16.msra.mxu1 %v11681_v47  ;;  %v11770_v24 = vld [vmem:[#allocation14 + $0xa4] ss:$16 sps:$4 sm:$0xff]   ;;  %v11773_v47 = vld [vmem:[#allocation14 + $0xac] ss:$16 sps:$4 sm:$0xff]  }
 0x688   : > { %7122 = vmatprep.subr.bf16.mxu0 %v11686_v17  ;;  %7286 = vmatprep.subr.bf16.mxu1 %v11689_v54  ;;  %v11768_v17 = vld [vmem:[#allocation14 + $0xa0] ss:$16 sps:$4 sm:$0xff]   ;;  %v11771_v54 = vld [vmem:[#allocation14 + $0xa8] ss:$16 sps:$4 sm:$0xff]  }
 0x68b   : > { %7123 = vmatpush1.bf16.msra.mxu0 %v11684_v58  ;;  %7287 = vmatpush1.bf16.msra.mxu1 %v11687_v59  ;;  %v11776_v58 = vld [vmem:[#allocation14 + $0xc4] ss:$16 sps:$4 sm:$0xff]   ;;  %v11779_v59 = vld [vmem:[#allocation14 + $0xcc] ss:$16 sps:$4 sm:$0xff]  }
 0x68c   : > { %7124 = vmatprep.subr.bf16.mxu0 %v11692_v11  ;;  %7288 = vmatprep.subr.bf16.mxu1 %v11695_v21  ;;  %v11774_v11 = vld [vmem:[#allocation14 + $0xc0] ss:$16 sps:$4 sm:$0xff]   ;;  %v11777_v21 = vld [vmem:[#allocation14 + $0xc8] ss:$16 sps:$4 sm:$0xff]  }
 0x68f   : > { %7125 = vmatpush1.bf16.msra.mxu0 %v11690_v45  ;;  %7289 = vmatpush1.bf16.msra.mxu1 %v11693_v50  ;;  %v11782_v45 = vld [vmem:[#allocation14 + $0xe4] ss:$16 sps:$4 sm:$0xff]   ;;  %v11785_v50 = vld [vmem:[#allocation14 + $0xec] ss:$16 sps:$4 sm:$0xff]  }
 0x690   : > { %7126 = vmatprep.subr.bf16.mxu0 %v11698_v12  ;;  %7290 = vmatprep.subr.bf16.mxu1 %v11701_v31  ;;  %v11780_v12 = vld [vmem:[#allocation14 + $0xe0] ss:$16 sps:$4 sm:$0xff]   ;;  %v11783_v31 = vld [vmem:[#allocation14 + $0xe8] ss:$16 sps:$4 sm:$0xff]  }
 0x693   : > { %7127 = vmatpush1.bf16.msra.mxu0 %v11696_v0  ;;  %7291 = vmatpush1.bf16.msra.mxu1 %v11699_v61  ;;  %v11788_v0 = vld [vmem:[#allocation14 + $0x104] ss:$16 sps:$4 sm:$0xff]   ;;  %v11791_v61 = vld [vmem:[#allocation14 + $0x10c] ss:$16 sps:$4 sm:$0xff]  }
 0x694   : > { %7128 = vmatprep.subr.bf16.mxu0 %v11704_v15  ;;  %7292 = vmatprep.subr.bf16.mxu1 %v11707_v5  ;;  %v11786_v15 = vld [vmem:[#allocation14 + $0x100] ss:$16 sps:$4 sm:$0xff]   ;;  %v11789_v5 = vld [vmem:[#allocation14 + $0x108] ss:$16 sps:$4 sm:$0xff]  }
 0x697   : > { %7129 = vmatpush1.bf16.msra.mxu0 %v11702_v22  ;;  %7293 = vmatpush1.bf16.msra.mxu1 %v11705_v27  ;;  %v11794_v22 = vld [vmem:[#allocation14 + $0x124] ss:$16 sps:$4 sm:$0xff]   ;;  %v11797_v27 = vld [vmem:[#allocation14 + $0x12c] ss:$16 sps:$4 sm:$0xff]  }
 0x698   : > { %7130 = vmatprep.subr.bf16.mxu0 %v11710_v56  ;;  %7294 = vmatprep.subr.bf16.mxu1 %v11713_v40  ;;  %v11792_v56 = vld [vmem:[#allocation14 + $0x120] ss:$16 sps:$4 sm:$0xff]   ;;  %v11795_v40 = vld [vmem:[#allocation14 + $0x128] ss:$16 sps:$4 sm:$0xff]  }
 0x69b   : > { %7131 = vmatpush1.bf16.msra.mxu0 %v11708_v16  ;;  %7295 = vmatpush1.bf16.msra.mxu1 %v11711_v63  ;;  %v11800_v16 = vld [vmem:[#allocation14 + $0x144] ss:$16 sps:$4 sm:$0xff]   ;;  %v11803_v63 = vld [vmem:[#allocation14 + $0x14c] ss:$16 sps:$4 sm:$0xff]  }
 0x69c   : > { %7132 = vmatprep.subr.bf16.mxu0 %v11716_v26  ;;  %7296 = vmatprep.subr.bf16.mxu1 %v11719_v13  ;;  %v11798_v26 = vld [vmem:[#allocation14 + $0x140] ss:$16 sps:$4 sm:$0xff]   ;;  %v11801_v13 = vld [vmem:[#allocation14 + $0x148] ss:$16 sps:$4 sm:$0xff]  }
 0x69f   : > { %7133 = vmatpush1.bf16.msra.mxu0 %v11714_v51  ;;  %7297 = vmatpush1.bf16.msra.mxu1 %v11717_v7  ;;  %v11806_v51 = vld [vmem:[#allocation14 + $0x164] ss:$16 sps:$4 sm:$0xff]   ;;  %v11809_v7 = vld [vmem:[#allocation14 + $0x16c] ss:$16 sps:$4 sm:$0xff]  }
 0x6a0   : > { %7134 = vmatprep.subr.bf16.mxu0 %v11722_v38  ;;  %7298 = vmatprep.subr.bf16.mxu1 %v11725_v41  ;;  %v11804_v38 = vld [vmem:[#allocation14 + $0x160] ss:$16 sps:$4 sm:$0xff]   ;;  %v11807_v41 = vld [vmem:[#allocation14 + $0x168] ss:$16 sps:$4 sm:$0xff]  }
 0x6a3   : > { %7135 = vmatpush1.bf16.msra.mxu0 %v11720_v28  ;;  %7299 = vmatpush1.bf16.msra.mxu1 %v11723_v43  ;;  %v11812_v28 = vld [vmem:[#allocation14 + $0x184] ss:$16 sps:$4 sm:$0xff]   ;;  %v11815_v43 = vld [vmem:[#allocation14 + $0x18c] ss:$16 sps:$4 sm:$0xff]  }
 0x6a4   : > { %7136 = vmatprep.subr.bf16.mxu0 %v11728_v3  ;;  %7300 = vmatprep.subr.bf16.mxu1 %v11731_v55  ;;  %v11810_v3 = vld [vmem:[#allocation14 + $0x180] ss:$16 sps:$4 sm:$0xff]   ;;  %v11813_v55 = vld [vmem:[#allocation14 + $0x188] ss:$16 sps:$4 sm:$0xff]  }
 0x6a7   : > { %7137 = vmatpush1.bf16.msra.mxu0 %v11726_v9  ;;  %7301 = vmatpush1.bf16.msra.mxu1 %v11729_v2  ;;  %v11818_v9 = vld [vmem:[#allocation14 + $0x1a4] ss:$16 sps:$4 sm:$0xff]   ;;  %v11821_v2 = vld [vmem:[#allocation14 + $0x1ac] ss:$16 sps:$4 sm:$0xff]  }
 0x6a8   : > { %7138 = vmatprep.subr.bf16.mxu0 %v11734_v32  ;;  %7302 = vmatprep.subr.bf16.mxu1 %v11737_v37  ;;  %v11816_v32 = vld [vmem:[#allocation14 + $0x1a0] ss:$16 sps:$4 sm:$0xff]   ;;  %v11819_v37 = vld [vmem:[#allocation14 + $0x1a8] ss:$16 sps:$4 sm:$0xff]  }
 0x6ab   : > { %7139 = vmatpush1.bf16.msra.mxu0 %v11732_v39  ;;  %7303 = vmatpush1.bf16.msra.mxu1 %v11735_v46  ;;  %v11824_v39 = vld [vmem:[#allocation14 + $0x1c4] ss:$16 sps:$4 sm:$0xff]   ;;  %v11827_v46 = vld [vmem:[#allocation14 + $0x1cc] ss:$16 sps:$4 sm:$0xff]  }
 0x6ac   : > { %7697 = vmatprep.subr.bf16.mxu0 %v11740_v19  ;;  %7810 = vmatprep.subr.bf16.mxu1 %v11743_v6  ;;  %v11822_v19 = vld [vmem:[#allocation14 + $0x1c0] ss:$16 sps:$4 sm:$0xff]   ;;  %v11825_v6 = vld [vmem:[#allocation14 + $0x1c8] ss:$16 sps:$4 sm:$0xff]  }
 0x6ae   : > { %7141 = vmatmul.mubr.bf16.vlgmr.msra.gmra.mrb[116].mxu0 %v5695_v44  ;;  %7305 = vmatmul.mubr.bf16.vlgmr.msra.gmra.mrb[132].mxu1 %v5695_v44  ;;  %v11833_v44 = vld [vmem:[#allocation14 + $0x1ec] ss:$16 sps:$4 sm:$0xff]  }
 0x6af   : > { %7698 = vmatpush1.bf16.msra.mxu0 %v11738_v20  ;;  %7729 = vmatprep.mubr.bf16.mxu0 %v14550_v29  ;;  %v11830_v20 = vld [vmem:[#allocation14 + $0x1e4] ss:$16 sps:$4 sm:$0xff]  }
 0x6b0   : > { %7811 = vmatpush1.bf16.msra.mxu1 %v11741_v25  ;;  %7842 = vmatprep.mubr.bf16.mxu1 %v14550_v29  ;;  %v11828_v25 = vld [vmem:[#allocation14 + $0x1e0] ss:$16 sps:$4 sm:$0xff]   ;;  %v14552_v29 = vld [vmem:[#allocation41_spill] sm:$0xff] }
 0x6b1   : > { %7699 = vmatprep.subr.bf16.mxu0 %v11746_v48  ;;  %7812 = vmatprep.subr.bf16.mxu1 %v11749_v8  ;;  %v11831_v48 = vld [vmem:[#allocation14 + $0x1e8] ss:$16 sps:$4 sm:$0xff]   ;;  %v14551_v8 = vld [vmem:[#allocation38_spill] sm:$0xff] }
 0x6b3   : > { %7700 = vmatpush1.bf16.msra.mxu0 %v11744_v36  ;;  %v14553_v36 = vld [vmem:[#allocation40_spill] sm:$0xff] }
 0x6b4   : > { %7813 = vmatpush1.bf16.msra.mxu1 %v11747_v35  ;;  %7701 = vmatprep.subr.bf16.mxu0 %v11752_v14  ;;  %v14554_v35 = vld [vmem:[#allocation43_spill] sm:$0xff]  ;;  %v14555_v14 = vld [vmem:[#allocation42_spill] sm:$0xff] }
 0x6b5   : > { %7814 = vmatprep.subr.bf16.mxu1 %v11755_v4  ;;  %v14556_v4 = vld [vmem:[#allocation45_spill] sm:$0xff] }
 0x6b7   : > { %7702 = vmatpush1.bf16.msra.mxu0 %v11750_v57  ;;  %v14557_v57 = vld [vmem:[#allocation44_spill] sm:$0xff] }
 0x6b8   : > { %7815 = vmatpush1.bf16.msra.mxu1 %v11753_v34  ;;  %7703 = vmatprep.subr.bf16.mxu0 %v11758_v1  ;;  %v14558_v34 = vld [vmem:[#allocation47_spill] sm:$0xff]  ;;  %v11836_v1 = vld [vmem:[#allocation17 + $0x4] ss:$8 sps:$4 sm:$0xff]  }
 0x6b9   : > { %7816 = vmatprep.subr.bf16.mxu1 %v11761_v33  ;;  %v11834_v33 = vld [vmem:[#allocation17] ss:$8 sps:$4 sm:$0xff]  }
 0x6bb   : > { %7704 = vmatpush1.bf16.msra.mxu0 %v11756_v60  ;;  %v14559_v60 = vld [vmem:[#allocation46_spill] sm:$0xff] }
 0x6bc   : > { %7817 = vmatpush1.bf16.msra.mxu1 %v11759_v53  ;;  %7705 = vmatprep.subr.bf16.mxu0 %v11764_v10  ;;  %v11839_v53 = vld [vmem:[#allocation17 + $0x14] ss:$8 sps:$4 sm:$0xff]   ;;  %v14560_v10 = vld [vmem:[#allocation49_spill] sm:$0xff] }
 0x6bd   : > { %7818 = vmatprep.subr.bf16.mxu1 %v11767_v52  ;;  %v11837_v52 = vld [vmem:[#allocation17 + $0x10] ss:$8 sps:$4 sm:$0xff]  }
 0x6bf   : > { %7706 = vmatpush1.bf16.msra.mxu0 %v11762_v42  ;;  %v11842_v42 = vld [vmem:[#allocation17 + $0x24] ss:$8 sps:$4 sm:$0xff]  }
 0x6c0   : > { %7819 = vmatpush1.bf16.msra.mxu1 %v11765_v30  ;;  %7707 = vmatprep.subr.bf16.mxu0 %v11770_v24  ;;  %v11840_v30 = vld [vmem:[#allocation17 + $0x20] ss:$8 sps:$4 sm:$0xff]   ;;  %v11845_v24 = vld [vmem:[#allocation17 + $0x34] ss:$8 sps:$4 sm:$0xff]  }
 0x6c1   : > { %7820 = vmatprep.subr.bf16.mxu1 %v11773_v47  ;;  %v14561_v47 = vld [vmem:[#allocation48_spill] sm:$0xff] }
 0x6c3   : > { %7708 = vmatpush1.bf16.msra.mxu0 %v11768_v17  ;;  %v14562_v17 = vld [vmem:[#allocation51_spill] sm:$0xff] }
 0x6c4   : > { %7821 = vmatpush1.bf16.msra.mxu1 %v11771_v54  ;;  %7709 = vmatprep.subr.bf16.mxu0 %v11776_v58  ;;  %v11843_v54 = vld [vmem:[#allocation17 + $0x30] ss:$8 sps:$4 sm:$0xff]   ;;  %v11848_v58 = vld [vmem:[#allocation17 + $0x44] ss:$8 sps:$4 sm:$0xff]  }
 0x6c5   : > { %7822 = vmatprep.subr.bf16.mxu1 %v11779_v59  ;;  %v11846_v59 = vld [vmem:[#allocation17 + $0x40] ss:$8 sps:$4 sm:$0xff]  }
 0x6c7   : > { %7710 = vmatpush1.bf16.msra.mxu0 %v11774_v11  ;;  %v11851_v11 = vld [vmem:[#allocation17 + $0x54] ss:$8 sps:$4 sm:$0xff]  }
 0x6c8   : > { %7823 = vmatpush1.bf16.msra.mxu1 %v11777_v21  ;;  %7711 = vmatprep.subr.bf16.mxu0 %v11782_v45  ;;  %v14563_v21 = vld [vmem:[#allocation50_spill] sm:$0xff]  ;;  %v14564_v45 = vld [vmem:[#allocation53_spill] sm:$0xff] }
 0x6c9   : > { %7824 = vmatprep.subr.bf16.mxu1 %v11785_v50  ;;  %v11849_v50 = vld [vmem:[#allocation17 + $0x50] ss:$8 sps:$4 sm:$0xff]  }
 0x6cb   : > { %7712 = vmatpush1.bf16.msra.mxu0 %v11780_v12  ;;  %v11854_v12 = vld [vmem:[#allocation17 + $0x64] ss:$8 sps:$4 sm:$0xff]  }
 0x6cc   : > { %7825 = vmatpush1.bf16.msra.mxu1 %v11783_v31  ;;  %7713 = vmatprep.subr.bf16.mxu0 %v11788_v0  ;;  %v11852_v31 = vld [vmem:[#allocation17 + $0x60] ss:$8 sps:$4 sm:$0xff]   ;;  %v11857_v0 = vld [vmem:[#allocation17 + $0x74] ss:$8 sps:$4 sm:$0xff]  }
 0x6cd   : > { %7826 = vmatprep.subr.bf16.mxu1 %v11791_v61  ;;  %v14565_v61 = vld [vmem:[#allocation52_spill] sm:$0xff] }
 0x6cf   : > { %7714 = vmatpush1.bf16.msra.mxu0 %v11786_v15  ;;  %v11855_v15 = vld [vmem:[#allocation17 + $0x70] ss:$8 sps:$4 sm:$0xff]  }
 0x6d0   : > { %7827 = vmatpush1.bf16.msra.mxu1 %v11789_v5  ;;  %7715 = vmatprep.subr.bf16.mxu0 %v11794_v22  ;;  %v11860_v5 = vld [vmem:[#allocation17 + $0x84] ss:$8 sps:$4 sm:$0xff]   ;;  %v11858_v22 = vld [vmem:[#allocation17 + $0x80] ss:$8 sps:$4 sm:$0xff]  }
 0x6d1   : > { %7828 = vmatprep.subr.bf16.mxu1 %v11797_v27  ;;  %v11863_v27 = vld [vmem:[#allocation17 + $0x94] ss:$8 sps:$4 sm:$0xff]  }
 0x6d3   : > { %7716 = vmatpush1.bf16.msra.mxu0 %v11792_v56  ;;  %v11861_v56 = vld [vmem:[#allocation17 + $0x90] ss:$8 sps:$4 sm:$0xff]  }
 0x6d4   : > { %7829 = vmatpush1.bf16.msra.mxu1 %v11795_v40  ;;  %7717 = vmatprep.subr.bf16.mxu0 %v11800_v16  ;;  %v11866_v40 = vld [vmem:[#allocation17 + $0xa4] ss:$8 sps:$4 sm:$0xff]   ;;  %v11864_v16 = vld [vmem:[#allocation17 + $0xa0] ss:$8 sps:$4 sm:$0xff]  }
 0x6d5   : > { %7830 = vmatprep.subr.bf16.mxu1 %v11803_v63  ;;  %v11869_v63 = vld [vmem:[#allocation17 + $0xb4] ss:$8 sps:$4 sm:$0xff]  }
 0x6d7   : > { %7718 = vmatpush1.bf16.msra.mxu0 %v11798_v26  ;;  %v11867_v26 = vld [vmem:[#allocation17 + $0xb0] ss:$8 sps:$4 sm:$0xff]  }
 0x6d8   : > { %7831 = vmatpush1.bf16.msra.mxu1 %v11801_v13  ;;  %7719 = vmatprep.subr.bf16.mxu0 %v11806_v51  ;;  %v11872_v13 = vld [vmem:[#allocation17 + $0xc4] ss:$8 sps:$4 sm:$0xff]   ;;  %v11870_v51 = vld [vmem:[#allocation17 + $0xc0] ss:$8 sps:$4 sm:$0xff]  }
 0x6d9   : > { %7832 = vmatprep.subr.bf16.mxu1 %v11809_v7  ;;  %v11875_v7 = vld [vmem:[#allocation17 + $0xd4] ss:$8 sps:$4 sm:$0xff]  }
 0x6db   : > { %7720 = vmatpush1.bf16.msra.mxu0 %v11804_v38  ;;  %v11873_v38 = vld [vmem:[#allocation17 + $0xd0] ss:$8 sps:$4 sm:$0xff]  }
 0x6dc   : > { %7833 = vmatpush1.bf16.msra.mxu1 %v11807_v41  ;;  %7721 = vmatprep.subr.bf16.mxu0 %v11812_v28  ;;  %v11878_v41 = vld [vmem:[#allocation17 + $0xe4] ss:$8 sps:$4 sm:$0xff]   ;;  %v11876_v28 = vld [vmem:[#allocation17 + $0xe0] ss:$8 sps:$4 sm:$0xff]  }
 0x6dd   : > { %7834 = vmatprep.subr.bf16.mxu1 %v11815_v43  ;;  %v11881_v43 = vld [vmem:[#allocation17 + $0xf4] ss:$8 sps:$4 sm:$0xff]  }
 0x6df   : > { %7722 = vmatpush1.bf16.msra.mxu0 %v11810_v3  ;;  %v11879_v3 = vld [vmem:[#allocation17 + $0xf0] ss:$8 sps:$4 sm:$0xff]  }
 0x6e0   : > { %7835 = vmatpush1.bf16.msra.mxu1 %v11813_v55  ;;  %7723 = vmatprep.subr.bf16.mxu0 %v11818_v9  ;;  %v11884_v55 = vld [vmem:[#allocation17 + $0x104] ss:$8 sps:$4 sm:$0xff]  }
 0x6e1   : > { %7836 = vmatprep.subr.bf16.mxu1 %v11821_v2  ;;  %v5627_v9 = vld [vmem:[%s14375_s12] sm:$0xf] }
 0x6e2   : > { %v5632_v2 = vrot.slane %v5627_v9, %v12955_v23 }
 0x6e3   : > { %7724 = vmatpush1.bf16.msra.mxu0 %v11816_v32  ;;  %v5640_v32 = vrot.slane %v5627_v9, %v14546_v62 }
 0x6e4   : > { %7837 = vmatpush1.bf16.msra.mxu1 %v11819_v37  ;;  %7725 = vmatprep.subr.bf16.mxu0 %v11824_v39  ;;  %v5636_v37 = vrot.slane %v5627_v9, %v14547_v49  ;;  %v5644_v39 = vrot.slane %v5627_v9, %v14548_v18 }
 0x6e5   : > { %7838 = vmatprep.subr.bf16.mxu1 %v11827_v46 }
 0x6e7   : > { %7726 = vmatpush1.bf16.msra.mxu0 %v11822_v19 }
 0x6e8   : > { %7839 = vmatpush1.bf16.msra.mxu1 %v11825_v6  ;;  %7727 = vmatprep.subr.bf16.mxu0 %v11830_v20 }
 0x6e9   : > { %7840 = vmatprep.subr.bf16.mxu1 %v11833_v44 }
 0x6eb   : > { %7728 = vmatpush1.bf16.msra.mxu0 %v11828_v25 }
 0x6ec   : > { %7841 = vmatpush1.bf16.msra.mxu1 %v11831_v48  ;;  %8555 = vmatprep.subr.bf16.mxu0 %v11836_v1 }
 0x6ee   : > { %7730 = vmatmul.mubr.bf16.vlgmr.msra.gmra.mrb[120].mxu0 %v14551_v8 }
 0x6ef   : > { %7843 = vmatmul.mubr.bf16.vlgmr.msra.gmra.mrb[136].mxu1 %v14551_v8  ;;  %7739 = vmatprep.mubr.bf16.mxu0 %v14552_v29 }
 0x6f0   : > { %7852 = vmatprep.mubr.bf16.mxu1 %v14552_v29  ;;  %8556 = vmatpush1.bf16.msra.mxu0 %v11834_v33 }
 0x6f1   : > { %8557 = vmatprep.subr.bf16.mxu0 %v11839_v53 }
 0x6f4   : > { %8558 = vmatpush1.bf16.msra.mxu0 %v11837_v52 }
 0x6f5   : > { %8559 = vmatprep.subr.bf16.mxu0 %v11842_v42 }
 0x6f6   : > { %7740 = vmatmul.mubr.bf16.gmra.mrb[124].mxu0 %v14553_v36 }
 0x6f7   : > { %7853 = vmatmul.mubr.bf16.gmra.mrb[140].mxu1 %v14553_v36  ;;  %7749 = vmatprep.mubr.bf16.mxu0 %v14554_v35 }
 0x6f8   : > { %7862 = vmatprep.mubr.bf16.mxu1 %v14554_v35  ;;  %8560 = vmatpush1.bf16.msra.mxu0 %v11840_v30 }
 0x6f9   : > { %8561 = vmatprep.subr.bf16.mxu0 %v11845_v24 }
 0x6fc   : > { %8562 = vmatpush1.bf16.msra.mxu0 %v11843_v54 }
 0x6fd   : > { %8563 = vmatprep.subr.bf16.mxu0 %v11848_v58 }
 0x6fe   : > { %7750 = vmatmul.mubr.bf16.gmra.mrb[128].mxu0 %v14555_v14 }
 0x6ff   : > { %7863 = vmatmul.mubr.bf16.gmra.mrb[144].mxu1 %v14555_v14  ;;  %7759 = vmatprep.mubr.bf16.mxu0 %v14556_v4 }
 0x700   : > { %7872 = vmatprep.mubr.bf16.mxu1 %v14556_v4  ;;  %8564 = vmatpush1.bf16.msra.mxu0 %v11846_v59 }
 0x701   : > { %8565 = vmatprep.subr.bf16.mxu0 %v11851_v11 }
 0x704   : > { %8566 = vmatpush1.bf16.msra.mxu0 %v11849_v50 }
 0x705   : > { %8567 = vmatprep.subr.bf16.mxu0 %v11854_v12 }
 0x706   : > { %7760 = vmatmul.mubr.bf16.gmra.mrb[132].mxu0 %v14557_v57 }
 0x707   : > { %7873 = vmatmul.mubr.bf16.gmra.mrb[148].mxu1 %v14557_v57  ;;  %7769 = vmatprep.mubr.bf16.mxu0 %v14558_v34 }
 0x708   : > { %7882 = vmatprep.mubr.bf16.mxu1 %v14558_v34  ;;  %8568 = vmatpush1.bf16.msra.mxu0 %v11852_v31  ;;  %v14566_v34 = vld [vmem:[#allocation56_spill] sm:$0xff] }
 0x709   : > { %8569 = vmatprep.subr.bf16.mxu0 %v11857_v0 }
 0x70c   : > { %8570 = vmatpush1.bf16.msra.mxu0 %v11855_v15  ;;  %v11931_v15 = vld [vmem:[#allocation19] sm:$0xff]  }
 0x70d   : > { %8571 = vmatprep.subr.bf16.mxu0 %v11860_v5  ;;  %v11932_v5 = vld [vmem:[#allocation19 + $0x48] sm:$0xff]  }
 0x70e   : > { %7770 = vmatmul.mubr.bf16.gmra.mrb[136].mxu0 %v14559_v60 }
 0x70f   : > { %7883 = vmatmul.mubr.bf16.gmra.mrb[152].mxu1 %v14559_v60  ;;  %7779 = vmatprep.mubr.bf16.mxu0 %v14560_v10 }
 0x710   : > { %7892 = vmatprep.mubr.bf16.mxu1 %v14560_v10  ;;  %8572 = vmatpush1.bf16.msra.mxu0 %v11858_v22 }
 0x711   : > { %8573 = vmatprep.subr.bf16.mxu0 %v11863_v27 }
 0x714   : > { %8574 = vmatpush1.bf16.msra.mxu0 %v11861_v56 }
 0x715   : > { %8575 = vmatprep.subr.bf16.mxu0 %v11866_v40 }
 0x716   : > { %7780 = vmatmul.mubr.bf16.gmra.mrb[140].mxu0 %v14561_v47 }
 0x717   : > { %7893 = vmatmul.mubr.bf16.gmra.mrb[156].mxu1 %v14561_v47  ;;  %7789 = vmatprep.mubr.bf16.mxu0 %v14562_v17 }
 0x718   : > { %7902 = vmatprep.mubr.bf16.mxu1 %v14562_v17  ;;  %8576 = vmatpush1.bf16.msra.mxu0 %v11864_v16 }
 0x719   : > { %8577 = vmatprep.subr.bf16.mxu0 %v11869_v63 }
 0x71c   : > { %8578 = vmatpush1.bf16.msra.mxu0 %v11867_v26 }
 0x71d   : > { %8579 = vmatprep.subr.bf16.mxu0 %v11872_v13 }
 0x71e   : > { %7790 = vmatmul.mubr.bf16.gmra.mrb[144].mxu0 %v14563_v21 }
 0x71f   : > { %7903 = vmatmul.mubr.bf16.gmra.mrb[160].mxu1 %v14563_v21  ;;  %7799 = vmatprep.mubr.bf16.mxu0 %v14564_v45 }
 0x720   : > { %7912 = vmatprep.mubr.bf16.mxu1 %v14564_v45  ;;  %8580 = vmatpush1.bf16.msra.mxu0 %v11870_v51 }
 0x721   : > { %8581 = vmatprep.subr.bf16.mxu0 %v11875_v7 }
 0x724   : > { %8582 = vmatpush1.bf16.msra.mxu0 %v11873_v38  ;;  %v11933_v38 = vld [vmem:[#allocation19 + $0x8] sm:$0xff]  }
 0x725   : > { %8583 = vmatprep.subr.bf16.mxu0 %v11878_v41 }
 0x726   : > { %7800 = vmatmul.mubr.bf16.gmra.mrb[148].mxu0 %v14565_v61 }
 0x727   : > { %7913 = vmatmul.mubr.bf16.gmra.mrb[164].mxu1 %v14565_v61  ;;  %v11930_v61 = vld [vmem:[#allocation19 + $0x40] sm:$0xff]  }
 0x728   : > { %8584 = vmatpush1.bf16.msra.mxu0 %v11876_v28  ;;  %10489 = vmatprep.subr.bf16.mxu1 %v11930_v61 }
 0x729   : > { %8585 = vmatprep.subr.bf16.mxu0 %v11881_v43  ;;  %10490 = vmatpush3.bf16.msra.mxu1 %v11931_v15  ;;  %v11938_v15 = vld [vmem:[#allocation19 + $0x60] sm:$0xff]  }
 0x72a   : > { %10491 = vmatprep.subr.bf16.mxu1 %v11932_v5 }
 0x72c   : > { %8586 = vmatpush1.bf16.msra.mxu0 %v11879_v3  ;;  %v11934_v3 = vld [vmem:[#allocation19 + $0x50] sm:$0xff]  }
 0x72d   : > { %8668 = vmatprep.subr.bf16.mxu0 %v11884_v55  ;;  %10492 = vmatpush3.bf16.msra.mxu1 %v11933_v38 }
 0x72e   : > { %10493 = vmatprep.subr.bf16.mxu1 %v11934_v3 }
 0x781   : > { %v7142_v46 = vpop.f32.mrb[116].mxu0  ;;  %v7306_v19 = vpop.f32.mrb[132].mxu1 }
 0x782   : > { %v10747_v6 = vadd.f32 %v7142_v46, %v5632_v2  ;;  %v10749_v20 = vadd.f32 %v7306_v19, %v5640_v32  ;;  %v7144_v44 = vpop.f32.mrb[117].mxu0  ;;  %v7308_v25 = vpop.f32.mrb[133].mxu1  ;;  %v11882_v32 = vld [vmem:[#allocation17 + $0x100] ss:$8 sps:$4 sm:$0xff]  }
 0x783   : > { %v10748_v48 = vadd.f32 %v7144_v44, %v5636_v37  ;;  %v10750_v8 = vadd.f32 %v7308_v25, %v5644_v39  ;;  %v7146_v29 = vpop.f32.mrb[118].mxu0  ;;  %v7310_v36 = vpop.f32.mrb[134].mxu1 }
 0x784   : > { %v7147_v35 = vpop.f32.mrb[119].mxu0  ;;  %v7311_v14 = vpop.f32.mrb[135].mxu1 }
 0x785   : > { %v7927_v4 = vcombine.low %v10747_v6, %v10748_v48  ;;  %v7928_v57 = vcombine.low %v10749_v20, %v10750_v8  ;;  %v11887_v6 = vld [vmem:[#allocation17 + $0x114] ss:$8 sps:$4 sm:$0xff]  }
 0x786   : > { %v11935_v8 = vld [vmem:[#allocation19 + $0x10] sm:$0xff]  }
 0x787   : > { %v13964_v1 = vrot.slane %v7927_v4, %v14566_v34  ;;  %v13967_v33 = vrot.slane %v7928_v57, %v14566_v34  ;;  %v11936_v4 = vld [vmem:[#allocation19 + $0x58] sm:$0xff]   ;;  %10494 = vmatpush3.bf16.msra.mxu1 %v11935_v8 }
 0x788   : > { %10495 = vmatprep.subr.bf16.mxu1 %v11936_v4 }
 0x789   : > { %v7943_v60 = vcombine.low %v13964_v1, %v13967_v33  ;;  %v7944_v53 = vcombine.high %v13964_v1, %v13967_v33 }
 0x78b   : > { %v7951_v10 = vrot.slane %v7943_v60, %v14566_v34 }
 0x78d   : > { %v13975_v52 = vrot.slane %v7951_v10, %v12955_v23  ;;  %v13978_v42 = vrot.slane %v7951_v10, %v14547_v49  ;;  %v13981_v30 = vrot.slane %v7951_v10, %v14546_v62  ;;  %v13984_v47 = vrot.slane %v7951_v10, %v14548_v18 }
 0x7c1   : > { %v7731_v24 = vpop.f32.mrb[120].mxu0 }
 0x7c2   : > { %v7999_v17 = vadd.f32 %v13975_v52, %v7731_v24  ;;  %v7844_v54 = vpop.f32.mrb[136].mxu1  ;;  %v7733_v58 = vpop.f32.mrb[121].mxu0  ;;  %v11885_v24 = vld [vmem:[#allocation17 + $0x110] ss:$8 sps:$4 sm:$0xff]  }
 0x7c3   : > { %v8001_v59 = vadd.f32 %v13981_v30, %v7844_v54  ;;  %v8000_v11 = vadd.f32 %v13978_v42, %v7733_v58  ;;  %v7846_v21 = vpop.f32.mrb[137].mxu1  ;;  %v7735_v45 = vpop.f32.mrb[122].mxu0 }
 0x7c4   : > { %v8002_v50 = vadd.f32 %v13984_v47, %v7846_v21  ;;  %v8003_v12 = vadd.f32 %v13975_v52, %v7735_v45  ;;  %v7848_v31 = vpop.f32.mrb[138].mxu1  ;;  %v7737_v0 = vpop.f32.mrb[123].mxu0  ;;  %v8063_v40 = vmax.f32 %v7999_v17, 0.0 }
 0x7c5   : > { %v8005_v22 = vadd.f32 %v13981_v30, %v7848_v31  ;;  %v8004_v27 = vadd.f32 %v13978_v42, %v7737_v0  ;;  %v7850_v56 = vpop.f32.mrb[139].mxu1  ;;  %v8065_v26 = vmax.f32 %v8001_v59, 0.0  ;;  %v8064_v13 = vmax.f32 %v8000_v11, 0.0  ;;  %v11890_v59 = vld [vmem:[#allocation17 + $0x124] ss:$8 sps:$4 sm:$0xff]  }
 0x7c6   : > { %v8067_v16 = vmax.f32 %v8003_v12, 0.0  ;;  %v8006_v63 = vadd.f32 %v13984_v47, %v7850_v56  ;;  %v8066_v41 = vmax.f32 %v8002_v50, 0.0  ;;  %v11937_v12 = vld [vmem:[#allocation19 + $0x18] sm:$0xff]   ;;  %v11888_v56 = vld [vmem:[#allocation17 + $0x120] ss:$8 sps:$4 sm:$0xff]  }
 0x7c7   : > { %v8069_v51 = vmax.f32 %v8005_v22, 0.0  ;;  %v8068_v7 = vmax.f32 %v8004_v27, 0.0  ;;  %10496 = vmatpush3.bf16.msra.mxu1 %v11937_v12 }
 0x7c8   : > { %v8127_v28 = vpack.c.bf16 %v8067_v16, %v8063_v40  ;;  %v8070_v43 = vmax.f32 %v8006_v63, 0.0  ;;  %10497 = vmatprep.subr.bf16.mxu1 %v11938_v15  ;;  %v11943_v15 = vld [vmem:[#allocation19 + $0x30] sm:$0xff]  }
 0x7c9   : > { %v13994_v55 = vpack.c.bf16 %v8069_v51, %v8065_v26  ;;  %v8128_v9 = vpack.c.bf16 %v8068_v7, %v8064_v13  ;;  %v7741_v2 = vpop.f32.mrb[124].mxu0  ;;  %v11893_v13 = vld [vmem:[#allocation17 + $0x134] ss:$8 sps:$4 sm:$0xff]  }
 0x7ca   : > { %v13996_v37 = vpack.c.bf16 %v8070_v43, %v8066_v41  ;;  %v8007_v39 = vadd.f32 %v13975_v52, %v7741_v2  ;;  %v7854_v46 = vpop.f32.mrb[140].mxu1  ;;  %v7743_v19 = vpop.f32.mrb[125].mxu0 }
 0x7cb   : > { %v8009_v20 = vadd.f32 %v13981_v30, %v7854_v46  ;;  %v8008_v44 = vadd.f32 %v13978_v42, %v7743_v19  ;;  %v7856_v25 = vpop.f32.mrb[141].mxu1  ;;  %v7745_v48 = vpop.f32.mrb[126].mxu0  ;;  %8587 = vmatprep.mubr.bf16.mxu0 %v8128_v9 }
 0x7cc   : > { %v8010_v29 = vadd.f32 %v13984_v47, %v7856_v25  ;;  %v8011_v36 = vadd.f32 %v13975_v52, %v7745_v48  ;;  %v7858_v35 = vpop.f32.mrb[142].mxu1  ;;  %v7747_v14 = vpop.f32.mrb[127].mxu0  ;;  %8588 = vmatmul.mubr.bf16.vlgmr.msra.gmra.mrb[152].mxu0 %v8127_v28  ;;  %v8071_v17 = vmax.f32 %v8007_v39, 0.0  ;;  %v11939_v28 = vld [vmem:[#allocation19 + $0x20] sm:$0xff]  }
 0x7cd   : > { %v8013_v57 = vadd.f32 %v13981_v30, %v7858_v35  ;;  %v8012_v60 = vadd.f32 %v13978_v42, %v7747_v14  ;;  %v7860_v10 = vpop.f32.mrb[143].mxu1  ;;  %8669 = vmatpush1.bf16.msra.mxu0 %v11882_v32  ;;  %v8073_v11 = vmax.f32 %v8009_v20, 0.0  ;;  %v8072_v21 = vmax.f32 %v8008_v44, 0.0  ;;  %v11940_v32 = vld [vmem:[#allocation19 + $0x68] sm:$0xff]   ;;  %10498 = vmatpush3.bf16.msra.mxu1 %v11939_v28 }
 0x7ce   : > { %v8075_v54 = vmax.f32 %v8011_v36, 0.0  ;;  %v8014_v58 = vadd.f32 %v13984_v47, %v7860_v10  ;;  %8670 = vmatprep.subr.bf16.mxu0 %v11887_v6  ;;  %v8074_v31 = vmax.f32 %v8010_v29, 0.0  ;;  %v11891_v6 = vld [vmem:[#allocation17 + $0x130] ss:$8 sps:$4 sm:$0xff]   ;;  %v11896_v48 = vld [vmem:[#allocation17 + $0x144] ss:$8 sps:$4 sm:$0xff]   ;;  %10499 = vmatprep.subr.bf16.mxu1 %v11940_v32 }
 0x7cf   : > { %v8077_v45 = vmax.f32 %v8013_v57, 0.0  ;;  %v8076_v50 = vmax.f32 %v8012_v60, 0.0  ;;  %v11941_v14 = vld [vmem:[#allocation19 + $0x28] sm:$0xff]   ;;  %v11942_v10 = vld [vmem:[#allocation19 + $0x70] sm:$0xff]  }
 0x7d0   : > { %v8131_v0 = vpack.c.bf16 %v8075_v54, %v8071_v17  ;;  %v8078_v61 = vmax.f32 %v8014_v58, 0.0  ;;  %v11894_v58 = vld [vmem:[#allocation17 + $0x140] ss:$8 sps:$4 sm:$0xff]  }
 0x7d1   : > { %v14006_v5 = vpack.c.bf16 %v8077_v45, %v8073_v11  ;;  %v8132_v22 = vpack.c.bf16 %v8076_v50, %v8072_v21  ;;  %8671 = vmatpush1.bf16.msra.mxu0 %v11885_v24  ;;  %v7751_v27 = vpop.f32.mrb[128].mxu0  ;;  %v11899_v50 = vld [vmem:[#allocation17 + $0x154] ss:$8 sps:$4 sm:$0xff]   ;;  %10500 = vmatpush3.bf16.msra.mxu1 %v11941_v14 }
 0x7d2   : > { %v14008_v40 = vpack.c.bf16 %v8078_v61, %v8074_v31  ;;  %v8015_v16 = vadd.f32 %v13975_v52, %v7751_v27  ;;  %v7864_v63 = vpop.f32.mrb[144].mxu1  ;;  %v7753_v26 = vpop.f32.mrb[129].mxu0  ;;  %8672 = vmatprep.subr.bf16.mxu0 %v11890_v59  ;;  %10501 = vmatprep.subr.bf16.mxu1 %v11942_v10 }
 0x7d3   : > { %v8017_v51 = vadd.f32 %v13981_v30, %v7864_v63  ;;  %v8016_v7 = vadd.f32 %v13978_v42, %v7753_v26  ;;  %v7866_v38 = vpop.f32.mrb[145].mxu1  ;;  %v7755_v41 = vpop.f32.mrb[130].mxu0  ;;  %8597 = vmatprep.mubr.bf16.mxu0 %v8132_v22  ;;  %v7958_v22 = vrot.slane %v7944_v53, %v14566_v34  ;;  %v11902_v34 = vld [vmem:[#allocation17 + $0x164] ss:$8 sps:$4 sm:$0xff]  }
 0x7d4   : > { %v8018_v43 = vadd.f32 %v13984_v47, %v7866_v38  ;;  %v8019_v3 = vadd.f32 %v13975_v52, %v7755_v41  ;;  %v7868_v9 = vpop.f32.mrb[146].mxu1  ;;  %v7757_v2 = vpop.f32.mrb[131].mxu0  ;;  %8598 = vmatmul.mubr.bf16.gmra.mrb[156].mxu0 %v8131_v0  ;;  %v8079_v20 = vmax.f32 %v8015_v16, 0.0 }
 0x7d5   : > { %v8021_v39 = vadd.f32 %v13981_v30, %v7868_v9  ;;  %v8020_v46 = vadd.f32 %v13978_v42, %v7757_v2  ;;  %v7870_v19 = vpop.f32.mrb[147].mxu1  ;;  %8673 = vmatpush1.bf16.msra.mxu0 %v11888_v56  ;;  %v8081_v8 = vmax.f32 %v8017_v51, 0.0  ;;  %v8080_v29 = vmax.f32 %v8016_v7, 0.0  ;;  %v11897_v7 = vld [vmem:[#allocation17 + $0x150] ss:$8 sps:$4 sm:$0xff]   ;;  %10502 = vmatpush3.bf16.msra.mxu1 %v11943_v15 }
 0x7d6   : > { %v8083_v44 = vmax.f32 %v8019_v3, 0.0  ;;  %v8022_v25 = vadd.f32 %v13984_v47, %v7870_v19  ;;  %8674 = vmatprep.subr.bf16.mxu0 %v11893_v13  ;;  %v8082_v4 = vmax.f32 %v8018_v43, 0.0  ;;  %v14035_v43 = vrot.slane %v7958_v22, %v12955_v23 }
 0x7d7   : > { %v8085_v36 = vmax.f32 %v8021_v39, 0.0  ;;  %v8084_v35 = vmax.f32 %v8020_v46, 0.0  ;;  %v14038_v9 = vrot.slane %v7958_v22, %v14547_v49  ;;  %v14041_v2 = vrot.slane %v7958_v22, %v14546_v62  ;;  %v11900_v46 = vld [vmem:[#allocation17 + $0x160] ss:$8 sps:$4 sm:$0xff]  }
 0x7d8   : > { %v8135_v57 = vpack.c.bf16 %v8083_v44, %v8079_v20  ;;  %v8086_v60 = vmax.f32 %v8022_v25, 0.0  ;;  %v14046_v19 = vrot.slane %v7958_v22, %v14548_v18 }
 0x7d9   : > { %v14018_v24 = vpack.c.bf16 %v8085_v36, %v8081_v8  ;;  %v8136_v17 = vpack.c.bf16 %v8084_v35, %v8080_v29  ;;  %8675 = vmatpush1.bf16.msra.mxu0 %v11891_v6  ;;  %v7761_v54 = vpop.f32.mrb[132].mxu0 }
 0x7da   : > { %v14020_v59 = vpack.c.bf16 %v8086_v60, %v8082_v4  ;;  %v8023_v11 = vadd.f32 %v13975_v52, %v7761_v54  ;;  %v7874_v21 = vpop.f32.mrb[148].mxu1  ;;  %v7763_v45 = vpop.f32.mrb[133].mxu0  ;;  %8676 = vmatprep.subr.bf16.mxu0 %v11896_v48  ;;  %v11905_v48 = vld [vmem:[#allocation17 + $0x174] ss:$8 sps:$4 sm:$0xff]  }
 0x7db   : > { %v8025_v12 = vadd.f32 %v13981_v30, %v7874_v21  ;;  %v8024_v31 = vadd.f32 %v13978_v42, %v7763_v45  ;;  %v7876_v0 = vpop.f32.mrb[149].mxu1  ;;  %v7765_v61 = vpop.f32.mrb[134].mxu0  ;;  %8607 = vmatprep.mubr.bf16.mxu0 %v8136_v17  ;;  %v11903_v17 = vld [vmem:[#allocation17 + $0x170] ss:$8 sps:$4 sm:$0xff]   ;;  %v11908_v21 = vld [vmem:[#allocation17 + $0x184] ss:$8 sps:$4 sm:$0xff]  }
 0x7dc   : > { %v8026_v27 = vadd.f32 %v13984_v47, %v7876_v0  ;;  %v8027_v56 = vadd.f32 %v13975_v52, %v7765_v61  ;;  %v7878_v16 = vpop.f32.mrb[150].mxu1  ;;  %v7767_v63 = vpop.f32.mrb[135].mxu0  ;;  %8608 = vmatmul.mubr.bf16.gmra.mrb[160].mxu0 %v8135_v57  ;;  %v8087_v38 = vmax.f32 %v8023_v11, 0.0 }
 0x7dd   : > { %v8029_v26 = vadd.f32 %v13981_v30, %v7878_v16  ;;  %v8028_v13 = vadd.f32 %v13978_v42, %v7767_v63  ;;  %v7880_v51 = vpop.f32.mrb[151].mxu1  ;;  %8677 = vmatpush1.bf16.msra.mxu0 %v11894_v58  ;;  %v8089_v33 = vmax.f32 %v8025_v12, 0.0  ;;  %v8088_v53 = vmax.f32 %v8024_v31, 0.0  ;;  %v11906_v16 = vld [vmem:[#allocation17 + $0x180] ss:$8 sps:$4 sm:$0xff]  }
 0x7de   : > { %v8091_v41 = vmax.f32 %v8027_v56, 0.0  ;;  %v8030_v1 = vadd.f32 %v13984_v47, %v7880_v51  ;;  %8678 = vmatprep.subr.bf16.mxu0 %v11899_v50  ;;  %v8090_v30 = vmax.f32 %v8026_v27, 0.0 }
 0x7df   : > { %v8093_v52 = vmax.f32 %v8029_v26, 0.0  ;;  %v8092_v28 = vmax.f32 %v8028_v13, 0.0 }
 0x7e0   : > { %v8139_v3 = vpack.c.bf16 %v8091_v41, %v8087_v38  ;;  %v8094_v42 = vmax.f32 %v8030_v1, 0.0 }
 0x7e1   : > { %v14043_v47 = vpack.c.bf16 %v8093_v52, %v8089_v33  ;;  %v8140_v32 = vpack.c.bf16 %v8092_v28, %v8088_v53  ;;  %8679 = vmatpush1.bf16.msra.mxu0 %v11897_v7  ;;  %v7771_v39 = vpop.f32.mrb[136].mxu0  ;;  %v11911_v7 = vld [vmem:[#allocation17 + $0x194] ss:$8 sps:$4 sm:$0xff]  }
 0x7e2   : > { %v14048_v6 = vpack.c.bf16 %v8094_v42, %v8090_v30  ;;  %v8031_v20 = vadd.f32 %v14035_v43, %v7771_v39  ;;  %v7884_v44 = vpop.f32.mrb[152].mxu1  ;;  %v7773_v25 = vpop.f32.mrb[137].mxu0  ;;  %8680 = vmatprep.subr.bf16.mxu0 %v11902_v34 }
 0x7e3   : > { %v8033_v62 = vadd.f32 %v14041_v2, %v7884_v44  ;;  %v8032_v8 = vadd.f32 %v14038_v9, %v7773_v25  ;;  %v7886_v29 = vpop.f32.mrb[153].mxu1  ;;  %v7775_v36 = vpop.f32.mrb[138].mxu0  ;;  %8617 = vmatprep.mubr.bf16.mxu0 %v8140_v32  ;;  %v11909_v32 = vld [vmem:[#allocation17 + $0x190] ss:$8 sps:$4 sm:$0xff]   ;;  %v11914_v44 = vld [vmem:[#allocation17 + $0x1a4] ss:$8 sps:$4 sm:$0xff]  }
 0x7e4   : > { %v8034_v35 = vadd.f32 %v14046_v19, %v7886_v29  ;;  %v8035_v18 = vadd.f32 %v14035_v43, %v7775_v36  ;;  %v7888_v14 = vpop.f32.mrb[154].mxu1  ;;  %v7777_v4 = vpop.f32.mrb[139].mxu0  ;;  %8618 = vmatmul.mubr.bf16.gmra.mrb[164].mxu0 %v8139_v3  ;;  %v8095_v54 = vmax.f32 %v8031_v20, 0.0 }
 0x7e5   : > { %v8037_v57 = vadd.f32 %v14041_v2, %v7888_v14  ;;  %v8036_v60 = vadd.f32 %v14038_v9, %v7777_v4  ;;  %v7890_v10 = vpop.f32.mrb[155].mxu1  ;;  %8681 = vmatpush1.bf16.msra.mxu0 %v11900_v46  ;;  %v8097_v45 = vmax.f32 %v8033_v62, 0.0  ;;  %v8096_v50 = vmax.f32 %v8032_v8, 0.0 }
 0x7e6   : > { %v8099_v58 = vmax.f32 %v8035_v18, 0.0  ;;  %v8038_v11 = vadd.f32 %v14046_v19, %v7890_v10  ;;  %8682 = vmatprep.subr.bf16.mxu0 %v11905_v48  ;;  %v8098_v0 = vmax.f32 %v8034_v35, 0.0 }
 0x7e7   : > { %v8101_v12 = vmax.f32 %v8037_v57, 0.0  ;;  %v8100_v31 = vmax.f32 %v8036_v60, 0.0  ;;  %v11912_v57 = vld [vmem:[#allocation17 + $0x1a0] ss:$8 sps:$4 sm:$0xff]  }
 0x7e8   : > { %v8143_v61 = vpack.c.bf16 %v8099_v58, %v8095_v54  ;;  %v8102_v15 = vmax.f32 %v8038_v11, 0.0  ;;  %v11917_v58 = vld [vmem:[#allocation17 + $0x1b4] ss:$8 sps:$4 sm:$0xff]  }
 0x7e9   : > { %v14058_v22 = vpack.c.bf16 %v8101_v12, %v8097_v45  ;;  %v8144_v27 = vpack.c.bf16 %v8100_v31, %v8096_v50  ;;  %8683 = vmatpush1.bf16.msra.mxu0 %v11903_v17  ;;  %v7781_v56 = vpop.f32.mrb[140].mxu0 }
 0x7ea   : > { %v14060_v63 = vpack.c.bf16 %v8102_v15, %v8098_v0  ;;  %v8039_v26 = vadd.f32 %v14035_v43, %v7781_v56  ;;  %v7894_v13 = vpop.f32.mrb[156].mxu1  ;;  %v7783_v51 = vpop.f32.mrb[141].mxu0  ;;  %8684 = vmatprep.subr.bf16.mxu0 %v11908_v21 }
 0x7eb   : > { %v8041_v38 = vadd.f32 %v14041_v2, %v7894_v13  ;;  %v8040_v41 = vadd.f32 %v14038_v9, %v7783_v51  ;;  %v7896_v1 = vpop.f32.mrb[157].mxu1  ;;  %v7785_v34 = vpop.f32.mrb[142].mxu0  ;;  %8627 = vmatprep.mubr.bf16.mxu0 %v8144_v27 }
 0x7ec   : > { %v8042_v33 = vadd.f32 %v14046_v19, %v7896_v1  ;;  %v8043_v53 = vadd.f32 %v14035_v43, %v7785_v34  ;;  %v7898_v52 = vpop.f32.mrb[158].mxu1  ;;  %v7787_v28 = vpop.f32.mrb[143].mxu0  ;;  %8628 = vmatmul.mubr.bf16.gmra.mrb[168].mxu0 %v8143_v61  ;;  %v8103_v39 = vmax.f32 %v8039_v26, 0.0 }
 0x7ed   : > { %v8045_v30 = vadd.f32 %v14041_v2, %v7898_v52  ;;  %v8044_v3 = vadd.f32 %v14038_v9, %v7787_v28  ;;  %v7900_v42 = vpop.f32.mrb[159].mxu1  ;;  %8685 = vmatpush1.bf16.msra.mxu0 %v11906_v16  ;;  %v8105_v25 = vmax.f32 %v8041_v38, 0.0  ;;  %v8104_v48 = vmax.f32 %v8040_v41, 0.0  ;;  %v11915_v16 = vld [vmem:[#allocation17 + $0x1b0] ss:$8 sps:$4 sm:$0xff]  }
 0x7ee   : > { %v8107_v46 = vmax.f32 %v8043_v53, 0.0  ;;  %v8046_v20 = vadd.f32 %v14046_v19, %v7900_v42  ;;  %8686 = vmatprep.subr.bf16.mxu0 %v11911_v7  ;;  %v8106_v29 = vmax.f32 %v8042_v33, 0.0  ;;  %v11920_v7 = vld [vmem:[#allocation17 + $0x1c4] ss:$8 sps:$4 sm:$0xff]   ;;  %v11918_v42 = vld [vmem:[#allocation17 + $0x1c0] ss:$8 sps:$4 sm:$0xff]  }
 0x7ef   : > { %v8109_v62 = vmax.f32 %v8045_v30, 0.0  ;;  %v8108_v8 = vmax.f32 %v8044_v3, 0.0 }
 0x7f0   : > { %v8147_v36 = vpack.c.bf16 %v8107_v46, %v8103_v39  ;;  %v8110_v35 = vmax.f32 %v8046_v20, 0.0 }
 0x7f1   : > { %v14070_v18 = vpack.c.bf16 %v8109_v62, %v8105_v25  ;;  %v8148_v14 = vpack.c.bf16 %v8108_v8, %v8104_v48  ;;  %8687 = vmatpush1.bf16.msra.mxu0 %v11909_v32  ;;  %v7791_v4 = vpop.f32.mrb[144].mxu0 }
 0x7f2   : > { %v14072_v60 = vpack.c.bf16 %v8110_v35, %v8106_v29  ;;  %v8047_v10 = vadd.f32 %v14035_v43, %v7791_v4  ;;  %v7904_v17 = vpop.f32.mrb[160].mxu1  ;;  %v7793_v54 = vpop.f32.mrb[145].mxu0  ;;  %8688 = vmatprep.subr.bf16.mxu0 %v11914_v44  ;;  %v11923_v44 = vld [vmem:[#allocation17 + $0x1d4] ss:$8 sps:$4 sm:$0xff]  }
 0x7f3   : > { %v8049_v11 = vadd.f32 %v14041_v2, %v7904_v17  ;;  %v8048_v21 = vadd.f32 %v14038_v9, %v7793_v54  ;;  %v7906_v45 = vpop.f32.mrb[161].mxu1  ;;  %v7795_v50 = vpop.f32.mrb[146].mxu0  ;;  %8637 = vmatprep.mubr.bf16.mxu0 %v8148_v14  ;;  %v11921_v17 = vld [vmem:[#allocation17 + $0x1d0] ss:$8 sps:$4 sm:$0xff]  }
 0x7f4   : > { %v8050_v12 = vadd.f32 %v14046_v19, %v7906_v45  ;;  %v8051_v31 = vadd.f32 %v14035_v43, %v7795_v50  ;;  %v7908_v0 = vpop.f32.mrb[162].mxu1  ;;  %v7797_v61 = vpop.f32.mrb[147].mxu0  ;;  %8638 = vmatmul.mubr.bf16.gmra.mrb[172].mxu0 %v8147_v36  ;;  %v8111_v26 = vmax.f32 %v8047_v10, 0.0 }
 0x7f5   : > { %v8053_v15 = vadd.f32 %v14041_v2, %v7908_v0  ;;  %v8052_v27 = vadd.f32 %v14038_v9, %v7797_v61  ;;  %v7910_v56 = vpop.f32.mrb[163].mxu1  ;;  %8689 = vmatpush1.bf16.msra.mxu0 %v11912_v57  ;;  %v8113_v38 = vmax.f32 %v8049_v11, 0.0  ;;  %v8112_v41 = vmax.f32 %v8048_v21, 0.0  ;;  %v11926_v21 = vld [vmem:[#allocation17 + $0x1e4] ss:$8 sps:$4 sm:$0xff]  }
 0x7f6   : > { %v8115_v13 = vmax.f32 %v8051_v31, 0.0  ;;  %v8054_v51 = vadd.f32 %v14046_v19, %v7910_v56  ;;  %8690 = vmatprep.subr.bf16.mxu0 %v11917_v58  ;;  %v8114_v33 = vmax.f32 %v8050_v12, 0.0  ;;  %v11929_v56 = vld [vmem:[#allocation17 + $0x1f4] ss:$8 sps:$4 sm:$0xff]  }
 0x7f7   : > { %v8117_v1 = vmax.f32 %v8053_v15, 0.0  ;;  %v8116_v34 = vmax.f32 %v8052_v27, 0.0 }
 0x7f8   : > { %v8151_v53 = vpack.c.bf16 %v8115_v13, %v8111_v26  ;;  %v8118_v52 = vmax.f32 %v8054_v51, 0.0 }
 0x7f9   : > { %v14082_v28 = vpack.c.bf16 %v8117_v1, %v8113_v38  ;;  %v8152_v30 = vpack.c.bf16 %v8116_v34, %v8112_v41  ;;  %8691 = vmatpush1.bf16.msra.mxu0 %v11915_v16  ;;  %v7801_v3 = vpop.f32.mrb[148].mxu0 }
 0x7fa   : > { %v8154_v32 = vpack.c.bf16 %v8118_v52, %v8114_v33  ;;  %v8055_v39 = vadd.f32 %v14035_v43, %v7801_v3  ;;  %v7914_v46 = vpop.f32.mrb[164].mxu1  ;;  %v7803_v20 = vpop.f32.mrb[149].mxu0  ;;  %8692 = vmatprep.subr.bf16.mxu0 %v11920_v7  ;;  %v11947_v33 = vld [vmem:[%s14380_s17 + $0x8] sm:$0xff]  }
 0x7fb   : > { %v8057_v25 = vadd.f32 %v14041_v2, %v7914_v46  ;;  %v8056_v48 = vadd.f32 %v14038_v9, %v7803_v20  ;;  %v7916_v62 = vpop.f32.mrb[165].mxu1  ;;  %v7805_v8 = vpop.f32.mrb[150].mxu0  ;;  %8647 = vmatprep.mubr.bf16.mxu0 %v8152_v30 }
 0x7fc   : > { %v8058_v29 = vadd.f32 %v14046_v19, %v7916_v62  ;;  %v8059_v36 = vadd.f32 %v14035_v43, %v7805_v8  ;;  %v7918_v35 = vpop.f32.mrb[166].mxu1  ;;  %v7807_v14 = vpop.f32.mrb[151].mxu0  ;;  %8648 = vmatmul.mubr.bf16.gmra.mrb[176].mxu0 %v8151_v53  ;;  %v8119_v54 = vmax.f32 %v8055_v39, 0.0  ;;  %v11948_v39 = vld [vmem:[%s14380_s17 + $0x10] sm:$0xff]  }
 0x7fd   : > { %v8061_v4 = vadd.f32 %v14041_v2, %v7918_v35  ;;  %v8060_v57 = vadd.f32 %v14038_v9, %v7807_v14  ;;  %v7920_v10 = vpop.f32.mrb[167].mxu1  ;;  %8693 = vmatpush1.bf16.msra.mxu0 %v11918_v42  ;;  %v8121_v45 = vmax.f32 %v8057_v25, 0.0  ;;  %v8120_v50 = vmax.f32 %v8056_v48, 0.0  ;;  %v11924_v9 = vld [vmem:[#allocation17 + $0x1e0] ss:$8 sps:$4 sm:$0xff]  }
 0x7fe   : > { %v8123_v58 = vmax.f32 %v8059_v36, 0.0  ;;  %v8062_v11 = vadd.f32 %v14046_v19, %v7920_v10  ;;  %8694 = vmatprep.subr.bf16.mxu0 %v11923_v44  ;;  %v8122_v31 = vmax.f32 %v8058_v29, 0.0  ;;  %v11927_v19 = vld [vmem:[#allocation17 + $0x1f0] ss:$8 sps:$4 sm:$0xff]  }
 0x7ff   : > { %v8125_v12 = vmax.f32 %v8061_v4, 0.0  ;;  %v8124_v43 = vmax.f32 %v8060_v57, 0.0 }
 0x800   : > { %v8155_v0 = vpack.c.bf16 %v8123_v58, %v8119_v54  ;;  %v8126_v61 = vmax.f32 %v8062_v11, 0.0 }
 0x801   : > { %v8157_v15 = vpack.c.bf16 %v8125_v12, %v8121_v45  ;;  %v8156_v2 = vpack.c.bf16 %v8124_v43, %v8120_v50  ;;  %8695 = vmatpush1.bf16.msra.mxu0 %v11921_v17 }
 0x802   : > { %v8158_v27 = vpack.c.bf16 %v8126_v61, %v8122_v31  ;;  %8696 = vmatprep.subr.bf16.mxu0 %v11926_v21 }
 0x803   : > { %8657 = vmatprep.mubr.bf16.mxu0 %v8156_v2 }
 0x804   : > { %8658 = vmatmul.mubr.bf16.gmra.mrb[180].mxu0 %v8155_v0 }
 0x805   : > { %8697 = vmatpush1.bf16.msra.mxu0 %v11924_v9  ;;  %8700 = vmatprep.mubr.bf16.mxu0 %v13996_v37  ;;  %v11945_v37 = vld [vmem:[#allocation19 + $0x38] sm:$0xff]  }
 0x806   : > { %8698 = vmatprep.subr.bf16.mxu0 %v11929_v56 }
 0x809   : > { %8699 = vmatpush1.bf16.msra.mxu0 %v11927_v19 }
 0x80c   : > { %8701 = vmatmul.mubr.bf16.vlgmr.msra.gmra.mrb[152].mxu0 %v13994_v55  ;;  %v11944_v55 = vld [vmem:[#allocation19 + $0x78] sm:$0xff]  }
 0x80d   : > { %8710 = vmatprep.mubr.bf16.mxu0 %v14008_v40  ;;  %10503 = vmatprep.subr.bf16.mxu1 %v11944_v55  ;;  %v8223_v40 = vld [vmem:[%s14377_s14] sm:$0x3] }
 0x80e   : > { %10504 = vmatpush3.bf16.msra.mxu1 %v11945_v37 }
 0x814   : > { %8711 = vmatmul.mubr.bf16.gmra.mrb[156].mxu0 %v14006_v5  ;;  %v11946_v5 = vld [vmem:[%s14380_s17] sm:$0xff]  }
 0x815   : > { %8720 = vmatprep.mubr.bf16.mxu0 %v14020_v59  ;;  %10587 = vmatprep.subr.bf16.mxu1 %v11946_v5  ;;  %v14115_v59 = vrot.slane %v8223_v40, %v14547_v49 }
 0x81c   : > { %8721 = vmatmul.mubr.bf16.gmra.mrb[160].mxu0 %v14018_v24  ;;  %v14112_v24 = vrot.slane %v8223_v40, %v12955_v23 }
 0x81d   : > { %8730 = vmatprep.mubr.bf16.mxu0 %v14048_v6 }
 0x824   : > { %8731 = vmatmul.mubr.bf16.gmra.mrb[164].mxu0 %v14043_v47 }
 0x825   : > { %8740 = vmatprep.mubr.bf16.mxu0 %v14060_v63 }
 0x82c   : > { %8741 = vmatmul.mubr.bf16.gmra.mrb[168].mxu0 %v14058_v22 }
 0x82d   : > { %8750 = vmatprep.mubr.bf16.mxu0 %v14072_v60 }
 0x834   : > { %8751 = vmatmul.mubr.bf16.gmra.mrb[172].mxu0 %v14070_v18 }
 0x835   : > { %8760 = vmatprep.mubr.bf16.mxu0 %v8154_v32 }
 0x83c   : > { %8761 = vmatmul.mubr.bf16.gmra.mrb[176].mxu0 %v14082_v28 }
 0x83d   : > { %8770 = vmatprep.mubr.bf16.mxu0 %v8158_v27 }
 0x844   : > { %8771 = vmatmul.mubr.bf16.gmra.mrb[180].mxu0 %v8157_v15 }
 0x8df   : > { %v8702_v47 = vpop.f32.mrb[152].mxu0 }
 0x8e0   : > { %v10751_v6 = vadd.f32 %v8702_v47, %v14112_v24  ;;  %v8704_v22 = vpop.f32.mrb[153].mxu0 }
 0x8e1   : > { %v10752_v63 = vadd.f32 %v8704_v22, %v14115_v59  ;;  %v8706_v18 = vpop.f32.mrb[154].mxu0 }
 0x8e2   : > { %v10753_v60 = vadd.f32 %v8706_v18, %v14112_v24  ;;  %v8708_v16 = vpop.f32.mrb[155].mxu0  ;;  %v8781_v13 = vmax.f32 %v10751_v6, 0.0 }
 0x8e3   : > { %v10754_v26 = vadd.f32 %v8708_v16, %v14115_v59  ;;  %v8782_v7 = vmax.f32 %v10752_v63, 0.0 }
 0x8e4   : > { %v8783_v51 = vmax.f32 %v10753_v60, 0.0 }
 0x8e5   : > { %v8784_v23 = vmax.f32 %v10754_v26, 0.0 }
 0x8e6   : > { %v8813_v38 = vpack.c.bf16 %v8783_v51, %v8781_v13 }
 0x8e7   : > { %v8814_v41 = vpack.c.bf16 %v8784_v23, %v8782_v7  ;;  %v8712_v49 = vpop.f32.mrb[156].mxu0 }
 0x8e8   : > { %v10755_v1 = vadd.f32 %v8712_v49, %v14112_v24  ;;  %v8714_v34 = vpop.f32.mrb[157].mxu0 }
 0x8e9   : > { %v10756_v53 = vadd.f32 %v8714_v34, %v14115_v59  ;;  %v8716_v52 = vpop.f32.mrb[158].mxu0  ;;  %8996 = vmatprep.mubr.bf16.mxu1 %v8814_v41 }
 0x8ea   : > { %v10757_v28 = vadd.f32 %v8716_v52, %v14112_v24  ;;  %v8718_v30 = vpop.f32.mrb[159].mxu0  ;;  %8997 = vmatmul.mubr.bf16.vlgmr.msra.gmra.mrb[168].mxu1 %v8813_v38  ;;  %v8785_v42 = vmax.f32 %v10755_v1, 0.0 }
 0x8eb   : > { %v10758_v3 = vadd.f32 %v8718_v30, %v14115_v59  ;;  %10588 = vmatpush3.bf16.msra.mxu1 %v11946_v5  ;;  %v8786_v46 = vmax.f32 %v10756_v53, 0.0 }
 0x8ec   : > { %v8787_v32 = vmax.f32 %v10757_v28, 0.0  ;;  %10589 = vmatprep.subr.bf16.mxu1 %v11947_v33 }
 0x8ed   : > { %v8788_v20 = vmax.f32 %v10758_v3, 0.0 }
 0x8ee   : > { %v8815_v44 = vpack.c.bf16 %v8787_v32, %v8785_v42 }
 0x8ef   : > { %v8816_v25 = vpack.c.bf16 %v8788_v20, %v8786_v46  ;;  %v8722_v48 = vpop.f32.mrb[160].mxu0  ;;  %10590 = vmatpush3.bf16.msra.mxu1 %v11947_v33 }
 0x8f0   : > { %v10759_v62 = vadd.f32 %v8722_v48, %v14112_v24  ;;  %v8724_v8 = vpop.f32.mrb[161].mxu0  ;;  %10591 = vmatprep.subr.bf16.mxu1 %v11948_v39 }
 0x8f1   : > { %v10760_v29 = vadd.f32 %v8724_v8, %v14115_v59  ;;  %v8726_v36 = vpop.f32.mrb[162].mxu0  ;;  %9004 = vmatprep.mubr.bf16.mxu1 %v8816_v25 }
 0x8f2   : > { %v10761_v35 = vadd.f32 %v8726_v36, %v14112_v24  ;;  %v8728_v14 = vpop.f32.mrb[163].mxu0  ;;  %9005 = vmatmul.mubr.bf16.gmra.mrb[172].mxu1 %v8815_v44  ;;  %v8789_v57 = vmax.f32 %v10759_v62, 0.0 }
 0x8f3   : > { %v10762_v4 = vadd.f32 %v8728_v14, %v14115_v59  ;;  %10592 = vmatpush3.bf16.msra.mxu1 %v11948_v39  ;;  %v8790_v17 = vmax.f32 %v10760_v29, 0.0 }
 0x8f4   : > { %v8791_v10 = vmax.f32 %v10761_v35, 0.0 }
 0x8f5   : > { %v8792_v54 = vmax.f32 %v10762_v4, 0.0 }
 0x8f6   : > { %v8817_v58 = vpack.c.bf16 %v8791_v10, %v8789_v57 }
 0x8f7   : > { %v8818_v11 = vpack.c.bf16 %v8792_v54, %v8790_v17  ;;  %v8732_v21 = vpop.f32.mrb[164].mxu0 }
 0x8f8   : > { %v10763_v45 = vadd.f32 %v8732_v21, %v14112_v24  ;;  %v8734_v50 = vpop.f32.mrb[165].mxu0 }
 0x8f9   : > { %v10764_v12 = vadd.f32 %v8734_v50, %v14115_v59  ;;  %v8736_v43 = vpop.f32.mrb[166].mxu0  ;;  %9012 = vmatprep.mubr.bf16.mxu1 %v8818_v11 }
 0x8fa   : > { %v10765_v31 = vadd.f32 %v8736_v43, %v14112_v24  ;;  %v8738_v0 = vpop.f32.mrb[167].mxu0  ;;  %9013 = vmatmul.mubr.bf16.gmra.mrb[176].mxu1 %v8817_v58  ;;  %v8793_v15 = vmax.f32 %v10763_v45, 0.0 }
 0x8fb   : > { %v10766_v61 = vadd.f32 %v8738_v0, %v14115_v59  ;;  %v8794_v9 = vmax.f32 %v10764_v12, 0.0 }
 0x8fc   : > { %v8795_v2 = vmax.f32 %v10765_v31, 0.0 }
 0x8fd   : > { %v8796_v27 = vmax.f32 %v10766_v61, 0.0 }
 0x8fe   : > { %v8819_v56 = vpack.c.bf16 %v8795_v2, %v8793_v15  ;;  %v11949_v15 = vld [vmem:[%s14380_s17 + $0x18] sm:$0xff]   ;;  %v11952_v2 = vld [vmem:[%s14380_s17 + $0x30] sm:$0xff]  }
 0x8ff   : > { %v8820_v19 = vpack.c.bf16 %v8796_v27, %v8794_v9  ;;  %v8742_v55 = vpop.f32.mrb[168].mxu0  ;;  %10593 = vmatprep.subr.bf16.mxu1 %v11949_v15  ;;  %v11953_v9 = vld [vmem:[%s14380_s17 + $0x38] sm:$0xff]  }
 0x900   : > { %v10767_v37 = vadd.f32 %v8742_v55, %v14112_v24  ;;  %v8744_v5 = vpop.f32.mrb[169].mxu0  ;;  %10594 = vmatpush3.bf16.msra.mxu1 %v11949_v15 }
 0x901   : > { %v10768_v40 = vadd.f32 %v8744_v5, %v14115_v59  ;;  %v8746_v47 = vpop.f32.mrb[170].mxu0  ;;  %9020 = vmatprep.mubr.bf16.mxu1 %v8820_v19 }
 0x902   : > { %v10769_v6 = vadd.f32 %v8746_v47, %v14112_v24  ;;  %v8748_v22 = vpop.f32.mrb[171].mxu0  ;;  %9021 = vmatmul.mubr.bf16.gmra.mrb[180].mxu1 %v8819_v56  ;;  %v8797_v18 = vmax.f32 %v10767_v37, 0.0  ;;  %v14173_v56 = vld [vmem:[%s14567_s30] ss:$0 sm:$0xff]  ;;  %s12330_s30 = sshll.u32 %s12435_s8, 4  ;;  %s12331_s30 = int_to_ptr.vmem [resolvable:$false] %s12330_s30 }
 0x903   : > { %v10770_v63 = vadd.f32 %v8748_v22, %v14115_v59  ;;  %v8798_v16 = vmax.f32 %v10768_v40, 0.0  ;;  %s12332_s18 = scalar_lea.vmem %s12331_s30, 4096  ;;  %p12333_p5 = scmp.lt.s32.totalorder %s14315_s27, %s12331_s30 }
 0x904   : > { %v8799_v60 = vmax.f32 %v10769_v6, 0.0  ;;  %p12334_p9 = scmp.lt.s32.totalorder %s12332_s18, %s12326_s2 }
 0x905   : > { %v8800_v26 = vmax.f32 %v10770_v63, 0.0 }
 0x906   : > { %v8821_v13 = vpack.c.bf16 %v8799_v60, %v8797_v18  ;;  %p12335_p12 = por %p12334_p9, %p12333_p5 }
 0x907   : > { %v8822_v51 = vpack.c.bf16 %v8800_v26, %v8798_v16  ;;  %v8752_v7 = vpop.f32.mrb[172].mxu0 }
 0x908   : > { %v10771_v23 = vadd.f32 %v8752_v7, %v14112_v24  ;;  %v8754_v38 = vpop.f32.mrb[173].mxu0  ;;  %p12336_p10 = pnand %p12335_p12, %p12329_p6 }
 0x909   : > { %v10772_v41 = vadd.f32 %v8754_v38, %v14115_v59  ;;  %v8756_v49 = vpop.f32.mrb[174].mxu0  ;;  %9028 = vmatprep.mubr.bf16.mxu1 %v8822_v51 }
 0x90a   : > { %v10773_v1 = vadd.f32 %v8756_v49, %v14112_v24  ;;  %v8758_v34 = vpop.f32.mrb[175].mxu0  ;;  %9029 = vmatmul.mubr.bf16.gmra.mrb[184].mxu1 %v8821_v13  ;;  %v8801_v53 = vmax.f32 %v10771_v23, 0.0 }
 0x90b   : > { %v10774_v33 = vadd.f32 %v8758_v34, %v14115_v59  ;;  %v8802_v28 = vmax.f32 %v10772_v41, 0.0 }
 0x90c   : > { %v8803_v52 = vmax.f32 %v10773_v1, 0.0 }
 0x90d   : > { %v8804_v30 = vmax.f32 %v10774_v33, 0.0 }
 0x90e   : > { %v8823_v3 = vpack.c.bf16 %v8803_v52, %v8801_v53 }
 0x90f   : > { %v8824_v42 = vpack.c.bf16 %v8804_v30, %v8802_v28  ;;  %v8762_v32 = vpop.f32.mrb[176].mxu0 }
 0x910   : > { %v10775_v39 = vadd.f32 %v8762_v32, %v14112_v24  ;;  %v8764_v46 = vpop.f32.mrb[177].mxu0 }
 0x911   : > { %v10776_v20 = vadd.f32 %v8764_v46, %v14115_v59  ;;  %v8766_v44 = vpop.f32.mrb[178].mxu0  ;;  %9036 = vmatprep.mubr.bf16.mxu1 %v8824_v42 }
 0x912   : > { %v10777_v25 = vadd.f32 %v8766_v44, %v14112_v24  ;;  %v8768_v48 = vpop.f32.mrb[179].mxu0  ;;  %9037 = vmatmul.mubr.bf16.gmra.mrb[188].mxu1 %v8823_v3  ;;  %v8805_v8 = vmax.f32 %v10775_v39, 0.0 }
 0x913   : > { %v10778_v62 = vadd.f32 %v8768_v48, %v14115_v59  ;;  %v8806_v36 = vmax.f32 %v10776_v20, 0.0 }
 0x914   : > { %v8807_v29 = vmax.f32 %v10777_v25, 0.0 }
 0x915   : > { %v8808_v35 = vmax.f32 %v10778_v62, 0.0 }
 0x916   : > { %v8825_v14 = vpack.c.bf16 %v8807_v29, %v8805_v8 }
 0x917   : > { %v8826_v4 = vpack.c.bf16 %v8808_v35, %v8806_v36  ;;  %v8772_v57 = vpop.f32.mrb[180].mxu0 }
 0x918   : > { %v10779_v10 = vadd.f32 %v8772_v57, %v14112_v24  ;;  %v8774_v17 = vpop.f32.mrb[181].mxu0 }
 0x919   : > { %v10780_v54 = vadd.f32 %v8774_v17, %v14115_v59  ;;  %v8776_v58 = vpop.f32.mrb[182].mxu0  ;;  %9044 = vmatprep.mubr.bf16.mxu1 %v8826_v4 }
 0x91a   : > { %v10781_v11 = vadd.f32 %v8776_v58, %v14112_v24  ;;  %v8778_v21 = vpop.f32.mrb[183].mxu0  ;;  %9045 = vmatmul.mubr.bf16.gmra.mrb[192].mxu1 %v8825_v14  ;;  %v8809_v50 = vmax.f32 %v10779_v10, 0.0  ;;  %v11950_v24 = vld [vmem:[%s14380_s17 + $0x20] sm:$0xff]  }
 0x91b   : > { %v10782_v45 = vadd.f32 %v8778_v21, %v14115_v59  ;;  %v8810_v43 = vmax.f32 %v10780_v54, 0.0  ;;  %10595 = vmatprep.subr.bf16.mxu1 %v11950_v24  ;;  %v11951_v59 = vld [vmem:[%s14380_s17 + $0x28] sm:$0xff]  }
 0x91c   : > { %v8811_v12 = vmax.f32 %v10781_v11, 0.0  ;;  %10596 = vmatpush3.bf16.msra.mxu1 %v11950_v24 }
 0x91d   : > { %v8812_v31 = vmax.f32 %v10782_v45, 0.0  ;;  %10597 = vmatprep.subr.bf16.mxu1 %v11951_v59 }
 0x91e   : > { %v8827_v0 = vpack.c.bf16 %v8811_v12, %v8809_v50 }
 0x91f   : > { %v8828_v61 = vpack.c.bf16 %v8812_v31, %v8810_v43 }
 0x920   : > { %10598 = vmatpush3.bf16.msra.mxu1 %v11951_v59 }
 0x921   : > { %9052 = vmatprep.mubr.bf16.mxu1 %v8828_v61  ;;  %10599 = vmatprep.subr.bf16.mxu1 %v11952_v2 }
 0x922   : > { %9053 = vmatmul.mubr.bf16.gmra.mrb[196].mxu1 %v8827_v0 }
 0x924   : > { %10600 = vmatpush3.bf16.msra.mxu1 %v11952_v2 }
 0x925   : > { %10601 = vmatprep.subr.bf16.mxu1 %v11953_v9 }
 0x928   : > { %10602 = vmatpush3.bf16.msra.mxu1 %v11953_v9 }
 0x9bd   : > { %v10505_v27 = vpop.f32.mrb[168].mxu1 }
 0x9be   : > { %v10506_v19 = vpop.f32.mrb[169].mxu1 }
 0x9bf   : > { %v10507_v55 = vadd.f32 %v10506_v19, %v10505_v27  ;;  %v10508_v37 = vpop.f32.mrb[170].mxu1 }
 0x9c0   : > { %v10509_v5 = vpop.f32.mrb[171].mxu1 }
 0x9c1   : > { %v8999_v40 = vadd.f32 %v10507_v55, %v14173_v56  ;;  %v10510_v47 = vadd.f32 %v10509_v5, %v10508_v37 }
 0x9c3   : > { %v9002_v6 = vadd.f32 %v10510_v47, %v14173_v56  ;;  %v9061_v22 = vmax.f32 %v8999_v40, 0.0 }
 0x9c5   : > { %v9062_v63 = vmax.f32 %v9002_v6, 0.0  ;;  %v10511_v18 = vpop.f32.mrb[172].mxu1 }
 0x9c6   : > { %v10512_v60 = vpop.f32.mrb[173].mxu1 }
 0x9c7   : > { %v10513_v16 = vadd.f32 %v10512_v60, %v10511_v18  ;;  %v10514_v26 = vpop.f32.mrb[174].mxu1  ;;  %v9077_v13 = vpack.c.bf16 %v9062_v63, %v9061_v22 }
 0x9c8   : > { %v10515_v51 = vpop.f32.mrb[175].mxu1 }
 0x9c9   : > { %v9007_v7 = vadd.f32 %v10513_v16, %v14173_v56  ;;  %v10516_v23 = vadd.f32 %v10515_v51, %v10514_v26  ;;  %10603 = vmatprep.mubr.bf16.mxu1 %v9077_v13 }
 0x9cb   : > { %v9010_v38 = vadd.f32 %v10516_v23, %v14173_v56  ;;  %v9063_v41 = vmax.f32 %v9007_v7, 0.0 }
 0x9cd   : > { %v9064_v49 = vmax.f32 %v9010_v38, 0.0  ;;  %v10517_v1 = vpop.f32.mrb[176].mxu1 }
 0x9ce   : > { %v10518_v34 = vpop.f32.mrb[177].mxu1 }
 0x9cf   : > { %v9078_v33 = vpack.c.bf16 %v9064_v49, %v9063_v41  ;;  %v10519_v53 = vadd.f32 %v10518_v34, %v10517_v1  ;;  %v10520_v52 = vpop.f32.mrb[178].mxu1 }
 0x9d0   : > { %v10521_v28 = vpop.f32.mrb[179].mxu1 }
 0x9d1   : > { %v9015_v30 = vadd.f32 %v10519_v53, %v14173_v56  ;;  %v10522_v3 = vadd.f32 %v10521_v28, %v10520_v52  ;;  %10604 = vmatmul.mubr.bf16.vlgmr.msra.gmra.mrb[200].mxu1 %v9078_v33  ;;  %v10462_v52 = vld [vmem:[%s14568_s21] ss:$0 sm:$0xff] }
 0x9d3   : > { %v9018_v42 = vadd.f32 %v10522_v3, %v14173_v56  ;;  %v9065_v32 = vmax.f32 %v9015_v30, 0.0 }
 0x9d5   : > { %v9066_v39 = vmax.f32 %v9018_v42, 0.0  ;;  %v10523_v46 = vpop.f32.mrb[180].mxu1 }
 0x9d6   : > { %v10524_v20 = vpop.f32.mrb[181].mxu1 }
 0x9d7   : > { %v10525_v44 = vadd.f32 %v10524_v20, %v10523_v46  ;;  %v10526_v25 = vpop.f32.mrb[182].mxu1  ;;  %v9079_v48 = vpack.c.bf16 %v9066_v39, %v9065_v32 }
 0x9d8   : > { %v10527_v62 = vpop.f32.mrb[183].mxu1 }
 0x9d9   : > { %v9023_v8 = vadd.f32 %v10525_v44, %v14173_v56  ;;  %v10528_v29 = vadd.f32 %v10527_v62, %v10526_v25  ;;  %10607 = vmatprep.mubr.bf16.mxu1 %v9079_v48 }
 0x9db   : > { %v9026_v36 = vadd.f32 %v10528_v29, %v14173_v56  ;;  %v9067_v35 = vmax.f32 %v9023_v8, 0.0 }
 0x9dd   : > { %v9068_v14 = vmax.f32 %v9026_v36, 0.0  ;;  %v10529_v4 = vpop.f32.mrb[184].mxu1 }
 0x9de   : > { %v10530_v57 = vpop.f32.mrb[185].mxu1 }
 0x9df   : > { %v10531_v10 = vadd.f32 %v10530_v57, %v10529_v4  ;;  %v10532_v17 = vpop.f32.mrb[186].mxu1  ;;  %v9080_v54 = vpack.c.bf16 %v9068_v14, %v9067_v35 }
 0x9e0   : > { %v10533_v58 = vpop.f32.mrb[187].mxu1 }
 0x9e1   : > { %v9031_v11 = vadd.f32 %v10531_v10, %v14173_v56  ;;  %v10534_v21 = vadd.f32 %v10533_v58, %v10532_v17  ;;  %10608 = vmatmul.mubr.bf16.gmra.mrb[204].mxu1 %v9080_v54 }
 0x9e3   : > { %v9034_v45 = vadd.f32 %v10534_v21, %v14173_v56  ;;  %v9069_v50 = vmax.f32 %v9031_v11, 0.0 }
 0x9e5   : > { %v9070_v12 = vmax.f32 %v9034_v45, 0.0  ;;  %v10535_v43 = vpop.f32.mrb[188].mxu1 }
 0x9e6   : > { %v10536_v31 = vpop.f32.mrb[189].mxu1 }
 0x9e7   : > { %v10537_v0 = vadd.f32 %v10536_v31, %v10535_v43  ;;  %v10538_v61 = vpop.f32.mrb[190].mxu1  ;;  %v9081_v15 = vpack.c.bf16 %v9070_v12, %v9069_v50 }
 0x9e8   : > { %v10539_v24 = vpop.f32.mrb[191].mxu1 }
 0x9e9   : > { %v9039_v59 = vadd.f32 %v10537_v0, %v14173_v56  ;;  %v10540_v2 = vadd.f32 %v10539_v24, %v10538_v61  ;;  %10611 = vmatprep.mubr.bf16.mxu1 %v9081_v15 }
 0x9eb   : > { %v9042_v9 = vadd.f32 %v10540_v2, %v14173_v56  ;;  %v9071_v27 = vmax.f32 %v9039_v59, 0.0 }
 0x9ed   : > { %v9072_v19 = vmax.f32 %v9042_v9, 0.0  ;;  %v10541_v55 = vpop.f32.mrb[192].mxu1 }
 0x9ee   : > { %v10542_v37 = vpop.f32.mrb[193].mxu1 }
 0x9ef   : > { %v10543_v5 = vadd.f32 %v10542_v37, %v10541_v55  ;;  %v10544_v40 = vpop.f32.mrb[194].mxu1  ;;  %v9082_v47 = vpack.c.bf16 %v9072_v19, %v9071_v27 }
 0x9f0   : > { %v10545_v6 = vpop.f32.mrb[195].mxu1 }
 0x9f1   : > { %v9047_v22 = vadd.f32 %v10543_v5, %v14173_v56  ;;  %v10546_v63 = vadd.f32 %v10545_v6, %v10544_v40  ;;  %10612 = vmatmul.mubr.bf16.gmra.mrb[208].mxu1 %v9082_v47 }
 0x9f3   : > { %v9050_v18 = vadd.f32 %v10546_v63, %v14173_v56  ;;  %v9073_v60 = vmax.f32 %v9047_v22, 0.0 }
 0x9f5   : > { %v9074_v16 = vmax.f32 %v9050_v18, 0.0  ;;  %v10547_v26 = vpop.f32.mrb[196].mxu1 }
 0x9f6   : > { %v10548_v13 = vpop.f32.mrb[197].mxu1 }
 0x9f7   : > { %v10549_v51 = vadd.f32 %v10548_v13, %v10547_v26  ;;  %v10550_v7 = vpop.f32.mrb[198].mxu1  ;;  %v9083_v23 = vpack.c.bf16 %v9074_v16, %v9073_v60 }
 0x9f8   : > { %v10551_v38 = vpop.f32.mrb[199].mxu1 }
 0x9f9   : > { %v9055_v41 = vadd.f32 %v10549_v51, %v14173_v56  ;;  %v10552_v49 = vadd.f32 %v10551_v38, %v10550_v7  ;;  %10615 = vmatprep.mubr.bf16.mxu1 %v9083_v23 }
 0x9fb   : > { %v9058_v1 = vadd.f32 %v10552_v49, %v14173_v56  ;;  %v9075_v34 = vmax.f32 %v9055_v41, 0.0 }
 0x9fd   : > { %v9076_v33 = vmax.f32 %v9058_v1, 0.0 }
 0x9ff   : > { %v9084_v53 = vpack.c.bf16 %v9076_v33, %v9075_v34 }
 0xa01   : > { %10616 = vmatmul.mubr.bf16.gmra.mrb[212].mxu1 %v9084_v53 }
 0xaa4   : > { %v10605_v28 = vpop.f32.mrb[200].mxu1 }
 0xaa5   : > { %v9199_v30 = vadd.f32 %v10605_v28, %v10462_v52  ;;  %v9190_v3 = vpop.f32.mrb[201].mxu1 }
 0xaa6   : > { %v9191_v42 = vadd.f32 %v10462_v52, %v9190_v3  ;;  %v10606_v32 = vpop.f32.mrb[202].mxu1 }
 0xaa7   : > { %9257 = vmax.xlane.f32.xlu1 %v9199_v30  ;;  %v9193_v39 = vpop.f32.mrb[203].mxu1  ;;  %v9202_v46 = vadd.f32 %v10606_v32, %v10462_v52 }
 0xaa8   : > { %9253 = vmax.xlane.f32.xlu0 %v9191_v42  ;;  %v9194_v20 = vadd.f32 %v10462_v52, %v9193_v39 }
 0xaab   : > { %9259 = vmax.xlane.f32.xlu1 %v9202_v46 }
 0xaac   : > { %9255 = vmax.xlane.f32.xlu0 %v9194_v20 }
 0xab4   : > { %v10609_v56 = vpop.f32.mrb[204].mxu1 }
 0xab5   : > { %v9215_v44 = vadd.f32 %v10609_v56, %v10462_v52  ;;  %v9206_v25 = vpop.f32.mrb[205].mxu1 }
 0xab6   : > { %v10610_v48 = vpop.f32.mrb[206].mxu1  ;;  %v9207_v29 = vadd.f32 %v10462_v52, %v9206_v25 }
 0xab7   : > { %v9218_v62 = vadd.f32 %v10610_v48, %v10462_v52  ;;  %v9209_v8 = vpop.f32.mrb[207].mxu1  ;;  %9265 = vmax.xlane.f32.xlu0 %v9215_v44 }
 0xab8   : > { %v9210_v36 = vadd.f32 %v10462_v52, %v9209_v8 }
 0xab9   : > { %9267 = vmax.xlane.f32.xlu1 %v9218_v62 }
 0xabb   : > { %9261 = vmax.xlane.f32.xlu0 %v9207_v29 }
 0xabd   : > { %9263 = vmax.xlane.f32.xlu1 %v9210_v36 }
 0xac4   : > { %v10613_v35 = vpop.f32.mrb[208].mxu1 }
 0xac5   : > { %v14194_v14 = vadd.f32 %v10613_v35, %v10462_v52  ;;  %v9222_v4 = vpop.f32.mrb[209].mxu1 }
 0xac6   : > { %v10614_v57 = vpop.f32.mrb[210].mxu1  ;;  %v14199_v54 = vadd.f32 %v10462_v52, %v9222_v4 }
 0xac7   : > { %v14196_v10 = vadd.f32 %v10614_v57, %v10462_v52  ;;  %v9225_v17 = vpop.f32.mrb[211].mxu1  ;;  %9273 = vmax.xlane.f32.xlu0 %v14194_v14 }
 0xac8   : > { %v14202_v58 = vadd.f32 %v10462_v52, %v9225_v17 }
 0xac9   : > { %9275 = vmax.xlane.f32.xlu1 %v14196_v10 }
 0xacb   : > { %9269 = vmax.xlane.f32.xlu0 %v14199_v54 }
 0xacd   : > { %9271 = vmax.xlane.f32.xlu1 %v14202_v58 }
 0xad4   : > { %v10617_v11 = vpop.f32.mrb[212].mxu1 }
 0xad5   : > { %v9238_v21 = vpop.f32.mrb[213].mxu1  ;;  %v14211_v31 = vadd.f32 %v10617_v11, %v10462_v52 }
 0xad6   : > { %v14206_v45 = vadd.f32 %v10462_v52, %v9238_v21  ;;  %v10618_v50 = vpop.f32.mrb[214].mxu1 }
 0xad7   : > { %v9241_v12 = vpop.f32.mrb[215].mxu1  ;;  %v14214_v0 = vadd.f32 %v10618_v50, %v10462_v52 }
 0xad8   : > { %v14208_v43 = vadd.f32 %v10462_v52, %v9241_v12  ;;  %9277 = vmax.xlane.f32.xlu0 %v14206_v45 }
 0xada   : > { %9279 = vmax.xlane.f32.xlu1 %v14208_v43 }
 0xadc   : > { %9281 = vmax.xlane.f32.xlu0 %v14211_v31 }
 0xade   : > { %9283 = vmax.xlane.f32.xlu1 %v14214_v0 }
 0xb34   : > { %v9258_v61 = vpop.xlane.xlu1 %9257 }
 0xb35   : > { %v14218_v15 = vsub.f32 %v9199_v30, %v9258_v61  ;;  %v9254_v24 = vpop.xlane.xlu0 %9253 }
 0xb36   : > { %v14220_v59 = vsub.f32 %v9191_v42, %v9254_v24 }
 0xb37   : > { %v9305_v2 = vmul.f32 1.442695, %v14218_v15 }
 0xb38   : > { %v9301_v9 = vmul.f32 1.442695, %v14220_v59  ;;  %v9260_v27 = vpop.xlane.xlu1 %9259 }
 0xb39   : > { %11954 = vpow2.f32 %v9305_v2  ;;  %v14224_v19 = vsub.f32 %v9202_v46, %v9260_v27  ;;  %v9256_v55 = vpop.xlane.xlu0 %9255 }
 0xb3a   : > { %v14226_v37 = vsub.f32 %v9194_v20, %v9256_v55  ;;  %11956 = vpow2.f32 %v9301_v9 }
 0xb3b   : > { %v9307_v5 = vmul.f32 1.442695, %v14224_v19 }
 0xb3c   : > { %v9303_v40 = vmul.f32 1.442695, %v14226_v37 }
 0xb3d   : > { %11958 = vpow2.f32 %v9307_v5 }
 0xb3e   : > { %11960 = vpow2.f32 %v9303_v40 }
 0xb43   : > { %v11955_v47 = vpop.eup %11954 }
 0xb44   : > { %9337 = vadd.xlane.f32.xlu0 %v11955_v47  ;;  %v9266_v6 = vpop.xlane.xlu0 %9265  ;;  %v11957_v63 = vpop.eup %11956 }
 0xb45   : > { %v14230_v22 = vsub.f32 %v9215_v44, %v9266_v6 }
 0xb46   : > { %v9268_v18 = vpop.xlane.xlu1 %9267 }
 0xb47   : > { %v11959_v60 = vpop.eup %11958  ;;  %v9313_v16 = vmul.f32 1.442695, %v14230_v22  ;;  %v14233_v26 = vsub.f32 %v9218_v62, %v9268_v18 }
 0xb48   : > { %9339 = vadd.xlane.f32.xlu1 %v11959_v60  ;;  %9333 = vadd.xlane.f32.xlu0 %v11957_v63  ;;  %v9262_v13 = vpop.xlane.xlu0 %9261  ;;  %v11961_v38 = vpop.eup %11960 }
 0xb49   : > { %11962 = vpow2.f32 %v9313_v16  ;;  %v9315_v51 = vmul.f32 1.442695, %v14233_v26  ;;  %v14236_v7 = vsub.f32 %v9207_v29, %v9262_v13 }
 0xb4a   : > { %v9264_v23 = vpop.xlane.xlu1 %9263 }
 0xb4b   : > { %11964 = vpow2.f32 %v9315_v51  ;;  %v9309_v41 = vmul.f32 1.442695, %v14236_v7  ;;  %v14239_v49 = vsub.f32 %v9210_v36, %v9264_v23 }
 0xb4c   : > { %9335 = vadd.xlane.f32.xlu1 %v11961_v38 }
 0xb4d   : > { %11966 = vpow2.f32 %v9309_v41  ;;  %v9311_v1 = vmul.f32 1.442695, %v14239_v49 }
 0xb4f   : > { %11968 = vpow2.f32 %v9311_v1 }
 0xb53   : > { %v11963_v34 = vpop.eup %11962 }
 0xb54   : > { %9345 = vadd.xlane.f32.xlu0 %v11963_v34  ;;  %v9274_v33 = vpop.xlane.xlu0 %9273 }
 0xb55   : > { %v11965_v53 = vpop.eup %11964  ;;  %v14243_v52 = vsub.f32 %v14194_v14, %v9274_v33 }
 0xb56   : > { %v9276_v28 = vpop.xlane.xlu1 %9275  ;;  %9347 = vadd.xlane.f32.xlu1 %v11965_v53 }
 0xb57   : > { %v11967_v30 = vpop.eup %11966  ;;  %v9321_v3 = vmul.f32 1.442695, %v14243_v52  ;;  %v14247_v42 = vsub.f32 %v14196_v10, %v9276_v28 }
 0xb58   : > { %9341 = vadd.xlane.f32.xlu0 %v11967_v30  ;;  %v9270_v32 = vpop.xlane.xlu0 %9269 }
 0xb59   : > { %v11969_v39 = vpop.eup %11968  ;;  %11970 = vpow2.f32 %v9321_v3  ;;  %v9323_v46 = vmul.f32 1.442695, %v14247_v42  ;;  %v14251_v20 = vsub.f32 %v14199_v54, %v9270_v32 }
 0xb5a   : > { %v9272_v56 = vpop.xlane.xlu1 %9271  ;;  %9343 = vadd.xlane.f32.xlu1 %v11969_v39 }
 0xb5b   : > { %11972 = vpow2.f32 %v9323_v46  ;;  %v9317_v44 = vmul.f32 1.442695, %v14251_v20  ;;  %v14255_v25 = vsub.f32 %v14202_v58, %v9272_v56 }
 0xb5d   : > { %11974 = vpow2.f32 %v9317_v44  ;;  %v9319_v48 = vmul.f32 1.442695, %v14255_v25 }
 0xb5f   : > { %11976 = vpow2.f32 %v9319_v48 }
 0xb63   : > { %v11971_v62 = vpop.eup %11970 }
 0xb64   : > { %9353 = vadd.xlane.f32.xlu0 %v11971_v62 }
 0xb65   : > { %v11973_v8 = vpop.eup %11972  ;;  %v9278_v29 = vpop.xlane.xlu0 %9277 }
 0xb66   : > { %v14259_v36 = vsub.f32 %v14206_v45, %v9278_v29  ;;  %9355 = vadd.xlane.f32.xlu1 %v11973_v8 }
 0xb67   : > { %v11975_v35 = vpop.eup %11974  ;;  %v9280_v14 = vpop.xlane.xlu1 %9279 }
 0xb68   : > { %v9325_v4 = vmul.f32 1.442695, %v14259_v36  ;;  %v14263_v57 = vsub.f32 %v14208_v43, %v9280_v14  ;;  %9349 = vadd.xlane.f32.xlu0 %v11975_v35 }
 0xb69   : > { %v11977_v10 = vpop.eup %11976  ;;  %v9282_v17 = vpop.xlane.xlu0 %9281 }
 0xb6a   : > { %11978 = vpow2.f32 %v9325_v4  ;;  %v9327_v54 = vmul.f32 1.442695, %v14263_v57  ;;  %v14267_v58 = vsub.f32 %v14211_v31, %v9282_v17  ;;  %9351 = vadd.xlane.f32.xlu1 %v11977_v10 }
 0xb6b   : > { %v9284_v11 = vpop.xlane.xlu1 %9283 }
 0xb6c   : > { %11980 = vpow2.f32 %v9327_v54  ;;  %v9329_v21 = vmul.f32 1.442695, %v14267_v58  ;;  %v14271_v45 = vsub.f32 %v14214_v0, %v9284_v11 }
 0xb6e   : > { %11982 = vpow2.f32 %v9329_v21  ;;  %v9331_v50 = vmul.f32 1.442695, %v14271_v45 }
 0xb70   : > { %11984 = vpow2.f32 %v9331_v50 }
 0xb74   : > { %v11979_v12 = vpop.eup %11978 }
 0xb75   : > { %9357 = vadd.xlane.f32.xlu0 %v11979_v12 }
 0xb76   : > { %v11981_v43 = vpop.eup %11980 }
 0xb77   : > { %9359 = vadd.xlane.f32.xlu1 %v11981_v43 }
 0xb78   : > { %v11983_v31 = vpop.eup %11982 }
 0xb79   : > { %9361 = vadd.xlane.f32.xlu0 %v11983_v31 }
 0xb7a   : > { %v11985_v61 = vpop.eup %11984 }
 0xb7b   : > { %9363 = vadd.xlane.f32.xlu1 %v11985_v61 }
 0xbd1   : > { %v9338_v24 = vpop.xlane.xlu0 %9337 }
 0xbd2   : > { %11986 = vlog2.f32 %v9338_v24 }
 0xbd5   : > { %v9340_v2 = vpop.xlane.xlu1 %9339  ;;  %v9334_v9 = vpop.xlane.xlu0 %9333 }
 0xbd6   : > { %11988 = vlog2.f32 %v9340_v2 }
 0xbd7   : > { %11990 = vlog2.f32 %v9334_v9 }
 0xbd9   : > { %v9336_v0 = vpop.xlane.xlu1 %9335 }
 0xbda   : > { %11992 = vlog2.f32 %v9336_v0 }
 0xbdc   : > { %v11987_v27 = vpop.eup %11986 }
 0xbdd   : > { %v9370_v55 = vmul.f32 0.6931472, %v11987_v27 }
 0xbdf   : > { %v9399_v5 = vsub.f32 %v14218_v15, %v9370_v55 }
 0xbe0   : > { %v11989_v40 = vpop.eup %11988 }
 0xbe1   : > { %v11991_v47 = vpop.eup %11990  ;;  %9415 = vst [vmem:[%s14278_s16 + $0x10] sm:$0xff] %v9399_v5  ;;  %v9372_v6 = vmul.f32 0.6931472, %v11989_v40  ;;  %v9346_v63 = vpop.xlane.xlu0 %9345 }
 0xbe2   : > { %v9366_v18 = vmul.f32 0.6931472, %v11991_v47  ;;  %11994 = vlog2.f32 %v9346_v63 }
 0xbe3   : > { %v9400_v60 = vsub.f32 %v14224_v19, %v9372_v6  ;;  %v9348_v16 = vpop.xlane.xlu1 %9347 }
 0xbe4   : > { %v11993_v13 = vpop.eup %11992  ;;  %v9397_v51 = vsub.f32 %v14220_v59, %v9366_v18  ;;  %11996 = vlog2.f32 %v9348_v16 }
 0xbe5   : > { %9416 = vst [vmem:[%s14278_s16 + $0x18] sm:$0xff] %v9400_v60  ;;  %v9368_v15 = vmul.f32 0.6931472, %v11993_v13  ;;  %v9342_v23 = vpop.xlane.xlu0 %9341 }
 0xbe6   : > { %9413 = vst [vmem:[%s14278_s16] sm:$0xff] %v9397_v51  ;;  %11998 = vlog2.f32 %v9342_v23 }
 0xbe7   : > { %v9398_v38 = vsub.f32 %v14226_v37, %v9368_v15  ;;  %v9344_v41 = vpop.xlane.xlu1 %9343 }
 0xbe8   : > { %12000 = vlog2.f32 %v9344_v41 }
 0xbe9   : > { %9414 = vst [vmem:[%s14278_s16 + $0x8] sm:$0xff] %v9398_v38 }
 0xbec   : > { %v11995_v1 = vpop.eup %11994 }
 0xbed   : > { %v9378_v34 = vmul.f32 0.6931472, %v11995_v1 }
 0xbee   : > { %v11997_v19 = vpop.eup %11996 }
 0xbef   : > { %v9403_v33 = vsub.f32 %v14230_v22, %v9378_v34  ;;  %v9380_v59 = vmul.f32 0.6931472, %v11997_v19 }
 0xbf0   : > { %v11999_v53 = vpop.eup %11998 }
 0xbf1   : > { %9419 = vst [vmem:[%s14278_s16 + $0x30] sm:$0xff] %v9403_v33  ;;  %v9404_v28 = vsub.f32 %v14233_v26, %v9380_v59  ;;  %v9374_v30 = vmul.f32 0.6931472, %v11999_v53  ;;  %v9354_v3 = vpop.xlane.xlu0 %9353 }
 0xbf2   : > { %v12001_v32 = vpop.eup %12000  ;;  %12002 = vlog2.f32 %v9354_v3 }
 0xbf3   : > { %9420 = vst [vmem:[%s14278_s16 + $0x38] sm:$0xff] %v9404_v28  ;;  %v9401_v37 = vsub.f32 %v14236_v7, %v9374_v30  ;;  %v9376_v39 = vmul.f32 0.6931472, %v12001_v32  ;;  %v9356_v46 = vpop.xlane.xlu1 %9355 }
 0xbf4   : > { %12004 = vlog2.f32 %v9356_v46 }
 0xbf5   : > { %9417 = vst [vmem:[%s14278_s16 + $0x20] sm:$0xff] %v9401_v37  ;;  %v9402_v22 = vsub.f32 %v14239_v49, %v9376_v39  ;;  %v9350_v56 = vpop.xlane.xlu0 %9349 }
 0xbf6   : > { %12006 = vlog2.f32 %v9350_v56 }
 0xbf7   : > { %9418 = vst [vmem:[%s14278_s16 + $0x28] sm:$0xff] %v9402_v22  ;;  %v9352_v44 = vpop.xlane.xlu1 %9351 }
 0xbf8   : > { %12008 = vlog2.f32 %v9352_v44 }
 0xbfc   : > { %v12003_v26 = vpop.eup %12002 }
 0xbfd   : > { %v9386_v48 = vmul.f32 0.6931472, %v12003_v26 }
 0xbfe   : > { %v12005_v62 = vpop.eup %12004 }
 0xbff   : > { %v9407_v8 = vsub.f32 %v14243_v52, %v9386_v48  ;;  %v9388_v7 = vmul.f32 0.6931472, %v12005_v62 }
 0xc00   : > { %v12007_v29 = vpop.eup %12006 }
 0xc01   : > { %9423 = vst [vmem:[%s14278_s16 + $0x50] sm:$0xff] %v9407_v8  ;;  %v9408_v35 = vsub.f32 %v14247_v42, %v9388_v7  ;;  %v9382_v14 = vmul.f32 0.6931472, %v12007_v29 }
 0xc02   : > { %v12009_v49 = vpop.eup %12008  ;;  %v9358_v4 = vpop.xlane.xlu0 %9357 }
 0xc03   : > { %9424 = vst [vmem:[%s14278_s16 + $0x58] sm:$0xff] %v9408_v35  ;;  %v9405_v10 = vsub.f32 %v14251_v20, %v9382_v14  ;;  %v9384_v17 = vmul.f32 0.6931472, %v12009_v49  ;;  %12010 = vlog2.f32 %v9358_v4 }
 0xc04   : > { %v9360_v54 = vpop.xlane.xlu1 %9359 }
 0xc05   : > { %9421 = vst [vmem:[%s14278_s16 + $0x40] sm:$0xff] %v9405_v10  ;;  %v9406_v11 = vsub.f32 %v14255_v25, %v9384_v17  ;;  %12012 = vlog2.f32 %v9360_v54 }
 0xc06   : > { %v9362_v52 = vpop.xlane.xlu0 %9361 }
 0xc07   : > { %9422 = vst [vmem:[%s14278_s16 + $0x48] sm:$0xff] %v9406_v11  ;;  %12014 = vlog2.f32 %v9362_v52 }
 0xc08   : > { %v9364_v42 = vpop.xlane.xlu1 %9363 }
 0xc09   : > { %12016 = vlog2.f32 %v9364_v42 }
 0xc0d   : > { %v12011_v21 = vpop.eup %12010 }
 0xc0e   : > { %v9390_v50 = vmul.f32 0.6931472, %v12011_v21 }
 0xc0f   : > { %v12013_v20 = vpop.eup %12012 }
 0xc10   : > { %v9409_v12 = vsub.f32 %v14259_v36, %v9390_v50  ;;  %v9392_v43 = vmul.f32 0.6931472, %v12013_v20 }
 0xc11   : > { %v12015_v31 = vpop.eup %12014 }
 0xc12   : > { %9425 = vst [vmem:[%s14278_s16 + $0x60] sm:$0xff] %v9409_v12  ;;  %v9410_v25 = vsub.f32 %v14263_v57, %v9392_v43  ;;  %v9394_v61 = vmul.f32 0.6931472, %v12015_v31 }
 0xc13   : > { %v12017_v24 = vpop.eup %12016 }
 0xc14   : > { %9426 = vst [vmem:[%s14278_s16 + $0x68] sm:$0xff] %v9410_v25  ;;  %v9411_v2 = vsub.f32 %v14267_v58, %v9394_v61  ;;  %v9396_v9 = vmul.f32 0.6931472, %v12017_v24 }
 0xc16   : > { %9427 = vst [vmem:[%s14278_s16 + $0x70] sm:$0xff] %v9411_v2  ;;  %v9412_v36 = vsub.f32 %v14271_v45, %v9396_v9 }
 0xc18   : > { %9428 = vst [vmem:[%s14278_s16 + $0x78] sm:$0xff] %v9412_v36 }
 0xc19   : > { %12339 = shalt.err (!%p12336_p10)
}
 0xc1a   : > { %s12340_s20 = scalar_lea.hbm %s14313_s28, 2048  ;;  %s12344_s6 = scalar_lea.hbm %s14572_s24, 4096 }
 0xc1b   : > { %p12341_p2 = scmp.ne.s32.totalorder %s14313_s28, %s12340_s20  ;;  %p12345_p7 = scmp.lt.u32.totalorder %s14313_s28, %s14572_s24 }
 0xc1c   : > { %p12346_p8 = scmp.lt.u32.totalorder %s12344_s6, %s12340_s20  ;;  %p12348_p13 = scmp.lt.u32.totalorder %s12340_s20, %s14313_s28 }
 0xc1d   : > { %p12342_p3 = pnand %p12341_p2, %p14573_p0 }
 0xc1e   : > { %p12347_p11 = por %p12346_p8, %p12345_p7 }
 0xc1f   : > { %p12343_p4 = pneg %p12342_p3 }
 0xc20   : > { %p12349_p1 = por %p12348_p13, %p12347_p11 }
 0xc22   : > { %p12350_p6 = pnand %p12349_p1, %p12343_p4 }
 0xc24   : > { %12353 = shalt.err (!%p12350_p6)
}
 0xc25   : > { %s12436_s19 = smov 128   ;;  %s12437_s22 = smov 8  }
 0xc26   : > { %11011 = dma.vmem_to_hbm [thread:$0]  (%p14573_p0), %s14315_s27, 2048, %s14313_s28, %s14322_s1, %s12436_s19, %s12436_s19, %s12437_s22  }
 0xc27 PF: > { %s14574_s23 = sld [smem:[#allocation31_spill]]  ;;  %s14575_s0 = sld [smem:[#allocation28_spill]] }
 0xc28   : > { %s14576_s2 = sld [smem:[#allocation35_spill]] }
 0xc2d   : > { %p11073_p5 = scmp.ge.s32.totalorder %s14574_s23, 2  ;;  %s9459_s8 = sand.u32 1, %s14575_s0  }
 0xc2e   : > { %p14577_p9 = scmp.ne.s32.totalorder %s14576_s2, 0  ;;  %s9460_s30 = scalar_lea.sflag [#allocation4], %s9459_s8 }
 0xc30   : > { %p11048_p12 = pnand %p11073_p5, %p14577_p9 }
 0xc32   : > { %12395 = dma.done.wait (!%p11048_p12), %s9460_s30, 2048  }
 0xc33   : > { %12397 = vsyncadd (!%p11048_p12), %s9460_s30, 4294965248  ;;  %s14578_s21 = sld [smem:[#allocation32_spill]]  ;;  %s14579_s0 = sld [smem:[#allocation29_spill]] }
 0xc34   : > { %s14580_s30 = sld [smem:[#allocation30_spill]]  ;;  %s14581_s20 = sld [smem:[#allocation33_spill]] }
 0xc39   : > { %p35_p10 = scmp.ge.s32.totalorder %s14578_s21, 4  }
 0xc3b   :  { %37 = sbr.rel (!%p35_p10) target bundleno = 20 (0x14), region = 176 }
 0xc42   :  { %9465 = vsyncpa [#allocation3], 1 }
 0xc43   :  { %9467 = vsyncpa [#allocation3 + $0x1], 1 }
 0xc44   :  { %9468 = vsyncpa [#allocation6], 1 }
 0xc45   :  { %9469 = vsyncpa [#allocation9], 1 }
 0xc46   :  { %9470 = vsyncpa [#allocation12], 1 }
 0xc47   :  { %9471 = vsyncpa [#allocation15], 1 }
 0xc48   :  { %9472 = vsyncpa [#allocation18], 1 }
 0xc49   :  { %9473 = vsyncpa [#allocation4], 1 }
 0xc4a   :  { %9475 = vsyncpa [#allocation4 + $0x1], 1 }

</bundles_post_ra>
